<compile_context>
chip_gen: v7x
topology: tpu7x:2x2x1
jax: 0.10.0
libtpu: 0.0.40
codegen_flags: <defaults>
</compile_context>

<pallas_src>
import functools

import numpy as np

import jax
import jax.numpy as jnp
from jax.experimental import pallas as pl
from jax.experimental.pallas import tpu as pltpu

NF = 96                 # Wcompute hidden width (instantiated with nf=96)
LEAKY_SLOPE = 0.01      # F.leaky_relu default negative_slope
NUM_GNN_LAYERS = 2      # GNN_nl hidden layers (+ 1 final layer)
N_LAYERS_TOTAL = NUM_GNN_LAYERS + 1
BN_EPS = 1e-5

F_SLOT = 128                        # lane-aligned feature slot per layer
F_TOT = F_SLOT * N_LAYERS_TOTAL     # 384: input slot + one slot per hidden layer
NF_PAD = 128                        # 96  -> 128
NF2_PAD = 256                       # 192 -> 256
NEG_DIAG = -1e8                     # matches PyTorch's `W_new - eye * 1e8`
NEG_PAD = -1e9                      # kills padded lanes (j >= N) in the softmax

WEIGHT_NAMES = ("W1", "B1", "W2", "B2", "W3", "B3", "W4", "B4",
                "WLR", "BL", "WFA", "WFB", "BFC")


def _leaky(v):
    return jnp.where(v >= 0, v, LEAKY_SLOPE * v)


# ----------------------------------------------------------------------------
# Fused Pallas kernel: all GNN layers, whole batch, single invocation.
# ----------------------------------------------------------------------------
def _fused_gnn_kernel(nodes_ref,
                      w1_ref, b1_ref, w2_ref, b2_ref, w3_ref, b3_ref,
                      w4_ref, b4_ref, wlr_ref, bl_ref, wfa_ref, wfb_ref, bfc_ref,
                      r1_ref, r2_ref, s1_ref, lane1h_ref, maskc_ref, sel_ref,
                      out_ref, *, n_layers):
    f32 = jnp.float32
    bf16 = jnp.bfloat16

    # Hoisted once (never re-read inside the per-layer loop).
    xf = nodes_ref[...]                 # (G, F_SLOT) f32 node features, G = bs*N
    r1 = r1_ref[...]                    # (P, G): pair (b,i,j) -> row (b,i), P = G*N
    r2 = r2_ref[...]                    # (P, G): pair (b,i,j) -> row (b,j)
    s1 = s1_ref[...]                    # (G, P): segment-sum over j
    lane1h = lane1h_ref[...]            # (P, 128): one-hot of j on the lane axis
    maskc = maskc_ref[...]              # (G, 128): -1e8 on diag, -1e9 on pad lanes
    sel0 = sel_ref[...]                 # (bs, G): node-0 row selector

    for l in range(n_layers + 1):       # statically unrolled: 3 layers
        k = F_SLOT * (l + 1)            # active width of the feature slab

        # ---- Wcompute: all-pairs |x_i - x_j| scores for the whole batch ----
        xi = jnp.dot(r1, xf, preferred_element_type=f32)        # (P, k) rows x_{b,i}
        xj = jnp.dot(r2, xf, preferred_element_type=f32)        # (P, k) rows x_{b,j}
        d = jnp.abs(xi - xj).astype(bf16)

        h = _leaky(jnp.dot(d, w1_ref[l][:k, :],
                           preferred_element_type=f32) + b1_ref[l])
        h = _leaky(jnp.dot(h.astype(bf16), w2_ref[l],
                           preferred_element_type=f32) + b2_ref[l])
        h = _leaky(jnp.dot(h.astype(bf16), w3_ref[l],
                           preferred_element_type=f32) + b3_ref[l])
        h = _leaky(jnp.dot(h.astype(bf16), w4_ref[l],
                           preferred_element_type=f32) + b4_ref[l])
        # conv2d_last folded into a lane-replicated 128-wide matmul (no width-1 MXU op):
        # every lane of p holds the pair's score.
        p = jnp.dot(h.astype(bf16), wlr_ref[l], preferred_element_type=f32)  # (P, 128)

        # Scatter scores to (G, 128): lane j of row (b,i) = score(i,j).  Bias bl is
        # uniform over j so it cancels in the softmax, kept only for faithfulness.
        s2 = jnp.dot(s1, p * lane1h, preferred_element_type=f32) + bl_ref[l]
        s2 = s2 + maskc                                           # diag + pad-lane mask
        # softmax over j (f32 throughout)
        mx = jnp.max(s2, axis=-1, keepdims=True)
        e = jnp.exp(s2 - mx)
        a2 = e * pl.reciprocal(jnp.sum(e, axis=-1, keepdims=True), approx=True)

        # ---- adjacency aggregation: (A x)[b,i] = sum_j A[b,i,j] * x[b,j] ----
        a_pair = jnp.sum(jnp.dot(r1, a2, preferred_element_type=f32) * lane1h,
                         axis=-1, keepdims=True)                  # (P, 1) = A[b,i,j]
        ax = jnp.dot(s1, a_pair * xj, preferred_element_type=f32)  # (G, k)

        # ---- Gconv (J2 operators [Id, A]): y = x Wfa + (A x) Wfb + b ----
        wfa = wfa_ref[l][:k, :]
        wfb = wfb_ref[l][:k, :]
        if l < n_layers:
            y = (jnp.dot(xf.astype(bf16), wfa, preferred_element_type=f32)
                 + jnp.dot(ax.astype(bf16), wfb, preferred_element_type=f32)
                 + bfc_ref[l])
            # grow the feature slab on a 128-aligned lane boundary (GNN_nl concat)
            xf = jnp.concatenate([xf, _leaky(y)], axis=-1)
        else:
            # final Gconv (bn_bool=False, no leaky); only node 0 of each batch item.
            x0 = jnp.dot(sel0, xf, preferred_element_type=f32)     # (bs, k)
            ax0 = jnp.dot(sel0, ax, preferred_element_type=f32)    # (bs, k)
            out_ref[...] = (jnp.dot(x0.astype(bf16), wfa, preferred_element_type=f32)
                            + jnp.dot(ax0.astype(bf16), wfb, preferred_element_type=f32)
                            + bfc_ref[l])


def _make_index_constants(bs, n):
    """Tiny 0/1 matrices that express pair expansion / segment sum / selection
    as lane-dense matmuls (avoids in-kernel reshapes and gathers)."""
    G = bs * n
    P = G * n
    m = np.arange(P)
    g_of_pair = m // n                      # row (b, i) of each pair
    j_of_pair = m % n
    b_of_pair = m // (n * n)
    r1 = np.zeros((P, G), np.float32)
    r1[m, g_of_pair] = 1.0
    r2 = np.zeros((P, G), np.float32)
    r2[m, b_of_pair * n + j_of_pair] = 1.0
    s1 = np.ascontiguousarray(r1.T)         # segment-sum over j
    lane1h = np.zeros((P, F_SLOT), np.float32)
    lane1h[m, j_of_pair] = 1.0
    maskc = np.full((G, F_SLOT), NEG_PAD, np.float32)
    maskc[:, :n] = 0.0
    maskc[np.arange(G), np.arange(G) % n] = NEG_DIAG
    sel0 = np.zeros((bs, G), np.float32)
    sel0[np.arange(bs), np.arange(bs) * n] = 1.0
    return [jnp.asarray(r1), jnp.asarray(r2), jnp.asarray(s1),
            jnp.asarray(lane1h), jnp.asarray(maskc), jnp.asarray(sel0)]


def fused_gnn_forward(nodes_flat, params, *, bs, n_nodes):
    """nodes_flat: (bs*N, 128) f32 -> node-0 logits padded to (bs, 128) f32."""
    consts = _make_index_constants(bs, n_nodes)
    weights = [params[k] for k in WEIGHT_NAMES]
    kernel = functools.partial(_fused_gnn_kernel, n_layers=NUM_GNN_LAYERS)
    return pl.pallas_call(
        kernel,
        out_shape=jax.ShapeDtypeStruct((bs, F_SLOT), jnp.float32),
        compiler_params=pltpu.CompilerParams(vmem_limit_bytes=32 * 1024 * 1024),
    )(nodes_flat, *weights, *consts)


# ----------------------------------------------------------------------------
# Deterministic parameter construction (shapes from the PyTorch module),
# padded / stacked for the fused kernel.
# ----------------------------------------------------------------------------
def _linear(key, fan_in, fan_out):
    kw, kb = jax.random.split(key)
    bound = 1.0 / (fan_in ** 0.5)
    w = jax.random.uniform(kw, (fan_in, fan_out), jnp.float32, -bound, bound)
    b = jax.random.uniform(kb, (1, fan_out), jnp.float32, -bound, bound)
    return w, b


def _fold_bn(key, w, b):
    """Fold eval-mode BatchNorm (mean=0, var=1, learned gamma/beta) into (w, b)."""
    kg, kb = jax.random.split(key)
    c = w.shape[1]
    gamma = 1.0 + 0.1 * jax.random.normal(kg, (c,), jnp.float32)
    beta = 0.1 * jax.random.normal(kb, (c,), jnp.float32)
    scale = gamma / jnp.sqrt(1.0 + BN_EPS)
    return w * scale[None, :], b * scale[None, :] + beta[None, :]


def _make_layer_raw(key, f_in, f_out, *, bn_fc):
    """One Wcompute (ratio [2,2,1,1], nf=NF) + one Gconv (2*f_in -> f_out)."""
    keys = jax.random.split(key, 6)
    dims = [(f_in, 2 * NF), (2 * NF, 2 * NF), (2 * NF, NF), (NF, NF)]
    p = {}
    for i, (di, do) in enumerate(dims):
        w, b = _linear(keys[i], di, do)
        w, b = _fold_bn(jax.random.fold_in(keys[i], 7), w, b)     # BN2d folded
        p[f"w{i + 1}"], p[f"b{i + 1}"] = w, b
    p["wl"], p["bl"] = _linear(keys[4], NF, 1)                    # conv2d_last
    wfc, bfc = _linear(keys[5], 2 * f_in, f_out)                  # Gconv fc (J=2)
    if bn_fc:
        wfc, bfc = _fold_bn(jax.random.fold_in(keys[5], 7), wfc, bfc)  # BN1d
    p["wfa"], p["wfb"] = wfc[:f_in, :], wfc[f_in:, :]
    p["bfc"] = bfc
    return p


def _pad_cols(a, n):
    return jnp.pad(a, ((0, 0), (0, n - a.shape[1])))


def _pad_rows(a, n):
    return jnp.pad(a, ((0, n - a.shape[0]), (0, 0)))


def _scatter_rows_to_slab(w, parts):
    """Place row-block p (size parts[p]) of w at slab row offset p*F_SLOT (zeros elsewhere)."""
    out = jnp.zeros((F_TOT, w.shape[1]), jnp.float32)
    src = 0
    for p, f in enumerate(parts):
        out = out.at[p * F_SLOT: p * F_SLOT + f, :].set(w[src: src + f, :])
        src += f
    return out


def make_metric_model_params(key, emb_size, class_size):
    num_inputs = emb_size + class_size
    raws, parts_list = [], []
    f_in, parts = num_inputs, [num_inputs]
    for i in range(NUM_GNN_LAYERS):
        raws.append(_make_layer_raw(jax.random.fold_in(key, i), f_in, NF // 2, bn_fc=True))
        parts_list.append(list(parts))
        f_in += NF // 2
        parts = parts + [NF // 2]
    raws.append(_make_layer_raw(jax.random.fold_in(key, 100), f_in, class_size, bn_fc=False))
    parts_list.append(list(parts))

    acc = {name: [] for name in WEIGHT_NAMES}
    for raw, parts in zip(raws, parts_list):
        acc["W1"].append(_pad_cols(_scatter_rows_to_slab(raw["w1"], parts), NF2_PAD))
        acc["B1"].append(_pad_cols(raw["b1"], NF2_PAD))
        acc["W2"].append(_pad_cols(_pad_rows(raw["w2"], NF2_PAD), NF2_PAD))
        acc["B2"].append(_pad_cols(raw["b2"], NF2_PAD))
        acc["W3"].append(_pad_cols(_pad_rows(raw["w3"], NF2_PAD), NF_PAD))
        acc["B3"].append(_pad_cols(raw["b3"], NF_PAD))
        acc["W4"].append(_pad_cols(_pad_rows(raw["w4"], NF_PAD), NF_PAD))
        acc["B4"].append(_pad_cols(raw["b4"], NF_PAD))
        acc["WLR"].append(jnp.tile(_pad_rows(raw["wl"], NF_PAD), (1, NF_PAD)))  # (128, 128)
        acc["BL"].append(raw["bl"])                                             # (1, 1)
        acc["WFA"].append(_pad_cols(_scatter_rows_to_slab(raw["wfa"], parts), F_SLOT))
        acc["WFB"].append(_pad_cols(_scatter_rows_to_slab(raw["wfb"], parts), F_SLOT))
        acc["BFC"].append(_pad_cols(raw["bfc"], F_SLOT))

    bf16_names = {"W1", "W2", "W3", "W4", "WLR", "WFA", "WFB"}
    params = {name: jnp.stack(acc[name]).astype(
                  jnp.bfloat16 if name in bf16_names else jnp.float32)
              for name in WEIGHT_NAMES}
    params["num_classes"] = class_size
    return params


# ----------------------------------------------------------------------------
# MetricModel.forward  (gnn_iclr_forward)
# ----------------------------------------------------------------------------
def metric_model_forward(inputs, params):
    z, zi_s, labels_yi = inputs
    zero_pad = jnp.zeros_like(labels_yi[0])                 # zeros for query node
    labels = [zero_pad] + list(labels_yi)
    zs = [z] + list(zi_s)
    nodes = jnp.stack(
        [jnp.concatenate([zi, lab], axis=1) for zi, lab in zip(zs, labels)],
        axis=1).astype(jnp.float32)                         # (bs, N, emb + classes)
    bs, n_nodes, f0 = nodes.shape
    nodes_flat = jnp.pad(nodes.reshape(bs * n_nodes, f0),
                         ((0, 0), (0, F_SLOT - f0)))        # lane-pad to 128
    logits_pad = fused_gnn_forward(nodes_flat, params, bs=bs, n_nodes=n_nodes)
    logits = logits_pad[:, :params["num_classes"]]          # GNN_nl returns node 0
    # .squeeze(-1) in the PyTorch code is a no-op for class_size > 1
    outputs = jax.nn.sigmoid(logits)                        # F.sigmoid
    return outputs, logits


if __name__ == "__main__":
    key = jax.random.PRNGKey(0)
    batch, emb_size, class_size, n_support = 2, 32, 4, 5

    k_param, k_z, k_zi, k_lab = jax.random.split(key, 4)
    params = make_metric_model_params(k_param, emb_size, class_size)

    z = jax.random.normal(k_z, (batch, emb_size), jnp.float32)
    zi_s = [jax.random.normal(jax.random.fold_in(k_zi, i),
                              (batch, emb_size), jnp.float32)
            for i in range(n_support)]
    labels_yi = [jax.nn.one_hot(
        jax.random.randint(jax.random.fold_in(k_lab, i), (batch,), 0, class_size),
        class_size, dtype=jnp.float32) for i in range(n_support)]

    outputs, logits = metric_model_forward([z, zi_s, labels_yi], params)
    outputs = jax.block_until_ready(outputs)
    logits = jax.block_until_ready(logits)

    assert outputs.shape == (batch, class_size)
    assert logits.shape == (batch, class_size)
    assert bool(jnp.all(jnp.isfinite(logits)))
    print("KERNEL_OK")
</pallas_src>

<mosaic_0001>
module attributes {stable_mosaic.version = 11 : i64} {
  func.func @_fused_gnn_kernel(%arg0: memref<12x128xf32, #tpu.memory_space<vmem>>, %arg1: memref<3x384x256xbf16, #tpu.memory_space<vmem>>, %arg2: memref<3x1x256xf32, #tpu.memory_space<vmem>>, %arg3: memref<3x256x256xbf16, #tpu.memory_space<vmem>>, %arg4: memref<3x1x256xf32, #tpu.memory_space<vmem>>, %arg5: memref<3x256x128xbf16, #tpu.memory_space<vmem>>, %arg6: memref<3x1x128xf32, #tpu.memory_space<vmem>>, %arg7: memref<3x128x128xbf16, #tpu.memory_space<vmem>>, %arg8: memref<3x1x128xf32, #tpu.memory_space<vmem>>, %arg9: memref<3x128x128xbf16, #tpu.memory_space<vmem>>, %arg10: memref<3x1x1xf32, #tpu.memory_space<vmem>>, %arg11: memref<3x384x128xbf16, #tpu.memory_space<vmem>>, %arg12: memref<3x384x128xbf16, #tpu.memory_space<vmem>>, %arg13: memref<3x1x128xf32, #tpu.memory_space<vmem>>, %arg14: memref<72x12xf32, #tpu.memory_space<vmem>>, %arg15: memref<72x12xf32, #tpu.memory_space<vmem>>, %arg16: memref<12x72xf32, #tpu.memory_space<vmem>>, %arg17: memref<72x128xf32, #tpu.memory_space<vmem>>, %arg18: memref<12x128xf32, #tpu.memory_space<vmem>>, %arg19: memref<2x12xf32, #tpu.memory_space<vmem>>, %arg20: memref<2x128xf32, #tpu.memory_space<vmem>>) attributes {dimension_semantics = [], scalar_prefetch = 0 : i64, scratch_operands = 0 : i64, tpu.core_type = #tpu.core_type<tc>} {
    %c0 = arith.constant 0 : index
    %c0_0 = arith.constant 0 : index
    %0 = vector.load %arg0[%c0, %c0_0] : memref<12x128xf32, #tpu.memory_space<vmem>>, vector<12x128xf32>
    %c0_1 = arith.constant 0 : index
    %c0_2 = arith.constant 0 : index
    %1 = vector.load %arg14[%c0_1, %c0_2] : memref<72x12xf32, #tpu.memory_space<vmem>>, vector<72x12xf32>
    %c0_3 = arith.constant 0 : index
    %c0_4 = arith.constant 0 : index
    %2 = vector.load %arg15[%c0_3, %c0_4] : memref<72x12xf32, #tpu.memory_space<vmem>>, vector<72x12xf32>
    %c0_5 = arith.constant 0 : index
    %c0_6 = arith.constant 0 : index
    %3 = vector.load %arg16[%c0_5, %c0_6] : memref<12x72xf32, #tpu.memory_space<vmem>>, vector<12x72xf32>
    %c0_7 = arith.constant 0 : index
    %c0_8 = arith.constant 0 : index
    %4 = vector.load %arg17[%c0_7, %c0_8] : memref<72x128xf32, #tpu.memory_space<vmem>>, vector<72x128xf32>
    %c0_9 = arith.constant 0 : index
    %c0_10 = arith.constant 0 : index
    %5 = vector.load %arg18[%c0_9, %c0_10] : memref<12x128xf32, #tpu.memory_space<vmem>>, vector<12x128xf32>
    %c0_11 = arith.constant 0 : index
    %c0_12 = arith.constant 0 : index
    %6 = vector.load %arg19[%c0_11, %c0_12] : memref<2x12xf32, #tpu.memory_space<vmem>>, vector<2x12xf32>
    %cst = arith.constant dense<0.000000e+00> : vector<72x128xf32>
    %7 = tpu.matmul %1, %0, %cst {dimension_numbers = #tpu.dot_dimension_numbers<[1], [0], [0], [1], [0, 0, 1, 1], [], []>} : vector<72x12xf32>, vector<12x128xf32>, vector<72x128xf32> -> vector<72x128xf32>
    %cst_13 = arith.constant dense<0.000000e+00> : vector<72x128xf32>
    %8 = tpu.matmul %2, %0, %cst_13 {dimension_numbers = #tpu.dot_dimension_numbers<[1], [0], [0], [1], [0, 0, 1, 1], [], []>} : vector<72x12xf32>, vector<12x128xf32>, vector<72x128xf32> -> vector<72x128xf32>
    %9 = arith.subf %7, %8 : vector<72x128xf32>
    %10 = math.absf %9 : vector<72x128xf32>
    %11 = arith.truncf %10 : vector<72x128xf32> to vector<72x128xbf16>
    %c0_14 = arith.constant 0 : index
    %c0_15 = arith.constant 0 : index
    %c0_16 = arith.constant 0 : index
    %12 = vector.load %arg1[%c0_14, %c0_15, %c0_16] : memref<3x384x256xbf16, #tpu.memory_space<vmem>>, vector<1x384x256xbf16>
    %13 = vector.shape_cast %12 : vector<1x384x256xbf16> to vector<384x256xbf16>
    %14 = vector.extract_strided_slice %13 {offsets = [0, 0], sizes = [128, 256], strides = [1, 1]} : vector<384x256xbf16> to vector<128x256xbf16>
    %cst_17 = arith.constant dense<0.000000e+00> : vector<72x256xf32>
    %15 = tpu.matmul %11, %14, %cst_17 {dimension_numbers = #tpu.dot_dimension_numbers<[1], [0], [0], [1], [0, 0, 1, 1], [], []>} : vector<72x128xbf16>, vector<128x256xbf16>, vector<72x256xf32> -> vector<72x256xf32>
    %c0_18 = arith.constant 0 : index
    %c0_19 = arith.constant 0 : index
    %c0_20 = arith.constant 0 : index
    %16 = vector.load %arg2[%c0_18, %c0_19, %c0_20] : memref<3x1x256xf32, #tpu.memory_space<vmem>>, vector<1x1x256xf32>
    %17 = vector.shape_cast %16 : vector<1x1x256xf32> to vector<1x256xf32>
    %18 = vector.broadcast %17 : vector<1x256xf32> to vector<72x256xf32>
    %19 = arith.addf %15, %18 : vector<72x256xf32>
    %cst_21 = arith.constant 0.000000e+00 : f32
    %20 = vector.broadcast %cst_21 : f32 to vector<72x256xf32>
    %21 = arith.cmpf oge, %19, %20 : vector<72x256xf32>
    %cst_22 = arith.constant 0.00999999977 : f32
    %22 = vector.broadcast %cst_22 : f32 to vector<72x256xf32>
    %23 = arith.mulf %22, %19 : vector<72x256xf32>
    %24 = arith.select %21, %19, %23 : vector<72x256xi1>, vector<72x256xf32>
    %25 = arith.truncf %24 : vector<72x256xf32> to vector<72x256xbf16>
    %c0_23 = arith.constant 0 : index
    %c0_24 = arith.constant 0 : index
    %c0_25 = arith.constant 0 : index
    %26 = vector.load %arg3[%c0_23, %c0_24, %c0_25] : memref<3x256x256xbf16, #tpu.memory_space<vmem>>, vector<1x256x256xbf16>
    %27 = vector.shape_cast %26 : vector<1x256x256xbf16> to vector<256x256xbf16>
    %cst_26 = arith.constant dense<0.000000e+00> : vector<72x256xf32>
    %28 = tpu.matmul %25, %27, %cst_26 {dimension_numbers = #tpu.dot_dimension_numbers<[1], [0], [0], [1], [0, 0, 1, 1], [], []>} : vector<72x256xbf16>, vector<256x256xbf16>, vector<72x256xf32> -> vector<72x256xf32>
    %c0_27 = arith.constant 0 : index
    %c0_28 = arith.constant 0 : index
    %c0_29 = arith.constant 0 : index
    %29 = vector.load %arg4[%c0_27, %c0_28, %c0_29] : memref<3x1x256xf32, #tpu.memory_space<vmem>>, vector<1x1x256xf32>
    %30 = vector.shape_cast %29 : vector<1x1x256xf32> to vector<1x256xf32>
    %31 = vector.broadcast %30 : vector<1x256xf32> to vector<72x256xf32>
    %32 = arith.addf %28, %31 : vector<72x256xf32>
    %cst_30 = arith.constant 0.000000e+00 : f32
    %33 = vector.broadcast %cst_30 : f32 to vector<72x256xf32>
    %34 = arith.cmpf oge, %32, %33 : vector<72x256xf32>
    %cst_31 = arith.constant 0.00999999977 : f32
    %35 = vector.broadcast %cst_31 : f32 to vector<72x256xf32>
    %36 = arith.mulf %35, %32 : vector<72x256xf32>
    %37 = arith.select %34, %32, %36 : vector<72x256xi1>, vector<72x256xf32>
    %38 = arith.truncf %37 : vector<72x256xf32> to vector<72x256xbf16>
    %c0_32 = arith.constant 0 : index
    %c0_33 = arith.constant 0 : index
    %c0_34 = arith.constant 0 : index
    %39 = vector.load %arg5[%c0_32, %c0_33, %c0_34] : memref<3x256x128xbf16, #tpu.memory_space<vmem>>, vector<1x256x128xbf16>
    %40 = vector.shape_cast %39 : vector<1x256x128xbf16> to vector<256x128xbf16>
    %cst_35 = arith.constant dense<0.000000e+00> : vector<72x128xf32>
    %41 = tpu.matmul %38, %40, %cst_35 {dimension_numbers = #tpu.dot_dimension_numbers<[1], [0], [0], [1], [0, 0, 1, 1], [], []>} : vector<72x256xbf16>, vector<256x128xbf16>, vector<72x128xf32> -> vector<72x128xf32>
    %c0_36 = arith.constant 0 : index
    %c0_37 = arith.constant 0 : index
    %c0_38 = arith.constant 0 : index
    %42 = vector.load %arg6[%c0_36, %c0_37, %c0_38] : memref<3x1x128xf32, #tpu.memory_space<vmem>>, vector<1x1x128xf32>
    %43 = vector.shape_cast %42 : vector<1x1x128xf32> to vector<1x128xf32>
    %44 = vector.broadcast %43 : vector<1x128xf32> to vector<72x128xf32>
    %45 = arith.addf %41, %44 : vector<72x128xf32>
    %cst_39 = arith.constant 0.000000e+00 : f32
    %46 = vector.broadcast %cst_39 : f32 to vector<72x128xf32>
    %47 = arith.cmpf oge, %45, %46 : vector<72x128xf32>
    %cst_40 = arith.constant 0.00999999977 : f32
    %48 = vector.broadcast %cst_40 : f32 to vector<72x128xf32>
    %49 = arith.mulf %48, %45 : vector<72x128xf32>
    %50 = arith.select %47, %45, %49 : vector<72x128xi1>, vector<72x128xf32>
    %51 = arith.truncf %50 : vector<72x128xf32> to vector<72x128xbf16>
    %c0_41 = arith.constant 0 : index
    %c0_42 = arith.constant 0 : index
    %c0_43 = arith.constant 0 : index
    %52 = vector.load %arg7[%c0_41, %c0_42, %c0_43] : memref<3x128x128xbf16, #tpu.memory_space<vmem>>, vector<1x128x128xbf16>
    %53 = vector.shape_cast %52 : vector<1x128x128xbf16> to vector<128x128xbf16>
    %cst_44 = arith.constant dense<0.000000e+00> : vector<72x128xf32>
    %54 = tpu.matmul %51, %53, %cst_44 {dimension_numbers = #tpu.dot_dimension_numbers<[1], [0], [0], [1], [0, 0, 1, 1], [], []>} : vector<72x128xbf16>, vector<128x128xbf16>, vector<72x128xf32> -> vector<72x128xf32>
    %c0_45 = arith.constant 0 : index
    %c0_46 = arith.constant 0 : index
    %c0_47 = arith.constant 0 : index
    %55 = vector.load %arg8[%c0_45, %c0_46, %c0_47] : memref<3x1x128xf32, #tpu.memory_space<vmem>>, vector<1x1x128xf32>
    %56 = vector.shape_cast %55 : vector<1x1x128xf32> to vector<1x128xf32>
    %57 = vector.broadcast %56 : vector<1x128xf32> to vector<72x128xf32>
    %58 = arith.addf %54, %57 : vector<72x128xf32>
    %cst_48 = arith.constant 0.000000e+00 : f32
    %59 = vector.broadcast %cst_48 : f32 to vector<72x128xf32>
    %60 = arith.cmpf oge, %58, %59 : vector<72x128xf32>
    %cst_49 = arith.constant 0.00999999977 : f32
    %61 = vector.broadcast %cst_49 : f32 to vector<72x128xf32>
    %62 = arith.mulf %61, %58 : vector<72x128xf32>
    %63 = arith.select %60, %58, %62 : vector<72x128xi1>, vector<72x128xf32>
    %64 = arith.truncf %63 : vector<72x128xf32> to vector<72x128xbf16>
    %c0_50 = arith.constant 0 : index
    %c0_51 = arith.constant 0 : index
    %c0_52 = arith.constant 0 : index
    %65 = vector.load %arg9[%c0_50, %c0_51, %c0_52] : memref<3x128x128xbf16, #tpu.memory_space<vmem>>, vector<1x128x128xbf16>
    %66 = vector.shape_cast %65 : vector<1x128x128xbf16> to vector<128x128xbf16>
    %cst_53 = arith.constant dense<0.000000e+00> : vector<72x128xf32>
    %67 = tpu.matmul %64, %66, %cst_53 {dimension_numbers = #tpu.dot_dimension_numbers<[1], [0], [0], [1], [0, 0, 1, 1], [], []>} : vector<72x128xbf16>, vector<128x128xbf16>, vector<72x128xf32> -> vector<72x128xf32>
    %68 = arith.mulf %67, %4 : vector<72x128xf32>
    %cst_54 = arith.constant dense<0.000000e+00> : vector<12x128xf32>
    %69 = tpu.matmul %3, %68, %cst_54 {dimension_numbers = #tpu.dot_dimension_numbers<[1], [0], [0], [1], [0, 0, 1, 1], [], []>} : vector<12x72xf32>, vector<72x128xf32>, vector<12x128xf32> -> vector<12x128xf32>
    %c0_55 = arith.constant 0 : index
    %c0_56 = arith.constant 0 : index
    %c0_57 = arith.constant 0 : index
    %70 = vector.load %arg10[%c0_55, %c0_56, %c0_57] : memref<3x1x1xf32, #tpu.memory_space<vmem>>, vector<1x1x1xf32>
    %71 = vector.shape_cast %70 : vector<1x1x1xf32> to vector<1x1xf32>
    %72 = vector.broadcast %71 : vector<1x1xf32> to vector<12x128xf32>
    %73 = arith.addf %69, %72 : vector<12x128xf32>
    %74 = arith.addf %73, %5 : vector<12x128xf32>
    %cst_58 = arith.constant dense<0xFF800000> : vector<12xf32>
    %75 = vector.multi_reduction <maximumf>, %74, %cst_58 [1] : vector<12x128xf32> to vector<12xf32>
    %76 = vector.shape_cast %75 : vector<12xf32> to vector<12x1xf32>
    %77 = vector.broadcast %76 : vector<12x1xf32> to vector<12x128xf32>
    %78 = arith.subf %74, %77 : vector<12x128xf32>
    %79 = math.exp %78 : vector<12x128xf32>
    %cst_59 = arith.constant dense<0.000000e+00> : vector<12xf32>
    %80 = vector.multi_reduction <add>, %79, %cst_59 [1] : vector<12x128xf32> to vector<12xf32>
    %81 = vector.shape_cast %80 : vector<12xf32> to vector<12x1xf32>
    %82 = tpu.reciprocal %81 {approx = true} : vector<12x1xf32> -> vector<12x1xf32>
    %83 = vector.broadcast %82 : vector<12x1xf32> to vector<12x128xf32>
    %84 = arith.mulf %79, %83 : vector<12x128xf32>
    %cst_60 = arith.constant dense<0.000000e+00> : vector<72x128xf32>
    %85 = tpu.matmul %1, %84, %cst_60 {dimension_numbers = #tpu.dot_dimension_numbers<[1], [0], [0], [1], [0, 0, 1, 1], [], []>} : vector<72x12xf32>, vector<12x128xf32>, vector<72x128xf32> -> vector<72x128xf32>
    %86 = arith.mulf %85, %4 : vector<72x128xf32>
    %cst_61 = arith.constant dense<0.000000e+00> : vector<72xf32>
    %87 = vector.multi_reduction <add>, %86, %cst_61 [1] : vector<72x128xf32> to vector<72xf32>
    %88 = vector.shape_cast %87 : vector<72xf32> to vector<72x1xf32>
    %89 = vector.broadcast %88 : vector<72x1xf32> to vector<72x128xf32>
    %90 = arith.mulf %89, %8 : vector<72x128xf32>
    %cst_62 = arith.constant dense<0.000000e+00> : vector<12x128xf32>
    %91 = tpu.matmul %3, %90, %cst_62 {dimension_numbers = #tpu.dot_dimension_numbers<[1], [0], [0], [1], [0, 0, 1, 1], [], []>} : vector<12x72xf32>, vector<72x128xf32>, vector<12x128xf32> -> vector<12x128xf32>
    %c0_63 = arith.constant 0 : index
    %c0_64 = arith.constant 0 : index
    %c0_65 = arith.constant 0 : index
    %92 = vector.load %arg11[%c0_63, %c0_64, %c0_65] : memref<3x384x128xbf16, #tpu.memory_space<vmem>>, vector<1x384x128xbf16>
    %93 = vector.shape_cast %92 : vector<1x384x128xbf16> to vector<384x128xbf16>
    %94 = vector.extract_strided_slice %93 {offsets = [0, 0], sizes = [128, 128], strides = [1, 1]} : vector<384x128xbf16> to vector<128x128xbf16>
    %c0_66 = arith.constant 0 : index
    %c0_67 = arith.constant 0 : index
    %c0_68 = arith.constant 0 : index
    %95 = vector.load %arg12[%c0_66, %c0_67, %c0_68] : memref<3x384x128xbf16, #tpu.memory_space<vmem>>, vector<1x384x128xbf16>
    %96 = vector.shape_cast %95 : vector<1x384x128xbf16> to vector<384x128xbf16>
    %97 = vector.extract_strided_slice %96 {offsets = [0, 0], sizes = [128, 128], strides = [1, 1]} : vector<384x128xbf16> to vector<128x128xbf16>
    %98 = arith.truncf %0 : vector<12x128xf32> to vector<12x128xbf16>
    %cst_69 = arith.constant dense<0.000000e+00> : vector<12x128xf32>
    %99 = tpu.matmul %98, %94, %cst_69 {dimension_numbers = #tpu.dot_dimension_numbers<[1], [0], [0], [1], [0, 0, 1, 1], [], []>} : vector<12x128xbf16>, vector<128x128xbf16>, vector<12x128xf32> -> vector<12x128xf32>
    %100 = arith.truncf %91 : vector<12x128xf32> to vector<12x128xbf16>
    %cst_70 = arith.constant dense<0.000000e+00> : vector<12x128xf32>
    %101 = tpu.matmul %100, %97, %cst_70 {dimension_numbers = #tpu.dot_dimension_numbers<[1], [0], [0], [1], [0, 0, 1, 1], [], []>} : vector<12x128xbf16>, vector<128x128xbf16>, vector<12x128xf32> -> vector<12x128xf32>
    %102 = arith.addf %99, %101 : vector<12x128xf32>
    %c0_71 = arith.constant 0 : index
    %c0_72 = arith.constant 0 : index
    %c0_73 = arith.constant 0 : index
    %103 = vector.load %arg13[%c0_71, %c0_72, %c0_73] : memref<3x1x128xf32, #tpu.memory_space<vmem>>, vector<1x1x128xf32>
    %104 = vector.shape_cast %103 : vector<1x1x128xf32> to vector<1x128xf32>
    %105 = vector.broadcast %104 : vector<1x128xf32> to vector<12x128xf32>
    %106 = arith.addf %102, %105 : vector<12x128xf32>
    %cst_74 = arith.constant 0.000000e+00 : f32
    %107 = vector.broadcast %cst_74 : f32 to vector<12x128xf32>
    %108 = arith.cmpf oge, %106, %107 : vector<12x128xf32>
    %cst_75 = arith.constant 0.00999999977 : f32
    %109 = vector.broadcast %cst_75 : f32 to vector<12x128xf32>
    %110 = arith.mulf %109, %106 : vector<12x128xf32>
    %111 = arith.select %108, %106, %110 : vector<12x128xi1>, vector<12x128xf32>
    %112 = tpu.concatenate %0, %111 in 1 : vector<12x128xf32>, vector<12x128xf32> -> vector<12x256xf32>
    %cst_76 = arith.constant dense<0.000000e+00> : vector<72x256xf32>
    %113 = tpu.matmul %1, %112, %cst_76 {dimension_numbers = #tpu.dot_dimension_numbers<[1], [0], [0], [1], [0, 0, 1, 1], [], []>} : vector<72x12xf32>, vector<12x256xf32>, vector<72x256xf32> -> vector<72x256xf32>
    %cst_77 = arith.constant dense<0.000000e+00> : vector<72x256xf32>
    %114 = tpu.matmul %2, %112, %cst_77 {dimension_numbers = #tpu.dot_dimension_numbers<[1], [0], [0], [1], [0, 0, 1, 1], [], []>} : vector<72x12xf32>, vector<12x256xf32>, vector<72x256xf32> -> vector<72x256xf32>
    %115 = arith.subf %113, %114 : vector<72x256xf32>
    %116 = math.absf %115 : vector<72x256xf32>
    %117 = arith.truncf %116 : vector<72x256xf32> to vector<72x256xbf16>
    %c1 = arith.constant 1 : index
    %c0_78 = arith.constant 0 : index
    %c0_79 = arith.constant 0 : index
    %118 = vector.load %arg1[%c1, %c0_78, %c0_79] : memref<3x384x256xbf16, #tpu.memory_space<vmem>>, vector<1x384x256xbf16>
    %119 = vector.shape_cast %118 : vector<1x384x256xbf16> to vector<384x256xbf16>
    %120 = vector.extract_strided_slice %119 {offsets = [0, 0], sizes = [256, 256], strides = [1, 1]} : vector<384x256xbf16> to vector<256x256xbf16>
    %cst_80 = arith.constant dense<0.000000e+00> : vector<72x256xf32>
    %121 = tpu.matmul %117, %120, %cst_80 {dimension_numbers = #tpu.dot_dimension_numbers<[1], [0], [0], [1], [0, 0, 1, 1], [], []>} : vector<72x256xbf16>, vector<256x256xbf16>, vector<72x256xf32> -> vector<72x256xf32>
    %c1_81 = arith.constant 1 : index
    %c0_82 = arith.constant 0 : index
    %c0_83 = arith.constant 0 : index
    %122 = vector.load %arg2[%c1_81, %c0_82, %c0_83] : memref<3x1x256xf32, #tpu.memory_space<vmem>>, vector<1x1x256xf32>
    %123 = vector.shape_cast %122 : vector<1x1x256xf32> to vector<1x256xf32>
    %124 = vector.broadcast %123 : vector<1x256xf32> to vector<72x256xf32>
    %125 = arith.addf %121, %124 : vector<72x256xf32>
    %cst_84 = arith.constant 0.000000e+00 : f32
    %126 = vector.broadcast %cst_84 : f32 to vector<72x256xf32>
    %127 = arith.cmpf oge, %125, %126 : vector<72x256xf32>
    %cst_85 = arith.constant 0.00999999977 : f32
    %128 = vector.broadcast %cst_85 : f32 to vector<72x256xf32>
    %129 = arith.mulf %128, %125 : vector<72x256xf32>
    %130 = arith.select %127, %125, %129 : vector<72x256xi1>, vector<72x256xf32>
    %131 = arith.truncf %130 : vector<72x256xf32> to vector<72x256xbf16>
    %c1_86 = arith.constant 1 : index
    %c0_87 = arith.constant 0 : index
    %c0_88 = arith.constant 0 : index
    %132 = vector.load %arg3[%c1_86, %c0_87, %c0_88] : memref<3x256x256xbf16, #tpu.memory_space<vmem>>, vector<1x256x256xbf16>
    %133 = vector.shape_cast %132 : vector<1x256x256xbf16> to vector<256x256xbf16>
    %cst_89 = arith.constant dense<0.000000e+00> : vector<72x256xf32>
    %134 = tpu.matmul %131, %133, %cst_89 {dimension_numbers = #tpu.dot_dimension_numbers<[1], [0], [0], [1], [0, 0, 1, 1], [], []>} : vector<72x256xbf16>, vector<256x256xbf16>, vector<72x256xf32> -> vector<72x256xf32>
    %c1_90 = arith.constant 1 : index
    %c0_91 = arith.constant 0 : index
    %c0_92 = arith.constant 0 : index
    %135 = vector.load %arg4[%c1_90, %c0_91, %c0_92] : memref<3x1x256xf32, #tpu.memory_space<vmem>>, vector<1x1x256xf32>
    %136 = vector.shape_cast %135 : vector<1x1x256xf32> to vector<1x256xf32>
    %137 = vector.broadcast %136 : vector<1x256xf32> to vector<72x256xf32>
    %138 = arith.addf %134, %137 : vector<72x256xf32>
    %cst_93 = arith.constant 0.000000e+00 : f32
    %139 = vector.broadcast %cst_93 : f32 to vector<72x256xf32>
    %140 = arith.cmpf oge, %138, %139 : vector<72x256xf32>
    %cst_94 = arith.constant 0.00999999977 : f32
    %141 = vector.broadcast %cst_94 : f32 to vector<72x256xf32>
    %142 = arith.mulf %141, %138 : vector<72x256xf32>
    %143 = arith.select %140, %138, %142 : vector<72x256xi1>, vector<72x256xf32>
    %144 = arith.truncf %143 : vector<72x256xf32> to vector<72x256xbf16>
    %c1_95 = arith.constant 1 : index
    %c0_96 = arith.constant 0 : index
    %c0_97 = arith.constant 0 : index
    %145 = vector.load %arg5[%c1_95, %c0_96, %c0_97] : memref<3x256x128xbf16, #tpu.memory_space<vmem>>, vector<1x256x128xbf16>
    %146 = vector.shape_cast %145 : vector<1x256x128xbf16> to vector<256x128xbf16>
    %cst_98 = arith.constant dense<0.000000e+00> : vector<72x128xf32>
    %147 = tpu.matmul %144, %146, %cst_98 {dimension_numbers = #tpu.dot_dimension_numbers<[1], [0], [0], [1], [0, 0, 1, 1], [], []>} : vector<72x256xbf16>, vector<256x128xbf16>, vector<72x128xf32> -> vector<72x128xf32>
    %c1_99 = arith.constant 1 : index
    %c0_100 = arith.constant 0 : index
    %c0_101 = arith.constant 0 : index
    %148 = vector.load %arg6[%c1_99, %c0_100, %c0_101] : memref<3x1x128xf32, #tpu.memory_space<vmem>>, vector<1x1x128xf32>
    %149 = vector.shape_cast %148 : vector<1x1x128xf32> to vector<1x128xf32>
    %150 = vector.broadcast %149 : vector<1x128xf32> to vector<72x128xf32>
    %151 = arith.addf %147, %150 : vector<72x128xf32>
    %cst_102 = arith.constant 0.000000e+00 : f32
    %152 = vector.broadcast %cst_102 : f32 to vector<72x128xf32>
    %153 = arith.cmpf oge, %151, %152 : vector<72x128xf32>
    %cst_103 = arith.constant 0.00999999977 : f32
    %154 = vector.broadcast %cst_103 : f32 to vector<72x128xf32>
    %155 = arith.mulf %154, %151 : vector<72x128xf32>
    %156 = arith.select %153, %151, %155 : vector<72x128xi1>, vector<72x128xf32>
    %157 = arith.truncf %156 : vector<72x128xf32> to vector<72x128xbf16>
    %c1_104 = arith.constant 1 : index
    %c0_105 = arith.constant 0 : index
    %c0_106 = arith.constant 0 : index
    %158 = vector.load %arg7[%c1_104, %c0_105, %c0_106] : memref<3x128x128xbf16, #tpu.memory_space<vmem>>, vector<1x128x128xbf16>
    %159 = vector.shape_cast %158 : vector<1x128x128xbf16> to vector<128x128xbf16>
    %cst_107 = arith.constant dense<0.000000e+00> : vector<72x128xf32>
    %160 = tpu.matmul %157, %159, %cst_107 {dimension_numbers = #tpu.dot_dimension_numbers<[1], [0], [0], [1], [0, 0, 1, 1], [], []>} : vector<72x128xbf16>, vector<128x128xbf16>, vector<72x128xf32> -> vector<72x128xf32>
    %c1_108 = arith.constant 1 : index
    %c0_109 = arith.constant 0 : index
    %c0_110 = arith.constant 0 : index
    %161 = vector.load %arg8[%c1_108, %c0_109, %c0_110] : memref<3x1x128xf32, #tpu.memory_space<vmem>>, vector<1x1x128xf32>
    %162 = vector.shape_cast %161 : vector<1x1x128xf32> to vector<1x128xf32>
    %163 = vector.broadcast %162 : vector<1x128xf32> to vector<72x128xf32>
    %164 = arith.addf %160, %163 : vector<72x128xf32>
    %cst_111 = arith.constant 0.000000e+00 : f32
    %165 = vector.broadcast %cst_111 : f32 to vector<72x128xf32>
    %166 = arith.cmpf oge, %164, %165 : vector<72x128xf32>
    %cst_112 = arith.constant 0.00999999977 : f32
    %167 = vector.broadcast %cst_112 : f32 to vector<72x128xf32>
    %168 = arith.mulf %167, %164 : vector<72x128xf32>
    %169 = arith.select %166, %164, %168 : vector<72x128xi1>, vector<72x128xf32>
    %170 = arith.truncf %169 : vector<72x128xf32> to vector<72x128xbf16>
    %c1_113 = arith.constant 1 : index
    %c0_114 = arith.constant 0 : index
    %c0_115 = arith.constant 0 : index
    %171 = vector.load %arg9[%c1_113, %c0_114, %c0_115] : memref<3x128x128xbf16, #tpu.memory_space<vmem>>, vector<1x128x128xbf16>
    %172 = vector.shape_cast %171 : vector<1x128x128xbf16> to vector<128x128xbf16>
    %cst_116 = arith.constant dense<0.000000e+00> : vector<72x128xf32>
    %173 = tpu.matmul %170, %172, %cst_116 {dimension_numbers = #tpu.dot_dimension_numbers<[1], [0], [0], [1], [0, 0, 1, 1], [], []>} : vector<72x128xbf16>, vector<128x128xbf16>, vector<72x128xf32> -> vector<72x128xf32>
    %174 = arith.mulf %173, %4 : vector<72x128xf32>
    %cst_117 = arith.constant dense<0.000000e+00> : vector<12x128xf32>
    %175 = tpu.matmul %3, %174, %cst_117 {dimension_numbers = #tpu.dot_dimension_numbers<[1], [0], [0], [1], [0, 0, 1, 1], [], []>} : vector<12x72xf32>, vector<72x128xf32>, vector<12x128xf32> -> vector<12x128xf32>
    %c1_118 = arith.constant 1 : index
    %c0_119 = arith.constant 0 : index
    %c0_120 = arith.constant 0 : index
    %176 = vector.load %arg10[%c1_118, %c0_119, %c0_120] : memref<3x1x1xf32, #tpu.memory_space<vmem>>, vector<1x1x1xf32>
    %177 = vector.shape_cast %176 : vector<1x1x1xf32> to vector<1x1xf32>
    %178 = vector.broadcast %177 : vector<1x1xf32> to vector<12x128xf32>
    %179 = arith.addf %175, %178 : vector<12x128xf32>
    %180 = arith.addf %179, %5 : vector<12x128xf32>
    %cst_121 = arith.constant dense<0xFF800000> : vector<12xf32>
    %181 = vector.multi_reduction <maximumf>, %180, %cst_121 [1] : vector<12x128xf32> to vector<12xf32>
    %182 = vector.shape_cast %181 : vector<12xf32> to vector<12x1xf32>
    %183 = vector.broadcast %182 : vector<12x1xf32> to vector<12x128xf32>
    %184 = arith.subf %180, %183 : vector<12x128xf32>
    %185 = math.exp %184 : vector<12x128xf32>
    %cst_122 = arith.constant dense<0.000000e+00> : vector<12xf32>
    %186 = vector.multi_reduction <add>, %185, %cst_122 [1] : vector<12x128xf32> to vector<12xf32>
    %187 = vector.shape_cast %186 : vector<12xf32> to vector<12x1xf32>
    %188 = tpu.reciprocal %187 {approx = true} : vector<12x1xf32> -> vector<12x1xf32>
    %189 = vector.broadcast %188 : vector<12x1xf32> to vector<12x128xf32>
    %190 = arith.mulf %185, %189 : vector<12x128xf32>
    %cst_123 = arith.constant dense<0.000000e+00> : vector<72x128xf32>
    %191 = tpu.matmul %1, %190, %cst_123 {dimension_numbers = #tpu.dot_dimension_numbers<[1], [0], [0], [1], [0, 0, 1, 1], [], []>} : vector<72x12xf32>, vector<12x128xf32>, vector<72x128xf32> -> vector<72x128xf32>
    %192 = arith.mulf %191, %4 : vector<72x128xf32>
    %cst_124 = arith.constant dense<0.000000e+00> : vector<72xf32>
    %193 = vector.multi_reduction <add>, %192, %cst_124 [1] : vector<72x128xf32> to vector<72xf32>
    %194 = vector.shape_cast %193 : vector<72xf32> to vector<72x1xf32>
    %195 = vector.broadcast %194 : vector<72x1xf32> to vector<72x256xf32>
    %196 = arith.mulf %195, %114 : vector<72x256xf32>
    %cst_125 = arith.constant dense<0.000000e+00> : vector<12x256xf32>
    %197 = tpu.matmul %3, %196, %cst_125 {dimension_numbers = #tpu.dot_dimension_numbers<[1], [0], [0], [1], [0, 0, 1, 1], [], []>} : vector<12x72xf32>, vector<72x256xf32>, vector<12x256xf32> -> vector<12x256xf32>
    %c1_126 = arith.constant 1 : index
    %c0_127 = arith.constant 0 : index
    %c0_128 = arith.constant 0 : index
    %198 = vector.load %arg11[%c1_126, %c0_127, %c0_128] : memref<3x384x128xbf16, #tpu.memory_space<vmem>>, vector<1x384x128xbf16>
    %199 = vector.shape_cast %198 : vector<1x384x128xbf16> to vector<384x128xbf16>
    %200 = vector.extract_strided_slice %199 {offsets = [0, 0], sizes = [256, 128], strides = [1, 1]} : vector<384x128xbf16> to vector<256x128xbf16>
    %c1_129 = arith.constant 1 : index
    %c0_130 = arith.constant 0 : index
    %c0_131 = arith.constant 0 : index
    %201 = vector.load %arg12[%c1_129, %c0_130, %c0_131] : memref<3x384x128xbf16, #tpu.memory_space<vmem>>, vector<1x384x128xbf16>
    %202 = vector.shape_cast %201 : vector<1x384x128xbf16> to vector<384x128xbf16>
    %203 = vector.extract_strided_slice %202 {offsets = [0, 0], sizes = [256, 128], strides = [1, 1]} : vector<384x128xbf16> to vector<256x128xbf16>
    %204 = arith.truncf %112 : vector<12x256xf32> to vector<12x256xbf16>
    %cst_132 = arith.constant dense<0.000000e+00> : vector<12x128xf32>
    %205 = tpu.matmul %204, %200, %cst_132 {dimension_numbers = #tpu.dot_dimension_numbers<[1], [0], [0], [1], [0, 0, 1, 1], [], []>} : vector<12x256xbf16>, vector<256x128xbf16>, vector<12x128xf32> -> vector<12x128xf32>
    %206 = arith.truncf %197 : vector<12x256xf32> to vector<12x256xbf16>
    %cst_133 = arith.constant dense<0.000000e+00> : vector<12x128xf32>
    %207 = tpu.matmul %206, %203, %cst_133 {dimension_numbers = #tpu.dot_dimension_numbers<[1], [0], [0], [1], [0, 0, 1, 1], [], []>} : vector<12x256xbf16>, vector<256x128xbf16>, vector<12x128xf32> -> vector<12x128xf32>
    %208 = arith.addf %205, %207 : vector<12x128xf32>
    %c1_134 = arith.constant 1 : index
    %c0_135 = arith.constant 0 : index
    %c0_136 = arith.constant 0 : index
    %209 = vector.load %arg13[%c1_134, %c0_135, %c0_136] : memref<3x1x128xf32, #tpu.memory_space<vmem>>, vector<1x1x128xf32>
    %210 = vector.shape_cast %209 : vector<1x1x128xf32> to vector<1x128xf32>
    %211 = vector.broadcast %210 : vector<1x128xf32> to vector<12x128xf32>
    %212 = arith.addf %208, %211 : vector<12x128xf32>
    %cst_137 = arith.constant 0.000000e+00 : f32
    %213 = vector.broadcast %cst_137 : f32 to vector<12x128xf32>
    %214 = arith.cmpf oge, %212, %213 : vector<12x128xf32>
    %cst_138 = arith.constant 0.00999999977 : f32
    %215 = vector.broadcast %cst_138 : f32 to vector<12x128xf32>
    %216 = arith.mulf %215, %212 : vector<12x128xf32>
    %217 = arith.select %214, %212, %216 : vector<12x128xi1>, vector<12x128xf32>
    %218 = tpu.concatenate %112, %217 in 1 : vector<12x256xf32>, vector<12x128xf32> -> vector<12x384xf32>
    %cst_139 = arith.constant dense<0.000000e+00> : vector<72x384xf32>
    %219 = tpu.matmul %1, %218, %cst_139 {dimension_numbers = #tpu.dot_dimension_numbers<[1], [0], [0], [1], [0, 0, 1, 1], [], []>} : vector<72x12xf32>, vector<12x384xf32>, vector<72x384xf32> -> vector<72x384xf32>
    %cst_140 = arith.constant dense<0.000000e+00> : vector<72x384xf32>
    %220 = tpu.matmul %2, %218, %cst_140 {dimension_numbers = #tpu.dot_dimension_numbers<[1], [0], [0], [1], [0, 0, 1, 1], [], []>} : vector<72x12xf32>, vector<12x384xf32>, vector<72x384xf32> -> vector<72x384xf32>
    %221 = arith.subf %219, %220 : vector<72x384xf32>
    %222 = math.absf %221 : vector<72x384xf32>
    %223 = arith.truncf %222 : vector<72x384xf32> to vector<72x384xbf16>
    %c2 = arith.constant 2 : index
    %c0_141 = arith.constant 0 : index
    %c0_142 = arith.constant 0 : index
    %224 = vector.load %arg1[%c2, %c0_141, %c0_142] : memref<3x384x256xbf16, #tpu.memory_space<vmem>>, vector<1x384x256xbf16>
    %225 = vector.shape_cast %224 : vector<1x384x256xbf16> to vector<384x256xbf16>
    %cst_143 = arith.constant dense<0.000000e+00> : vector<72x256xf32>
    %226 = tpu.matmul %223, %225, %cst_143 {dimension_numbers = #tpu.dot_dimension_numbers<[1], [0], [0], [1], [0, 0, 1, 1], [], []>} : vector<72x384xbf16>, vector<384x256xbf16>, vector<72x256xf32> -> vector<72x256xf32>
    %c2_144 = arith.constant 2 : index
    %c0_145 = arith.constant 0 : index
    %c0_146 = arith.constant 0 : index
    %227 = vector.load %arg2[%c2_144, %c0_145, %c0_146] : memref<3x1x256xf32, #tpu.memory_space<vmem>>, vector<1x1x256xf32>
    %228 = vector.shape_cast %227 : vector<1x1x256xf32> to vector<1x256xf32>
    %229 = vector.broadcast %228 : vector<1x256xf32> to vector<72x256xf32>
    %230 = arith.addf %226, %229 : vector<72x256xf32>
    %cst_147 = arith.constant 0.000000e+00 : f32
    %231 = vector.broadcast %cst_147 : f32 to vector<72x256xf32>
    %232 = arith.cmpf oge, %230, %231 : vector<72x256xf32>
    %cst_148 = arith.constant 0.00999999977 : f32
    %233 = vector.broadcast %cst_148 : f32 to vector<72x256xf32>
    %234 = arith.mulf %233, %230 : vector<72x256xf32>
    %235 = arith.select %232, %230, %234 : vector<72x256xi1>, vector<72x256xf32>
    %236 = arith.truncf %235 : vector<72x256xf32> to vector<72x256xbf16>
    %c2_149 = arith.constant 2 : index
    %c0_150 = arith.constant 0 : index
    %c0_151 = arith.constant 0 : index
    %237 = vector.load %arg3[%c2_149, %c0_150, %c0_151] : memref<3x256x256xbf16, #tpu.memory_space<vmem>>, vector<1x256x256xbf16>
    %238 = vector.shape_cast %237 : vector<1x256x256xbf16> to vector<256x256xbf16>
    %cst_152 = arith.constant dense<0.000000e+00> : vector<72x256xf32>
    %239 = tpu.matmul %236, %238, %cst_152 {dimension_numbers = #tpu.dot_dimension_numbers<[1], [0], [0], [1], [0, 0, 1, 1], [], []>} : vector<72x256xbf16>, vector<256x256xbf16>, vector<72x256xf32> -> vector<72x256xf32>
    %c2_153 = arith.constant 2 : index
    %c0_154 = arith.constant 0 : index
    %c0_155 = arith.constant 0 : index
    %240 = vector.load %arg4[%c2_153, %c0_154, %c0_155] : memref<3x1x256xf32, #tpu.memory_space<vmem>>, vector<1x1x256xf32>
    %241 = vector.shape_cast %240 : vector<1x1x256xf32> to vector<1x256xf32>
    %242 = vector.broadcast %241 : vector<1x256xf32> to vector<72x256xf32>
    %243 = arith.addf %239, %242 : vector<72x256xf32>
    %cst_156 = arith.constant 0.000000e+00 : f32
    %244 = vector.broadcast %cst_156 : f32 to vector<72x256xf32>
    %245 = arith.cmpf oge, %243, %244 : vector<72x256xf32>
    %cst_157 = arith.constant 0.00999999977 : f32
    %246 = vector.broadcast %cst_157 : f32 to vector<72x256xf32>
    %247 = arith.mulf %246, %243 : vector<72x256xf32>
    %248 = arith.select %245, %243, %247 : vector<72x256xi1>, vector<72x256xf32>
    %249 = arith.truncf %248 : vector<72x256xf32> to vector<72x256xbf16>
    %c2_158 = arith.constant 2 : index
    %c0_159 = arith.constant 0 : index
    %c0_160 = arith.constant 0 : index
    %250 = vector.load %arg5[%c2_158, %c0_159, %c0_160] : memref<3x256x128xbf16, #tpu.memory_space<vmem>>, vector<1x256x128xbf16>
    %251 = vector.shape_cast %250 : vector<1x256x128xbf16> to vector<256x128xbf16>
    %cst_161 = arith.constant dense<0.000000e+00> : vector<72x128xf32>
    %252 = tpu.matmul %249, %251, %cst_161 {dimension_numbers = #tpu.dot_dimension_numbers<[1], [0], [0], [1], [0, 0, 1, 1], [], []>} : vector<72x256xbf16>, vector<256x128xbf16>, vector<72x128xf32> -> vector<72x128xf32>
    %c2_162 = arith.constant 2 : index
    %c0_163 = arith.constant 0 : index
    %c0_164 = arith.constant 0 : index
    %253 = vector.load %arg6[%c2_162, %c0_163, %c0_164] : memref<3x1x128xf32, #tpu.memory_space<vmem>>, vector<1x1x128xf32>
    %254 = vector.shape_cast %253 : vector<1x1x128xf32> to vector<1x128xf32>
    %255 = vector.broadcast %254 : vector<1x128xf32> to vector<72x128xf32>
    %256 = arith.addf %252, %255 : vector<72x128xf32>
    %cst_165 = arith.constant 0.000000e+00 : f32
    %257 = vector.broadcast %cst_165 : f32 to vector<72x128xf32>
    %258 = arith.cmpf oge, %256, %257 : vector<72x128xf32>
    %cst_166 = arith.constant 0.00999999977 : f32
    %259 = vector.broadcast %cst_166 : f32 to vector<72x128xf32>
    %260 = arith.mulf %259, %256 : vector<72x128xf32>
    %261 = arith.select %258, %256, %260 : vector<72x128xi1>, vector<72x128xf32>
    %262 = arith.truncf %261 : vector<72x128xf32> to vector<72x128xbf16>
    %c2_167 = arith.constant 2 : index
    %c0_168 = arith.constant 0 : index
    %c0_169 = arith.constant 0 : index
    %263 = vector.load %arg7[%c2_167, %c0_168, %c0_169] : memref<3x128x128xbf16, #tpu.memory_space<vmem>>, vector<1x128x128xbf16>
    %264 = vector.shape_cast %263 : vector<1x128x128xbf16> to vector<128x128xbf16>
    %cst_170 = arith.constant dense<0.000000e+00> : vector<72x128xf32>
    %265 = tpu.matmul %262, %264, %cst_170 {dimension_numbers = #tpu.dot_dimension_numbers<[1], [0], [0], [1], [0, 0, 1, 1], [], []>} : vector<72x128xbf16>, vector<128x128xbf16>, vector<72x128xf32> -> vector<72x128xf32>
    %c2_171 = arith.constant 2 : index
    %c0_172 = arith.constant 0 : index
    %c0_173 = arith.constant 0 : index
    %266 = vector.load %arg8[%c2_171, %c0_172, %c0_173] : memref<3x1x128xf32, #tpu.memory_space<vmem>>, vector<1x1x128xf32>
    %267 = vector.shape_cast %266 : vector<1x1x128xf32> to vector<1x128xf32>
    %268 = vector.broadcast %267 : vector<1x128xf32> to vector<72x128xf32>
    %269 = arith.addf %265, %268 : vector<72x128xf32>
    %cst_174 = arith.constant 0.000000e+00 : f32
    %270 = vector.broadcast %cst_174 : f32 to vector<72x128xf32>
    %271 = arith.cmpf oge, %269, %270 : vector<72x128xf32>
    %cst_175 = arith.constant 0.00999999977 : f32
    %272 = vector.broadcast %cst_175 : f32 to vector<72x128xf32>
    %273 = arith.mulf %272, %269 : vector<72x128xf32>
    %274 = arith.select %271, %269, %273 : vector<72x128xi1>, vector<72x128xf32>
    %275 = arith.truncf %274 : vector<72x128xf32> to vector<72x128xbf16>
    %c2_176 = arith.constant 2 : index
    %c0_177 = arith.constant 0 : index
    %c0_178 = arith.constant 0 : index
    %276 = vector.load %arg9[%c2_176, %c0_177, %c0_178] : memref<3x128x128xbf16, #tpu.memory_space<vmem>>, vector<1x128x128xbf16>
    %277 = vector.shape_cast %276 : vector<1x128x128xbf16> to vector<128x128xbf16>
    %cst_179 = arith.constant dense<0.000000e+00> : vector<72x128xf32>
    %278 = tpu.matmul %275, %277, %cst_179 {dimension_numbers = #tpu.dot_dimension_numbers<[1], [0], [0], [1], [0, 0, 1, 1], [], []>} : vector<72x128xbf16>, vector<128x128xbf16>, vector<72x128xf32> -> vector<72x128xf32>
    %279 = arith.mulf %278, %4 : vector<72x128xf32>
    %cst_180 = arith.constant dense<0.000000e+00> : vector<12x128xf32>
    %280 = tpu.matmul %3, %279, %cst_180 {dimension_numbers = #tpu.dot_dimension_numbers<[1], [0], [0], [1], [0, 0, 1, 1], [], []>} : vector<12x72xf32>, vector<72x128xf32>, vector<12x128xf32> -> vector<12x128xf32>
    %c2_181 = arith.constant 2 : index
    %c0_182 = arith.constant 0 : index
    %c0_183 = arith.constant 0 : index
    %281 = vector.load %arg10[%c2_181, %c0_182, %c0_183] : memref<3x1x1xf32, #tpu.memory_space<vmem>>, vector<1x1x1xf32>
    %282 = vector.shape_cast %281 : vector<1x1x1xf32> to vector<1x1xf32>
    %283 = vector.broadcast %282 : vector<1x1xf32> to vector<12x128xf32>
    %284 = arith.addf %280, %283 : vector<12x128xf32>
    %285 = arith.addf %284, %5 : vector<12x128xf32>
    %cst_184 = arith.constant dense<0xFF800000> : vector<12xf32>
    %286 = vector.multi_reduction <maximumf>, %285, %cst_184 [1] : vector<12x128xf32> to vector<12xf32>
    %287 = vector.shape_cast %286 : vector<12xf32> to vector<12x1xf32>
    %288 = vector.broadcast %287 : vector<12x1xf32> to vector<12x128xf32>
    %289 = arith.subf %285, %288 : vector<12x128xf32>
    %290 = math.exp %289 : vector<12x128xf32>
    %cst_185 = arith.constant dense<0.000000e+00> : vector<12xf32>
    %291 = vector.multi_reduction <add>, %290, %cst_185 [1] : vector<12x128xf32> to vector<12xf32>
    %292 = vector.shape_cast %291 : vector<12xf32> to vector<12x1xf32>
    %293 = tpu.reciprocal %292 {approx = true} : vector<12x1xf32> -> vector<12x1xf32>
    %294 = vector.broadcast %293 : vector<12x1xf32> to vector<12x128xf32>
    %295 = arith.mulf %290, %294 : vector<12x128xf32>
    %cst_186 = arith.constant dense<0.000000e+00> : vector<72x128xf32>
    %296 = tpu.matmul %1, %295, %cst_186 {dimension_numbers = #tpu.dot_dimension_numbers<[1], [0], [0], [1], [0, 0, 1, 1], [], []>} : vector<72x12xf32>, vector<12x128xf32>, vector<72x128xf32> -> vector<72x128xf32>
    %297 = arith.mulf %296, %4 : vector<72x128xf32>
    %cst_187 = arith.constant dense<0.000000e+00> : vector<72xf32>
    %298 = vector.multi_reduction <add>, %297, %cst_187 [1] : vector<72x128xf32> to vector<72xf32>
    %299 = vector.shape_cast %298 : vector<72xf32> to vector<72x1xf32>
    %300 = vector.broadcast %299 : vector<72x1xf32> to vector<72x384xf32>
    %301 = arith.mulf %300, %220 : vector<72x384xf32>
    %cst_188 = arith.constant dense<0.000000e+00> : vector<12x384xf32>
    %302 = tpu.matmul %3, %301, %cst_188 {dimension_numbers = #tpu.dot_dimension_numbers<[1], [0], [0], [1], [0, 0, 1, 1], [], []>} : vector<12x72xf32>, vector<72x384xf32>, vector<12x384xf32> -> vector<12x384xf32>
    %c2_189 = arith.constant 2 : index
    %c0_190 = arith.constant 0 : index
    %c0_191 = arith.constant 0 : index
    %303 = vector.load %arg11[%c2_189, %c0_190, %c0_191] : memref<3x384x128xbf16, #tpu.memory_space<vmem>>, vector<1x384x128xbf16>
    %304 = vector.shape_cast %303 : vector<1x384x128xbf16> to vector<384x128xbf16>
    %c2_192 = arith.constant 2 : index
    %c0_193 = arith.constant 0 : index
    %c0_194 = arith.constant 0 : index
    %305 = vector.load %arg12[%c2_192, %c0_193, %c0_194] : memref<3x384x128xbf16, #tpu.memory_space<vmem>>, vector<1x384x128xbf16>
    %306 = vector.shape_cast %305 : vector<1x384x128xbf16> to vector<384x128xbf16>
    %cst_195 = arith.constant dense<0.000000e+00> : vector<2x384xf32>
    %307 = tpu.matmul %6, %218, %cst_195 {dimension_numbers = #tpu.dot_dimension_numbers<[1], [0], [0], [1], [0, 0, 1, 1], [], []>} : vector<2x12xf32>, vector<12x384xf32>, vector<2x384xf32> -> vector<2x384xf32>
    %cst_196 = arith.constant dense<0.000000e+00> : vector<2x384xf32>
    %308 = tpu.matmul %6, %302, %cst_196 {dimension_numbers = #tpu.dot_dimension_numbers<[1], [0], [0], [1], [0, 0, 1, 1], [], []>} : vector<2x12xf32>, vector<12x384xf32>, vector<2x384xf32> -> vector<2x384xf32>
    %309 = arith.truncf %307 : vector<2x384xf32> to vector<2x384xbf16>
    %cst_197 = arith.constant dense<0.000000e+00> : vector<2x128xf32>
    %310 = tpu.matmul %309, %304, %cst_197 {dimension_numbers = #tpu.dot_dimension_numbers<[1], [0], [0], [1], [0, 0, 1, 1], [], []>} : vector<2x384xbf16>, vector<384x128xbf16>, vector<2x128xf32> -> vector<2x128xf32>
    %311 = arith.truncf %308 : vector<2x384xf32> to vector<2x384xbf16>
    %cst_198 = arith.constant dense<0.000000e+00> : vector<2x128xf32>
    %312 = tpu.matmul %311, %306, %cst_198 {dimension_numbers = #tpu.dot_dimension_numbers<[1], [0], [0], [1], [0, 0, 1, 1], [], []>} : vector<2x384xbf16>, vector<384x128xbf16>, vector<2x128xf32> -> vector<2x128xf32>
    %313 = arith.addf %310, %312 : vector<2x128xf32>
    %c2_199 = arith.constant 2 : index
    %c0_200 = arith.constant 0 : index
    %c0_201 = arith.constant 0 : index
    %314 = vector.load %arg13[%c2_199, %c0_200, %c0_201] : memref<3x1x128xf32, #tpu.memory_space<vmem>>, vector<1x1x128xf32>
    %315 = vector.shape_cast %314 : vector<1x1x128xf32> to vector<1x128xf32>
    %316 = vector.broadcast %315 : vector<1x128xf32> to vector<2x128xf32>
    %317 = arith.addf %313, %316 : vector<2x128xf32>
    %c0_202 = arith.constant 0 : index
    %c0_203 = arith.constant 0 : index
    %318 = vector.load %arg20[%c0_202, %c0_203] : memref<2x128xf32, #tpu.memory_space<vmem>>, vector<2x128xf32>
    tpu.vector_store %arg20[%c0_202, %c0_203], %317 {strides = array<i32>} : memref<2x128xf32, #tpu.memory_space<vmem>>, vector<2x128xf32>,
    return
  }
}

</mosaic_0001>

<bundles_post_ra>
// kernel: tpu_custom_call.1
= control target key start
LH: loop header
LB: loop body
LE: loop exit
PB: predicated region body
PF: predicated region fallthrough
CT: control target
= control target key end

     0   :  { %s12039_s0 = inlined_call_operand.hbm [shape: f32[12,128], index: 0, kind: input, shape index: {}]   ;;  %s12040_s1 = inlined_call_operand.hbm [shape: bf16[3,384,256], index: 1, kind: input, shape index: {}]   ;;  %s12041_s2 = inlined_call_operand.hbm [shape: f32[3,1,256], index: 2, kind: input, shape index: {}]   ;;  %s12042_s3 = inlined_call_operand.hbm [shape: bf16[3,256,256], index: 3, kind: input, shape index: {}]   ;;  %s12043_s4 = inlined_call_operand.hbm [shape: f32[3,1,256], index: 4, kind: input, shape index: {}]   ;;  %s12044_s5 = inlined_call_operand.hbm [shape: bf16[3,256,128], index: 5, kind: input, shape index: {}]   ;;  %s12045_s6 = inlined_call_operand.hbm [shape: f32[3,1,128], index: 6, kind: input, shape index: {}]   ;;  %s12046_s7 = inlined_call_operand.vmem [shape: bf16[3,128,128], index: 7, kind: input, shape index: {}]   ;;  %s12047_s8 = inlined_call_operand.hbm [shape: f32[3,1,128], index: 8, kind: input, shape index: {}]   ;;  %s12048_s9 = inlined_call_operand.hbm [shape: bf16[3,128,128], index: 9, kind: input, shape index: {}]   ;;  %s12049_s10 = inlined_call_operand.vmem [shape: f32[3,1,1], index: 10, kind: input, shape index: {}]   ;;  %s12050_s11 = inlined_call_operand.hbm [shape: bf16[3,384,128], index: 11, kind: input, shape index: {}]   ;;  %s12051_s12 = inlined_call_operand.hbm [shape: bf16[3,384,128], index: 12, kind: input, shape index: {}]   ;;  %s12052_s13 = inlined_call_operand.vmem [shape: f32[3,1,128], index: 13, kind: input, shape index: {}]   ;;  %s12053_s14 = inlined_call_operand.vmem [shape: f32[72,12], index: 14, kind: input, shape index: {}]   ;;  %s12054_s15 = inlined_call_operand.vmem [shape: f32[72,12], index: 15, kind: input, shape index: {}]   ;;  %s12055_s16 = inlined_call_operand.vmem [shape: f32[12,72], index: 16, kind: input, shape index: {}]   ;;  %s12056_s17 = inlined_call_operand.hbm [shape: f32[72,128], index: 17, kind: input, shape index: {}]   ;;  %s12057_s18 = inlined_call_operand.vmem [shape: f32[12,128], index: 18, kind: input, shape index: {}]   ;;  %s12058_s19 = inlined_call_operand.vmem [shape: f32[2,12], index: 19, kind: input, shape index: {}]   ;;  %s12059_s20 = inlined_call_operand.hbm [shape: f32[2,128], index: 20, kind: output, shape index: {}]  }
   0x1   :  { %12086 = sst [smem:[#allocation33_spill]] %s12039_s0 }
   0x2   :  { %12087 = sst [smem:[#allocation34_spill]] %s12040_s1 }
   0x3   :  { %12088 = sst [smem:[#allocation35_spill]] %s12041_s2 }
   0x4   :  { %12089 = sst [smem:[#allocation36_spill]] %s12042_s3 }
   0x5   :  { %12090 = sst [smem:[#allocation37_spill]] %s12043_s4 }
   0x6   :  { %12091 = sst [smem:[#allocation38_spill]] %s12058_s19 }
   0x7   :  { %12092 = sst [smem:[#allocation39_spill]] %s12059_s20 }
   0x8   :  { %25 = vsyncpa [#allocation3], 0 }
   0x9   :  { %26 = vsyncpa [#allocation6], 0 }
   0xa   :  { %27 = vsyncpa [#allocation9], 0 }
   0xb   :  { %28 = vsyncpa [#allocation12], 0 }
   0xc   :  { %29 = vsyncpa [#allocation15], 0 }
   0xd   :  { %30 = vsyncpa [#allocation18], 0 }
   0xe   :  { %31 = vsyncpa [#allocation21], 0 }
   0xf   :  { %32 = vsyncpa [#allocation4], 0  ;;  %s10313_s1 = smov [#allocation5]   ;;  %s10314_s23 = smov [#allocation8]  }
  0x10   :  { %s50_s22 = sshll.u32 %s10313_s1, 4  ;;  %s74_s24 = sshll.u32 %s10314_s23, 4  ;;  %s51_s22 = int_to_ptr.vmem [resolvable:$true] %s50_s22  ;;  %s10444_s24 = int_to_ptr.vmem [resolvable:$true] %s74_s24 }
  0x11   :  { %s12093_s3 = sld [smem:[#allocation34_spill]] }
  0x17   :  { %s10011_s26 = scalar_lea.hbm %s12093_s3, 18432 }
  0x18   :  { %p10012_p0 = scmp.ne.s32.totalorder %s12093_s3, %s10011_s26  ;;  %p10015_p1 = scmp.lt.u32.totalorder %s10011_s26, %s12093_s3 }
  0x1a   :  { %p10017_p2 = pnand %p10015_p1, %p10012_p0 }
  0x1c   :  { %10020 = shalt.err (!%p10017_p2)
}
  0x1d   :  { %s10021_s30 = scalar_lea.vmem %s51_s22, 18432  ;;  %p10026_p4 = scmp.lt.s32.totalorder %s51_s22, %s51_s22 }
  0x1e   :  { %p10022_p3 = scmp.ne.s32.totalorder %s51_s22, %s10021_s30  ;;  %p10027_p5 = scmp.lt.s32.totalorder %s10021_s30, %s10021_s30 }
  0x20   :  { %p10028_p6 = por %p10027_p5, %p10026_p4 }
  0x22   :  { %p10029_p7 = pnand %p10028_p6, %p10022_p3 }
  0x24   :  { %10032 = shalt.err (!%p10029_p7)
}
  0x25   :  { %s12066_s0 = smov 128   ;;  %s12068_s21 = smov 8  }
  0x26   :  { %56 = dma.hbm_to_vmem [thread:$0]  %s12093_s3, 18432, %s51_s22, [#allocation6], %s12066_s0, %s12066_s0, %s12068_s21  }
  0x27   :  { %s12094_s26 = sld [smem:[#allocation36_spill]] }
  0x2d   :  { %s10033_s27 = scalar_lea.hbm %s12094_s26, 12288 }
  0x2e   :  { %p10034_p8 = scmp.ne.s32.totalorder %s12094_s26, %s10033_s27  ;;  %p10037_p9 = scmp.lt.u32.totalorder %s10033_s27, %s12094_s26 }
  0x30   :  { %p10039_p10 = pnand %p10037_p9, %p10034_p8 }
  0x32   :  { %10042 = shalt.err (!%p10039_p10)
}
  0x33   :  { %s10043_s20 = scalar_lea.vmem %s10444_s24, 12288  ;;  %p10048_p12 = scmp.lt.s32.totalorder %s10444_s24, %s10444_s24 }
  0x34   :  { %p10044_p11 = scmp.ne.s32.totalorder %s10444_s24, %s10043_s20  ;;  %p10049_p13 = scmp.lt.s32.totalorder %s10043_s20, %s10043_s20 }
  0x36   :  { %p10050_p0 = por %p10049_p13, %p10048_p12 }
  0x38   :  { %p10051_p1 = pnand %p10050_p0, %p10044_p11 }
  0x3a   :  { %10054 = shalt.err (!%p10051_p1)
}
  0x3b   :  { %80 = dma.hbm_to_vmem [thread:$0]  %s12094_s26, 12288, %s10444_s24, [#allocation9], %s12066_s0, %s12066_s0, %s12068_s21  }
  0x3c   :  { %s10317_s1 = smov [#allocation11]   ;;  %s10055_s27 = scalar_lea.hbm %s12044_s5, 6144 }
  0x3d   :  { %s98_s23 = sshll.u32 %s10317_s1, 4  ;;  %p10056_p2 = scmp.ne.s32.totalorder %s12044_s5, %s10055_s27  ;;  %s99_s23 = int_to_ptr.vmem [resolvable:$true] %s98_s23 }
  0x3e   :  { %p10059_p3 = scmp.lt.u32.totalorder %s10055_s27, %s12044_s5 }
  0x40   :  { %p10061_p4 = pnand %p10059_p3, %p10056_p2 }
  0x42   :  { %10064 = shalt.err (!%p10061_p4)
}
  0x43   :  { %s10065_s30 = scalar_lea.vmem %s99_s23, 6144  ;;  %p10070_p6 = scmp.lt.s32.totalorder %s99_s23, %s99_s23 }
  0x44   :  { %p10066_p5 = scmp.ne.s32.totalorder %s99_s23, %s10065_s30  ;;  %p10071_p7 = scmp.lt.s32.totalorder %s10065_s30, %s10065_s30 }
  0x46   :  { %p10072_p8 = por %p10071_p7, %p10070_p6 }
  0x48   :  { %p10073_p9 = pnand %p10072_p8, %p10066_p5 }
  0x4a   :  { %10076 = shalt.err (!%p10073_p9)
}
  0x4b   :  { %s12071_s24 = smov 64   ;;  %s12073_s26 = smov 4  }
  0x4c   :  { %104 = dma.hbm_to_vmem [thread:$0]  %s12044_s5, 6144, %s99_s23, [#allocation12], %s12071_s24, %s12071_s24, %s12073_s26  }
  0x4d   :  { %s10320_s1 = smov [#allocation14]   ;;  %s10321_s25 = smov [#allocation17]  }
  0x4e   :  { %s124_s2 = sshll.u32 %s10320_s1, 4  ;;  %s150_s27 = sshll.u32 %s10321_s25, 4  ;;  %s125_s2 = int_to_ptr.vmem [resolvable:$true] %s124_s2  ;;  %s151_s27 = int_to_ptr.vmem [resolvable:$true] %s150_s27 }
  0x4f   :  { %s10077_s4 = scalar_lea.hbm %s12047_s8, 48 }
  0x50   :  { %p10078_p10 = scmp.ne.s32.totalorder %s12047_s8, %s10077_s4  ;;  %p10081_p11 = scmp.lt.u32.totalorder %s10077_s4, %s12047_s8 }
  0x52   :  { %p10083_p12 = pnand %p10081_p11, %p10078_p10 }
  0x54   :  { %10086 = shalt.err (!%p10083_p12)
}
  0x55   :  { %s10087_s5 = scalar_lea.vmem %s125_s2, 48  ;;  %s10091_s23 = scalar_lea.vmem %s125_s2, 64 }
  0x56   :  { %p10088_p13 = scmp.ne.s32.totalorder %s125_s2, %s10087_s5  ;;  %p10092_p0 = scmp.lt.s32.totalorder %s125_s2, %s125_s2 }
  0x57   :  { %p10093_p1 = scmp.lt.s32.totalorder %s10091_s23, %s10087_s5 }
  0x59   :  { %p10094_p2 = por %p10093_p1, %p10092_p0 }
  0x5b   :  { %p10095_p3 = pnand %p10094_p2, %p10088_p13 }
  0x5d   :  { %10098 = shalt.err (!%p10095_p3)
}
  0x5e   :  { %s12070_s22 = smov 16   ;;  %s12075_s3 = smov 1  }
  0x5f   :  { %130 = dma.hbm_to_vmem [thread:$0]  %s12047_s8, 48, %s125_s2, [#allocation15], %s12070_s22, %s12070_s22, %s12075_s3  }
  0x60   :  { %s10099_s28 = scalar_lea.hbm %s12050_s11, 9216 }
  0x61   :  { %p10100_p4 = scmp.ne.s32.totalorder %s12050_s11, %s10099_s28  ;;  %p10103_p5 = scmp.lt.u32.totalorder %s10099_s28, %s12050_s11 }
  0x63   :  { %p10105_p6 = pnand %p10103_p5, %p10100_p4 }
  0x65   :  { %10108 = shalt.err (!%p10105_p6)
}
  0x66   :  { %s10109_s5 = scalar_lea.vmem %s151_s27, 9216  ;;  %p10114_p8 = scmp.lt.s32.totalorder %s151_s27, %s151_s27 }
  0x67   :  { %p10110_p7 = scmp.ne.s32.totalorder %s151_s27, %s10109_s5  ;;  %p10115_p9 = scmp.lt.s32.totalorder %s10109_s5, %s10109_s5 }
  0x69   :  { %p10116_p10 = por %p10115_p9, %p10114_p8 }
  0x6b   :  { %p10117_p11 = pnand %p10116_p10, %p10110_p7 }
  0x6d   :  { %10120 = shalt.err (!%p10117_p11)
}
  0x6e   :  { %156 = dma.hbm_to_vmem [thread:$0]  %s12050_s11, 9216, %s151_s27, [#allocation18], %s12071_s24, %s12071_s24, %s12073_s26  }
  0x6f   :  { %s10324_s23 = smov [#allocation2]   ;;  %s10325_s25 = smov [#allocation7]  }
  0x70   :  { %s38_s1 = sshll.u32 %s10324_s23, 4  ;;  %s62_s0 = sshll.u32 %s10325_s25, 4  ;;  %s39_s1 = int_to_ptr.vmem [resolvable:$true] %s38_s1  ;;  %s63_s0 = int_to_ptr.vmem [resolvable:$true] %s62_s0 }
  0x71   :  { %s12095_s20 = sld [smem:[#allocation33_spill]] }
  0x77   :  { %s10121_s4 = scalar_lea.hbm %s12095_s20, 256 }
  0x78   :  { %p10122_p12 = scmp.ne.s32.totalorder %s12095_s20, %s10121_s4  ;;  %p10125_p13 = scmp.lt.u32.totalorder %s10121_s4, %s12095_s20 }
  0x7a   :  { %p10127_p0 = pnand %p10125_p13, %p10122_p12 }
  0x7c   :  { %10130 = shalt.err (!%p10127_p0)
}
  0x7d   :  { %s10131_s11 = scalar_lea.vmem %s39_s1, 256  ;;  %p10136_p2 = scmp.lt.s32.totalorder %s39_s1, %s39_s1 }
  0x7e   :  { %p10132_p1 = scmp.ne.s32.totalorder %s39_s1, %s10131_s11  ;;  %p10137_p3 = scmp.lt.s32.totalorder %s10131_s11, %s10131_s11 }
  0x80   :  { %p10138_p4 = por %p10137_p3, %p10136_p2 }
  0x82   :  { %p10139_p5 = pnand %p10138_p4, %p10132_p1 }
  0x84   :  { %10142 = shalt.err (!%p10139_p5)
}
  0x85   :  { %s12096_s27 = smov 8   ;;  %s12097_s8 = smov 128  }
  0x86   :  { %44 = dma.hbm_to_vmem [thread:$0]  %s12095_s20, 256, %s39_s1, [#allocation3], %s12097_s8, %s12097_s8, %s12096_s27  }
  0x87   :  { %s12098_s21 = sld [smem:[#allocation35_spill]] }
  0x8d   :  { %s10143_s28 = scalar_lea.hbm %s12098_s21, 96 }
  0x8e   :  { %p10144_p6 = scmp.ne.s32.totalorder %s12098_s21, %s10143_s28  ;;  %p10147_p7 = scmp.lt.u32.totalorder %s10143_s28, %s12098_s21 }
  0x90   :  { %p10149_p8 = pnand %p10147_p7, %p10144_p6 }
  0x92   :  { %10152 = shalt.err (!%p10149_p8)
}
  0x93   :  { %s10153_s11 = scalar_lea.vmem %s63_s0, 96  ;;  %p10158_p10 = scmp.lt.s32.totalorder %s63_s0, %s63_s0 }
  0x94   :  { %p10154_p9 = scmp.ne.s32.totalorder %s63_s0, %s10153_s11  ;;  %p10159_p11 = scmp.lt.s32.totalorder %s10153_s11, %s10153_s11 }
  0x96   :  { %p10160_p12 = por %p10159_p11, %p10158_p10 }
  0x98   :  { %p10161_p13 = pnand %p10160_p12, %p10154_p9 }
  0x9a   :  { %10164 = shalt.err (!%p10161_p13)
}
  0x9b   :  { %s10326_s1 = smov 32   ;;  %s10327_s20 = smov 2  }
  0x9c   :  { %68 = dma.hbm_to_vmem [thread:$0]  %s12098_s21, 96, %s63_s0, [#allocation6], %s10326_s1, %s10326_s1, %s10327_s20  }
  0x9d   :  { %s10328_s25 = smov [#allocation10]   ;;  %s10329_s4 = smov [#allocation13]  }
  0x9e   :  { %s86_s22 = sshll.u32 %s10328_s25, 4  ;;  %s110_s28 = sshll.u32 %s10329_s4, 4  ;;  %s87_s22 = int_to_ptr.vmem [resolvable:$true] %s86_s22  ;;  %s111_s28 = int_to_ptr.vmem [resolvable:$true] %s110_s28 }
  0x9f   :  { %s12099_s5 = sld [smem:[#allocation37_spill]] }
  0xa5   :  { %s10165_s24 = scalar_lea.hbm %s12099_s5, 96 }
  0xa6   :  { %p10166_p0 = scmp.ne.s32.totalorder %s12099_s5, %s10165_s24  ;;  %p10169_p1 = scmp.lt.u32.totalorder %s10165_s24, %s12099_s5 }
  0xa8   :  { %p10171_p2 = pnand %p10169_p1, %p10166_p0 }
  0xaa   :  { %10174 = shalt.err (!%p10171_p2)
}
  0xab   :  { %s10175_s0 = scalar_lea.vmem %s87_s22, 96  ;;  %p10180_p4 = scmp.lt.s32.totalorder %s87_s22, %s87_s22 }
  0xac   :  { %p10176_p3 = scmp.ne.s32.totalorder %s87_s22, %s10175_s0  ;;  %p10181_p5 = scmp.lt.s32.totalorder %s10175_s0, %s10175_s0 }
  0xae   :  { %p10182_p6 = por %p10181_p5, %p10180_p4 }
  0xb0   :  { %p10183_p7 = pnand %p10182_p6, %p10176_p3 }
  0xb2   :  { %10186 = shalt.err (!%p10183_p7)
}
  0xb3   :  { %92 = dma.hbm_to_vmem [thread:$0]  %s12099_s5, 96, %s87_s22, [#allocation9], %s10326_s1, %s10326_s1, %s10327_s20  }
  0xb4   :  { %s10187_s25 = scalar_lea.hbm %s12045_s6, 48 }
  0xb5   :  { %p10188_p8 = scmp.ne.s32.totalorder %s12045_s6, %s10187_s25  ;;  %p10191_p9 = scmp.lt.u32.totalorder %s10187_s25, %s12045_s6 }
  0xb7   :  { %p10193_p10 = pnand %p10191_p9, %p10188_p8 }
  0xb9   :  { %10196 = shalt.err (!%p10193_p10)
}
  0xba   :  { %s10197_s29 = scalar_lea.vmem %s111_s28, 48  ;;  %s10201_s30 = scalar_lea.vmem %s111_s28, 64 }
  0xbb   :  { %p10198_p11 = scmp.ne.s32.totalorder %s111_s28, %s10197_s29  ;;  %p10202_p12 = scmp.lt.s32.totalorder %s111_s28, %s111_s28 }
  0xbc   :  { %p10203_p13 = scmp.lt.s32.totalorder %s10201_s30, %s10197_s29 }
  0xbe   :  { %p10204_p0 = por %p10203_p13, %p10202_p12 }
  0xc0   :  { %p10205_p1 = pnand %p10204_p0, %p10198_p11 }
  0xc2   :  { %10208 = shalt.err (!%p10205_p1)
}
  0xc3   :  { %s12100_s1 = smov 1   ;;  %s12101_s20 = smov 16  }
  0xc4   :  { %116 = dma.hbm_to_vmem [thread:$0]  %s12045_s6, 48, %s111_s28, [#allocation12], %s12101_s20, %s12101_s20, %s12100_s1  }
  0xc5   :  { %s10330_s11 = smov [#allocation16]   ;;  %s10331_s21 = smov [#allocation19]  }
  0xc6   :  { %s136_s0 = sshll.u32 %s10330_s11, 4  ;;  %s162_s2 = sshll.u32 %s10331_s21, 4  ;;  %s137_s0 = int_to_ptr.vmem [resolvable:$true] %s136_s0  ;;  %s163_s2 = int_to_ptr.vmem [resolvable:$true] %s162_s2 }
  0xc7   :  { %s10209_s25 = scalar_lea.hbm %s12048_s9, 3072 }
  0xc8   :  { %p10210_p2 = scmp.ne.s32.totalorder %s12048_s9, %s10209_s25  ;;  %p10213_p3 = scmp.lt.u32.totalorder %s10209_s25, %s12048_s9 }
  0xca   :  { %p10215_p4 = pnand %p10213_p3, %p10210_p2 }
  0xcc   :  { %10218 = shalt.err (!%p10215_p4)
}
  0xcd   :  { %s10219_s6 = scalar_lea.vmem %s137_s0, 3072  ;;  %p10224_p6 = scmp.lt.s32.totalorder %s137_s0, %s137_s0 }
  0xce   :  { %p10220_p5 = scmp.ne.s32.totalorder %s137_s0, %s10219_s6  ;;  %p10225_p7 = scmp.lt.s32.totalorder %s10219_s6, %s10219_s6 }
  0xd0   :  { %p10226_p8 = por %p10225_p7, %p10224_p6 }
  0xd2   :  { %p10227_p9 = pnand %p10226_p8, %p10220_p5 }
  0xd4   :  { %10230 = shalt.err (!%p10227_p9)
}
  0xd5   :  { %s12102_s28 = smov 4   ;;  %s12103_s29 = smov 64  }
  0xd6   :  { %142 = dma.hbm_to_vmem [thread:$0]  %s12048_s9, 3072, %s137_s0, [#allocation15], %s12103_s29, %s12103_s29, %s12102_s28  }
  0xd7   :  { %s10231_s5 = scalar_lea.hbm %s12051_s12, 9216 }
  0xd8   :  { %p10232_p10 = scmp.ne.s32.totalorder %s12051_s12, %s10231_s5  ;;  %p10235_p11 = scmp.lt.u32.totalorder %s10231_s5, %s12051_s12 }
  0xda   :  { %p10237_p12 = pnand %p10235_p11, %p10232_p10 }
  0xdc   :  { %10240 = shalt.err (!%p10237_p12)
}
  0xdd   :  { %s10241_s25 = scalar_lea.vmem %s163_s2, 9216  ;;  %p10246_p0 = scmp.lt.s32.totalorder %s163_s2, %s163_s2 }
  0xde   :  { %p10242_p13 = scmp.ne.s32.totalorder %s163_s2, %s10241_s25  ;;  %p10247_p1 = scmp.lt.s32.totalorder %s10241_s25, %s10241_s25 }
  0xe0   :  { %p10248_p2 = por %p10247_p1, %p10246_p0 }
  0xe2   :  { %p10249_p3 = pnand %p10248_p2, %p10242_p13 }
  0xe4   :  { %10252 = shalt.err (!%p10249_p3)
}
  0xe5   :  { %168 = dma.hbm_to_vmem [thread:$0]  %s12051_s12, 9216, %s163_s2, [#allocation18], %s12103_s29, %s12103_s29, %s12102_s28  }
  0xe6   :  { %s10332_s19 = smov [#allocation20]   ;;  %s10253_s6 = scalar_lea.hbm %s12056_s17, 1152 }
  0xe7   :  { %s182_s24 = sshll.u32 %s10332_s19, 4  ;;  %p10254_p4 = scmp.ne.s32.totalorder %s12056_s17, %s10253_s6  ;;  %s183_s24 = int_to_ptr.vmem [resolvable:$true] %s182_s24 }
  0xe8   :  { %p10257_p5 = scmp.lt.u32.totalorder %s10253_s6, %s12056_s17 }
  0xea   :  { %p10259_p6 = pnand %p10257_p5, %p10254_p4 }
  0xec   :  { %10262 = shalt.err (!%p10259_p6)
}
  0xed   :  { %s10263_s5 = scalar_lea.vmem %s183_s24, 1152  ;;  %p10268_p8 = scmp.lt.s32.totalorder %s183_s24, %s183_s24 }
  0xee   :  { %p10264_p7 = scmp.ne.s32.totalorder %s183_s24, %s10263_s5  ;;  %p10269_p9 = scmp.lt.s32.totalorder %s10263_s5, %s10263_s5 }
  0xf0   :  { %p10270_p10 = por %p10269_p9, %p10268_p8 }
  0xf2   :  { %p10271_p11 = pnand %p10270_p10, %p10264_p7 }
  0xf4   :  { %10274 = shalt.err (!%p10271_p11)
}
  0xf5   :  { %188 = dma.hbm_to_vmem [thread:$0]  %s12056_s17, 1152, %s183_s24, [#allocation21], %s12097_s8, %s12097_s8, %s12096_s27  }
  0xf6   :  { %10297 = dma.done.wait [#allocation3], 256  }
  0xf7   :  { %10298 = vsyncadd [#allocation3], 4294967040 }
  0xf8   :  { %10299 = dma.done.wait [#allocation6], 18528  }
  0xf9   :  { %10300 = vsyncadd [#allocation6], 4294948768 }
  0xfa   :  { %10301 = dma.done.wait [#allocation9], 12384  }
  0xfb   :  { %10302 = vsyncadd [#allocation9], 4294954912 }
  0xfc   :  { %10303 = dma.done.wait [#allocation12], 6192  }
  0xfd   :  { %10304 = vsyncadd [#allocation12], 4294961104 }
  0xfe   :  { %10305 = dma.done.wait [#allocation15], 3120  }
  0xff   :  { %10306 = vsyncadd [#allocation15], 4294964176 }
 0x100   :  { %10307 = dma.done.wait [#allocation18], 18432  }
 0x101   :  { %10308 = vsyncadd [#allocation18], 4294948864 }
 0x102   :  { %10309 = dma.done.wait [#allocation21], 1152  }
 0x103   :  { %10310 = vsyncadd [#allocation21], 4294966144  ;;  %v12078_v0 = vmov 0.0|0.0   ;;  %vm10334_vm0 = vmmov 0   ;;  %v12080_v1 = vmov 0.0   ;;  %vm292_vm1 = vcmask 1043456  }
 0x104   :  { %9198 = vmatprep.subr.bf16.mxu0 %v12078_v0  ;;  %9202 = vmatprep.subr.bf16.mxu1 %v12078_v0  ;;  %v230_v2 = vld [vmem:[#allocation2] sm:$0xff]  ;;  %v231_v3 = vld [vmem:[#allocation2 + $0x8] sm:$0xf]  ;;  %vm10336_vm2 = vmmov 1   ;;  %vm264_vm4 = vcmask 97280   ;;  %v234_v13 = vld [vmem:[%s12053_s14 + $0x10] sm:$0xff] }
 0x105   :  { %8570 = vmatprep.mubr.msk.f32.mxu0 %vm10334_vm0, %v12080_v1  ;;  %8601 = vmatprep.mubr.msk.f32.mxu1 %vm10334_vm0, %v12080_v1  ;;  %vm10632_vm3 = vmpackc.low %vm292_vm1, %vm10336_vm2  ;;  %v10636_v5 = vpack.c.bf16 %v231_v3, %v230_v2  ;;  %v232_v6 = vld [vmem:[%s12053_s14] sm:$0xff]  ;;  %v233_v8 = vld [vmem:[%s12053_s14 + $0x8] sm:$0xff]  ;;  %v12076_v40 = vmov 0   ;;  %s12113_s25 = sld [smem:[#allocation38_spill]]  ;;  %s10338_s0 = smov [#allocation22]  }
 0x106   :  { %v241_v7 = vld [vmem:[%s12054_s15] sm:$0xff]  ;;  %v242_v9 = vld [vmem:[%s12054_s15 + $0x8] sm:$0xff]  ;;  %v9438_v10 = vld [vmem:[#allocation5 + $0x4] ss:$8 sps:$4 sm:$0xff]   ;;  %9434 = vset.pattern.permute.xlu0 %v12076_v40  ;;  %9435 = vset.pattern.permute.xlu1 %v12076_v40  ;;  %s7525_s19 = sshll.u32 %s10338_s0, 4  ;;  %s7526_s19 = int_to_ptr.vmem [resolvable:$true] %s7525_s19 }
 0x107   :  { %9201 = vmatpush3.bf16.msk.msra.mxu0 %vm10632_vm3, %v10636_v5  ;;  %9205 = vmatpush3.bf16.msk.msra.mxu1 %vm10632_vm3, %v10636_v5  ;;  %v9436_v11 = vld [vmem:[#allocation5] ss:$8 sps:$4 sm:$0xff]   ;;  %v9441_v12 = vld [vmem:[#allocation5 + $0x14] ss:$8 sps:$4 sm:$0xff]   ;;  %v9439_v15 = vld [vmem:[#allocation5 + $0x10] ss:$8 sps:$4 sm:$0xff]   ;;  %p10280_p13 = scmp.lt.s32.totalorder %s7526_s19, %s7526_s19 }
 0x108   :  { %674 = vmatprep.subr.bf16.mxu0 %v9438_v10  ;;  %v243_v14 = vld [vmem:[%s12054_s15 + $0x10] sm:$0xff]  ;;  %v235_v16 = vld [vmem:[%s12053_s14 + $0x18] sm:$0xff]  ;;  %v9447_v20 = vld [vmem:[#allocation5 + $0x34] ss:$8 sps:$4 sm:$0xff]   ;;  %s10275_s24 = scalar_lea.vmem %s7526_s19, 32 }
 0x109   :  { %v9444_v17 = vld [vmem:[#allocation5 + $0x24] ss:$8 sps:$4 sm:$0xff]   ;;  %v9442_v19 = vld [vmem:[#allocation5 + $0x20] ss:$8 sps:$4 sm:$0xff]   ;;  %v236_v21 = vld [vmem:[%s12053_s14 + $0x20] sm:$0xff]  ;;  %p10276_p12 = scmp.ne.s32.totalorder %s7526_s19, %s10275_s24  ;;  %p10281_p0 = scmp.lt.s32.totalorder %s10275_s24, %s10275_s24 }
 0x10a   :  { %8571 = vmatmul.mubr.msk.f32.vlgmr.msra.gmra.mrb[0].mxu0 %vm264_vm4, %v232_v6  ;;  %8602 = vmatmul.mubr.msk.f32.vlgmr.msra.gmra.mrb[0].mxu1 %vm264_vm4, %v241_v7  ;;  %v244_v18 = vld [vmem:[%s12054_s15 + $0x18] sm:$0xff]  ;;  %v245_v22 = vld [vmem:[%s12054_s15 + $0x20] sm:$0xff]  ;;  %v237_v25 = vld [vmem:[%s12053_s14 + $0x28] sm:$0xff] }
 0x10b   :  { %8573 = vmatprep.mubr.msk.f32.mxu0 %vm10334_vm0, %v12080_v1  ;;  %8604 = vmatprep.mubr.msk.f32.mxu1 %vm10334_vm0, %v12080_v1  ;;  %v9445_v23 = vld [vmem:[#allocation5 + $0x30] ss:$8 sps:$4 sm:$0xff]   ;;  %v9450_v24 = vld [vmem:[#allocation5 + $0x44] ss:$8 sps:$4 sm:$0xff]   ;;  %v9448_v27 = vld [vmem:[#allocation5 + $0x40] ss:$8 sps:$4 sm:$0xff]   ;;  %p10282_p1 = por %p10281_p0, %p10280_p13 }
 0x10c   :  { %675 = vmatpush1.bf16.msra.mxu0 %v9436_v11  ;;  %v246_v26 = vld [vmem:[%s12054_s15 + $0x28] sm:$0xff]  ;;  %v238_v29 = vld [vmem:[%s12053_s14 + $0x30] sm:$0xff]  ;;  %v239_v32 = vld [vmem:[%s12053_s14 + $0x38] sm:$0xff] }
 0x10d   :  { %676 = vmatprep.subr.bf16.mxu0 %v9441_v12  ;;  %v9453_v28 = vld [vmem:[#allocation5 + $0x54] ss:$8 sps:$4 sm:$0xff]   ;;  %v247_v30 = vld [vmem:[%s12054_s15 + $0x30] sm:$0xff]  ;;  %v9451_v31 = vld [vmem:[#allocation5 + $0x50] ss:$8 sps:$4 sm:$0xff]   ;;  %p10283_p2 = pnand %p10282_p1, %p10276_p12 }
 0x10e   :  { %8574 = vmatmul.mubr.msk.f32.gmra.mrb[2].mxu0 %vm264_vm4, %v233_v8  ;;  %8605 = vmatmul.mubr.msk.f32.gmra.mrb[2].mxu1 %vm264_vm4, %v242_v9  ;;  %v248_v33 = vld [vmem:[%s12054_s15 + $0x38] sm:$0xff]  ;;  %v240_v34 = vld [vmem:[%s12053_s14 + $0x40] sm:$0xff]  ;;  %v9465_v43 = vld [vmem:[#allocation8 + $0x14] ss:$8 sps:$4 sm:$0xff]  }
 0x10f   :  { %8576 = vmatprep.mubr.msk.f32.mxu0 %vm10334_vm0, %v12080_v1  ;;  %8607 = vmatprep.mubr.msk.f32.mxu1 %vm10334_vm0, %v12080_v1  ;;  %v249_v35 = vld [vmem:[%s12054_s15 + $0x40] sm:$0xff]  ;;  %v9456_v36 = vld [vmem:[#allocation5 + $0x64] ss:$8 sps:$4 sm:$0xff]   ;;  %v9454_v37 = vld [vmem:[#allocation5 + $0x60] ss:$8 sps:$4 sm:$0xff]  }
 0x110   :  { %677 = vmatpush1.bf16.msra.mxu0 %v9439_v15  ;;  %v9459_v38 = vld [vmem:[#allocation5 + $0x74] ss:$8 sps:$4 sm:$0xff]   ;;  %v9457_v39 = vld [vmem:[#allocation5 + $0x70] ss:$8 sps:$4 sm:$0xff]  }
 0x111   :  { %678 = vmatprep.subr.bf16.mxu0 %v9444_v17  ;;  %v9460_v41 = vld [vmem:[#allocation8] ss:$8 sps:$4 sm:$0xff]   ;;  %v9462_v42 = vld [vmem:[#allocation8 + $0x4] ss:$8 sps:$4 sm:$0xff]   ;;  %v9463_v44 = vld [vmem:[#allocation8 + $0x10] ss:$8 sps:$4 sm:$0xff]  }
 0x112   :  { %8577 = vmatmul.mubr.msk.f32.gmra.mrb[4].mxu0 %vm264_vm4, %v234_v13  ;;  %8608 = vmatmul.mubr.msk.f32.gmra.mrb[4].mxu1 %vm264_vm4, %v243_v14  ;;  %v9468_v45 = vld [vmem:[#allocation8 + $0x24] ss:$8 sps:$4 sm:$0xff]   ;;  %v9466_v46 = vld [vmem:[#allocation8 + $0x20] ss:$8 sps:$4 sm:$0xff]   ;;  %v9471_v47 = vld [vmem:[#allocation8 + $0x34] ss:$8 sps:$4 sm:$0xff]  }
 0x113   :  { %8579 = vmatprep.mubr.msk.f32.mxu0 %vm10334_vm0, %v12080_v1  ;;  %8610 = vmatprep.mubr.msk.f32.mxu1 %vm10334_vm0, %v12080_v1  ;;  %v9469_v48 = vld [vmem:[#allocation8 + $0x30] ss:$8 sps:$4 sm:$0xff]   ;;  %v9474_v49 = vld [vmem:[#allocation8 + $0x44] ss:$8 sps:$4 sm:$0xff]   ;;  %v9472_v50 = vld [vmem:[#allocation8 + $0x40] ss:$8 sps:$4 sm:$0xff]  }
 0x114   :  { %679 = vmatpush1.bf16.msra.mxu0 %v9442_v19  ;;  %1023 = vmatprep.subr.bf16.mxu1 %v9462_v42  ;;  %v9477_v51 = vld [vmem:[#allocation8 + $0x54] ss:$8 sps:$4 sm:$0xff]   ;;  %v9475_v52 = vld [vmem:[#allocation8 + $0x50] ss:$8 sps:$4 sm:$0xff]   ;;  %v9480_v53 = vld [vmem:[#allocation8 + $0x64] ss:$8 sps:$4 sm:$0xff]  }
 0x115   :  { %680 = vmatprep.subr.bf16.mxu0 %v9447_v20  ;;  %1024 = vmatpush1.bf16.msra.mxu1 %v9460_v41  ;;  %v9478_v54 = vld [vmem:[#allocation8 + $0x60] ss:$8 sps:$4 sm:$0xff]   ;;  %v9483_v55 = vld [vmem:[#allocation8 + $0x74] ss:$8 sps:$4 sm:$0xff]   ;;  %v9481_v56 = vld [vmem:[#allocation8 + $0x70] ss:$8 sps:$4 sm:$0xff]  }
 0x116   :  { %8580 = vmatmul.mubr.msk.f32.gmra.mrb[6].mxu0 %vm264_vm4, %v235_v16  ;;  %8611 = vmatmul.mubr.msk.f32.gmra.mrb[6].mxu1 %vm264_vm4, %v244_v18  ;;  %v9486_v57 = vld [vmem:[#allocation8 + $0x84] ss:$8 sps:$4 sm:$0xff]   ;;  %v9484_v58 = vld [vmem:[#allocation8 + $0x80] ss:$8 sps:$4 sm:$0xff]   ;;  %v9489_v59 = vld [vmem:[#allocation8 + $0x94] ss:$8 sps:$4 sm:$0xff]  }
 0x117   :  { %8582 = vmatprep.mubr.msk.f32.mxu0 %vm10334_vm0, %v12080_v1  ;;  %8613 = vmatprep.mubr.msk.f32.mxu1 %vm10334_vm0, %v12080_v1  ;;  %v9487_v60 = vld [vmem:[#allocation8 + $0x90] ss:$8 sps:$4 sm:$0xff]   ;;  %v9492_v61 = vld [vmem:[#allocation8 + $0xa4] ss:$8 sps:$4 sm:$0xff]   ;;  %v9490_v62 = vld [vmem:[#allocation8 + $0xa0] ss:$8 sps:$4 sm:$0xff]  }
 0x118   :  { %681 = vmatpush1.bf16.msra.mxu0 %v9445_v23  ;;  %1025 = vmatprep.subr.bf16.mxu1 %v9465_v43  ;;  %v9495_v63 = vld [vmem:[#allocation8 + $0xb4] ss:$8 sps:$4 sm:$0xff]   ;;  %v9493_v2 = vld [vmem:[#allocation8 + $0xb0] ss:$8 sps:$4 sm:$0xff]   ;;  %v9498_v3 = vld [vmem:[#allocation8 + $0xc4] ss:$8 sps:$4 sm:$0xff]  }
 0x119   :  { %682 = vmatprep.subr.bf16.mxu0 %v9450_v24  ;;  %1026 = vmatpush1.bf16.msra.mxu1 %v9463_v44  ;;  %v9496_v6 = vld [vmem:[#allocation8 + $0xc0] ss:$8 sps:$4 sm:$0xff]   ;;  %v9874_v4 = vld [vmem:[#allocation19 + $0x188] sm:$0xff]  }
 0x11a   :  { %8583 = vmatmul.mubr.msk.f32.gmra.mrb[8].mxu0 %vm264_vm4, %v236_v21  ;;  %8614 = vmatmul.mubr.msk.f32.gmra.mrb[8].mxu1 %vm264_vm4, %v245_v22 }
 0x11b   :  { %8585 = vmatprep.mubr.msk.f32.mxu0 %vm10334_vm0, %v12080_v1  ;;  %8616 = vmatprep.mubr.msk.f32.mxu1 %vm10334_vm0, %v12080_v1 }
 0x11c   :  { %683 = vmatpush1.bf16.msra.mxu0 %v9448_v27  ;;  %1027 = vmatprep.subr.bf16.mxu1 %v9468_v45 }
 0x11d   :  { %684 = vmatprep.subr.bf16.mxu0 %v9453_v28  ;;  %1028 = vmatpush1.bf16.msra.mxu1 %v9466_v46 }
 0x11e   :  { %8586 = vmatmul.mubr.msk.f32.gmra.mrb[10].mxu0 %vm264_vm4, %v237_v25  ;;  %8617 = vmatmul.mubr.msk.f32.gmra.mrb[10].mxu1 %vm264_vm4, %v246_v26 }
 0x11f   :  { %8588 = vmatprep.mubr.msk.f32.mxu0 %vm10334_vm0, %v12080_v1  ;;  %8619 = vmatprep.mubr.msk.f32.mxu1 %vm10334_vm0, %v12080_v1 }
 0x120   :  { %685 = vmatpush1.bf16.msra.mxu0 %v9451_v31  ;;  %1029 = vmatprep.subr.bf16.mxu1 %v9471_v47 }
 0x121   :  { %686 = vmatprep.subr.bf16.mxu0 %v9456_v36  ;;  %1030 = vmatpush1.bf16.msra.mxu1 %v9469_v48 }
 0x122   :  { %8589 = vmatmul.mubr.msk.f32.gmra.mrb[12].mxu0 %vm264_vm4, %v238_v29  ;;  %8620 = vmatmul.mubr.msk.f32.gmra.mrb[12].mxu1 %vm264_vm4, %v247_v30 }
 0x123   :  { %8591 = vmatprep.mubr.msk.f32.mxu0 %vm10334_vm0, %v12080_v1  ;;  %8622 = vmatprep.mubr.msk.f32.mxu1 %vm10334_vm0, %v12080_v1 }
 0x124   :  { %687 = vmatpush1.bf16.msra.mxu0 %v9454_v37  ;;  %1031 = vmatprep.subr.bf16.mxu1 %v9474_v49 }
 0x125   :  { %688 = vmatprep.subr.bf16.mxu0 %v9459_v38  ;;  %1032 = vmatpush1.bf16.msra.mxu1 %v9472_v50 }
 0x126   :  { %8592 = vmatmul.mubr.msk.f32.gmra.mrb[14].mxu0 %vm264_vm4, %v239_v32  ;;  %8623 = vmatmul.mubr.msk.f32.gmra.mrb[14].mxu1 %vm264_vm4, %v248_v33 }
 0x127   :  { %8594 = vmatprep.mubr.msk.f32.mxu0 %vm10334_vm0, %v12080_v1  ;;  %8625 = vmatprep.mubr.msk.f32.mxu1 %vm10334_vm0, %v12080_v1 }
 0x128   :  { %689 = vmatpush1.bf16.msra.mxu0 %v9457_v39  ;;  %1033 = vmatprep.subr.bf16.mxu1 %v9477_v51 }
 0x129   :  { %1034 = vmatpush1.bf16.msra.mxu1 %v9475_v52 }
 0x12a   :  { %8595 = vmatmul.mubr.msk.f32.gmra.mrb[16].mxu0 %vm264_vm4, %v240_v34  ;;  %8626 = vmatmul.mubr.msk.f32.gmra.mrb[16].mxu1 %vm264_vm4, %v249_v35 }
 0x12b   :  { %706 = vmatprep.mubr.bf16.mxu0 %v12076_v40  ;;  %1035 = vmatprep.subr.bf16.mxu1 %v9480_v53 }
 0x12d   :  { %1036 = vmatpush1.bf16.msra.mxu1 %v9478_v54 }
 0x12e   :  { %1037 = vmatprep.subr.bf16.mxu1 %v9483_v55 }
 0x131   :  { %1038 = vmatpush1.bf16.msra.mxu1 %v9481_v56 }
 0x132   :  { %1039 = vmatprep.subr.bf16.mxu1 %v9486_v57 }
 0x135   :  { %1040 = vmatpush1.bf16.msra.mxu1 %v9484_v58 }
 0x136   :  { %1041 = vmatprep.subr.bf16.mxu1 %v9489_v59 }
 0x139   :  { %1042 = vmatpush1.bf16.msra.mxu1 %v9487_v60 }
 0x13a   :  { %1043 = vmatprep.subr.bf16.mxu1 %v9492_v61 }
 0x13d   :  { %1044 = vmatpush1.bf16.msra.mxu1 %v9490_v62 }
 0x13e   :  { %1045 = vmatprep.subr.bf16.mxu1 %v9495_v63 }
 0x141   :  { %1046 = vmatpush1.bf16.msra.mxu1 %v9493_v2 }
 0x142   :  { %1047 = vmatprep.subr.bf16.mxu1 %v9498_v3 }
 0x145   :  { %1048 = vmatpush1.bf16.msra.mxu1 %v9496_v6 }
 0x1dd   :  { %v362_v7 = vpop.f32.mrb[0].mxu0  ;;  %v10751_v8 = vpop.f32.mrb[0].mxu1 }
 0x1de   :  { %v543_v9 = vsub.f32 %v362_v7, %v10751_v8  ;;  %v8572_v10 = vpop.f32.mrb[1].mxu0  ;;  %v8603_v11 = vpop.f32.mrb[1].mxu1  ;;  %v9501_v7 = vld [vmem:[#allocation8 + $0xd4] ss:$8 sps:$4 sm:$0xff]  }
 0x1df   :  { %1049 = vmatprep.subr.bf16.mxu1 %v9501_v7  ;;  %v9504_v10 = vld [vmem:[#allocation8 + $0xe4] ss:$8 sps:$4 sm:$0xff]   ;;  %v9502_v11 = vld [vmem:[#allocation8 + $0xe0] ss:$8 sps:$4 sm:$0xff]  }
 0x1e0   :  { %v552_v17 = vand.u32 2147483647, %v543_v9  ;;  %v9499_v9 = vld [vmem:[#allocation8 + $0xd0] ss:$8 sps:$4 sm:$0xff]  }
 0x1e1   :  { %v367_v12 = vpop.f32.mrb[2].mxu0  ;;  %v10754_v13 = vpop.f32.mrb[2].mxu1  ;;  %1050 = vmatpush1.bf16.msra.mxu1 %v9499_v9 }
 0x1e2   :  { %v544_v14 = vsub.f32 %v367_v12, %v10754_v13  ;;  %v8575_v15 = vpop.f32.mrb[3].mxu0  ;;  %v8606_v16 = vpop.f32.mrb[3].mxu1  ;;  %1051 = vmatprep.subr.bf16.mxu1 %v9504_v10  ;;  %v9507_v12 = vld [vmem:[#allocation8 + $0xf4] ss:$8 sps:$4 sm:$0xff]  }
 0x1e3   :  { %v9508_v15 = vld [vmem:[#allocation11 + $0x40] sm:$0xff]  }
 0x1e4   :  { %v553_v18 = vand.u32 2147483647, %v544_v14  ;;  %v9505_v14 = vld [vmem:[#allocation8 + $0xf0] ss:$8 sps:$4 sm:$0xff]   ;;  %v9509_v16 = vld [vmem:[#allocation11] sm:$0xff]   ;;  %8110 = vmatprep.subr.bf16.mxu0 %v9508_v15 }
 0x1e5   :  { %v372_v19 = vpop.f32.mrb[4].mxu0  ;;  %v10757_v20 = vpop.f32.mrb[4].mxu1  ;;  %1052 = vmatpush1.bf16.msra.mxu1 %v9502_v11 }
 0x1e6   :  { %v561_v21 = vpack.c.bf16 %v553_v18, %v552_v17  ;;  %v545_v22 = vsub.f32 %v372_v19, %v10757_v20  ;;  %v8578_v23 = vpop.f32.mrb[5].mxu0  ;;  %v8609_v24 = vpop.f32.mrb[5].mxu1  ;;  %1053 = vmatprep.subr.bf16.mxu1 %v9507_v12  ;;  %v9510_v17 = vld [vmem:[#allocation11 + $0x48] sm:$0xff]   ;;  %v9512_v19 = vld [vmem:[#allocation11 + $0x50] sm:$0xff]  }
 0x1e7   :  { %v9511_v18 = vld [vmem:[#allocation11 + $0x8] sm:$0xff]   ;;  %v9515_v23 = vld [vmem:[#allocation11 + $0x18] sm:$0xff]   ;;  %v9516_v24 = vld [vmem:[#allocation11 + $0x60] sm:$0xff]  }
 0x1e8   :  { %707 = vmatmul.mubr.bf16.vlgmr.msra.gmra.mrb[20].mxu0 %v561_v21  ;;  %v554_v30 = vand.u32 2147483647, %v545_v22  ;;  %v9513_v21 = vld [vmem:[#allocation11 + $0x10] sm:$0xff]   ;;  %v9514_v22 = vld [vmem:[#allocation11 + $0x58] sm:$0xff]  }
 0x1e9   :  { %v377_v25 = vpop.f32.mrb[6].mxu0  ;;  %v10760_v26 = vpop.f32.mrb[6].mxu1  ;;  %716 = vmatprep.mubr.bf16.mxu0 %v12076_v40  ;;  %1054 = vmatpush1.bf16.msra.mxu1 %v9505_v14 }
 0x1ea   :  { %v546_v27 = vsub.f32 %v377_v25, %v10760_v26  ;;  %v8581_v28 = vpop.f32.mrb[7].mxu0  ;;  %v8612_v29 = vpop.f32.mrb[7].mxu1  ;;  %8628 = vmatprep.subr.bf16.mxu1 %v12080_v1  ;;  %8111 = vmatpush3.bf16.msra.mxu0 %v9509_v16  ;;  %v9517_v25 = vld [vmem:[#allocation11 + $0x20] sm:$0xff]  }
 0x1eb   :  { %8112 = vmatprep.subr.bf16.mxu0 %v9510_v17 }
 0x1ec   :  { %v555_v31 = vand.u32 2147483647, %v546_v27  ;;  %v584_v27 = vlaneseq }
 0x1ed   :  { %v382_v32 = vpop.f32.mrb[8].mxu0  ;;  %v10764_v33 = vpop.f32.mrb[8].mxu1 }
 0x1ee   :  { %v547_v34 = vsub.f32 %v382_v32, %v10764_v33  ;;  %v8584_v35 = vpop.f32.mrb[9].mxu0  ;;  %v8615_v36 = vpop.f32.mrb[9].mxu1  ;;  %v562_v37 = vpack.c.bf16 %v555_v31, %v554_v30  ;;  %8113 = vmatpush3.bf16.msra.mxu0 %v9511_v18  ;;  %v585_v28 = vshrl.u32 %v584_v27, 7  ;;  %v582_v30 = vld [vmem:[#allocation7] sm:$0x3] }
 0x1ef   :  { %8114 = vmatprep.subr.bf16.mxu0 %v9512_v19 }
 0x1f0   :  { %717 = vmatmul.mubr.bf16.gmra.mrb[24].mxu0 %v562_v37  ;;  %v556_v44 = vand.u32 2147483647, %v547_v34  ;;  %v10783_v29 = vsub.s32 0, %v585_v28  ;;  %v10785_v31 = vsub.s32 1, %v585_v28 }
 0x1f1   :  { %v387_v38 = vpop.f32.mrb[10].mxu0  ;;  %v10767_v39 = vpop.f32.mrb[10].mxu1  ;;  %726 = vmatprep.mubr.bf16.mxu0 %v12076_v40 }
 0x1f2   :  { %v548_v41 = vsub.f32 %v387_v38, %v10767_v39  ;;  %v8587_v42 = vpop.f32.mrb[11].mxu0  ;;  %v8618_v43 = vpop.f32.mrb[11].mxu1  ;;  %8115 = vmatpush3.bf16.msra.mxu0 %v9513_v21  ;;  %12106 = vst [vmem:[#allocation31_spill] sm:$0xff] %v10783_v29  ;;  %12107 = vst [vmem:[#allocation32_spill] sm:$0xff] %v10785_v31  ;;  %v10788_v32 = vrot.slane %v582_v30, %v10783_v29  ;;  %v10791_v34 = vrot.slane %v582_v30, %v10785_v31 }
 0x1f3   :  { %8116 = vmatprep.subr.bf16.mxu0 %v9514_v22 }
 0x1f4   :  { %v557_v45 = vand.u32 2147483647, %v548_v41 }
 0x1f5   :  { %v392_v46 = vpop.f32.mrb[12].mxu0  ;;  %v10771_v47 = vpop.f32.mrb[12].mxu1 }
 0x1f6   :  { %v549_v48 = vsub.f32 %v392_v46, %v10771_v47  ;;  %v8590_v49 = vpop.f32.mrb[13].mxu0  ;;  %v8621_v50 = vpop.f32.mrb[13].mxu1  ;;  %v563_v51 = vpack.c.bf16 %v557_v45, %v556_v44  ;;  %8117 = vmatpush3.bf16.msra.mxu0 %v9515_v23 }
 0x1f7   :  { %8118 = vmatprep.subr.bf16.mxu0 %v9516_v24 }
 0x1f8   :  { %727 = vmatmul.mubr.bf16.gmra.mrb[28].mxu0 %v563_v51  ;;  %v558_v57 = vand.u32 2147483647, %v549_v48 }
 0x1f9   :  { %v397_v52 = vpop.f32.mrb[14].mxu0  ;;  %v10774_v53 = vpop.f32.mrb[14].mxu1  ;;  %736 = vmatprep.mubr.bf16.mxu0 %v12076_v40 }
 0x1fa   :  { %v550_v54 = vsub.f32 %v397_v52, %v10774_v53  ;;  %v8593_v55 = vpop.f32.mrb[15].mxu0  ;;  %v8624_v56 = vpop.f32.mrb[15].mxu1  ;;  %8119 = vmatpush3.bf16.msra.mxu0 %v9517_v25 }
 0x1fc   :  { %v559_v58 = vand.u32 2147483647, %v550_v54 }
 0x1fd   :  { %v402_v59 = vpop.f32.mrb[16].mxu0  ;;  %v10778_v60 = vpop.f32.mrb[16].mxu1 }
 0x1fe   :  { %v564_v61 = vpack.c.bf16 %v559_v58, %v558_v57  ;;  %v551_v62 = vsub.f32 %v402_v59, %v10778_v60  ;;  %v8596_v63 = vpop.f32.mrb[17].mxu0  ;;  %v8627_v2 = vpop.f32.mrb[17].mxu1 }
 0x200   :  { %737 = vmatmul.mubr.bf16.gmra.mrb[32].mxu0 %v564_v61  ;;  %v560_v3 = vand.u32 2147483647, %v551_v62 }
 0x201   :  { %746 = vmatprep.mubr.bf16.mxu0 %v12076_v40 }
 0x202   :  { %v565_v6 = vpack.c.bf16 %v560_v3, %v560_v3 }
 0x208   :  { %747 = vmatmul.mubr.bf16.gmra.mrb[36].mxu0 %v565_v6 }
 0x2bb   :  { %v708_v35 = vpop.f32.mrb[20].mxu0 }
 0x2bc   :  { %v709_v36 = vadd.f32 %v708_v35, %v10788_v32  ;;  %v710_v37 = vpop.f32.mrb[21].mxu0 }
 0x2bd   :  { %v711_v38 = vadd.f32 %v710_v37, %v10791_v34  ;;  %v712_v41 = vpop.f32.mrb[22].mxu0 }
 0x2be   :  { %v773_v42 = vmul.f32 0.01, %v709_v36  ;;  %v713_v43 = vadd.f32 %v712_v41, %v10788_v32  ;;  %v714_v44 = vpop.f32.mrb[23].mxu0  ;;  %vm755_vm5 = vcmp.ge.f32.partialorder %v709_v36, 0.0 }
 0x2bf   :  { %v774_v45 = vmul.f32 0.01, %v711_v38  ;;  %v715_v46 = vadd.f32 %v714_v44, %v10791_v34  ;;  %vm756_vm6 = vcmp.ge.f32.partialorder %v711_v38, 0.0 }
 0x2c0   :  { %vm757_vm7 = vcmp.ge.f32.partialorder %v713_v43, 0.0  ;;  %v775_v48 = vmul.f32 0.01, %v713_v43  ;;  %v791_v50 = vsel %vm755_vm5, %v709_v36, %v773_v42 }
 0x2c1   :  { %vm758_vm8 = vcmp.ge.f32.partialorder %v715_v46, 0.0  ;;  %v776_v49 = vmul.f32 0.01, %v715_v46  ;;  %v792_v55 = vsel %vm756_vm6, %v711_v38, %v774_v45 }
 0x2c2   :  { %v793_v51 = vsel %vm757_vm7, %v713_v43, %v775_v48 }
 0x2c3   :  { %v809_v52 = vpack.c.bf16 %v793_v51, %v791_v50  ;;  %v718_v54 = vpop.f32.mrb[24].mxu0  ;;  %v794_v56 = vsel %vm758_vm8, %v715_v46, %v776_v49 }
 0x2c4   :  { %v719_v57 = vadd.f32 %v718_v54, %v10788_v32  ;;  %v720_v58 = vpop.f32.mrb[25].mxu0  ;;  %v810_v59 = vpack.c.bf16 %v794_v56, %v792_v55 }
 0x2c5   :  { %v721_v61 = vadd.f32 %v720_v58, %v10791_v34  ;;  %v722_v62 = vpop.f32.mrb[26].mxu0 }
 0x2c6   :  { %v777_v63 = vmul.f32 0.01, %v719_v57  ;;  %v723_v2 = vadd.f32 %v722_v62, %v10788_v32  ;;  %v724_v3 = vpop.f32.mrb[27].mxu0  ;;  %1055 = vmatprep.mubr.bf16.mxu1 %v810_v59  ;;  %vm759_vm9 = vcmp.ge.f32.partialorder %v719_v57, 0.0 }
 0x2c7   :  { %v778_v6 = vmul.f32 0.01, %v721_v61  ;;  %v725_v7 = vadd.f32 %v724_v3, %v10791_v34  ;;  %1056 = vmatmul.mubr.bf16.vlgmr.msra.gmra.mrb[20].mxu1 %v809_v52  ;;  %vm760_vm10 = vcmp.ge.f32.partialorder %v721_v61, 0.0 }
 0x2c8   :  { %vm761_vm11 = vcmp.ge.f32.partialorder %v723_v2, 0.0  ;;  %v779_v9 = vmul.f32 0.01, %v723_v2  ;;  %v795_v11 = vsel %vm759_vm9, %v719_v57, %v777_v63 }
 0x2c9   :  { %vm762_vm12 = vcmp.ge.f32.partialorder %v725_v7, 0.0  ;;  %v780_v10 = vmul.f32 0.01, %v725_v7  ;;  %v796_v15 = vsel %vm760_vm10, %v721_v61, %v778_v6 }
 0x2ca   :  { %v797_v12 = vsel %vm761_vm11, %v723_v2, %v779_v9 }
 0x2cb   :  { %v728_v14 = vpop.f32.mrb[28].mxu0  ;;  %v798_v16 = vsel %vm762_vm12, %v725_v7, %v780_v10  ;;  %v811_v17 = vpack.c.bf16 %v797_v12, %v795_v11 }
 0x2cc   :  { %v729_v18 = vadd.f32 %v728_v14, %v10788_v32  ;;  %v730_v19 = vpop.f32.mrb[29].mxu0  ;;  %v812_v21 = vpack.c.bf16 %v798_v16, %v796_v15 }
 0x2cd   :  { %v731_v22 = vadd.f32 %v730_v19, %v10791_v34  ;;  %v732_v23 = vpop.f32.mrb[30].mxu0 }
 0x2ce   :  { %v781_v24 = vmul.f32 0.01, %v729_v18  ;;  %v733_v25 = vadd.f32 %v732_v23, %v10788_v32  ;;  %v734_v27 = vpop.f32.mrb[31].mxu0  ;;  %1065 = vmatprep.mubr.bf16.mxu1 %v812_v21  ;;  %vm763_vm13 = vcmp.ge.f32.partialorder %v729_v18, 0.0  ;;  %v9519_v21 = vld [vmem:[#allocation11 + $0x28] sm:$0xff]   ;;  %v9522_v23 = vld [vmem:[#allocation11 + $0x78] sm:$0xff]  }
 0x2cf   :  { %v782_v28 = vmul.f32 0.01, %v731_v22  ;;  %v735_v30 = vadd.f32 %v734_v27, %v10791_v34  ;;  %1066 = vmatmul.mubr.bf16.gmra.mrb[24].mxu1 %v811_v17  ;;  %vm764_vm14 = vcmp.ge.f32.partialorder %v731_v22, 0.0  ;;  %v9525_v27 = vld [vmem:[%s12046_s7 + $0x8] sm:$0xff]  }
 0x2d0   :  { %vm765_vm15 = vcmp.ge.f32.partialorder %v733_v25, 0.0  ;;  %v783_v35 = vmul.f32 0.01, %v733_v25  ;;  %v799_v37 = vsel %vm763_vm13, %v729_v18, %v781_v24  ;;  %v9523_v24 = vld [vmem:[#allocation11 + $0x38] sm:$0xff]  }
 0x2d1   :  { %vm766_vm2 = vcmp.ge.f32.partialorder %v735_v30, 0.0  ;;  %v784_v36 = vmul.f32 0.01, %v735_v30  ;;  %v800_v42 = vsel %vm764_vm14, %v731_v22, %v782_v28  ;;  %v9521_v22 = vld [vmem:[#allocation11 + $0x30] sm:$0xff]  }
 0x2d2   :  { %v801_v38 = vsel %vm765_vm15, %v733_v25, %v783_v35  ;;  %v9524_v25 = vld [vmem:[%s12046_s7] sm:$0xff]   ;;  %v9526_v28 = vld [vmem:[%s12046_s7 + $0x10] sm:$0xff]  }
 0x2d3   :  { %v738_v41 = vpop.f32.mrb[32].mxu0  ;;  %v802_v43 = vsel %vm766_vm2, %v735_v30, %v784_v36  ;;  %v813_v44 = vpack.c.bf16 %v801_v38, %v799_v37  ;;  %8629 = vmatpush3.bf16.msra.mxu1 %v9524_v25  ;;  %v9527_v30 = vld [vmem:[%s12046_s7 + $0x18] sm:$0xff]   ;;  %v9528_v35 = vld [vmem:[%s12046_s7 + $0x20] sm:$0xff]   ;;  %v851_v36 = vld [vmem:[#allocation10] sm:$0x3] }
 0x2d4   :  { %v739_v45 = vadd.f32 %v738_v41, %v10788_v32  ;;  %v740_v46 = vpop.f32.mrb[33].mxu0  ;;  %v814_v48 = vpack.c.bf16 %v802_v43, %v800_v42  ;;  %8630 = vmatprep.subr.bf16.mxu1 %v12080_v1  ;;  %v10835_v37 = vrot.slane %v851_v36, %v10783_v29  ;;  %v10838_v38 = vrot.slane %v851_v36, %v10785_v31 }
 0x2d5   :  { %v741_v49 = vadd.f32 %v740_v46, %v10791_v34  ;;  %v742_v50 = vpop.f32.mrb[34].mxu0 }
 0x2d6   :  { %v785_v51 = vmul.f32 0.01, %v739_v45  ;;  %v743_v52 = vadd.f32 %v742_v50, %v10788_v32  ;;  %v744_v54 = vpop.f32.mrb[35].mxu0  ;;  %1075 = vmatprep.mubr.bf16.mxu1 %v814_v48  ;;  %vm767_vm5 = vcmp.ge.f32.partialorder %v739_v45, 0.0 }
 0x2d7   :  { %v786_v55 = vmul.f32 0.01, %v741_v49  ;;  %v745_v56 = vadd.f32 %v744_v54, %v10791_v34  ;;  %1076 = vmatmul.mubr.bf16.gmra.mrb[28].mxu1 %v813_v44  ;;  %vm768_vm6 = vcmp.ge.f32.partialorder %v741_v49, 0.0 }
 0x2d8   :  { %vm769_vm7 = vcmp.ge.f32.partialorder %v743_v52, 0.0  ;;  %v787_v57 = vmul.f32 0.01, %v743_v52  ;;  %v803_v59 = vsel %vm767_vm5, %v739_v45, %v785_v51  ;;  %8631 = vmatpush3.bf16.msra.mxu1 %v9525_v27 }
 0x2d9   :  { %vm770_vm8 = vcmp.ge.f32.partialorder %v745_v56, 0.0  ;;  %v788_v58 = vmul.f32 0.01, %v745_v56  ;;  %v804_v63 = vsel %vm768_vm6, %v741_v49, %v786_v55  ;;  %8632 = vmatprep.subr.bf16.mxu1 %v12080_v1 }
 0x2da   :  { %v805_v61 = vsel %vm769_vm7, %v743_v52, %v787_v57 }
 0x2db   :  { %v748_v62 = vpop.f32.mrb[36].mxu0  ;;  %v806_v2 = vsel %vm770_vm8, %v745_v56, %v788_v58  ;;  %v815_v3 = vpack.c.bf16 %v805_v61, %v803_v59 }
 0x2dc   :  { %v749_v6 = vadd.f32 %v748_v62, %v10788_v32  ;;  %v750_v7 = vpop.f32.mrb[37].mxu0  ;;  %v816_v9 = vpack.c.bf16 %v806_v2, %v804_v63  ;;  %v9518_v32 = vld [vmem:[#allocation11 + $0x68] sm:$0xff]   ;;  %8633 = vmatpush3.bf16.msra.mxu1 %v9526_v28 }
 0x2dd   :  { %v751_v10 = vadd.f32 %v750_v7, %v10791_v34  ;;  %v752_v11 = vpop.f32.mrb[38].mxu0  ;;  %8120 = vmatprep.subr.bf16.mxu0 %v9518_v32  ;;  %v9520_v34 = vld [vmem:[#allocation11 + $0x70] sm:$0xff]   ;;  %8634 = vmatprep.subr.bf16.mxu1 %v12080_v1 }
 0x2de   :  { %vm771_vm9 = vcmp.ge.f32.partialorder %v749_v6, 0.0  ;;  %v789_v12 = vmul.f32 0.01, %v749_v6  ;;  %1085 = vmatprep.mubr.bf16.mxu1 %v816_v9  ;;  %v753_v14 = vpop.f32.mrb[39].mxu0  ;;  %8121 = vmatpush3.bf16.msra.mxu0 %v9519_v21 }
 0x2df   :  { %vm772_vm10 = vcmp.ge.f32.partialorder %v751_v10, 0.0  ;;  %v790_v15 = vmul.f32 0.01, %v751_v10  ;;  %1086 = vmatmul.mubr.bf16.gmra.mrb[32].mxu1 %v815_v3  ;;  %8122 = vmatprep.subr.bf16.mxu0 %v9520_v34 }
 0x2e0   :  { %v807_v16 = vsel %vm771_vm9, %v749_v6, %v789_v12  ;;  %8635 = vmatpush3.bf16.msra.mxu1 %v9527_v30 }
 0x2e1   :  { %v808_v17 = vsel %vm772_vm10, %v751_v10, %v790_v15  ;;  %v817_v19 = vpack.c.bf16 %v807_v16, %v807_v16  ;;  %8636 = vmatprep.subr.bf16.mxu1 %v12080_v1 }
 0x2e2   :  { %v818_v18 = vpack.c.bf16 %v808_v17, %v808_v17  ;;  %8123 = vmatpush3.bf16.msra.mxu0 %v9521_v22 }
 0x2e3   :  { %8124 = vmatprep.subr.bf16.mxu0 %v9522_v23 }
 0x2e4   :  { %1095 = vmatprep.mubr.bf16.mxu1 %v818_v18  ;;  %8637 = vmatpush3.bf16.msra.mxu1 %v9528_v35 }
 0x2e5   :  { %8638 = vmatprep.subr.bf16.mxu1 %v12080_v1 }
 0x2e6   :  { %8125 = vmatpush3.bf16.msra.mxu0 %v9523_v24 }
 0x2e7   :  { %1096 = vmatmul.mubr.bf16.gmra.mrb[36].mxu1 %v817_v19  ;;  %8664 = vmatprep.subr.bf16.mxu0 %v12080_v1 }
 0x2e8   :  { %8644 = vmatprep.mubr.msk.bf16.mxu1 %vm10334_vm0, %v12080_v1 }
 0x39a   :  { %v1057_v41 = vpop.f32.mrb[20].mxu1 }
 0x39b   :  { %v1058_v42 = vadd.f32 %v1057_v41, %v10835_v37  ;;  %v1059_v43 = vpop.f32.mrb[21].mxu1 }
 0x39c   :  { %v1060_v44 = vadd.f32 %v1059_v43, %v10838_v38  ;;  %v1061_v45 = vpop.f32.mrb[22].mxu1 }
 0x39d   :  { %v1122_v46 = vmul.f32 0.01, %v1058_v42  ;;  %v1062_v48 = vadd.f32 %v1061_v45, %v10835_v37  ;;  %v1063_v49 = vpop.f32.mrb[23].mxu1  ;;  %vm1104_vm11 = vcmp.ge.f32.partialorder %v1058_v42, 0.0 }
 0x39e   :  { %v1123_v50 = vmul.f32 0.01, %v1060_v44  ;;  %v1064_v51 = vadd.f32 %v1063_v49, %v10838_v38  ;;  %vm1105_vm12 = vcmp.ge.f32.partialorder %v1060_v44, 0.0 }
 0x39f   :  { %vm1106_vm13 = vcmp.ge.f32.partialorder %v1062_v48, 0.0  ;;  %v1124_v52 = vmul.f32 0.01, %v1062_v48  ;;  %v1140_v55 = vsel %vm1104_vm11, %v1058_v42, %v1122_v46 }
 0x3a0   :  { %vm1107_vm14 = vcmp.ge.f32.partialorder %v1064_v51, 0.0  ;;  %v1125_v54 = vmul.f32 0.01, %v1064_v51  ;;  %v1141_v59 = vsel %vm1105_vm12, %v1060_v44, %v1123_v50 }
 0x3a1   :  { %v1142_v56 = vsel %vm1106_vm13, %v1062_v48, %v1124_v52 }
 0x3a2   :  { %v1158_v57 = vpack.c.bf16 %v1142_v56, %v1140_v55  ;;  %v1067_v58 = vpop.f32.mrb[24].mxu1  ;;  %v1143_v61 = vsel %vm1107_vm14, %v1064_v51, %v1125_v54 }
 0x3a3   :  { %v1068_v62 = vadd.f32 %v1067_v58, %v10835_v37  ;;  %v1069_v63 = vpop.f32.mrb[25].mxu1  ;;  %v1159_v2 = vpack.c.bf16 %v1143_v61, %v1141_v59 }
 0x3a4   :  { %v1070_v3 = vadd.f32 %v1069_v63, %v10838_v38  ;;  %v1071_v6 = vpop.f32.mrb[26].mxu1 }
 0x3a5   :  { %v1126_v7 = vmul.f32 0.01, %v1068_v62  ;;  %v1072_v9 = vadd.f32 %v1071_v6, %v10835_v37  ;;  %v1073_v10 = vpop.f32.mrb[27].mxu1  ;;  %1335 = vmatprep.mubr.bf16.mxu0 %v1159_v2  ;;  %vm1108_vm15 = vcmp.ge.f32.partialorder %v1068_v62, 0.0 }
 0x3a6   :  { %v1127_v11 = vmul.f32 0.01, %v1070_v3  ;;  %v1074_v12 = vadd.f32 %v1073_v10, %v10838_v38  ;;  %1336 = vmatmul.mubr.bf16.vlgmr.msra.gmra.mrb[40].mxu0 %v1158_v57  ;;  %vm1109_vm2 = vcmp.ge.f32.partialorder %v1070_v3, 0.0 }
 0x3a7   :  { %vm1110_vm5 = vcmp.ge.f32.partialorder %v1072_v9, 0.0  ;;  %v1128_v14 = vmul.f32 0.01, %v1072_v9  ;;  %v1144_v16 = vsel %vm1108_vm15, %v1068_v62, %v1126_v7 }
 0x3a8   :  { %vm1111_vm6 = vcmp.ge.f32.partialorder %v1074_v12, 0.0  ;;  %v1129_v15 = vmul.f32 0.01, %v1074_v12  ;;  %v1145_v19 = vsel %vm1109_vm2, %v1070_v3, %v1127_v11 }
 0x3a9   :  { %v1146_v17 = vsel %vm1110_vm5, %v1072_v9, %v1128_v14 }
 0x3aa   :  { %v1077_v18 = vpop.f32.mrb[28].mxu1  ;;  %v1147_v32 = vsel %vm1111_vm6, %v1074_v12, %v1129_v15  ;;  %v1160_v21 = vpack.c.bf16 %v1146_v17, %v1144_v16 }
 0x3ab   :  { %v1078_v34 = vadd.f32 %v1077_v18, %v10835_v37  ;;  %v1079_v22 = vpop.f32.mrb[29].mxu1  ;;  %v1161_v23 = vpack.c.bf16 %v1147_v32, %v1145_v19 }
 0x3ac   :  { %v1080_v24 = vadd.f32 %v1079_v22, %v10838_v38  ;;  %v1081_v25 = vpop.f32.mrb[30].mxu1 }
 0x3ad   :  { %v1130_v27 = vmul.f32 0.01, %v1078_v34  ;;  %v1082_v28 = vadd.f32 %v1081_v25, %v10835_v37  ;;  %v1083_v30 = vpop.f32.mrb[31].mxu1  ;;  %1343 = vmatprep.mubr.bf16.mxu0 %v1161_v23  ;;  %vm1112_vm7 = vcmp.ge.f32.partialorder %v1078_v34, 0.0  ;;  %v9531_v23 = vld [vmem:[%s12046_s7 + $0x38] sm:$0xff]   ;;  %v9533_v25 = vld [vmem:[#allocation16 + $0x8] sm:$0xff]  }
 0x3ae   :  { %v1131_v35 = vmul.f32 0.01, %v1080_v24  ;;  %v1084_v36 = vadd.f32 %v1083_v30, %v10838_v38  ;;  %1344 = vmatmul.mubr.bf16.gmra.mrb[44].mxu0 %v1160_v21  ;;  %vm1113_vm8 = vcmp.ge.f32.partialorder %v1080_v24, 0.0  ;;  %v9536_v30 = vld [vmem:[#allocation16 + $0x20] sm:$0xff]  }
 0x3af   :  { %vm1114_vm9 = vcmp.ge.f32.partialorder %v1082_v28, 0.0  ;;  %v1132_v41 = vmul.f32 0.01, %v1082_v28  ;;  %v1148_v43 = vsel %vm1112_vm7, %v1078_v34, %v1130_v27  ;;  %v9534_v27 = vld [vmem:[#allocation16 + $0x10] sm:$0xff]  }
 0x3b0   :  { %vm1115_vm10 = vcmp.ge.f32.partialorder %v1084_v36, 0.0  ;;  %v1133_v42 = vmul.f32 0.01, %v1084_v36  ;;  %v1149_v46 = vsel %vm1113_vm8, %v1080_v24, %v1131_v35  ;;  %v9532_v24 = vld [vmem:[#allocation16] sm:$0xff]   ;;  %v9537_v35 = vld [vmem:[#allocation16 + $0x28] sm:$0xff]  }
 0x3b1   :  { %v1150_v44 = vsel %vm1114_vm9, %v1082_v28, %v1132_v41  ;;  %8665 = vmatpush3.bf16.msra.mxu0 %v9532_v24  ;;  %v9535_v28 = vld [vmem:[#allocation16 + $0x18] sm:$0xff]  }
 0x3b2   :  { %v1087_v45 = vpop.f32.mrb[32].mxu1  ;;  %v1151_v48 = vsel %vm1115_vm10, %v1084_v36, %v1133_v42  ;;  %v1162_v49 = vpack.c.bf16 %v1150_v44, %v1148_v43  ;;  %8666 = vmatprep.subr.bf16.mxu0 %v12080_v1  ;;  %v10877_v41 = vld [vmem:[#allocation13] ss:$0 sm:$0xff] }
 0x3b3   :  { %v1088_v50 = vadd.f32 %v1087_v45, %v10835_v37  ;;  %v1089_v51 = vpop.f32.mrb[33].mxu1  ;;  %v1163_v52 = vpack.c.bf16 %v1151_v48, %v1149_v46 }
 0x3b4   :  { %v1090_v54 = vadd.f32 %v1089_v51, %v10838_v38  ;;  %v1091_v55 = vpop.f32.mrb[34].mxu1 }
 0x3b5   :  { %v1134_v56 = vmul.f32 0.01, %v1088_v50  ;;  %v1092_v57 = vadd.f32 %v1091_v55, %v10835_v37  ;;  %v1093_v58 = vpop.f32.mrb[35].mxu1  ;;  %1351 = vmatprep.mubr.bf16.mxu0 %v1163_v52  ;;  %vm1116_vm11 = vcmp.ge.f32.partialorder %v1088_v50, 0.0  ;;  %8667 = vmatpush3.bf16.msra.mxu0 %v9533_v25 }
 0x3b6   :  { %v1135_v59 = vmul.f32 0.01, %v1090_v54  ;;  %v1094_v61 = vadd.f32 %v1093_v58, %v10838_v38  ;;  %1352 = vmatmul.mubr.bf16.gmra.mrb[48].mxu0 %v1162_v49  ;;  %vm1117_vm12 = vcmp.ge.f32.partialorder %v1090_v54, 0.0  ;;  %8668 = vmatprep.subr.bf16.mxu0 %v12080_v1 }
 0x3b7   :  { %vm1118_vm13 = vcmp.ge.f32.partialorder %v1092_v57, 0.0  ;;  %v1136_v62 = vmul.f32 0.01, %v1092_v57  ;;  %v1152_v2 = vsel %vm1116_vm11, %v1088_v50, %v1134_v56 }
 0x3b8   :  { %vm1119_vm14 = vcmp.ge.f32.partialorder %v1094_v61, 0.0  ;;  %v1137_v63 = vmul.f32 0.01, %v1094_v61  ;;  %v1153_v7 = vsel %vm1117_vm12, %v1090_v54, %v1135_v59 }
 0x3b9   :  { %v1154_v3 = vsel %vm1118_vm13, %v1092_v57, %v1136_v62  ;;  %8669 = vmatpush3.bf16.msra.mxu0 %v9534_v27 }
 0x3ba   :  { %v1097_v6 = vpop.f32.mrb[36].mxu1  ;;  %v1155_v9 = vsel %vm1119_vm14, %v1094_v61, %v1137_v63  ;;  %v1164_v10 = vpack.c.bf16 %v1154_v3, %v1152_v2  ;;  %8670 = vmatprep.subr.bf16.mxu0 %v12080_v1 }
 0x3bb   :  { %v1098_v11 = vadd.f32 %v1097_v6, %v10835_v37  ;;  %v1099_v12 = vpop.f32.mrb[37].mxu1  ;;  %v1165_v14 = vpack.c.bf16 %v1155_v9, %v1153_v7  ;;  %v9529_v37 = vld [vmem:[%s12046_s7 + $0x28] sm:$0xff]  }
 0x3bc   :  { %v1100_v15 = vadd.f32 %v1099_v12, %v10838_v38  ;;  %v1101_v16 = vpop.f32.mrb[38].mxu1  ;;  %8639 = vmatpush3.bf16.msra.mxu1 %v9529_v37  ;;  %v9530_v38 = vld [vmem:[%s12046_s7 + $0x30] sm:$0xff]  }
 0x3bd   :  { %v1138_v17 = vmul.f32 0.01, %v1098_v11  ;;  %v1102_v18 = vpop.f32.mrb[39].mxu1  ;;  %1359 = vmatprep.mubr.bf16.mxu0 %v1165_v14  ;;  %vm1120_vm15 = vcmp.ge.f32.partialorder %v1098_v11, 0.0  ;;  %8640 = vmatprep.subr.bf16.mxu1 %v12080_v1 }
 0x3be   :  { %vm1121_vm2 = vcmp.ge.f32.partialorder %v1100_v15, 0.0  ;;  %v1139_v19 = vmul.f32 0.01, %v1100_v15  ;;  %1360 = vmatmul.mubr.bf16.gmra.mrb[52].mxu0 %v1164_v10 }
 0x3bf   :  { %v1156_v34 = vsel %vm1120_vm15, %v1098_v11, %v1138_v17  ;;  %8671 = vmatpush3.bf16.msra.mxu0 %v9535_v28 }
 0x3c0   :  { %v1157_v32 = vsel %vm1121_vm2, %v1100_v15, %v1139_v19  ;;  %v1166_v22 = vpack.c.bf16 %v1156_v34, %v1156_v34  ;;  %8641 = vmatpush3.bf16.msra.mxu1 %v9530_v38  ;;  %8672 = vmatprep.subr.bf16.mxu0 %v12080_v1 }
 0x3c1   :  { %v1167_v21 = vpack.c.bf16 %v1157_v32, %v1157_v32  ;;  %8642 = vmatprep.subr.bf16.mxu1 %v12080_v1 }
 0x3c3   :  { %1367 = vmatprep.mubr.bf16.mxu0 %v1167_v21  ;;  %8673 = vmatpush3.bf16.msra.mxu0 %v9536_v30 }
 0x3c4   :  { %8643 = vmatpush3.bf16.msra.mxu1 %v9531_v23  ;;  %8674 = vmatprep.subr.bf16.mxu0 %v12080_v1 }
 0x3c6   :  { %1368 = vmatmul.mubr.bf16.gmra.mrb[56].mxu0 %v1166_v22 }
 0x3c7   :  { %8680 = vmatprep.mubr.msk.bf16.mxu0 %vm10334_vm0, %v12080_v1  ;;  %8675 = vmatpush3.bf16.msra.mxu0 %v9537_v35 }
 0x3c8   :  { %8676 = vmatprep.subr.bf16.mxu0 %v12080_v1 }
 0x479   :  { %v8126_v36 = vpop.f32.mrb[40].mxu0 }
 0x47a   :  { %v8127_v42 = vpop.f32.mrb[41].mxu0 }
 0x47b   :  { %v8128_v43 = vadd.f32 %v8127_v42, %v8126_v36  ;;  %v8129_v44 = vpop.f32.mrb[42].mxu0 }
 0x47c   :  { %v8130_v45 = vpop.f32.mrb[43].mxu0 }
 0x47d   :  { %v1338_v46 = vadd.f32 %v8128_v43, %v10877_v41  ;;  %v8131_v48 = vadd.f32 %v8130_v45, %v8129_v44 }
 0x47f   :  { %v1384_v49 = vmul.f32 0.01, %v1338_v46  ;;  %v1341_v50 = vadd.f32 %v8131_v48, %v10877_v41  ;;  %vm1375_vm5 = vcmp.ge.f32.partialorder %v1338_v46, 0.0 }
 0x481   :  { %vm1376_vm6 = vcmp.ge.f32.partialorder %v1341_v50, 0.0  ;;  %v1385_v51 = vmul.f32 0.01, %v1341_v50  ;;  %v8132_v52 = vpop.f32.mrb[44].mxu0  ;;  %v1393_v55 = vsel %vm1375_vm5, %v1338_v46, %v1384_v49 }
 0x482   :  { %v8133_v54 = vpop.f32.mrb[45].mxu0 }
 0x483   :  { %v1394_v56 = vsel %vm1376_vm6, %v1341_v50, %v1385_v51  ;;  %v8134_v57 = vadd.f32 %v8133_v54, %v8132_v52  ;;  %v8135_v58 = vpop.f32.mrb[46].mxu0 }
 0x484   :  { %v1402_v59 = vpack.c.bf16 %v1394_v56, %v1393_v55  ;;  %v8136_v61 = vpop.f32.mrb[47].mxu0 }
 0x485   :  { %v1346_v62 = vadd.f32 %v8134_v57, %v10877_v41  ;;  %v8137_v63 = vadd.f32 %v8136_v61, %v8135_v58  ;;  %v9538_v57 = vld [vmem:[#allocation16 + $0x30] sm:$0xff]   ;;  %v9539_v58 = vld [vmem:[#allocation16 + $0x38] sm:$0xff]  }
 0x486   :  { %8645 = vmatmul.mubr.bf16.vlgmr.msra.gmra.mrb[40].mxu1 %v1402_v59  ;;  %8677 = vmatpush3.bf16.msra.mxu0 %v9538_v57  ;;  %v7625_v59 = vld [vmem:[#allocation14] ss:$0 sm:$0xff] }
 0x487   :  { %v1386_v2 = vmul.f32 0.01, %v1346_v62  ;;  %v1349_v3 = vadd.f32 %v8137_v63, %v10877_v41  ;;  %8648 = vmatprep.mubr.msk.bf16.mxu1 %vm10334_vm0, %v12080_v1  ;;  %vm1377_vm7 = vcmp.ge.f32.partialorder %v1346_v62, 0.0  ;;  %8678 = vmatprep.subr.bf16.mxu0 %v12080_v1 }
 0x489   :  { %vm1378_vm8 = vcmp.ge.f32.partialorder %v1349_v3, 0.0  ;;  %v1387_v6 = vmul.f32 0.01, %v1349_v3  ;;  %v8138_v7 = vpop.f32.mrb[48].mxu0  ;;  %v1395_v12 = vsel %vm1377_vm7, %v1346_v62, %v1386_v2 }
 0x48a   :  { %v8139_v9 = vpop.f32.mrb[49].mxu0  ;;  %8679 = vmatpush3.bf16.msra.mxu0 %v9539_v58 }
 0x48b   :  { %v8140_v10 = vadd.f32 %v8139_v9, %v8138_v7  ;;  %v8141_v11 = vpop.f32.mrb[50].mxu0  ;;  %v1396_v14 = vsel %vm1378_vm8, %v1349_v3, %v1387_v6 }
 0x48c   :  { %v8142_v15 = vpop.f32.mrb[51].mxu0  ;;  %v1403_v16 = vpack.c.bf16 %v1396_v14, %v1395_v12 }
 0x48d   :  { %v1354_v17 = vadd.f32 %v8140_v10, %v10877_v41  ;;  %v8143_v18 = vadd.f32 %v8142_v15, %v8141_v11 }
 0x48e   :  { %8649 = vmatmul.mubr.bf16.gmra.mrb[44].mxu1 %v1403_v16 }
 0x48f   :  { %v1388_v19 = vmul.f32 0.01, %v1354_v17  ;;  %v1357_v32 = vadd.f32 %v8143_v18, %v10877_v41  ;;  %8652 = vmatprep.mubr.msk.bf16.mxu1 %vm10334_vm0, %v12080_v1  ;;  %vm1379_vm9 = vcmp.ge.f32.partialorder %v1354_v17, 0.0 }
 0x491   :  { %vm1380_vm10 = vcmp.ge.f32.partialorder %v1357_v32, 0.0  ;;  %v1389_v21 = vmul.f32 0.01, %v1357_v32  ;;  %v8144_v34 = vpop.f32.mrb[52].mxu0  ;;  %v1397_v23 = vsel %vm1379_vm9, %v1354_v17, %v1388_v19 }
 0x492   :  { %v8145_v22 = vpop.f32.mrb[53].mxu0 }
 0x493   :  { %v8146_v37 = vadd.f32 %v8145_v22, %v8144_v34  ;;  %v8147_v38 = vpop.f32.mrb[54].mxu0  ;;  %v1398_v24 = vsel %vm1380_vm10, %v1357_v32, %v1389_v21 }
 0x494   :  { %v8148_v25 = vpop.f32.mrb[55].mxu0  ;;  %v1404_v27 = vpack.c.bf16 %v1398_v24, %v1397_v23 }
 0x495   :  { %v1362_v28 = vadd.f32 %v8146_v37, %v10877_v41  ;;  %v8149_v30 = vadd.f32 %v8148_v25, %v8147_v38 }
 0x496   :  { %8653 = vmatmul.mubr.bf16.gmra.mrb[48].mxu1 %v1404_v27 }
 0x497   :  { %v1390_v35 = vmul.f32 0.01, %v1362_v28  ;;  %v1365_v36 = vadd.f32 %v8149_v30, %v10877_v41  ;;  %8656 = vmatprep.mubr.msk.bf16.mxu1 %vm10334_vm0, %v12080_v1  ;;  %vm1381_vm11 = vcmp.ge.f32.partialorder %v1362_v28, 0.0 }
 0x499   :  { %vm1382_vm12 = vcmp.ge.f32.partialorder %v1365_v36, 0.0  ;;  %v1391_v42 = vmul.f32 0.01, %v1365_v36  ;;  %v8150_v43 = vpop.f32.mrb[56].mxu0  ;;  %v1399_v48 = vsel %vm1381_vm11, %v1362_v28, %v1390_v35  ;;  %vm1737_vm11 = vcmask 588800  }
 0x49a   :  { %v8151_v44 = vpop.f32.mrb[57].mxu0 }
 0x49b   :  { %v8152_v45 = vadd.f32 %v8151_v44, %v8150_v43  ;;  %v8153_v46 = vpop.f32.mrb[58].mxu0  ;;  %v1400_v49 = vsel %vm1382_vm12, %v1365_v36, %v1391_v42 }
 0x49c   :  { %v8154_v50 = vpop.f32.mrb[59].mxu0  ;;  %v1405_v51 = vpack.c.bf16 %v1400_v49, %v1399_v48 }
 0x49d   :  { %v1370_v52 = vadd.f32 %v8152_v45, %v10877_v41 }
 0x49e   :  { %8657 = vmatmul.mubr.bf16.gmra.mrb[52].mxu1 %v1405_v51 }
 0x49f   :  { %v1392_v54 = vmul.f32 0.01, %v1370_v52  ;;  %8660 = vmatprep.mubr.msk.bf16.mxu1 %vm10334_vm0, %v12080_v1  ;;  %vm1383_vm13 = vcmp.ge.f32.partialorder %v1370_v52, 0.0 }
 0x4a1   :  { %v1401_v55 = vsel %vm1383_vm13, %v1370_v52, %v1392_v54 }
 0x4a2   :  { %v1406_v56 = vpack.c.bf16 %v1401_v55, %v1401_v55 }
 0x4a6   :  { %8661 = vmatmul.mubr.bf16.gmra.mrb[56].mxu1 %v1406_v56 }
 0x559   :  { %v1512_v61 = vpop.f32.mrb[40].mxu1 }
 0x55a   :  { %v1513_v62 = vadd.f32 %v7625_v59, %v1512_v61  ;;  %v8646_v63 = vpop.f32.mrb[41].mxu1 }
 0x55b   :  { %v1515_v41 = vpop.f32.mrb[42].mxu1 }
 0x55c   :  { %v1559_v2 = vmul.f32 0.01, %v1513_v62  ;;  %v1516_v3 = vadd.f32 %v7625_v59, %v1515_v41  ;;  %v8647_v6 = vpop.f32.mrb[43].mxu1  ;;  %vm1550_vm14 = vcmp.ge.f32.partialorder %v1513_v62, 0.0 }
 0x55d   :  { %v10913_v6 = vld [vmem:[#allocation20] sm:$0xff] }
 0x55e   :  { %vm1551_vm15 = vcmp.ge.f32.partialorder %v1516_v3, 0.0  ;;  %v1560_v7 = vmul.f32 0.01, %v1516_v3  ;;  %v1568_v9 = vsel %vm1550_vm14, %v1513_v62, %v1559_v2 }
 0x560   :  { %v1569_v10 = vsel %vm1551_vm15, %v1516_v3, %v1560_v7  ;;  %v250_v3 = vld [vmem:[%s12055_s16] sm:$0xff] }
 0x561   :  { %v1577_v11 = vpack.c.bf16 %v1569_v10, %v1568_v9  ;;  %v1520_v12 = vpop.f32.mrb[44].mxu1  ;;  %8718 = vmatprep.mubr.msk.f32.mxu1 %vm1737_vm11, %v250_v3  ;;  %v10915_v9 = vld [vmem:[#allocation20 + $0x8] sm:$0xff] }
 0x562   :  { %v1521_v14 = vadd.f32 %v7625_v59, %v1520_v12  ;;  %v8650_v15 = vpop.f32.mrb[45].mxu1 }
 0x563   :  { %v1523_v16 = vpop.f32.mrb[46].mxu1  ;;  %8681 = vmatmul.mubr.bf16.vlgmr.msra.gmra.mrb[60].mxu0 %v1577_v11 }
 0x564   :  { %v1561_v17 = vmul.f32 0.01, %v1521_v14  ;;  %v1524_v18 = vadd.f32 %v7625_v59, %v1523_v16  ;;  %v8651_v19 = vpop.f32.mrb[47].mxu1  ;;  %8684 = vmatprep.mubr.msk.bf16.mxu0 %vm10334_vm0, %v12080_v1  ;;  %vm1552_vm2 = vcmp.ge.f32.partialorder %v1521_v14, 0.0 }
 0x565   :  { %v10921_v19 = vld [vmem:[#allocation20 + $0x18] sm:$0xff] }
 0x566   :  { %vm1553_vm5 = vcmp.ge.f32.partialorder %v1524_v18, 0.0  ;;  %v1562_v32 = vmul.f32 0.01, %v1524_v18  ;;  %v1570_v21 = vsel %vm1552_vm2, %v1521_v14, %v1561_v17  ;;  %v10919_v17 = vld [vmem:[#allocation20 + $0x10] sm:$0xff] }
 0x568   :  { %v1571_v34 = vsel %vm1553_vm5, %v1524_v18, %v1562_v32 }
 0x569   :  { %v1528_v22 = vpop.f32.mrb[48].mxu1  ;;  %v1578_v37 = vpack.c.bf16 %v1571_v34, %v1570_v21 }
 0x56a   :  { %v1529_v38 = vadd.f32 %v7625_v59, %v1528_v22  ;;  %v8654_v23 = vpop.f32.mrb[49].mxu1 }
 0x56b   :  { %v1531_v24 = vpop.f32.mrb[50].mxu1  ;;  %8685 = vmatmul.mubr.bf16.gmra.mrb[64].mxu0 %v1578_v37  ;;  %v10925_v23 = vld [vmem:[#allocation20 + $0x20] sm:$0xff] }
 0x56c   :  { %v1563_v25 = vmul.f32 0.01, %v1529_v38  ;;  %v1532_v27 = vadd.f32 %v7625_v59, %v1531_v24  ;;  %v8655_v28 = vpop.f32.mrb[51].mxu1  ;;  %8688 = vmatprep.mubr.msk.bf16.mxu0 %vm10334_vm0, %v12080_v1  ;;  %vm1554_vm6 = vcmp.ge.f32.partialorder %v1529_v38, 0.0 }
 0x56e   :  { %vm1555_vm7 = vcmp.ge.f32.partialorder %v1532_v27, 0.0  ;;  %v1564_v30 = vmul.f32 0.01, %v1532_v27  ;;  %v1572_v35 = vsel %vm1554_vm6, %v1529_v38, %v1563_v25  ;;  %v10927_v25 = vld [vmem:[#allocation20 + $0x28] sm:$0xff] }
 0x570   :  { %v1573_v36 = vsel %vm1555_vm7, %v1532_v27, %v1564_v30 }
 0x571   :  { %v1536_v42 = vpop.f32.mrb[52].mxu1  ;;  %v1579_v43 = vpack.c.bf16 %v1573_v36, %v1572_v35 }
 0x572   :  { %v1537_v44 = vadd.f32 %v7625_v59, %v1536_v42  ;;  %v8658_v45 = vpop.f32.mrb[53].mxu1 }
 0x573   :  { %v1539_v46 = vpop.f32.mrb[54].mxu1  ;;  %8689 = vmatmul.mubr.bf16.gmra.mrb[68].mxu0 %v1579_v43  ;;  %v10931_v43 = vld [vmem:[#allocation20 + $0x30] sm:$0xff]  ;;  %v10933_v45 = vld [vmem:[#allocation20 + $0x38] sm:$0xff] }
 0x574   :  { %v1565_v48 = vmul.f32 0.01, %v1537_v44  ;;  %v1540_v49 = vadd.f32 %v7625_v59, %v1539_v46  ;;  %v8659_v50 = vpop.f32.mrb[55].mxu1  ;;  %8692 = vmatprep.mubr.msk.bf16.mxu0 %vm10334_vm0, %v12080_v1  ;;  %vm1556_vm8 = vcmp.ge.f32.partialorder %v1537_v44, 0.0 }
 0x576   :  { %vm1557_vm9 = vcmp.ge.f32.partialorder %v1540_v49, 0.0  ;;  %v1566_v51 = vmul.f32 0.01, %v1540_v49  ;;  %v1574_v52 = vsel %vm1556_vm8, %v1537_v44, %v1565_v48 }
 0x578   :  { %v1575_v54 = vsel %vm1557_vm9, %v1540_v49, %v1566_v51 }
 0x579   :  { %v1544_v55 = vpop.f32.mrb[56].mxu1  ;;  %v1580_v56 = vpack.c.bf16 %v1575_v54, %v1574_v52  ;;  %v10937_v54 = vld [vmem:[#allocation20 + $0x40] sm:$0xff] }
 0x57a   :  { %v1545_v57 = vadd.f32 %v7625_v59, %v1544_v55  ;;  %v8662_v58 = vpop.f32.mrb[57].mxu1  ;;  %v7642_v59 = vld [vmem:[%s12049_s10] ss:$0 sm:$0xff] }
 0x57b   :  { %v1547_v61 = vpop.f32.mrb[58].mxu1  ;;  %8693 = vmatmul.mubr.bf16.gmra.mrb[72].mxu0 %v1580_v56  ;;  %1734 = vperm.xlu0 %9434, %v7642_v59  }
 0x57c   :  { %vm1558_vm10 = vcmp.ge.f32.partialorder %v1545_v57, 0.0  ;;  %v1567_v62 = vmul.f32 0.01, %v1545_v57  ;;  %v8663_v63 = vpop.f32.mrb[59].mxu1  ;;  %8696 = vmatprep.mubr.msk.bf16.mxu0 %vm10334_vm0, %v12080_v1  ;;  %v10943_v61 = vld [vmem:[%s12055_s16 + $0x8] sm:$0xf] }
 0x57e   :  { %v1576_v41 = vsel %vm1558_vm10, %v1545_v57, %v1567_v62 }
 0x57f   :  { %v1581_v2 = vpack.c.bf16 %v1576_v41, %v1576_v41 }
 0x583   :  { %8697 = vmatmul.mubr.bf16.gmra.mrb[76].mxu0 %v1581_v2  ;;  %v262_v2 = vld [vmem:[%s12057_s18 + $0x8] sm:$0xf] }
 0x584   :  { %8770 = vmatprep.mubr.msk.f32.mxu0 %vm1737_vm11, %v250_v3 }
 0x5fa   :  { %v1735_v63 = vpop.permute.xlu0 %1734 }
 0x636   :  { %v1680_v7 = vpop.f32.mrb[60].mxu0 }
 0x637   :  { %v8682_v10 = vpop.f32.mrb[61].mxu0  ;;  %v1718_v12 = vmul.f32 %v1680_v7, %v10913_v6  ;;  %v261_v7 = vld [vmem:[%s12057_s18] sm:$0xff] }
 0x638   :  { %v1683_v11 = vpop.f32.mrb[62].mxu0 }
 0x639   :  { %v1719_v14 = vmul.f32 %v1683_v11, %v10915_v9  ;;  %v8683_v15 = vpop.f32.mrb[63].mxu0 }
 0x63b   :  { %v9206_v16 = vpack.c.bf16 %v1719_v14, %v1718_v12 }
 0x63d   :  { %9207 = vmatprep.subr.bf16.mxu1 %v9206_v16 }
 0x63e   :  { %v1688_v18 = vpop.f32.mrb[64].mxu0  ;;  %9209 = vmatpush3.bf16.msra.mxu1 %v9206_v16 }
 0x63f   :  { %v8686_v32 = vpop.f32.mrb[65].mxu0  ;;  %v1720_v34 = vmul.f32 %v1688_v18, %v10919_v17 }
 0x640   :  { %v1691_v21 = vpop.f32.mrb[66].mxu0 }
 0x641   :  { %v1721_v22 = vmul.f32 %v1691_v21, %v10921_v19  ;;  %v8687_v37 = vpop.f32.mrb[67].mxu0 }
 0x643   :  { %v9210_v38 = vpack.c.bf16 %v1721_v22, %v1720_v34 }
 0x645   :  { %9211 = vmatprep.subr.bf16.mxu1 %v9210_v38 }
 0x646   :  { %v1696_v24 = vpop.f32.mrb[68].mxu0  ;;  %9213 = vmatpush3.bf16.msra.mxu1 %v9210_v38 }
 0x647   :  { %v8690_v27 = vpop.f32.mrb[69].mxu0  ;;  %v1722_v30 = vmul.f32 %v1696_v24, %v10925_v23 }
 0x648   :  { %v1699_v28 = vpop.f32.mrb[70].mxu0 }
 0x649   :  { %v1723_v35 = vmul.f32 %v1699_v28, %v10927_v25  ;;  %v8691_v36 = vpop.f32.mrb[71].mxu0 }
 0x64b   :  { %v9214_v42 = vpack.c.bf16 %v1723_v35, %v1722_v30 }
 0x64d   :  { %9215 = vmatprep.subr.bf16.mxu1 %v9214_v42 }
 0x64e   :  { %v1704_v44 = vpop.f32.mrb[72].mxu0  ;;  %9217 = vmatpush3.bf16.msra.mxu1 %v9214_v42 }
 0x64f   :  { %v8694_v46 = vpop.f32.mrb[73].mxu0  ;;  %v1724_v49 = vmul.f32 %v1704_v44, %v10931_v43  ;;  %v10964_v44 = vld [vmem:[%s12053_s14] sm:$0xff] }
 0x650   :  { %v1707_v48 = vpop.f32.mrb[74].mxu0  ;;  %v10973_v46 = vld [vmem:[%s12053_s14 + $0x8] sm:$0xff] }
 0x651   :  { %v1725_v50 = vmul.f32 %v1707_v48, %v10933_v45  ;;  %v8695_v51 = vpop.f32.mrb[75].mxu0  ;;  %v10982_v48 = vld [vmem:[%s12053_s14 + $0x10] sm:$0xff] }
 0x652   :  { %v11009_v51 = vld [vmem:[%s12053_s14 + $0x28] sm:$0xff] }
 0x653   :  { %v9218_v52 = vpack.c.bf16 %v1725_v50, %v1724_v49  ;;  %v10991_v49 = vld [vmem:[%s12053_s14 + $0x18] sm:$0xff]  ;;  %v11000_v50 = vld [vmem:[%s12053_s14 + $0x20] sm:$0xff] }
 0x655   :  { %9219 = vmatprep.subr.bf16.mxu1 %v9218_v52 }
 0x656   :  { %v1712_v55 = vpop.f32.mrb[76].mxu0  ;;  %9221 = vmatpush3.bf16.msra.mxu1 %v9218_v52  ;;  %v11018_v52 = vld [vmem:[%s12053_s14 + $0x30] sm:$0xff] }
 0x657   :  { %v1726_v56 = vmul.f32 %v1712_v55, %v10937_v54  ;;  %v8698_v57 = vpop.f32.mrb[77].mxu0  ;;  %v11027_v55 = vld [vmem:[%s12053_s14 + $0x38] sm:$0xff] }
 0x658   :  { %v1715_v58 = vpop.f32.mrb[78].mxu0 }
 0x659   :  { %v8699_v62 = vpop.f32.mrb[79].mxu0  ;;  %8716 = vmatprep.subr.mxu1 %v1726_v56 }
 0x65a   :  { %8717 = vmatpush3.msra.mxu1 %v1726_v56  ;;  %v11036_v56 = vld [vmem:[%s12053_s14 + $0x40] sm:$0xff] }
 0x65b   :  { %8719 = vmatmul.mubr.msk.f32.vlgmr.msra.gmra.mrb[18].mxu1 %vm1737_vm11, %v10943_v61  ;;  %9222 = vmatprep.subr.bf16.mxu1 %v12078_v0 }
 0x65c   :  { %8725 = vmatprep.mubr.msk.f32.mxu1 %vm10334_vm0, %v12080_v1 }
 0x72e   :  { %v8720_v41 = vpop.f32.mrb[18].mxu1 }
 0x72f   :  { %v1816_v3 = vadd.f32 %v8720_v41, %v1735_v63  ;;  %v1810_v59 = vpop.f32.mrb[19].mxu1 }
 0x730   :  { %v1811_v10 = vadd.f32 %v1810_v59, %v1735_v63 }
 0x731   :  { %v1820_v11 = vadd.f32 %v1816_v3, %v262_v2 }
 0x732   :  { %v1819_v12 = vadd.f32 %v1811_v10, %v261_v7 }
 0x733   :  { %v1823_v14 = vsel %vm292_vm1, %v1820_v11, -inf }
 0x734   :  { %1824 = vmax.xlane.f32.xlu0 %v1823_v14  ;;  %1821 = vmax.xlane.f32.xlu1 %v1819_v12 }
 0x7c1   :  { %v1825_v15 = vpop.xlane.xlu0 %1824  ;;  %v1822_v16 = vpop.xlane.xlu1 %1821 }
 0x7c2   :  { %v1827_v18 = vsub.f32 %v1820_v11, %v1825_v15  ;;  %v1826_v32 = vsub.f32 %v1819_v12, %v1822_v16 }
 0x7c4   :  { %v1830_v21 = vmul.f32 1.442695, %v1827_v18  ;;  %v1828_v34 = vmul.f32 1.442695, %v1826_v32 }
 0x7c6   :  { %9916 = vpow2.f32 %v1828_v34 }
 0x7c7   :  { %9918 = vpow2.f32 %v1830_v21 }
 0x7d0   :  { %v9917_v22 = vpop.eup %9916 }
 0x7d1   :  { %v9919_v37 = vpop.eup %9918  ;;  %1832 = vadd.xlane.f32.xlu1 %v9917_v22 }
 0x7d2   :  { %v1834_v38 = vsel %vm292_vm1, %v9919_v37, 0.0 }
 0x7d5   :  { %1835 = vadd.xlane.f32.xlu1 %v1834_v38 }
 0x85e   :  { %v1833_v24 = vpop.xlane.xlu1 %1832 }
 0x85f   :  { %9920 = vrcp.f32 %v1833_v24  ;;  %v9541_v24 = vld [vmem:[#allocation19] sm:$0xff]  }
 0x862   :  { %v1836_v27 = vpop.xlane.xlu1 %1835 }
 0x863   :  { %9922 = vrcp.f32 %v1836_v27  ;;  %v9549_v27 = vld [vmem:[#allocation19 + $0x20] sm:$0xff]  }
 0x869   :  { %v9921_v28 = vpop.eup %9920 }
 0x86a   :  { %v1839_v35 = vmul.f32 %v9921_v28, %v9917_v22  ;;  %v9553_v28 = vld [vmem:[#allocation19 + $0x30] sm:$0xff]  }
 0x86d   :  { %v9923_v30 = vpop.eup %9922 }
 0x86e   :  { %v1840_v36 = vmul.f32 %v9923_v30, %v9919_v37 }
 0x870   :  { %v9223_v42 = vpack.c.bf16 %v1840_v36, %v1839_v35 }
 0x872   :  { %9225 = vmatpush3.bf16.msk.msra.mxu1 %vm10632_vm3, %v9223_v42 }
 0x873   :  { %8773 = vmatprep.subr.bf16.mxu1 %v12080_v1 }
 0x875   :  { %8726 = vmatmul.mubr.msk.f32.vlgmr.msra.gmra.mrb[60].mxu1 %vm264_vm4, %v10964_v44 }
 0x876   :  { %8728 = vmatprep.mubr.msk.f32.mxu1 %vm10334_vm0, %v12080_v1  ;;  %8774 = vmatpush3.bf16.msra.mxu1 %v9541_v24 }
 0x877   :  { %8775 = vmatprep.subr.bf16.mxu1 %v12080_v1 }
 0x879   :  { %8729 = vmatmul.mubr.msk.f32.gmra.mrb[62].mxu1 %vm264_vm4, %v10973_v46 }
 0x87a   :  { %8731 = vmatprep.mubr.msk.f32.mxu1 %vm10334_vm0, %v12080_v1 }
 0x87d   :  { %8732 = vmatmul.mubr.msk.f32.gmra.mrb[64].mxu1 %vm264_vm4, %v10982_v48 }
 0x87e   :  { %8734 = vmatprep.mubr.msk.f32.mxu1 %vm10334_vm0, %v12080_v1 }
 0x881   :  { %8735 = vmatmul.mubr.msk.f32.gmra.mrb[66].mxu1 %vm264_vm4, %v10991_v49 }
 0x882   :  { %8737 = vmatprep.mubr.msk.f32.mxu1 %vm10334_vm0, %v12080_v1 }
 0x885   :  { %8738 = vmatmul.mubr.msk.f32.gmra.mrb[68].mxu1 %vm264_vm4, %v11000_v50 }
 0x886   :  { %8740 = vmatprep.mubr.msk.f32.mxu1 %vm10334_vm0, %v12080_v1 }
 0x889   :  { %8741 = vmatmul.mubr.msk.f32.gmra.mrb[70].mxu1 %vm264_vm4, %v11009_v51 }
 0x88a   :  { %8743 = vmatprep.mubr.msk.f32.mxu1 %vm10334_vm0, %v12080_v1 }
 0x88d   :  { %8744 = vmatmul.mubr.msk.f32.gmra.mrb[72].mxu1 %vm264_vm4, %v11018_v52 }
 0x88e   :  { %8746 = vmatprep.mubr.msk.f32.mxu1 %vm10334_vm0, %v12080_v1 }
 0x891   :  { %8747 = vmatmul.mubr.msk.f32.gmra.mrb[74].mxu1 %vm264_vm4, %v11027_v55 }
 0x892   :  { %8749 = vmatprep.mubr.msk.f32.mxu1 %vm10334_vm0, %v12080_v1 }
 0x895   :  { %8750 = vmatmul.mubr.msk.f32.gmra.mrb[76].mxu1 %vm264_vm4, %v11036_v56 }
 0x896   :  { %8789 = vmatprep.mubr.msk.bf16.mxu1 %vm10334_vm0, %v12080_v1 }
 0x948   :  { %v1910_v57 = vpop.f32.mrb[60].mxu1 }
 0x949   :  { %v1954_v58 = vmul.f32 %v1910_v57, %v10913_v6  ;;  %v8727_v62 = vpop.f32.mrb[61].mxu1 }
 0x94b   :  { %1963 = vadd.xlane.f32.xlu1 %v1954_v58 }
 0x94c   :  { %v1915_v63 = vpop.f32.mrb[62].mxu1 }
 0x94d   :  { %v1955_v41 = vmul.f32 %v1915_v63, %v10915_v9  ;;  %v8730_v2 = vpop.f32.mrb[63].mxu1 }
 0x94f   :  { %1965 = vadd.xlane.f32.xlu1 %v1955_v41 }
 0x950   :  { %v1920_v3 = vpop.f32.mrb[64].mxu1 }
 0x951   :  { %v1956_v59 = vmul.f32 %v1920_v3, %v10919_v17  ;;  %v8733_v7 = vpop.f32.mrb[65].mxu1 }
 0x953   :  { %1967 = vadd.xlane.f32.xlu1 %v1956_v59 }
 0x954   :  { %v1925_v10 = vpop.f32.mrb[66].mxu1 }
 0x955   :  { %v1957_v11 = vmul.f32 %v1925_v10, %v10921_v19  ;;  %v8736_v12 = vpop.f32.mrb[67].mxu1 }
 0x957   :  { %1969 = vadd.xlane.f32.xlu1 %v1957_v11 }
 0x958   :  { %v1930_v14 = vpop.f32.mrb[68].mxu1 }
 0x959   :  { %v1958_v6 = vmul.f32 %v1930_v14, %v10925_v23  ;;  %v8739_v15 = vpop.f32.mrb[69].mxu1 }
 0x95a   :  { %v9540_v15 = vld [vmem:[#allocation17] sm:$0xff]  }
 0x95b   :  { %1971 = vadd.xlane.f32.xlu1 %v1958_v6 }
 0x95c   :  { %v1935_v16 = vpop.f32.mrb[70].mxu1 }
 0x95d   :  { %v1959_v9 = vmul.f32 %v1935_v16, %v10927_v25  ;;  %v8742_v18 = vpop.f32.mrb[71].mxu1  ;;  %v9543_v25 = vld [vmem:[#allocation19 + $0x8] sm:$0xff]   ;;  %v9554_v16 = vld [vmem:[#allocation17 + $0x38] sm:$0xff]  }
 0x95e   :  { %8776 = vmatpush3.bf16.msra.mxu1 %v9543_v25 }
 0x95f   :  { %1973 = vadd.xlane.f32.xlu1 %v1959_v9  ;;  %8777 = vmatprep.subr.bf16.mxu1 %v12080_v1  ;;  %v9555_v9 = vld [vmem:[#allocation19 + $0x38] sm:$0xff]  }
 0x960   :  { %v1940_v32 = vpop.f32.mrb[72].mxu1 }
 0x961   :  { %v1960_v17 = vmul.f32 %v1940_v32, %v10931_v43  ;;  %v8745_v21 = vpop.f32.mrb[73].mxu1  ;;  %v9545_v43 = vld [vmem:[#allocation19 + $0x10] sm:$0xff]  }
 0x962   :  { %8778 = vmatpush3.bf16.msra.mxu1 %v9545_v43 }
 0x963   :  { %1975 = vadd.xlane.f32.xlu0 %v1960_v17  ;;  %8779 = vmatprep.subr.bf16.mxu1 %v12080_v1 }
 0x964   :  { %v1945_v34 = vpop.f32.mrb[74].mxu1 }
 0x965   :  { %v1961_v19 = vmul.f32 %v1945_v34, %v10933_v45  ;;  %v8748_v22 = vpop.f32.mrb[75].mxu1  ;;  %v9547_v45 = vld [vmem:[#allocation19 + $0x18] sm:$0xff]  }
 0x966   :  { %8780 = vmatpush3.bf16.msra.mxu1 %v9547_v45 }
 0x967   :  { %1977 = vadd.xlane.f32.xlu1 %v1961_v19  ;;  %8781 = vmatprep.subr.bf16.mxu1 %v12080_v1 }
 0x968   :  { %v1950_v37 = vpop.f32.mrb[76].mxu1 }
 0x969   :  { %v1962_v23 = vmul.f32 %v1950_v37, %v10937_v54  ;;  %v8751_v38 = vpop.f32.mrb[77].mxu1  ;;  %v9551_v54 = vld [vmem:[#allocation19 + $0x28] sm:$0xff]  }
 0x96a   :  { %8782 = vmatpush3.bf16.msra.mxu1 %v9549_v27 }
 0x96b   :  { %1979 = vadd.xlane.f32.xlu0 %v1962_v23  ;;  %8783 = vmatprep.subr.bf16.mxu1 %v12080_v1  ;;  %v7673_v23 = vld [vmem:[%s12052_s13] ss:$0 sm:$0xff] }
 0x96e   :  { %8784 = vmatpush3.bf16.msra.mxu1 %v9551_v54 }
 0x96f   :  { %8785 = vmatprep.subr.bf16.mxu1 %v12080_v1 }
 0x972   :  { %8786 = vmatpush3.bf16.msra.mxu1 %v9553_v28 }
 0x973   :  { %8787 = vmatprep.subr.bf16.mxu1 %v12080_v1 }
 0x976   :  { %8788 = vmatpush3.bf16.msra.mxu1 %v9555_v9  ;;  %v9597_v9 = vld [vmem:[#allocation5 + $0x254] ss:$8 sps:$4 sm:$0xff]  }
 0x9d8   :  { %v1964_v30 = vpop.xlane.xlu1 %1963 }
 0x9d9   :  { %v1981_v36 = vmul.f32 %v1964_v30, %v10751_v8 }
 0x9dc   :  { %v1966_v35 = vpop.xlane.xlu1 %1965 }
 0x9dd   :  { %v1982_v42 = vmul.f32 %v1966_v35, %v10754_v13 }
 0x9df   :  { %v9226_v57 = vpack.c.bf16 %v1982_v42, %v1981_v36 }
 0x9e0   :  { %v1968_v58 = vpop.xlane.xlu1 %1967 }
 0x9e1   :  { %9227 = vmatprep.subr.bf16.mxu0 %v9226_v57  ;;  %v1983_v63 = vmul.f32 %v1968_v58, %v10757_v20  ;;  %v9556_v58 = vld [vmem:[#allocation5 + $0x180] ss:$8 sps:$4 sm:$0xff]  }
 0x9e2   :  { %9229 = vmatpush3.bf16.msra.mxu0 %v9226_v57  ;;  %v9558_v57 = vld [vmem:[#allocation5 + $0x184] ss:$8 sps:$4 sm:$0xff]  }
 0x9e4   :  { %v1970_v62 = vpop.xlane.xlu1 %1969 }
 0x9e5   :  { %v1984_v41 = vmul.f32 %v1970_v62, %v10760_v26  ;;  %v9561_v62 = vld [vmem:[#allocation5 + $0x194] ss:$8 sps:$4 sm:$0xff]  }
 0x9e7   :  { %v9230_v2 = vpack.c.bf16 %v1984_v41, %v1983_v63  ;;  %v9949_v63 = vld [vmem:[%s12054_s15] sm:$0xff] }
 0x9e8   :  { %v1972_v3 = vpop.xlane.xlu1 %1971  ;;  %v9559_v41 = vld [vmem:[#allocation5 + $0x190] ss:$8 sps:$4 sm:$0xff]  }
 0x9e9   :  { %9231 = vmatprep.subr.bf16.mxu0 %v9230_v2  ;;  %v1985_v7 = vmul.f32 %v1972_v3, %v10764_v33  ;;  %v9542_v33 = vld [vmem:[#allocation17 + $0x8] sm:$0xff]  }
 0x9ea   :  { %9233 = vmatpush3.bf16.msra.mxu0 %v9230_v2  ;;  %v9564_v2 = vld [vmem:[#allocation5 + $0x1a4] ss:$8 sps:$4 sm:$0xff]   ;;  %v9562_v3 = vld [vmem:[#allocation5 + $0x1a0] ss:$8 sps:$4 sm:$0xff]  }
 0x9ec   :  { %v1974_v59 = vpop.xlane.xlu1 %1973 }
 0x9ed   :  { %v1986_v8 = vmul.f32 %v1974_v59, %v10767_v39  ;;  %v9544_v39 = vld [vmem:[#allocation17 + $0x10] sm:$0xff]   ;;  %v9567_v59 = vld [vmem:[#allocation5 + $0x1b4] ss:$8 sps:$4 sm:$0xff]  }
 0x9ef   :  { %v9234_v10 = vpack.c.bf16 %v1986_v8, %v1985_v7  ;;  %v9565_v7 = vld [vmem:[#allocation5 + $0x1b0] ss:$8 sps:$4 sm:$0xff]   ;;  %v9570_v8 = vld [vmem:[#allocation5 + $0x1c4] ss:$8 sps:$4 sm:$0xff]  }
 0x9f0   :  { %v1976_v13 = vpop.xlane.xlu0 %1975 }
 0x9f1   :  { %9235 = vmatprep.subr.bf16.mxu0 %v9234_v10  ;;  %v1987_v12 = vmul.f32 %v1976_v13, %v10771_v47  ;;  %v9546_v47 = vld [vmem:[#allocation17 + $0x18] sm:$0xff]   ;;  %v9573_v13 = vld [vmem:[#allocation5 + $0x1d4] ss:$8 sps:$4 sm:$0xff]  }
 0x9f2   :  { %9237 = vmatpush3.bf16.msra.mxu0 %v9234_v10  ;;  %v9568_v10 = vld [vmem:[#allocation5 + $0x1c0] ss:$8 sps:$4 sm:$0xff]  }
 0x9f4   :  { %v1978_v11 = vpop.xlane.xlu1 %1977 }
 0x9f5   :  { %v1988_v20 = vmul.f32 %v1978_v11, %v10774_v53  ;;  %v9548_v53 = vld [vmem:[#allocation17 + $0x20] sm:$0xff]  }
 0x9f6   :  { %v9571_v11 = vld [vmem:[#allocation5 + $0x1d0] ss:$8 sps:$4 sm:$0xff]  }
 0x9f7   :  { %v9238_v14 = vpack.c.bf16 %v1988_v20, %v1987_v12  ;;  %v9576_v12 = vld [vmem:[#allocation5 + $0x1e4] ss:$8 sps:$4 sm:$0xff]   ;;  %v9574_v20 = vld [vmem:[#allocation5 + $0x1e0] ss:$8 sps:$4 sm:$0xff]  }
 0x9f8   :  { %v1980_v26 = vpop.xlane.xlu0 %1979 }
 0x9f9   :  { %v1989_v6 = vmul.f32 %v1980_v26, %v10778_v60  ;;  %9239 = vmatprep.subr.bf16.mxu0 %v9238_v14  ;;  %v9550_v60 = vld [vmem:[#allocation17 + $0x28] sm:$0xff]   ;;  %v9577_v26 = vld [vmem:[#allocation5 + $0x1f0] ss:$8 sps:$4 sm:$0xff]  }
 0x9fa   :  { %9241 = vmatpush3.bf16.msra.mxu0 %v9238_v14  ;;  %v9579_v14 = vld [vmem:[#allocation5 + $0x1f4] ss:$8 sps:$4 sm:$0xff]  }
 0x9fb   :  { %8768 = vmatprep.subr.mxu0 %v1989_v6 }
 0x9fe   :  { %8769 = vmatpush3.msra.mxu0 %v1989_v6  ;;  %v9582_v6 = vld [vmem:[#allocation5 + $0x204] ss:$8 sps:$4 sm:$0xff]  }
 0x9ff   :  { %8771 = vmatmul.mubr.msk.f32.vlgmr.msra.gmra.mrb[18].mxu0 %vm1737_vm11, %v10943_v61  ;;  %8793 = vmatprep.subr.bf16.mxu0 %v12080_v1  ;;  %v9552_v61 = vld [vmem:[#allocation17 + $0x30] sm:$0xff]  }
 0xa00   :  { %8794 = vmatpush3.bf16.msra.mxu0 %v9540_v15  ;;  %8809 = vmatprep.mubr.msk.bf16.mxu0 %vm10334_vm0, %v12080_v1  ;;  %v9580_v15 = vld [vmem:[#allocation5 + $0x200] ss:$8 sps:$4 sm:$0xff]  }
 0xa01   :  { %8795 = vmatprep.subr.bf16.mxu0 %v12080_v1 }
 0xa04   :  { %8796 = vmatpush3.bf16.msra.mxu0 %v9542_v33  ;;  %v9585_v33 = vld [vmem:[#allocation5 + $0x214] ss:$8 sps:$4 sm:$0xff]  }
 0xa05   :  { %8797 = vmatprep.subr.bf16.mxu0 %v12080_v1 }
 0xa08   :  { %8798 = vmatpush3.bf16.msra.mxu0 %v9544_v39  ;;  %v9583_v39 = vld [vmem:[#allocation5 + $0x210] ss:$8 sps:$4 sm:$0xff]  }
 0xa09   :  { %8799 = vmatprep.subr.bf16.mxu0 %v12080_v1 }
 0xa0c   :  { %8800 = vmatpush3.bf16.msra.mxu0 %v9546_v47  ;;  %v9588_v47 = vld [vmem:[#allocation5 + $0x224] ss:$8 sps:$4 sm:$0xff]  }
 0xa0d   :  { %8801 = vmatprep.subr.bf16.mxu0 %v12080_v1 }
 0xa10   :  { %8802 = vmatpush3.bf16.msra.mxu0 %v9548_v53  ;;  %v9586_v53 = vld [vmem:[#allocation5 + $0x220] ss:$8 sps:$4 sm:$0xff]  }
 0xa11   :  { %8803 = vmatprep.subr.bf16.mxu0 %v12080_v1 }
 0xa14   :  { %8804 = vmatpush3.bf16.msra.mxu0 %v9550_v60  ;;  %v9591_v60 = vld [vmem:[#allocation5 + $0x234] ss:$8 sps:$4 sm:$0xff]  }
 0xa15   :  { %8805 = vmatprep.subr.bf16.mxu0 %v12080_v1 }
 0xa18   :  { %8806 = vmatpush3.bf16.msra.mxu0 %v9552_v61  ;;  %v9589_v61 = vld [vmem:[#allocation5 + $0x230] ss:$8 sps:$4 sm:$0xff]  }
 0xa19   :  { %8807 = vmatprep.subr.bf16.mxu0 %v12080_v1 }
 0xa1c   :  { %8808 = vmatpush3.bf16.msra.mxu0 %v9554_v16  ;;  %v9594_v16 = vld [vmem:[#allocation5 + $0x244] ss:$8 sps:$4 sm:$0xff]  }
 0xa1f   :  { %8810 = vmatmul.mubr.bf16.vlgmr.msra.gmra.mrb[80].mxu0 %v10636_v5 }
 0xa20   :  { %2478 = vmatprep.mubr.f32.mxu0 %v12080_v1 }
 0xad2   :  { %v8772_v18 = vpop.f32.mrb[18].mxu0 }
 0xad3   :  { %v2056_v32 = vpop.f32.mrb[19].mxu0 }
 0xad4   :  { %v2098_v17 = vpack.c.bf16 %v8772_v18, %v2056_v32  ;;  %v9595_v18 = vld [vmem:[#allocation5 + $0x250] ss:$8 sps:$4 sm:$0xff]   ;;  %v9600_v32 = vld [vmem:[#allocation5 + $0x264] ss:$8 sps:$4 sm:$0xff]  }
 0xad6   :  { %8790 = vmatmul.mubr.bf16.vlgmr.msra.gmra.mrb[80].mxu1 %v2098_v17  ;;  %v9598_v17 = vld [vmem:[#allocation5 + $0x260] ss:$8 sps:$4 sm:$0xff]  }
 0xad7   :  { %2359 = vmatprep.mubr.f32.mxu1 %v12080_v1 }
 0xaf2   :  { %v2270_v21 = vpop.f32.mrb[80].mxu0 }
 0xaf3   :  { %v8811_v34 = vpop.f32.mrb[81].mxu0 }
 0xaf4   :  { %v2273_v19 = vpop.f32.mrb[82].mxu0  ;;  %v9601_v34 = vld [vmem:[#allocation5 + $0x270] ss:$8 sps:$4 sm:$0xff]  }
 0xaf5   :  { %v8812_v22 = vpop.f32.mrb[83].mxu0 }
 0xaf6   :  { %v9606_v22 = vld [vmem:[#allocation8 + $0x104] ss:$8 sps:$4 sm:$0xff]  }
 0xba9   :  { %v2181_v37 = vpop.f32.mrb[80].mxu1 }
 0xbaa   :  { %v2271_v38 = vadd.f32 %v2270_v21, %v2181_v37  ;;  %v8791_v24 = vpop.f32.mrb[81].mxu1  ;;  %v9603_v21 = vld [vmem:[#allocation5 + $0x274] ss:$8 sps:$4 sm:$0xff]  }
 0xbab   :  { %v2184_v25 = vpop.f32.mrb[82].mxu1  ;;  %v9609_v37 = vld [vmem:[#allocation8 + $0x114] ss:$8 sps:$4 sm:$0xff]   ;;  %v9610_v24 = vld [vmem:[#allocation8 + $0x120] ss:$8 sps:$4 sm:$0xff]  }
 0xbac   :  { %v2284_v43 = vadd.f32 %v7673_v23, %v2271_v38  ;;  %v2274_v45 = vadd.f32 %v2273_v19, %v2184_v25  ;;  %v8792_v27 = vpop.f32.mrb[83].mxu1  ;;  %v9604_v19 = vld [vmem:[#allocation8 + $0x100] ss:$8 sps:$4 sm:$0xff]   ;;  %v9612_v38 = vld [vmem:[#allocation8 + $0x124] ss:$8 sps:$4 sm:$0xff]  }
 0xbad   :  { %v9615_v25 = vld [vmem:[#allocation8 + $0x134] ss:$8 sps:$4 sm:$0xff]   ;;  %v9616_v27 = vld [vmem:[#allocation8 + $0x140] ss:$8 sps:$4 sm:$0xff]  }
 0xbae   :  { %v2288_v54 = vmul.f32 0.01, %v2284_v43  ;;  %v2285_v28 = vadd.f32 %v7673_v23, %v2274_v45  ;;  %vm2286_vm12 = vcmp.ge.f32.partialorder %v2284_v43, 0.0  ;;  %v9607_v23 = vld [vmem:[#allocation8 + $0x110] ss:$8 sps:$4 sm:$0xff]  }
 0xbaf   :  { %v9618_v45 = vld [vmem:[#allocation8 + $0x144] ss:$8 sps:$4 sm:$0xff]  }
 0xbb0   :  { %vm2287_vm13 = vcmp.ge.f32.partialorder %v2285_v28, 0.0  ;;  %v2289_v30 = vmul.f32 0.01, %v2285_v28  ;;  %v2290_v35 = vsel %vm2286_vm12, %v2284_v43, %v2288_v54  ;;  %v9613_v43 = vld [vmem:[#allocation8 + $0x130] ss:$8 sps:$4 sm:$0xff]  }
 0xbb1   :  { %v9621_v54 = vld [vmem:[#allocation8 + $0x154] ss:$8 sps:$4 sm:$0xff]  }
 0xbb2   :  { %v2291_v36 = vsel %vm2287_vm13, %v2285_v28, %v2289_v30  ;;  %v9619_v28 = vld [vmem:[#allocation8 + $0x150] ss:$8 sps:$4 sm:$0xff]   ;;  %v9624_v30 = vld [vmem:[#allocation8 + $0x164] ss:$8 sps:$4 sm:$0xff]  }
 0xbb3   :  { %v11085_v42 = vpack.c.bf16 %v2291_v36, %v2290_v35  ;;  %v9622_v35 = vld [vmem:[#allocation8 + $0x160] ss:$8 sps:$4 sm:$0xff]   ;;  %v9627_v36 = vld [vmem:[#allocation8 + $0x174] ss:$8 sps:$4 sm:$0xff]  }
 0xbb5   :  { %9244 = vmatprep.subr.msk.bf16.mxu1 %vm10632_vm3, %v11085_v42  ;;  %9250 = vmatprep.subr.msk.bf16.mxu0 %vm10632_vm3, %v11085_v42 }
 0xbb6   :  { %9247 = vmatpush1.bf16.msk.msra.mxu1 %vm10632_vm3, %v10636_v5  ;;  %9253 = vmatpush1.bf16.msk.msra.mxu0 %vm10632_vm3, %v10636_v5 }
 0xbb7   :  { %2785 = vmatprep.subr.bf16.mxu1 %v9558_v57  ;;  %3136 = vmatprep.subr.bf16.mxu0 %v9606_v22  ;;  %v9625_v57 = vld [vmem:[#allocation8 + $0x170] ss:$8 sps:$4 sm:$0xff]  }
 0xbb9   :  { %7676 = vmatmul.mubr.msk.f32.vlgmr.msra.gmra.mrb[78].mxu1 %vm264_vm4, %v10964_v44  ;;  %7687 = vmatmul.mubr.msk.f32.vlgmr.msra.gmra.mrb[84].mxu0 %vm264_vm4, %v9949_v63  ;;  %v9950_v44 = vld [vmem:[%s12054_s15 + $0x8] sm:$0xff] }
 0xbba   :  { %2365 = vmatprep.mubr.f32.mxu1 %v12080_v1  ;;  %2484 = vmatprep.mubr.f32.mxu0 %v12080_v1  ;;  %v9633_v63 = vld [vmem:[#allocation8 + $0x194] ss:$8 sps:$4 sm:$0xff]  }
 0xbbb   :  { %2786 = vmatpush1.bf16.msra.mxu1 %v9556_v58  ;;  %3137 = vmatpush1.bf16.msra.mxu0 %v9604_v19  ;;  %v9630_v58 = vld [vmem:[#allocation8 + $0x184] ss:$8 sps:$4 sm:$0xff]  }
 0xbbc   :  { %2787 = vmatprep.subr.bf16.mxu1 %v9561_v62  ;;  %3138 = vmatprep.subr.bf16.mxu0 %v9609_v37  ;;  %v9628_v62 = vld [vmem:[#allocation8 + $0x180] ss:$8 sps:$4 sm:$0xff]  }
 0xbbd   :  { %7677 = vmatmul.mubr.msk.f32.gmra.mrb[84].mxu1 %vm264_vm4, %v10973_v46  ;;  %7688 = vmatmul.mubr.msk.f32.gmra.mrb[86].mxu0 %vm264_vm4, %v9950_v44  ;;  %v9951_v46 = vld [vmem:[%s12054_s15 + $0x10] sm:$0xff] }
 0xbbe   :  { %2371 = vmatprep.mubr.f32.mxu1 %v12080_v1  ;;  %2490 = vmatprep.mubr.f32.mxu0 %v12080_v1  ;;  %v9634_v44 = vld [vmem:[#allocation8 + $0x1a0] ss:$8 sps:$4 sm:$0xff]  }
 0xbbf   :  { %2788 = vmatpush1.bf16.msra.mxu1 %v9559_v41  ;;  %3139 = vmatpush1.bf16.msra.mxu0 %v9607_v23  ;;  %v9631_v41 = vld [vmem:[#allocation8 + $0x190] ss:$8 sps:$4 sm:$0xff]  }
 0xbc0   :  { %2789 = vmatprep.subr.bf16.mxu1 %v9564_v2  ;;  %3140 = vmatprep.subr.bf16.mxu0 %v9612_v38  ;;  %v9636_v2 = vld [vmem:[#allocation8 + $0x1a4] ss:$8 sps:$4 sm:$0xff]  }
 0xbc1   :  { %7678 = vmatmul.mubr.msk.f32.gmra.mrb[86].mxu1 %vm264_vm4, %v10982_v48  ;;  %7689 = vmatmul.mubr.msk.f32.gmra.mrb[88].mxu0 %vm264_vm4, %v9951_v46  ;;  %v9952_v48 = vld [vmem:[%s12054_s15 + $0x18] sm:$0xff] }
 0xbc2   :  { %2377 = vmatprep.mubr.f32.mxu1 %v12080_v1  ;;  %2496 = vmatprep.mubr.f32.mxu0 %v12080_v1  ;;  %v9642_v46 = vld [vmem:[#allocation8 + $0x1c4] ss:$8 sps:$4 sm:$0xff]  }
 0xbc3   :  { %2790 = vmatpush1.bf16.msra.mxu1 %v9562_v3  ;;  %3141 = vmatpush1.bf16.msra.mxu0 %v9610_v24  ;;  %v9639_v3 = vld [vmem:[#allocation8 + $0x1b4] ss:$8 sps:$4 sm:$0xff]  }
 0xbc4   :  { %2791 = vmatprep.subr.bf16.mxu1 %v9567_v59  ;;  %3142 = vmatprep.subr.bf16.mxu0 %v9615_v25  ;;  %v9637_v59 = vld [vmem:[#allocation8 + $0x1b0] ss:$8 sps:$4 sm:$0xff]  }
 0xbc5   :  { %7679 = vmatmul.mubr.msk.f32.gmra.mrb[88].mxu1 %vm264_vm4, %v10991_v49  ;;  %7690 = vmatmul.mubr.msk.f32.gmra.mrb[90].mxu0 %vm264_vm4, %v9952_v48  ;;  %v9953_v49 = vld [vmem:[%s12054_s15 + $0x20] sm:$0xff] }
 0xbc6   :  { %2383 = vmatprep.mubr.f32.mxu1 %v12080_v1  ;;  %2502 = vmatprep.mubr.f32.mxu0 %v12080_v1 }
 0xbc7   :  { %2792 = vmatpush1.bf16.msra.mxu1 %v9565_v7  ;;  %3143 = vmatpush1.bf16.msra.mxu0 %v9613_v43  ;;  %v9640_v7 = vld [vmem:[#allocation8 + $0x1c0] ss:$8 sps:$4 sm:$0xff]  }
 0xbc8   :  { %2793 = vmatprep.subr.bf16.mxu1 %v9570_v8  ;;  %3144 = vmatprep.subr.bf16.mxu0 %v9618_v45 }
 0xbc9   :  { %7680 = vmatmul.mubr.msk.f32.gmra.mrb[90].mxu1 %vm264_vm4, %v11000_v50  ;;  %7691 = vmatmul.mubr.msk.f32.gmra.mrb[92].mxu0 %vm264_vm4, %v9953_v49  ;;  %v9954_v50 = vld [vmem:[%s12054_s15 + $0x28] sm:$0xff] }
 0xbca   :  { %2389 = vmatprep.mubr.f32.mxu1 %v12080_v1  ;;  %2508 = vmatprep.mubr.f32.mxu0 %v12080_v1 }
 0xbcb   :  { %2794 = vmatpush1.bf16.msra.mxu1 %v9568_v10  ;;  %3145 = vmatpush1.bf16.msra.mxu0 %v9616_v27 }
 0xbcc   :  { %2795 = vmatprep.subr.bf16.mxu1 %v9573_v13  ;;  %3146 = vmatprep.subr.bf16.mxu0 %v9621_v54 }
 0xbcd   :  { %7681 = vmatmul.mubr.msk.f32.gmra.mrb[92].mxu1 %vm264_vm4, %v11009_v51  ;;  %7692 = vmatmul.mubr.msk.f32.gmra.mrb[94].mxu0 %vm264_vm4, %v9954_v50  ;;  %v9955_v51 = vld [vmem:[%s12054_s15 + $0x30] sm:$0xff] }
 0xbce   :  { %2395 = vmatprep.mubr.f32.mxu1 %v12080_v1  ;;  %2514 = vmatprep.mubr.f32.mxu0 %v12080_v1 }
 0xbcf   :  { %2796 = vmatpush1.bf16.msra.mxu1 %v9571_v11  ;;  %3147 = vmatpush1.bf16.msra.mxu0 %v9619_v28 }
 0xbd0   :  { %2797 = vmatprep.subr.bf16.mxu1 %v9576_v12  ;;  %3148 = vmatprep.subr.bf16.mxu0 %v9624_v30 }
 0xbd1   :  { %7682 = vmatmul.mubr.msk.f32.gmra.mrb[94].mxu1 %vm264_vm4, %v11018_v52  ;;  %7693 = vmatmul.mubr.msk.f32.gmra.mrb[96].mxu0 %vm264_vm4, %v9955_v51  ;;  %v9956_v52 = vld [vmem:[%s12054_s15 + $0x38] sm:$0xff] }
 0xbd2   :  { %2401 = vmatprep.mubr.f32.mxu1 %v12080_v1  ;;  %2520 = vmatprep.mubr.f32.mxu0 %v12080_v1 }
 0xbd3   :  { %2798 = vmatpush1.bf16.msra.mxu1 %v9574_v20  ;;  %3149 = vmatpush1.bf16.msra.mxu0 %v9622_v35 }
 0xbd4   :  { %2799 = vmatprep.subr.bf16.mxu1 %v9579_v14  ;;  %3150 = vmatprep.subr.bf16.mxu0 %v9627_v36 }
 0xbd5   :  { %7683 = vmatmul.mubr.msk.f32.gmra.mrb[96].mxu1 %vm264_vm4, %v11027_v55  ;;  %7694 = vmatmul.mubr.msk.f32.gmra.mrb[98].mxu0 %vm264_vm4, %v9956_v52  ;;  %v9957_v55 = vld [vmem:[%s12054_s15 + $0x40] sm:$0xff] }
 0xbd6   :  { %2407 = vmatprep.mubr.f32.mxu1 %v12080_v1  ;;  %2526 = vmatprep.mubr.f32.mxu0 %v12080_v1 }
 0xbd7   :  { %2800 = vmatpush1.bf16.msra.mxu1 %v9577_v26  ;;  %3151 = vmatpush1.bf16.msra.mxu0 %v9625_v57 }
 0xbd8   :  { %2801 = vmatprep.subr.bf16.mxu1 %v9582_v6  ;;  %3152 = vmatprep.subr.bf16.mxu0 %v9630_v58 }
 0xbd9   :  { %7684 = vmatmul.mubr.msk.f32.gmra.mrb[98].mxu1 %vm264_vm4, %v11036_v56  ;;  %7695 = vmatmul.mubr.msk.f32.gmra.mrb[100].mxu0 %vm264_vm4, %v9957_v55  ;;  %v9592_v56 = vld [vmem:[#allocation5 + $0x240] ss:$8 sps:$4 sm:$0xff]  }
 0xbdb   :  { %2802 = vmatpush1.bf16.msra.mxu1 %v9580_v15  ;;  %3153 = vmatpush1.bf16.msra.mxu0 %v9628_v62 }
 0xbdc   :  { %2803 = vmatprep.subr.bf16.mxu1 %v9585_v33  ;;  %3154 = vmatprep.subr.bf16.mxu0 %v9633_v63 }
 0xbdf   :  { %2804 = vmatpush1.bf16.msra.mxu1 %v9583_v39  ;;  %3155 = vmatpush1.bf16.msra.mxu0 %v9631_v41 }
 0xbe0   :  { %2805 = vmatprep.subr.bf16.mxu1 %v9588_v47  ;;  %3156 = vmatprep.subr.bf16.mxu0 %v9636_v2 }
 0xbe3   :  { %2806 = vmatpush1.bf16.msra.mxu1 %v9586_v53  ;;  %3157 = vmatpush1.bf16.msra.mxu0 %v9634_v44 }
 0xbe4   :  { %2807 = vmatprep.subr.bf16.mxu1 %v9591_v60  ;;  %3158 = vmatprep.subr.bf16.mxu0 %v9639_v3 }
 0xbe7   :  { %2808 = vmatpush1.bf16.msra.mxu1 %v9589_v61  ;;  %3159 = vmatpush1.bf16.msra.mxu0 %v9637_v59 }
 0xbe8   :  { %2809 = vmatprep.subr.bf16.mxu1 %v9594_v16  ;;  %3160 = vmatprep.subr.bf16.mxu0 %v9642_v46 }
 0xbeb   :  { %2810 = vmatpush1.bf16.msra.mxu1 %v9592_v56  ;;  %3161 = vmatpush1.bf16.msra.mxu0 %v9640_v7 }
 0xbec   :  { %2811 = vmatprep.subr.bf16.mxu1 %v9597_v9 }
 0xbef   :  { %2812 = vmatpush1.bf16.msra.mxu1 %v9595_v18 }
 0xbf0   :  { %2813 = vmatprep.subr.bf16.mxu1 %v9600_v32 }
 0xbf3   :  { %2814 = vmatpush1.bf16.msra.mxu1 %v9598_v17 }
 0xbf4   :  { %2815 = vmatprep.subr.bf16.mxu1 %v9603_v21 }
 0xbf7   :  { %2816 = vmatpush1.bf16.msra.mxu1 %v9601_v34 }
 0xc8c   :  { %v2361_v8 = vpop.f32.mrb[78].mxu1  ;;  %v11169_v48 = vpop.f32.mrb[84].mxu0 }
 0xc8d   :  { %v2533_v10 = vsub.f32 %v2361_v8, %v11169_v48  ;;  %v2363_v13 = vpop.f32.mrb[79].mxu1  ;;  %v11172_v49 = vpop.f32.mrb[85].mxu0 }
 0xc8e   :  { %v2534_v11 = vsub.f32 %v2363_v13, %v11172_v49 }
 0xc8f   :  { %v2551_v6 = vand.u32 2147483647, %v2533_v10 }
 0xc90   :  { %v2367_v12 = vpop.f32.mrb[84].mxu1  ;;  %v11175_v50 = vpop.f32.mrb[86].mxu0  ;;  %v2552_v15 = vand.u32 2147483647, %v2534_v11 }
 0xc91   :  { %v2535_v20 = vsub.f32 %v2367_v12, %v11175_v50  ;;  %v2369_v14 = vpop.f32.mrb[85].mxu1  ;;  %v11178_v51 = vpop.f32.mrb[87].mxu0 }
 0xc92   :  { %v2536_v26 = vsub.f32 %v2369_v14, %v11178_v51 }
 0xc93   :  { %v2553_v52 = vand.u32 2147483647, %v2535_v20 }
 0xc94   :  { %v2554_v33 = vand.u32 2147483647, %v2536_v26  ;;  %v2373_v55 = vpop.f32.mrb[86].mxu1  ;;  %v11181_v39 = vpop.f32.mrb[88].mxu0 }
 0xc95   :  { %v11183_v47 = vpack.c.bf16 %v2553_v52, %v2551_v6  ;;  %v2537_v53 = vsub.f32 %v2373_v55, %v11181_v39  ;;  %v2375_v60 = vpop.f32.mrb[87].mxu1  ;;  %v11186_v61 = vpop.f32.mrb[89].mxu0 }
 0xc96   :  { %v2538_v16 = vsub.f32 %v2375_v60, %v11186_v61  ;;  %v11189_v56 = vpack.c.bf16 %v2554_v33, %v2552_v15 }
 0xc97   :  { %v2555_v19 = vand.u32 2147483647, %v2537_v53 }
 0xc98   :  { %v2379_v9 = vpop.f32.mrb[88].mxu1  ;;  %v11191_v18 = vpop.f32.mrb[90].mxu0  ;;  %2817 = vmatprep.mubr.bf16.mxu1 %v11189_v56  ;;  %v2556_v37 = vand.u32 2147483647, %v2538_v16 }
 0xc99   :  { %v2539_v32 = vsub.f32 %v2379_v9, %v11191_v18  ;;  %v2381_v17 = vpop.f32.mrb[89].mxu1  ;;  %v11195_v21 = vpop.f32.mrb[91].mxu0  ;;  %2818 = vmatmul.mubr.bf16.vlgmr.msra.gmra.mrb[100].mxu1 %v11183_v47 }
 0xc9a   :  { %v2540_v34 = vsub.f32 %v2381_v17, %v11195_v21 }
 0xc9b   :  { %v2557_v22 = vand.u32 2147483647, %v2539_v32 }
 0xc9c   :  { %v2558_v23 = vand.u32 2147483647, %v2540_v34  ;;  %v2385_v38 = vpop.f32.mrb[90].mxu1  ;;  %v11199_v24 = vpop.f32.mrb[92].mxu0 }
 0xc9d   :  { %v2541_v25 = vsub.f32 %v2385_v38, %v11199_v24  ;;  %v2387_v43 = vpop.f32.mrb[91].mxu1  ;;  %v11202_v45 = vpop.f32.mrb[93].mxu0  ;;  %v11204_v27 = vpack.c.bf16 %v2557_v22, %v2555_v19 }
 0xc9e   :  { %v2542_v54 = vsub.f32 %v2387_v43, %v11202_v45  ;;  %v11207_v28 = vpack.c.bf16 %v2558_v23, %v2556_v37  ;;  %v9645_v43 = vld [vmem:[#allocation8 + $0x1d4] ss:$8 sps:$4 sm:$0xff]  }
 0xc9f   :  { %v2559_v63 = vand.u32 2147483647, %v2541_v25  ;;  %3162 = vmatprep.subr.bf16.mxu0 %v9645_v43 }
 0xca0   :  { %v2391_v30 = vpop.f32.mrb[92].mxu1  ;;  %v11209_v35 = vpop.f32.mrb[94].mxu0  ;;  %2827 = vmatprep.mubr.bf16.mxu1 %v11207_v28  ;;  %v2560_v2 = vand.u32 2147483647, %v2542_v54  ;;  %v9643_v54 = vld [vmem:[#allocation8 + $0x1d0] ss:$8 sps:$4 sm:$0xff]  }
 0xca1   :  { %v2543_v36 = vsub.f32 %v2391_v30, %v11209_v35  ;;  %v2393_v57 = vpop.f32.mrb[93].mxu1  ;;  %v11213_v58 = vpop.f32.mrb[95].mxu0  ;;  %2828 = vmatmul.mubr.bf16.gmra.mrb[104].mxu1 %v11204_v27  ;;  %3163 = vmatpush1.bf16.msra.mxu0 %v9643_v54  ;;  %v9648_v30 = vld [vmem:[#allocation8 + $0x1e4] ss:$8 sps:$4 sm:$0xff]  }
 0xca2   :  { %v2544_v62 = vsub.f32 %v2393_v57, %v11213_v58  ;;  %3164 = vmatprep.subr.bf16.mxu0 %v9648_v30  ;;  %v9651_v57 = vld [vmem:[#allocation8 + $0x1f4] ss:$8 sps:$4 sm:$0xff]  }
 0xca3   :  { %v2561_v41 = vand.u32 2147483647, %v2543_v36  ;;  %v9646_v36 = vld [vmem:[#allocation8 + $0x1e0] ss:$8 sps:$4 sm:$0xff]  }
 0xca4   :  { %v2562_v44 = vand.u32 2147483647, %v2544_v62  ;;  %v2397_v3 = vpop.f32.mrb[94].mxu1  ;;  %v11217_v59 = vpop.f32.mrb[96].mxu0  ;;  %v9649_v62 = vld [vmem:[#allocation8 + $0x1f0] ss:$8 sps:$4 sm:$0xff]  }
 0xca5   :  { %v2545_v46 = vsub.f32 %v2397_v3, %v11217_v59  ;;  %v2399_v7 = vpop.f32.mrb[95].mxu1  ;;  %v11220_v8 = vpop.f32.mrb[97].mxu0  ;;  %v11222_v10 = vpack.c.bf16 %v2561_v41, %v2559_v63  ;;  %3165 = vmatpush1.bf16.msra.mxu0 %v9646_v36  ;;  %v9652_v63 = vld [vmem:[#allocation11 + $0xc0] sm:$0xff]   ;;  %v9656_v3 = vld [vmem:[#allocation11 + $0xd0] sm:$0xff]  }
 0xca6   :  { %v2546_v13 = vsub.f32 %v2399_v7, %v11220_v8  ;;  %v11225_v11 = vpack.c.bf16 %v2562_v44, %v2560_v2  ;;  %3166 = vmatprep.subr.bf16.mxu0 %v9651_v57  ;;  %v9653_v41 = vld [vmem:[#allocation11 + $0x80] sm:$0xff]   ;;  %v9654_v2 = vld [vmem:[#allocation11 + $0xc8] sm:$0xff]   ;;  %8233 = vmatprep.subr.bf16.mxu1 %v9652_v63  ;;  %v9658_v7 = vld [vmem:[#allocation11 + $0xd8] sm:$0xff]  }
 0xca7   :  { %v2563_v15 = vand.u32 2147483647, %v2545_v46  ;;  %8234 = vmatpush3.bf16.msra.mxu1 %v9653_v41  ;;  %v9655_v44 = vld [vmem:[#allocation11 + $0x88] sm:$0xff]   ;;  %v9657_v46 = vld [vmem:[#allocation11 + $0x90] sm:$0xff]  }
 0xca8   :  { %v2403_v12 = vpop.f32.mrb[96].mxu1  ;;  %v11227_v20 = vpop.f32.mrb[98].mxu0  ;;  %2837 = vmatprep.mubr.bf16.mxu1 %v11225_v11  ;;  %v2564_v55 = vand.u32 2147483647, %v2546_v13  ;;  %8235 = vmatprep.subr.bf16.mxu1 %v9654_v2  ;;  %v9659_v13 = vld [vmem:[#allocation11 + $0x98] sm:$0xff]  }
 0xca9   :  { %v2547_v14 = vsub.f32 %v2403_v12, %v11227_v20  ;;  %v2405_v26 = vpop.f32.mrb[97].mxu1  ;;  %v11231_v6 = vpop.f32.mrb[99].mxu0  ;;  %2838 = vmatmul.mubr.bf16.gmra.mrb[108].mxu1 %v11222_v10  ;;  %3167 = vmatpush1.bf16.msra.mxu0 %v9649_v62  ;;  %v9660_v12 = vld [vmem:[#allocation11 + $0xe0] sm:$0xff]  }
 0xcaa   :  { %v2548_v52 = vsub.f32 %v2405_v26, %v11231_v6  ;;  %8813 = vmatprep.subr.bf16.mxu0 %v12080_v1  ;;  %v2613_v26 = vld [vmem:[#allocation7 + $0x2] sm:$0x3] }
 0xcab   :  { %v2565_v33 = vand.u32 2147483647, %v2547_v14  ;;  %8236 = vmatpush3.bf16.msra.mxu1 %v9655_v44  ;;  %v9661_v14 = vld [vmem:[#allocation11 + $0xa0] sm:$0xff]  }
 0xcac   :  { %v2566_v53 = vand.u32 2147483647, %v2548_v52  ;;  %v2409_v60 = vpop.f32.mrb[98].mxu1  ;;  %v11235_v16 = vpop.f32.mrb[100].mxu0  ;;  %8237 = vmatprep.subr.bf16.mxu1 %v9656_v3  ;;  %v11255_v52 = vrot.slane %v2613_v26, %v10783_v29 }
 0xcad   :  { %v11237_v9 = vpack.c.bf16 %v2565_v33, %v2563_v15  ;;  %v2549_v32 = vsub.f32 %v2409_v60, %v11235_v16  ;;  %v2411_v17 = vpop.f32.mrb[99].mxu1  ;;  %v11240_v34 = vpop.f32.mrb[101].mxu0  ;;  %v11258_v15 = vrot.slane %v2613_v26, %v10785_v31 }
 0xcae   :  { %v11242_v19 = vpack.c.bf16 %v2566_v53, %v2564_v55  ;;  %v2550_v22 = vsub.f32 %v2411_v17, %v11240_v34 }
 0xcaf   :  { %v2567_v23 = vand.u32 2147483647, %v2549_v32  ;;  %8238 = vmatpush3.bf16.msra.mxu1 %v9657_v46 }
 0xcb0   :  { %2847 = vmatprep.mubr.bf16.mxu1 %v11242_v19  ;;  %v2568_v37 = vand.u32 2147483647, %v2550_v22  ;;  %8239 = vmatprep.subr.bf16.mxu1 %v9658_v7 }
 0xcb1   :  { %2848 = vmatmul.mubr.bf16.gmra.mrb[112].mxu1 %v11237_v9  ;;  %v11250_v25 = vpack.c.bf16 %v2567_v23, %v2567_v23 }
 0xcb2   :  { %v11247_v38 = vpack.c.bf16 %v2568_v37, %v2568_v37 }
 0xcb3   :  { %8240 = vmatpush3.bf16.msra.mxu1 %v9659_v13 }
 0xcb4   :  { %2857 = vmatprep.mubr.bf16.mxu1 %v11247_v38  ;;  %8241 = vmatprep.subr.bf16.mxu1 %v9660_v12 }
 0xcb7   :  { %8242 = vmatpush3.bf16.msra.mxu1 %v9661_v14 }
 0xcb9   :  { %2858 = vmatmul.mubr.bf16.gmra.mrb[116].mxu1 %v11250_v25 }
 0xd6c   :  { %v2819_v33 = vpop.f32.mrb[100].mxu1 }
 0xd6d   :  { %v2820_v55 = vadd.f32 %v2819_v33, %v11255_v52  ;;  %v2821_v53 = vpop.f32.mrb[101].mxu1 }
 0xd6e   :  { %v2822_v60 = vadd.f32 %v2821_v53, %v11258_v15  ;;  %v2823_v32 = vpop.f32.mrb[102].mxu1 }
 0xd6f   :  { %v2884_v17 = vmul.f32 0.01, %v2820_v55  ;;  %v2824_v22 = vadd.f32 %v2823_v32, %v11255_v52  ;;  %v2825_v37 = vpop.f32.mrb[103].mxu1  ;;  %vm2866_vm14 = vcmp.ge.f32.partialorder %v2820_v55, 0.0 }
 0xd70   :  { %v2885_v23 = vmul.f32 0.01, %v2822_v60  ;;  %v2826_v43 = vadd.f32 %v2825_v37, %v11258_v15  ;;  %vm2867_vm15 = vcmp.ge.f32.partialorder %v2822_v60, 0.0 }
 0xd71   :  { %vm2868_vm2 = vcmp.ge.f32.partialorder %v2824_v22, 0.0  ;;  %v2886_v54 = vmul.f32 0.01, %v2824_v22  ;;  %v2902_v36 = vsel %vm2866_vm14, %v2820_v55, %v2884_v17 }
 0xd72   :  { %vm2869_vm5 = vcmp.ge.f32.partialorder %v2826_v43, 0.0  ;;  %v2887_v30 = vmul.f32 0.01, %v2826_v43  ;;  %v2903_v41 = vsel %vm2867_vm15, %v2822_v60, %v2885_v23 }
 0xd73   :  { %v2904_v57 = vsel %vm2868_vm2, %v2824_v22, %v2886_v54 }
 0xd74   :  { %v2920_v62 = vpack.c.bf16 %v2904_v57, %v2902_v36  ;;  %v2829_v63 = vpop.f32.mrb[104].mxu1  ;;  %v2905_v2 = vsel %vm2869_vm5, %v2826_v43, %v2887_v30 }
 0xd75   :  { %v2830_v44 = vadd.f32 %v2829_v63, %v11255_v52  ;;  %v2831_v3 = vpop.f32.mrb[105].mxu1  ;;  %v2921_v46 = vpack.c.bf16 %v2905_v2, %v2903_v41 }
 0xd76   :  { %v2832_v7 = vadd.f32 %v2831_v3, %v11258_v15  ;;  %v2833_v13 = vpop.f32.mrb[106].mxu1 }
 0xd77   :  { %v2888_v12 = vmul.f32 0.01, %v2830_v44  ;;  %v2834_v14 = vadd.f32 %v2833_v13, %v11255_v52  ;;  %v2835_v26 = vpop.f32.mrb[107].mxu1  ;;  %3168 = vmatprep.mubr.bf16.mxu0 %v2921_v46  ;;  %vm2870_vm6 = vcmp.ge.f32.partialorder %v2830_v44, 0.0 }
 0xd78   :  { %v2889_v33 = vmul.f32 0.01, %v2832_v7  ;;  %v2836_v55 = vadd.f32 %v2835_v26, %v11258_v15  ;;  %3169 = vmatmul.mubr.bf16.vlgmr.msra.gmra.mrb[104].mxu0 %v2920_v62  ;;  %vm2871_vm7 = vcmp.ge.f32.partialorder %v2832_v7, 0.0 }
 0xd79   :  { %vm2872_vm8 = vcmp.ge.f32.partialorder %v2834_v14, 0.0  ;;  %v2890_v53 = vmul.f32 0.01, %v2834_v14  ;;  %v2906_v32 = vsel %vm2870_vm6, %v2830_v44, %v2888_v12 }
 0xd7a   :  { %vm2873_vm9 = vcmp.ge.f32.partialorder %v2836_v55, 0.0  ;;  %v2891_v60 = vmul.f32 0.01, %v2836_v55  ;;  %v2907_v37 = vsel %vm2871_vm7, %v2832_v7, %v2889_v33 }
 0xd7b   :  { %v2908_v17 = vsel %vm2872_vm8, %v2834_v14, %v2890_v53 }
 0xd7c   :  { %v2839_v22 = vpop.f32.mrb[108].mxu1  ;;  %v2909_v23 = vsel %vm2873_vm9, %v2836_v55, %v2891_v60  ;;  %v2922_v43 = vpack.c.bf16 %v2908_v17, %v2906_v32 }
 0xd7d   :  { %v2840_v54 = vadd.f32 %v2839_v22, %v11255_v52  ;;  %v2841_v30 = vpop.f32.mrb[109].mxu1  ;;  %v2923_v36 = vpack.c.bf16 %v2909_v23, %v2907_v37 }
 0xd7e   :  { %v2842_v57 = vadd.f32 %v2841_v30, %v11258_v15  ;;  %v2843_v63 = vpop.f32.mrb[110].mxu1 }
 0xd7f   :  { %v2892_v41 = vmul.f32 0.01, %v2840_v54  ;;  %v2844_v62 = vadd.f32 %v2843_v63, %v11255_v52  ;;  %v2845_v2 = vpop.f32.mrb[111].mxu1  ;;  %3178 = vmatprep.mubr.bf16.mxu0 %v2923_v36  ;;  %vm2874_vm10 = vcmp.ge.f32.partialorder %v2840_v54, 0.0 }
 0xd80   :  { %v2893_v3 = vmul.f32 0.01, %v2842_v57  ;;  %v2846_v44 = vadd.f32 %v2845_v2, %v11258_v15  ;;  %3179 = vmatmul.mubr.bf16.gmra.mrb[108].mxu0 %v2922_v43  ;;  %vm2875_vm12 = vcmp.ge.f32.partialorder %v2842_v57, 0.0 }
 0xd81   :  { %vm2876_vm13 = vcmp.ge.f32.partialorder %v2844_v62, 0.0  ;;  %v2894_v46 = vmul.f32 0.01, %v2844_v62  ;;  %v2910_v13 = vsel %vm2874_vm10, %v2840_v54, %v2892_v41 }
 0xd82   :  { %vm2877_vm14 = vcmp.ge.f32.partialorder %v2846_v44, 0.0  ;;  %v2895_v7 = vmul.f32 0.01, %v2846_v44  ;;  %v2911_v26 = vsel %vm2875_vm12, %v2842_v57, %v2893_v3 }
 0xd83   :  { %v2912_v12 = vsel %vm2876_vm13, %v2844_v62, %v2894_v46 }
 0xd84   :  { %v2849_v14 = vpop.f32.mrb[112].mxu1  ;;  %v2913_v33 = vsel %vm2877_vm14, %v2846_v44, %v2895_v7  ;;  %v2924_v55 = vpack.c.bf16 %v2912_v12, %v2910_v13 }
 0xd85   :  { %v2850_v53 = vadd.f32 %v2849_v14, %v11255_v52  ;;  %v2851_v60 = vpop.f32.mrb[113].mxu1  ;;  %v2925_v32 = vpack.c.bf16 %v2913_v33, %v2911_v26 }
 0xd86   :  { %v2852_v17 = vadd.f32 %v2851_v60, %v11258_v15  ;;  %v2853_v22 = vpop.f32.mrb[114].mxu1 }
 0xd87   :  { %v2896_v37 = vmul.f32 0.01, %v2850_v53  ;;  %v2854_v23 = vadd.f32 %v2853_v22, %v11255_v52  ;;  %v2855_v43 = vpop.f32.mrb[115].mxu1  ;;  %3188 = vmatprep.mubr.bf16.mxu0 %v2925_v32  ;;  %vm2878_vm15 = vcmp.ge.f32.partialorder %v2850_v53, 0.0  ;;  %v9663_v22 = vld [vmem:[#allocation11 + $0xa8] sm:$0xff]  }
 0xd88   :  { %v2897_v30 = vmul.f32 0.01, %v2852_v17  ;;  %v2856_v54 = vadd.f32 %v2855_v43, %v11258_v15  ;;  %3189 = vmatmul.mubr.bf16.gmra.mrb[112].mxu0 %v2924_v55  ;;  %vm2879_vm2 = vcmp.ge.f32.partialorder %v2852_v17, 0.0  ;;  %v9667_v43 = vld [vmem:[#allocation11 + $0xb8] sm:$0xff]  }
 0xd89   :  { %vm2880_vm5 = vcmp.ge.f32.partialorder %v2854_v23, 0.0  ;;  %v2898_v36 = vmul.f32 0.01, %v2854_v23  ;;  %v2914_v63 = vsel %vm2878_vm15, %v2850_v53, %v2896_v37  ;;  %v9665_v37 = vld [vmem:[#allocation11 + $0xb0] sm:$0xff]  }
 0xd8a   :  { %vm2881_vm6 = vcmp.ge.f32.partialorder %v2856_v54, 0.0  ;;  %v2899_v57 = vmul.f32 0.01, %v2856_v54  ;;  %v2915_v2 = vsel %vm2879_vm2, %v2852_v17, %v2897_v30  ;;  %v9668_v30 = vld [vmem:[%s12046_s7 + $0x40] sm:$0xff]  }
 0xd8b   :  { %v2916_v41 = vsel %vm2880_vm5, %v2854_v23, %v2898_v36  ;;  %v9666_v23 = vld [vmem:[#allocation11 + $0xf8] sm:$0xff]   ;;  %8814 = vmatpush3.bf16.msra.mxu0 %v9668_v30 }
 0xd8c   :  { %v2859_v62 = vpop.f32.mrb[116].mxu1  ;;  %v2917_v3 = vsel %vm2881_vm6, %v2856_v54, %v2899_v57  ;;  %v2926_v44 = vpack.c.bf16 %v2916_v41, %v2914_v63  ;;  %v9669_v54 = vld [vmem:[%s12046_s7 + $0x48] sm:$0xff]   ;;  %8815 = vmatprep.subr.bf16.mxu0 %v12080_v1  ;;  %v9670_v36 = vld [vmem:[%s12046_s7 + $0x50] sm:$0xff]   ;;  %v9671_v57 = vld [vmem:[%s12046_s7 + $0x58] sm:$0xff]  }
 0xd8d   :  { %v2860_v46 = vadd.f32 %v2859_v62, %v11255_v52  ;;  %v2861_v7 = vpop.f32.mrb[117].mxu1  ;;  %v2927_v13 = vpack.c.bf16 %v2917_v3, %v2915_v2  ;;  %v9662_v52 = vld [vmem:[#allocation11 + $0xe8] sm:$0xff]   ;;  %v2964_v41 = vld [vmem:[#allocation10 + $0x2] sm:$0x3] }
 0xd8e   :  { %v2862_v12 = vadd.f32 %v2861_v7, %v11258_v15  ;;  %v2863_v14 = vpop.f32.mrb[118].mxu1  ;;  %8243 = vmatprep.subr.bf16.mxu1 %v9662_v52  ;;  %v9664_v15 = vld [vmem:[#allocation11 + $0xf0] sm:$0xff]   ;;  %v9672_v63 = vld [vmem:[%s12046_s7 + $0x60] sm:$0xff]   ;;  %v11302_v62 = vrot.slane %v2964_v41, %v10783_v29  ;;  %v11305_v2 = vrot.slane %v2964_v41, %v10785_v31 }
 0xd8f   :  { %vm2882_vm7 = vcmp.ge.f32.partialorder %v2860_v46, 0.0  ;;  %v2900_v26 = vmul.f32 0.01, %v2860_v46  ;;  %3198 = vmatprep.mubr.bf16.mxu0 %v2927_v13  ;;  %v2864_v33 = vpop.f32.mrb[119].mxu1  ;;  %8244 = vmatpush3.bf16.msra.mxu1 %v9663_v22 }
 0xd90   :  { %vm2883_vm8 = vcmp.ge.f32.partialorder %v2862_v12, 0.0  ;;  %v2901_v55 = vmul.f32 0.01, %v2862_v12  ;;  %3199 = vmatmul.mubr.bf16.gmra.mrb[116].mxu0 %v2926_v44  ;;  %8245 = vmatprep.subr.bf16.mxu1 %v9664_v15 }
 0xd91   :  { %v2918_v53 = vsel %vm2882_vm7, %v2860_v46, %v2900_v26  ;;  %8816 = vmatpush3.bf16.msra.mxu0 %v9669_v54 }
 0xd92   :  { %v2919_v60 = vsel %vm2883_vm8, %v2862_v12, %v2901_v55  ;;  %v2928_v17 = vpack.c.bf16 %v2918_v53, %v2918_v53  ;;  %8817 = vmatprep.subr.bf16.mxu0 %v12080_v1 }
 0xd93   :  { %v2929_v32 = vpack.c.bf16 %v2919_v60, %v2919_v60  ;;  %8246 = vmatpush3.bf16.msra.mxu1 %v9665_v37 }
 0xd94   :  { %8247 = vmatprep.subr.bf16.mxu1 %v9666_v23 }
 0xd95   :  { %3208 = vmatprep.mubr.bf16.mxu0 %v2929_v32  ;;  %8818 = vmatpush3.bf16.msra.mxu0 %v9670_v36 }
 0xd96   :  { %8819 = vmatprep.subr.bf16.mxu0 %v12080_v1 }
 0xd97   :  { %8248 = vmatpush3.bf16.msra.mxu1 %v9667_v43 }
 0xd98   :  { %3209 = vmatmul.mubr.bf16.gmra.mrb[120].mxu0 %v2928_v17  ;;  %8849 = vmatprep.subr.bf16.mxu1 %v12080_v1 }
 0xd99   :  { %8829 = vmatprep.mubr.msk.bf16.mxu0 %vm10334_vm0, %v12080_v1  ;;  %8820 = vmatpush3.bf16.msra.mxu0 %v9671_v57 }
 0xd9a   :  { %8821 = vmatprep.subr.bf16.mxu0 %v12080_v1 }
 0xd9d   :  { %8822 = vmatpush3.bf16.msra.mxu0 %v9672_v63 }
 0xd9e   :  { %8823 = vmatprep.subr.bf16.mxu0 %v12080_v1 }
 0xe4b   :  { %v3170_v3 = vpop.f32.mrb[104].mxu0 }
 0xe4c   :  { %v3171_v44 = vadd.f32 %v3170_v3, %v11302_v62  ;;  %v3172_v46 = vpop.f32.mrb[105].mxu0 }
 0xe4d   :  { %v3173_v7 = vadd.f32 %v3172_v46, %v11305_v2  ;;  %v3174_v13 = vpop.f32.mrb[106].mxu0 }
 0xe4e   :  { %v3235_v12 = vmul.f32 0.01, %v3171_v44  ;;  %v3175_v14 = vadd.f32 %v3174_v13, %v11302_v62  ;;  %v3176_v26 = vpop.f32.mrb[107].mxu0  ;;  %vm3217_vm9 = vcmp.ge.f32.partialorder %v3171_v44, 0.0 }
 0xe4f   :  { %v3236_v33 = vmul.f32 0.01, %v3173_v7  ;;  %v3177_v55 = vadd.f32 %v3176_v26, %v11305_v2  ;;  %vm3218_vm10 = vcmp.ge.f32.partialorder %v3173_v7, 0.0 }
 0xe50   :  { %vm3219_vm12 = vcmp.ge.f32.partialorder %v3175_v14, 0.0  ;;  %v3237_v53 = vmul.f32 0.01, %v3175_v14  ;;  %v3253_v32 = vsel %vm3217_vm9, %v3171_v44, %v3235_v12 }
 0xe51   :  { %vm3220_vm13 = vcmp.ge.f32.partialorder %v3177_v55, 0.0  ;;  %v3238_v60 = vmul.f32 0.01, %v3177_v55  ;;  %v3254_v15 = vsel %vm3218_vm10, %v3173_v7, %v3236_v33 }
 0xe52   :  { %v3255_v17 = vsel %vm3219_vm12, %v3175_v14, %v3237_v53 }
 0xe53   :  { %v3271_v52 = vpack.c.bf16 %v3255_v17, %v3253_v32  ;;  %v3180_v22 = vpop.f32.mrb[108].mxu0  ;;  %v3256_v37 = vsel %vm3220_vm13, %v3177_v55, %v3238_v60 }
 0xe54   :  { %v3181_v23 = vadd.f32 %v3180_v22, %v11302_v62  ;;  %v3182_v43 = vpop.f32.mrb[109].mxu0  ;;  %v3272_v30 = vpack.c.bf16 %v3256_v37, %v3254_v15 }
 0xe55   :  { %v3183_v54 = vadd.f32 %v3182_v43, %v11305_v2  ;;  %v3184_v36 = vpop.f32.mrb[110].mxu0 }
 0xe56   :  { %v3239_v57 = vmul.f32 0.01, %v3181_v23  ;;  %v3185_v63 = vadd.f32 %v3184_v36, %v11302_v62  ;;  %v3186_v41 = vpop.f32.mrb[111].mxu0  ;;  %3450 = vmatprep.mubr.bf16.mxu1 %v3272_v30  ;;  %vm3221_vm14 = vcmp.ge.f32.partialorder %v3181_v23, 0.0 }
 0xe57   :  { %v3240_v3 = vmul.f32 0.01, %v3183_v54  ;;  %v3187_v44 = vadd.f32 %v3186_v41, %v11305_v2  ;;  %3451 = vmatmul.mubr.bf16.vlgmr.msra.gmra.mrb[120].mxu1 %v3271_v52  ;;  %vm3222_vm15 = vcmp.ge.f32.partialorder %v3183_v54, 0.0 }
 0xe58   :  { %vm3223_vm2 = vcmp.ge.f32.partialorder %v3185_v63, 0.0  ;;  %v3241_v46 = vmul.f32 0.01, %v3185_v63  ;;  %v3257_v13 = vsel %vm3221_vm14, %v3181_v23, %v3239_v57 }
 0xe59   :  { %vm3224_vm5 = vcmp.ge.f32.partialorder %v3187_v44, 0.0  ;;  %v3242_v7 = vmul.f32 0.01, %v3187_v44  ;;  %v3258_v26 = vsel %vm3222_vm15, %v3183_v54, %v3240_v3 }
 0xe5a   :  { %v3259_v12 = vsel %vm3223_vm2, %v3185_v63, %v3241_v46 }
 0xe5b   :  { %v3190_v14 = vpop.f32.mrb[112].mxu0  ;;  %v3260_v33 = vsel %vm3224_vm5, %v3187_v44, %v3242_v7  ;;  %v3273_v55 = vpack.c.bf16 %v3259_v12, %v3257_v13 }
 0xe5c   :  { %v3191_v53 = vadd.f32 %v3190_v14, %v11302_v62  ;;  %v3192_v60 = vpop.f32.mrb[113].mxu0  ;;  %v3274_v32 = vpack.c.bf16 %v3260_v33, %v3258_v26 }
 0xe5d   :  { %v3193_v17 = vadd.f32 %v3192_v60, %v11305_v2  ;;  %v3194_v22 = vpop.f32.mrb[114].mxu0 }
 0xe5e   :  { %v3243_v15 = vmul.f32 0.01, %v3191_v53  ;;  %v3195_v52 = vadd.f32 %v3194_v22, %v11302_v62  ;;  %v3196_v37 = vpop.f32.mrb[115].mxu0  ;;  %3458 = vmatprep.mubr.bf16.mxu1 %v3274_v32  ;;  %vm3225_vm6 = vcmp.ge.f32.partialorder %v3191_v53, 0.0 }
 0xe5f   :  { %v3244_v43 = vmul.f32 0.01, %v3193_v17  ;;  %v3197_v23 = vadd.f32 %v3196_v37, %v11305_v2  ;;  %3459 = vmatmul.mubr.bf16.gmra.mrb[124].mxu1 %v3273_v55  ;;  %vm3226_vm7 = vcmp.ge.f32.partialorder %v3193_v17, 0.0 }
 0xe60   :  { %vm3227_vm8 = vcmp.ge.f32.partialorder %v3195_v52, 0.0  ;;  %v3245_v30 = vmul.f32 0.01, %v3195_v52  ;;  %v3261_v36 = vsel %vm3225_vm6, %v3191_v53, %v3243_v15 }
 0xe61   :  { %vm3228_vm9 = vcmp.ge.f32.partialorder %v3197_v23, 0.0  ;;  %v3246_v54 = vmul.f32 0.01, %v3197_v23  ;;  %v3262_v41 = vsel %vm3226_vm7, %v3193_v17, %v3244_v43 }
 0xe62   :  { %v3263_v57 = vsel %vm3227_vm8, %v3195_v52, %v3245_v30 }
 0xe63   :  { %v3200_v63 = vpop.f32.mrb[116].mxu0  ;;  %v3264_v3 = vsel %vm3228_vm9, %v3197_v23, %v3246_v54  ;;  %v3275_v44 = vpack.c.bf16 %v3263_v57, %v3261_v36 }
 0xe64   :  { %v3201_v46 = vadd.f32 %v3200_v63, %v11302_v62  ;;  %v3202_v7 = vpop.f32.mrb[117].mxu0  ;;  %v3276_v13 = vpack.c.bf16 %v3264_v3, %v3262_v41 }
 0xe65   :  { %v3203_v12 = vadd.f32 %v3202_v7, %v11305_v2  ;;  %v3204_v14 = vpop.f32.mrb[118].mxu0 }
 0xe66   :  { %v3247_v26 = vmul.f32 0.01, %v3201_v46  ;;  %v3205_v33 = vadd.f32 %v3204_v14, %v11302_v62  ;;  %v3206_v55 = vpop.f32.mrb[119].mxu0  ;;  %3466 = vmatprep.mubr.bf16.mxu1 %v3276_v13  ;;  %vm3229_vm10 = vcmp.ge.f32.partialorder %v3201_v46, 0.0  ;;  %v9675_v14 = vld [vmem:[%s12046_s7 + $0x78] sm:$0xff]  }
 0xe67   :  { %v3248_v60 = vmul.f32 0.01, %v3203_v12  ;;  %v3207_v53 = vadd.f32 %v3206_v55, %v11305_v2  ;;  %3467 = vmatmul.mubr.bf16.gmra.mrb[128].mxu1 %v3275_v44  ;;  %vm3230_vm12 = vcmp.ge.f32.partialorder %v3203_v12, 0.0  ;;  %v9678_v55 = vld [vmem:[#allocation16 + $0x50] sm:$0xff]  }
 0xe68   :  { %vm3231_vm13 = vcmp.ge.f32.partialorder %v3205_v33, 0.0  ;;  %v3249_v32 = vmul.f32 0.01, %v3205_v33  ;;  %v3265_v22 = vsel %vm3229_vm10, %v3201_v46, %v3247_v26  ;;  %v9676_v26 = vld [vmem:[#allocation16 + $0x40] sm:$0xff]  }
 0xe69   :  { %vm3232_vm14 = vcmp.ge.f32.partialorder %v3207_v53, 0.0  ;;  %v3250_v17 = vmul.f32 0.01, %v3207_v53  ;;  %v3266_v37 = vsel %vm3230_vm12, %v3203_v12, %v3248_v60  ;;  %8850 = vmatpush3.bf16.msra.mxu1 %v9676_v26  ;;  %v9679_v60 = vld [vmem:[#allocation16 + $0x58] sm:$0xff]  }
 0xe6a   :  { %v3267_v15 = vsel %vm3231_vm13, %v3205_v33, %v3249_v32  ;;  %v9677_v33 = vld [vmem:[#allocation16 + $0x48] sm:$0xff]   ;;  %8851 = vmatprep.subr.bf16.mxu1 %v12080_v1 }
 0xe6b   :  { %v3210_v52 = vpop.f32.mrb[120].mxu0  ;;  %v3268_v43 = vsel %vm3232_vm14, %v3207_v53, %v3250_v17  ;;  %v3277_v23 = vpack.c.bf16 %v3267_v15, %v3265_v22  ;;  %v9680_v53 = vld [vmem:[#allocation16 + $0x60] sm:$0xff]   ;;  %v9681_v32 = vld [vmem:[#allocation16 + $0x68] sm:$0xff]   ;;  %v11344_v22 = vld [vmem:[#allocation13 + $0x1] ss:$0 sm:$0xff] }
 0xe6c   :  { %v3211_v30 = vadd.f32 %v3210_v52, %v11302_v62  ;;  %v3212_v54 = vpop.f32.mrb[121].mxu0  ;;  %v3278_v36 = vpack.c.bf16 %v3268_v43, %v3266_v37  ;;  %v9673_v62 = vld [vmem:[%s12046_s7 + $0x68] sm:$0xff]  }
 0xe6d   :  { %v3213_v57 = vadd.f32 %v3212_v54, %v11305_v2  ;;  %v3214_v63 = vpop.f32.mrb[122].mxu0  ;;  %8824 = vmatpush3.bf16.msra.mxu0 %v9673_v62  ;;  %v9674_v2 = vld [vmem:[%s12046_s7 + $0x70] sm:$0xff]   ;;  %8852 = vmatpush3.bf16.msra.mxu1 %v9677_v33 }
 0xe6e   :  { %v3251_v41 = vmul.f32 0.01, %v3211_v30  ;;  %v3215_v3 = vpop.f32.mrb[123].mxu0  ;;  %3474 = vmatprep.mubr.bf16.mxu1 %v3278_v36  ;;  %vm3233_vm15 = vcmp.ge.f32.partialorder %v3211_v30, 0.0  ;;  %8825 = vmatprep.subr.bf16.mxu0 %v12080_v1 }
 0xe6f   :  { %vm3234_vm2 = vcmp.ge.f32.partialorder %v3213_v57, 0.0  ;;  %v3252_v44 = vmul.f32 0.01, %v3213_v57  ;;  %3475 = vmatmul.mubr.bf16.gmra.mrb[132].mxu1 %v3277_v23  ;;  %8853 = vmatprep.subr.bf16.mxu1 %v12080_v1 }
 0xe70   :  { %v3269_v13 = vsel %vm3233_vm15, %v3211_v30, %v3251_v41 }
 0xe71   :  { %v3270_v46 = vsel %vm3234_vm2, %v3213_v57, %v3252_v44  ;;  %v3279_v12 = vpack.c.bf16 %v3269_v13, %v3269_v13  ;;  %8826 = vmatpush3.bf16.msra.mxu0 %v9674_v2  ;;  %8854 = vmatpush3.bf16.msra.mxu1 %v9678_v55 }
 0xe72   :  { %v3280_v7 = vpack.c.bf16 %v3270_v46, %v3270_v46  ;;  %8827 = vmatprep.subr.bf16.mxu0 %v12080_v1  ;;  %8855 = vmatprep.subr.bf16.mxu1 %v12080_v1 }
 0xe74   :  { %3482 = vmatprep.mubr.bf16.mxu1 %v3280_v7 }
 0xe75   :  { %8828 = vmatpush3.bf16.msra.mxu0 %v9675_v14  ;;  %8856 = vmatpush3.bf16.msra.mxu1 %v9679_v60 }
 0xe76   :  { %8857 = vmatprep.subr.bf16.mxu1 %v12080_v1 }
 0xe77   :  { %3483 = vmatmul.mubr.bf16.gmra.mrb[136].mxu1 %v3279_v12 }
 0xe78   :  { %8865 = vmatprep.mubr.msk.bf16.mxu1 %vm10334_vm0, %v12080_v1 }
 0xe79   :  { %8858 = vmatpush3.bf16.msra.mxu1 %v9680_v53 }
 0xe7a   :  { %8859 = vmatprep.subr.bf16.mxu1 %v12080_v1 }
 0xe7d   :  { %8860 = vmatpush3.bf16.msra.mxu1 %v9681_v32 }
 0xe7e   :  { %8861 = vmatprep.subr.bf16.mxu1 %v12080_v1 }
 0xf2a   :  { %v8249_v17 = vpop.f32.mrb[120].mxu1 }
 0xf2b   :  { %v8250_v15 = vpop.f32.mrb[121].mxu1 }
 0xf2c   :  { %v8251_v52 = vadd.f32 %v8250_v15, %v8249_v17  ;;  %v8252_v37 = vpop.f32.mrb[122].mxu1 }
 0xf2d   :  { %v8253_v43 = vpop.f32.mrb[123].mxu1 }
 0xf2e   :  { %v3453_v23 = vadd.f32 %v8251_v52, %v11344_v22  ;;  %v8254_v30 = vadd.f32 %v8253_v43, %v8252_v37 }
 0xf30   :  { %v3499_v54 = vmul.f32 0.01, %v3453_v23  ;;  %v3456_v36 = vadd.f32 %v8254_v30, %v11344_v22  ;;  %vm3490_vm5 = vcmp.ge.f32.partialorder %v3453_v23, 0.0 }
 0xf32   :  { %vm3491_vm6 = vcmp.ge.f32.partialorder %v3456_v36, 0.0  ;;  %v3500_v57 = vmul.f32 0.01, %v3456_v36  ;;  %v8255_v63 = vpop.f32.mrb[124].mxu1  ;;  %v3508_v3 = vsel %vm3490_vm5, %v3453_v23, %v3499_v54 }
 0xf33   :  { %v8256_v41 = vpop.f32.mrb[125].mxu1 }
 0xf34   :  { %v3509_v44 = vsel %vm3491_vm6, %v3456_v36, %v3500_v57  ;;  %v8257_v46 = vadd.f32 %v8256_v41, %v8255_v63  ;;  %v8258_v7 = vpop.f32.mrb[126].mxu1 }
 0xf35   :  { %v3517_v13 = vpack.c.bf16 %v3509_v44, %v3508_v3  ;;  %v8259_v12 = vpop.f32.mrb[127].mxu1 }
 0xf36   :  { %v3461_v62 = vadd.f32 %v8257_v46, %v11344_v22  ;;  %v8260_v2 = vadd.f32 %v8259_v12, %v8258_v7 }
 0xf37   :  { %8830 = vmatmul.mubr.bf16.vlgmr.msra.gmra.mrb[124].mxu0 %v3517_v13 }
 0xf38   :  { %v3501_v14 = vmul.f32 0.01, %v3461_v62  ;;  %v3464_v26 = vadd.f32 %v8260_v2, %v11344_v22  ;;  %8833 = vmatprep.mubr.msk.bf16.mxu0 %vm10334_vm0, %v12080_v1  ;;  %vm3492_vm7 = vcmp.ge.f32.partialorder %v3461_v62, 0.0 }
 0xf3a   :  { %vm3493_vm8 = vcmp.ge.f32.partialorder %v3464_v26, 0.0  ;;  %v3502_v33 = vmul.f32 0.01, %v3464_v26  ;;  %v8261_v55 = vpop.f32.mrb[128].mxu1  ;;  %v3510_v17 = vsel %vm3492_vm7, %v3461_v62, %v3501_v14 }
 0xf3b   :  { %v8262_v60 = vpop.f32.mrb[129].mxu1 }
 0xf3c   :  { %v8263_v53 = vadd.f32 %v8262_v60, %v8261_v55  ;;  %v8264_v32 = vpop.f32.mrb[130].mxu1  ;;  %v3511_v15 = vsel %vm3493_vm8, %v3464_v26, %v3502_v33 }
 0xf3d   :  { %v8265_v52 = vpop.f32.mrb[131].mxu1  ;;  %v3518_v37 = vpack.c.bf16 %v3511_v15, %v3510_v17 }
 0xf3e   :  { %v3469_v43 = vadd.f32 %v8263_v53, %v11344_v22  ;;  %v8266_v23 = vadd.f32 %v8265_v52, %v8264_v32 }
 0xf3f   :  { %8834 = vmatmul.mubr.bf16.gmra.mrb[128].mxu0 %v3518_v37 }
 0xf40   :  { %v3503_v30 = vmul.f32 0.01, %v3469_v43  ;;  %v3472_v54 = vadd.f32 %v8266_v23, %v11344_v22  ;;  %8837 = vmatprep.mubr.msk.bf16.mxu0 %vm10334_vm0, %v12080_v1  ;;  %vm3494_vm9 = vcmp.ge.f32.partialorder %v3469_v43, 0.0 }
 0xf42   :  { %vm3495_vm10 = vcmp.ge.f32.partialorder %v3472_v54, 0.0  ;;  %v3504_v36 = vmul.f32 0.01, %v3472_v54  ;;  %v8267_v57 = vpop.f32.mrb[132].mxu1  ;;  %v3512_v44 = vsel %vm3494_vm9, %v3469_v43, %v3503_v30 }
 0xf43   :  { %v8268_v63 = vpop.f32.mrb[133].mxu1 }
 0xf44   :  { %v8269_v41 = vadd.f32 %v8268_v63, %v8267_v57  ;;  %v8270_v3 = vpop.f32.mrb[134].mxu1  ;;  %v3513_v46 = vsel %vm3495_vm10, %v3472_v54, %v3504_v36  ;;  %v11366_v54 = vld [vmem:[%s12055_s16] sm:$0xff]  ;;  %v9682_v36 = vld [vmem:[#allocation16 + $0x70] sm:$0xff]  }
 0xf45   :  { %v8271_v7 = vpop.f32.mrb[135].mxu1  ;;  %v3519_v13 = vpack.c.bf16 %v3513_v46, %v3512_v44  ;;  %8862 = vmatpush3.bf16.msra.mxu1 %v9682_v36  ;;  %v7793_v57 = vld [vmem:[#allocation14 + $0x1] ss:$0 sm:$0xff] }
 0xf46   :  { %v3477_v12 = vadd.f32 %v8269_v41, %v11344_v22  ;;  %v8272_v62 = vadd.f32 %v8271_v7, %v8270_v3  ;;  %8863 = vmatprep.subr.bf16.mxu1 %v12080_v1 }
 0xf47   :  { %8838 = vmatmul.mubr.bf16.gmra.mrb[132].mxu0 %v3519_v13 }
 0xf48   :  { %v3505_v2 = vmul.f32 0.01, %v3477_v12  ;;  %v3480_v14 = vadd.f32 %v8272_v62, %v11344_v22  ;;  %8841 = vmatprep.mubr.msk.bf16.mxu0 %vm10334_vm0, %v12080_v1  ;;  %vm3496_vm12 = vcmp.ge.f32.partialorder %v3477_v12, 0.0 }
 0xf4a   :  { %vm3497_vm13 = vcmp.ge.f32.partialorder %v3480_v14, 0.0  ;;  %v3506_v26 = vmul.f32 0.01, %v3480_v14  ;;  %v8273_v33 = vpop.f32.mrb[136].mxu1  ;;  %v3514_v32 = vsel %vm3496_vm12, %v3477_v12, %v3505_v2 }
 0xf4b   :  { %v8274_v55 = vpop.f32.mrb[137].mxu1 }
 0xf4c   :  { %v8275_v60 = vadd.f32 %v8274_v55, %v8273_v33  ;;  %v8276_v53 = vpop.f32.mrb[138].mxu1  ;;  %v3515_v17 = vsel %vm3497_vm13, %v3480_v14, %v3506_v26 }
 0xf4d   :  { %v8277_v15 = vpop.f32.mrb[139].mxu1  ;;  %v3520_v52 = vpack.c.bf16 %v3515_v17, %v3514_v32 }
 0xf4e   :  { %v3485_v37 = vadd.f32 %v8275_v60, %v11344_v22  ;;  %v9683_v22 = vld [vmem:[#allocation16 + $0x78] sm:$0xff]  }
 0xf4f   :  { %8842 = vmatmul.mubr.bf16.gmra.mrb[136].mxu0 %v3520_v52  ;;  %8864 = vmatpush3.bf16.msra.mxu1 %v9683_v22 }
 0xf50   :  { %v3507_v43 = vmul.f32 0.01, %v3485_v37  ;;  %8845 = vmatprep.mubr.msk.bf16.mxu0 %vm10334_vm0, %v12080_v1  ;;  %vm3498_vm14 = vcmp.ge.f32.partialorder %v3485_v37, 0.0 }
 0xf52   :  { %v3516_v23 = vsel %vm3498_vm14, %v3485_v37, %v3507_v43 }
 0xf53   :  { %v3521_v30 = vpack.c.bf16 %v3516_v23, %v3516_v23 }
 0xf57   :  { %8846 = vmatmul.mubr.bf16.gmra.mrb[140].mxu0 %v3521_v30 }
 0xf58   :  { %8903 = vmatprep.mubr.msk.f32.mxu0 %vm1737_vm11, %v11366_v54 }
0x100a   :  { %v3629_v63 = vpop.f32.mrb[124].mxu0 }
0x100b   :  { %v3630_v41 = vadd.f32 %v7793_v57, %v3629_v63  ;;  %v8831_v3 = vpop.f32.mrb[125].mxu0 }
0x100c   :  { %v3632_v44 = vpop.f32.mrb[126].mxu0 }
0x100d   :  { %v3676_v46 = vmul.f32 0.01, %v3630_v41  ;;  %v3633_v7 = vadd.f32 %v7793_v57, %v3632_v44  ;;  %v8832_v13 = vpop.f32.mrb[127].mxu0  ;;  %vm3667_vm15 = vcmp.ge.f32.partialorder %v3630_v41, 0.0 }
0x100f   :  { %vm3668_vm2 = vcmp.ge.f32.partialorder %v3633_v7, 0.0  ;;  %v3677_v12 = vmul.f32 0.01, %v3633_v7  ;;  %v3685_v62 = vsel %vm3667_vm15, %v3630_v41, %v3676_v46 }
0x1011   :  { %v3686_v2 = vsel %vm3668_vm2, %v3633_v7, %v3677_v12 }
0x1012   :  { %v3694_v14 = vpack.c.bf16 %v3686_v2, %v3685_v62  ;;  %v3637_v26 = vpop.f32.mrb[128].mxu0 }
0x1013   :  { %v3638_v33 = vadd.f32 %v7793_v57, %v3637_v26  ;;  %v8835_v55 = vpop.f32.mrb[129].mxu0 }
0x1014   :  { %v3640_v60 = vpop.f32.mrb[130].mxu0  ;;  %8866 = vmatmul.mubr.bf16.vlgmr.msra.gmra.mrb[140].mxu1 %v3694_v14 }
0x1015   :  { %v3678_v53 = vmul.f32 0.01, %v3638_v33  ;;  %v3641_v32 = vadd.f32 %v7793_v57, %v3640_v60  ;;  %v8836_v17 = vpop.f32.mrb[131].mxu0  ;;  %8869 = vmatprep.mubr.msk.bf16.mxu1 %vm10334_vm0, %v12080_v1  ;;  %vm3669_vm5 = vcmp.ge.f32.partialorder %v3638_v33, 0.0 }
0x1017   :  { %vm3670_vm6 = vcmp.ge.f32.partialorder %v3641_v32, 0.0  ;;  %v3679_v15 = vmul.f32 0.01, %v3641_v32  ;;  %v3687_v52 = vsel %vm3669_vm5, %v3638_v33, %v3678_v53 }
0x1019   :  { %v3688_v37 = vsel %vm3670_vm6, %v3641_v32, %v3679_v15 }
0x101a   :  { %v3645_v43 = vpop.f32.mrb[132].mxu0  ;;  %v3695_v23 = vpack.c.bf16 %v3688_v37, %v3687_v52 }
0x101b   :  { %v3646_v30 = vadd.f32 %v7793_v57, %v3645_v43  ;;  %v8839_v36 = vpop.f32.mrb[133].mxu0 }
0x101c   :  { %v3648_v22 = vpop.f32.mrb[134].mxu0  ;;  %8870 = vmatmul.mubr.bf16.gmra.mrb[144].mxu1 %v3695_v23 }
0x101d   :  { %v3680_v63 = vmul.f32 0.01, %v3646_v30  ;;  %v3649_v41 = vadd.f32 %v7793_v57, %v3648_v22  ;;  %v8840_v3 = vpop.f32.mrb[135].mxu0  ;;  %8873 = vmatprep.mubr.msk.bf16.mxu1 %vm10334_vm0, %v12080_v1  ;;  %vm3671_vm7 = vcmp.ge.f32.partialorder %v3646_v30, 0.0 }
0x101f   :  { %vm3672_vm8 = vcmp.ge.f32.partialorder %v3649_v41, 0.0  ;;  %v3681_v44 = vmul.f32 0.01, %v3649_v41  ;;  %v3689_v46 = vsel %vm3671_vm7, %v3646_v30, %v3680_v63  ;;  %v7811_v63 = vld [vmem:[%s12049_s10 + $0x1] ss:$0 sm:$0xff] }
0x1020   :  { %3853 = vperm.xlu1 %9435, %v7811_v63  }
0x1021   :  { %v3690_v7 = vsel %vm3672_vm8, %v3649_v41, %v3681_v44  ;;  %v11383_v44 = vld [vmem:[#allocation20] sm:$0xff] }
0x1022   :  { %v3653_v13 = vpop.f32.mrb[136].mxu0  ;;  %v3696_v12 = vpack.c.bf16 %v3690_v7, %v3689_v46  ;;  %v11386_v7 = vld [vmem:[#allocation20 + $0x8] sm:$0xff] }
0x1023   :  { %v3654_v62 = vadd.f32 %v7793_v57, %v3653_v13  ;;  %v8843_v2 = vpop.f32.mrb[137].mxu0 }
0x1024   :  { %v3656_v14 = vpop.f32.mrb[138].mxu0  ;;  %8874 = vmatmul.mubr.bf16.gmra.mrb[148].mxu1 %v3696_v12 }
0x1025   :  { %v3682_v26 = vmul.f32 0.01, %v3654_v62  ;;  %v3657_v33 = vadd.f32 %v7793_v57, %v3656_v14  ;;  %v8844_v55 = vpop.f32.mrb[139].mxu0  ;;  %8877 = vmatprep.mubr.msk.bf16.mxu1 %vm10334_vm0, %v12080_v1  ;;  %vm3673_vm9 = vcmp.ge.f32.partialorder %v3654_v62, 0.0 }
0x1027   :  { %vm3674_vm10 = vcmp.ge.f32.partialorder %v3657_v33, 0.0  ;;  %v3683_v60 = vmul.f32 0.01, %v3657_v33  ;;  %v3691_v53 = vsel %vm3673_vm9, %v3654_v62, %v3682_v26 }
0x1029   :  { %v3692_v32 = vsel %vm3674_vm10, %v3657_v33, %v3683_v60  ;;  %v11389_v33 = vld [vmem:[#allocation20 + $0x10] sm:$0xff]  ;;  %v11392_v60 = vld [vmem:[#allocation20 + $0x18] sm:$0xff] }
0x102a   :  { %v3661_v17 = vpop.f32.mrb[140].mxu0  ;;  %v3697_v15 = vpack.c.bf16 %v3692_v32, %v3691_v53 }
0x102b   :  { %v3662_v52 = vadd.f32 %v7793_v57, %v3661_v17  ;;  %v8847_v37 = vpop.f32.mrb[141].mxu0 }
0x102c   :  { %v3664_v43 = vpop.f32.mrb[142].mxu0  ;;  %8878 = vmatmul.mubr.bf16.gmra.mrb[152].mxu1 %v3697_v15 }
0x102d   :  { %vm3675_vm12 = vcmp.ge.f32.partialorder %v3662_v52, 0.0  ;;  %v3684_v23 = vmul.f32 0.01, %v3662_v52  ;;  %v8848_v30 = vpop.f32.mrb[143].mxu0  ;;  %8881 = vmatprep.mubr.msk.bf16.mxu1 %vm10334_vm0, %v12080_v1  ;;  %v11395_v43 = vld [vmem:[#allocation20 + $0x20] sm:$0xff] }
0x102e   :  { %v11398_v30 = vld [vmem:[#allocation20 + $0x28] sm:$0xff] }
0x102f   :  { %v3693_v36 = vsel %vm3675_vm12, %v3662_v52, %v3684_v23 }
0x1030   :  { %v3698_v22 = vpack.c.bf16 %v3693_v36, %v3693_v36 }
0x1034   :  { %8882 = vmatmul.mubr.bf16.gmra.mrb[156].mxu1 %v3698_v22 }
0x1035   :  { %4175 = vmatprep.mubr.f32.mxu1 %v12080_v1 }
0x10e7   :  { %v3798_v57 = vpop.f32.mrb[140].mxu1 }
0x10e8   :  { %v8867_v41 = vpop.f32.mrb[141].mxu1  ;;  %v3836_v46 = vmul.f32 %v11383_v44, %v3798_v57 }
0x10e9   :  { %v3801_v3 = vpop.f32.mrb[142].mxu1 }
0x10ea   :  { %v3837_v13 = vmul.f32 %v11386_v7, %v3801_v3  ;;  %v8868_v12 = vpop.f32.mrb[143].mxu1 }
0x10eb   :  { %v11404_v12 = vld [vmem:[#allocation20 + $0x38] sm:$0xff] }
0x10ec   :  { %v9254_v62 = vpack.c.bf16 %v3837_v13, %v3836_v46  ;;  %v11401_v46 = vld [vmem:[#allocation20 + $0x30] sm:$0xff] }
0x10ee   :  { %9255 = vmatprep.subr.bf16.mxu0 %v9254_v62 }
0x10ef   :  { %v3806_v2 = vpop.f32.mrb[144].mxu1  ;;  %9257 = vmatpush3.bf16.msra.mxu0 %v9254_v62 }
0x10f0   :  { %v8871_v14 = vpop.f32.mrb[145].mxu1  ;;  %v3838_v55 = vmul.f32 %v11389_v33, %v3806_v2 }
0x10f1   :  { %v3809_v26 = vpop.f32.mrb[146].mxu1 }
0x10f2   :  { %v3839_v53 = vmul.f32 %v11392_v60, %v3809_v26  ;;  %v8872_v32 = vpop.f32.mrb[147].mxu1 }
0x10f4   :  { %v9258_v17 = vpack.c.bf16 %v3839_v53, %v3838_v55  ;;  %v11407_v55 = vld [vmem:[#allocation20 + $0x40] sm:$0xff] }
0x10f6   :  { %9259 = vmatprep.subr.bf16.mxu0 %v9258_v17 }
0x10f7   :  { %v3814_v15 = vpop.f32.mrb[148].mxu1  ;;  %9261 = vmatpush3.bf16.msra.mxu0 %v9258_v17 }
0x10f8   :  { %v8875_v52 = vpop.f32.mrb[149].mxu1  ;;  %v3840_v23 = vmul.f32 %v11395_v43, %v3814_v15 }
0x10f9   :  { %v3817_v37 = vpop.f32.mrb[150].mxu1  ;;  %v11413_v52 = vld [vmem:[%s12055_s16 + $0x8] sm:$0xf] }
0x10fa   :  { %v3841_v36 = vmul.f32 %v11398_v30, %v3817_v37  ;;  %v8876_v22 = vpop.f32.mrb[151].mxu1  ;;  %v3854_v37 = vpop.permute.xlu1 %3853 }
0x10fc   :  { %v9262_v63 = vpack.c.bf16 %v3841_v36, %v3840_v23 }
0x10fe   :  { %9263 = vmatprep.subr.bf16.mxu0 %v9262_v63 }
0x10ff   :  { %v3822_v57 = vpop.f32.mrb[152].mxu1  ;;  %9265 = vmatpush3.bf16.msra.mxu0 %v9262_v63  ;;  %v9969_v63 = vld [vmem:[%s12057_s18 + $0x8] sm:$0xf] }
0x1100   :  { %v8879_v41 = vpop.f32.mrb[153].mxu1  ;;  %v3842_v13 = vmul.f32 %v11401_v46, %v3822_v57 }
0x1101   :  { %v3825_v3 = vpop.f32.mrb[154].mxu1 }
0x1102   :  { %v3843_v62 = vmul.f32 %v11404_v12, %v3825_v3  ;;  %v8880_v2 = vpop.f32.mrb[155].mxu1 }
0x1104   :  { %v9266_v14 = vpack.c.bf16 %v3843_v62, %v3842_v13  ;;  %v9970_v13 = vld [vmem:[%s12057_s18] sm:$0xff] }
0x1106   :  { %9267 = vmatprep.subr.bf16.mxu0 %v9266_v14 }
0x1107   :  { %v3830_v26 = vpop.f32.mrb[156].mxu1  ;;  %9269 = vmatpush3.bf16.msra.mxu0 %v9266_v14 }
0x1108   :  { %v3844_v53 = vmul.f32 %v11407_v55, %v3830_v26  ;;  %v8883_v32 = vpop.f32.mrb[157].mxu1 }
0x1109   :  { %v3833_v17 = vpop.f32.mrb[158].mxu1 }
0x110a   :  { %v8884_v15 = vpop.f32.mrb[159].mxu1  ;;  %8901 = vmatprep.subr.mxu0 %v3844_v53 }
0x110b   :  { %8902 = vmatpush3.msra.mxu0 %v3844_v53 }
0x110c   :  { %8904 = vmatmul.mubr.msk.f32.vlgmr.msra.gmra.mrb[102].mxu0 %vm1737_vm11, %v11413_v52  ;;  %9270 = vmatprep.subr.bf16.mxu0 %v12078_v0 }
0x110d   :  { %8910 = vmatprep.mubr.msk.f32.mxu0 %vm10334_vm0, %v12080_v1 }
0x11df   :  { %v8905_v23 = vpop.f32.mrb[102].mxu0 }
0x11e0   :  { %v3928_v36 = vadd.f32 %v8905_v23, %v3854_v37  ;;  %v3922_v22 = vpop.f32.mrb[103].mxu0 }
0x11e1   :  { %v3923_v41 = vadd.f32 %v3922_v22, %v3854_v37 }
0x11e2   :  { %v3932_v57 = vadd.f32 %v9969_v63, %v3928_v36 }
0x11e3   :  { %v3931_v62 = vadd.f32 %v9970_v13, %v3923_v41 }
0x11e4   :  { %v3935_v3 = vsel %vm292_vm1, %v3932_v57, -inf }
0x11e5   :  { %3936 = vmax.xlane.f32.xlu0 %v3935_v3 }
0x11e9   :  { %3933 = vmax.xlane.f32.xlu0 %v3931_v62 }
0x1272   :  { %v3937_v2 = vpop.xlane.xlu0 %3936 }
0x1273   :  { %v3939_v14 = vsub.f32 %v3932_v57, %v3937_v2  ;;  %v11442_v2 = vld [vmem:[%s12053_s14 + $0x8] sm:$0xff] }
0x1275   :  { %v3942_v32 = vmul.f32 1.442695, %v3939_v14  ;;  %v11451_v14 = vld [vmem:[%s12053_s14 + $0x10] sm:$0xff] }
0x1276   :  { %v3934_v26 = vpop.xlane.xlu0 %3933 }
0x1277   :  { %v3938_v53 = vsub.f32 %v3931_v62, %v3934_v26  ;;  %v11433_v62 = vld [vmem:[%s12053_s14] sm:$0xff]  ;;  %v11460_v26 = vld [vmem:[%s12053_s14 + $0x18] sm:$0xff] }
0x1279   :  { %v3940_v17 = vmul.f32 1.442695, %v3938_v53  ;;  %v11469_v53 = vld [vmem:[%s12053_s14 + $0x20] sm:$0xff] }
0x127b   :  { %9924 = vpow2.f32 %v3940_v17  ;;  %v11487_v17 = vld [vmem:[%s12053_s14 + $0x30] sm:$0xff] }
0x127c   :  { %9926 = vpow2.f32 %v3942_v32  ;;  %v11478_v32 = vld [vmem:[%s12053_s14 + $0x28] sm:$0xff] }
0x1285   :  { %v9925_v15 = vpop.eup %9924 }
0x1286   :  { %v9927_v23 = vpop.eup %9926  ;;  %3944 = vadd.xlane.f32.xlu0 %v9925_v15 }
0x1287   :  { %v3946_v37 = vsel %vm292_vm1, %v9927_v23, 0.0 }
0x128a   :  { %3947 = vadd.xlane.f32.xlu0 %v3946_v37 }
0x1313   :  { %v3945_v36 = vpop.xlane.xlu0 %3944 }
0x1314   :  { %9928 = vrcp.f32 %v3945_v36 }
0x1317   :  { %v3948_v22 = vpop.xlane.xlu0 %3947 }
0x1318   :  { %9930 = vrcp.f32 %v3948_v22 }
0x131e   :  { %v9929_v63 = vpop.eup %9928 }
0x131f   :  { %v3951_v3 = vmul.f32 %v9929_v63, %v9925_v15  ;;  %v11496_v15 = vld [vmem:[%s12053_s14 + $0x38] sm:$0xff] }
0x1322   :  { %v9931_v41 = vpop.eup %9930 }
0x1323   :  { %v3952_v57 = vmul.f32 %v9931_v41, %v9927_v23  ;;  %v11505_v23 = vld [vmem:[%s12053_s14 + $0x40] sm:$0xff] }
0x1325   :  { %v9271_v13 = vpack.c.bf16 %v3952_v57, %v3951_v3 }
0x1327   :  { %9273 = vmatpush3.bf16.msk.msra.mxu0 %vm10632_vm3, %v9271_v13 }
0x132a   :  { %8911 = vmatmul.mubr.msk.f32.vlgmr.msra.gmra.mrb[144].mxu0 %vm264_vm4, %v11433_v62 }
0x132b   :  { %8913 = vmatprep.mubr.msk.f32.mxu0 %vm10334_vm0, %v12080_v1 }
0x132e   :  { %8914 = vmatmul.mubr.msk.f32.gmra.mrb[146].mxu0 %vm264_vm4, %v11442_v2 }
0x132f   :  { %8916 = vmatprep.mubr.msk.f32.mxu0 %vm10334_vm0, %v12080_v1 }
0x1332   :  { %8917 = vmatmul.mubr.msk.f32.gmra.mrb[148].mxu0 %vm264_vm4, %v11451_v14 }
0x1333   :  { %8919 = vmatprep.mubr.msk.f32.mxu0 %vm10334_vm0, %v12080_v1 }
0x1336   :  { %8920 = vmatmul.mubr.msk.f32.gmra.mrb[150].mxu0 %vm264_vm4, %v11460_v26 }
0x1337   :  { %8922 = vmatprep.mubr.msk.f32.mxu0 %vm10334_vm0, %v12080_v1 }
0x133a   :  { %8923 = vmatmul.mubr.msk.f32.gmra.mrb[152].mxu0 %vm264_vm4, %v11469_v53 }
0x133b   :  { %8925 = vmatprep.mubr.msk.f32.mxu0 %vm10334_vm0, %v12080_v1 }
0x133e   :  { %8926 = vmatmul.mubr.msk.f32.gmra.mrb[154].mxu0 %vm264_vm4, %v11478_v32 }
0x133f   :  { %8928 = vmatprep.mubr.msk.f32.mxu0 %vm10334_vm0, %v12080_v1 }
0x1342   :  { %8929 = vmatmul.mubr.msk.f32.gmra.mrb[156].mxu0 %vm264_vm4, %v11487_v17 }
0x1343   :  { %8931 = vmatprep.mubr.msk.f32.mxu0 %vm10334_vm0, %v12080_v1 }
0x1346   :  { %8932 = vmatmul.mubr.msk.f32.gmra.mrb[158].mxu0 %vm264_vm4, %v11496_v15 }
0x1347   :  { %8934 = vmatprep.mubr.msk.f32.mxu0 %vm10334_vm0, %v12080_v1 }
0x134a   :  { %8935 = vmatmul.mubr.msk.f32.gmra.mrb[160].mxu0 %vm264_vm4, %v11505_v23 }
0x13fd   :  { %v4022_v37 = vpop.f32.mrb[144].mxu0 }
0x13fe   :  { %v4066_v36 = vmul.f32 %v11383_v44, %v4022_v37  ;;  %v8912_v22 = vpop.f32.mrb[145].mxu0 }
0x1400   :  { %4075 = vadd.xlane.f32.xlu1 %v4066_v36 }
0x1401   :  { %v4027_v63 = vpop.f32.mrb[146].mxu0 }
0x1402   :  { %v4067_v41 = vmul.f32 %v11386_v7, %v4027_v63  ;;  %v8915_v3 = vpop.f32.mrb[147].mxu0 }
0x1403   :  { %v9687_v3 = vld [vmem:[#allocation19 + $0xc0] sm:$0xff]  }
0x1404   :  { %4077 = vadd.xlane.f32.xlu0 %v4067_v41 }
0x1405   :  { %v4032_v57 = vpop.f32.mrb[148].mxu0 }
0x1406   :  { %v4068_v13 = vmul.f32 %v11389_v33, %v4032_v57  ;;  %v8918_v40 = vpop.f32.mrb[149].mxu0  ;;  %v9691_v57 = vld [vmem:[#allocation19 + $0xc8] sm:$0xff]  }
0x1408   :  { %4079 = vadd.xlane.f32.xlu0 %v4068_v13  ;;  %v9695_v13 = vld [vmem:[#allocation19 + $0xd0] sm:$0xff]  }
0x1409   :  { %v4037_v0 = vpop.f32.mrb[150].mxu0 }
0x140a   :  { %v4069_v1 = vmul.f32 %v11392_v60, %v4037_v0  ;;  %v8921_v31 = vpop.f32.mrb[151].mxu0 }
0x140c   :  { %4081 = vadd.xlane.f32.xlu0 %v4069_v1 }
0x140d   :  { %v4042_v29 = vpop.f32.mrb[152].mxu0 }
0x140e   :  { %v4070_v44 = vmul.f32 %v11395_v43, %v4042_v29  ;;  %v8924_v37 = vpop.f32.mrb[153].mxu0  ;;  %v8011_v43 = vld [vmem:[%s12049_s10 + $0x2] ss:$0 sm:$0xff] }
0x140f   :  { %v9702_v37 = vld [vmem:[#allocation19 + $0x120] sm:$0xff]  }
0x1410   :  { %4083 = vadd.xlane.f32.xlu0 %v4070_v44  ;;  %v9698_v44 = vld [vmem:[#allocation19 + $0x118] sm:$0xff]  }
0x1411   :  { %v4047_v36 = vpop.f32.mrb[154].mxu0 }
0x1412   :  { %v4071_v7 = vmul.f32 %v11398_v30, %v4047_v36  ;;  %v8927_v22 = vpop.f32.mrb[155].mxu0  ;;  %v9686_v30 = vld [vmem:[#allocation19 + $0x100] sm:$0xff]  }
0x1413   :  { %8327 = vmatprep.subr.bf16.mxu0 %v9686_v30  ;;  %v9703_v36 = vld [vmem:[#allocation19 + $0xe0] sm:$0xff]   ;;  %v9707_v22 = vld [vmem:[#allocation19 + $0xe8] sm:$0xff]  }
0x1414   :  { %4085 = vadd.xlane.f32.xlu0 %v4071_v7  ;;  %8328 = vmatpush3.bf16.msra.mxu0 %v9687_v3  ;;  %v9706_v7 = vld [vmem:[#allocation19 + $0x128] sm:$0xff]  }
0x1415   :  { %v4052_v63 = vpop.f32.mrb[156].mxu0 }
0x1416   :  { %v4072_v33 = vmul.f32 %v11401_v46, %v4052_v63  ;;  %v8930_v40 = vpop.f32.mrb[157].mxu0  ;;  %v9690_v46 = vld [vmem:[#allocation19 + $0x108] sm:$0xff]  }
0x1417   :  { %8329 = vmatprep.subr.bf16.mxu0 %v9690_v46 }
0x1418   :  { %4087 = vadd.xlane.f32.xlu0 %v4072_v33  ;;  %8330 = vmatpush3.bf16.msra.mxu0 %v9691_v57 }
0x1419   :  { %v4057_v41 = vpop.f32.mrb[158].mxu0 }
0x141a   :  { %v4073_v0 = vmul.f32 %v11404_v12, %v4057_v41  ;;  %v8933_v31 = vpop.f32.mrb[159].mxu0  ;;  %v9694_v12 = vld [vmem:[#allocation19 + $0x110] sm:$0xff]  }
0x141b   :  { %8331 = vmatprep.subr.bf16.mxu0 %v9694_v12 }
0x141c   :  { %4089 = vadd.xlane.f32.xlu0 %v4073_v0  ;;  %8332 = vmatpush3.bf16.msra.mxu0 %v9695_v13 }
0x141d   :  { %v4062_v1 = vpop.f32.mrb[160].mxu0  ;;  %8333 = vmatprep.subr.bf16.mxu0 %v9698_v44 }
0x141e   :  { %v4074_v29 = vmul.f32 %v11407_v55, %v4062_v1  ;;  %v8936_v60 = vpop.f32.mrb[161].mxu0  ;;  %v9699_v55 = vld [vmem:[#allocation19 + $0xd8] sm:$0xff]  }
0x1420   :  { %4091 = vadd.xlane.f32.xlu0 %v4074_v29  ;;  %8334 = vmatpush3.bf16.msra.mxu0 %v9699_v55 }
0x1421   :  { %8335 = vmatprep.subr.bf16.mxu0 %v9702_v37 }
0x1424   :  { %8336 = vmatpush3.bf16.msra.mxu0 %v9703_v36 }
0x1425   :  { %8337 = vmatprep.subr.bf16.mxu0 %v9706_v7 }
0x1428   :  { %8338 = vmatpush3.bf16.msra.mxu0 %v9707_v22 }
0x1436   :  { %6244 = vperm.xlu0 %9434, %v8011_v43  }
0x148d   :  { %v4076_v63 = vpop.xlane.xlu1 %4075 }
0x148e   :  { %v4093_v40 = vmul.f32 %v4076_v63, %v11169_v48  ;;  %v4094_v41 = vmul.f32 %v4076_v63, %v11172_v49 }
0x1491   :  { %v4078_v33 = vpop.xlane.xlu0 %4077 }
0x1492   :  { %v4095_v0 = vmul.f32 %v4078_v33, %v11175_v50  ;;  %v4096_v31 = vmul.f32 %v4078_v33, %v11178_v51 }
0x1494   :  { %v9274_v1 = vpack.c.bf16 %v4096_v31, %v4094_v41  ;;  %v9276_v29 = vpack.c.bf16 %v4095_v0, %v4093_v40 }
0x1495   :  { %v4080_v60 = vpop.xlane.xlu0 %4079 }
0x1496   :  { %9275 = vmatprep.subr.bf16.mxu1 %v9274_v1  ;;  %v4097_v30 = vmul.f32 %v4080_v60, %v11181_v39  ;;  %v4098_v3 = vmul.f32 %v4080_v60, %v11186_v61 }
0x1497   :  { %9277 = vmatpush1.bf16.msra.mxu1 %v9276_v29 }
0x1499   :  { %v4082_v43 = vpop.xlane.xlu0 %4081 }
0x149a   :  { %v4099_v46 = vmul.f32 %v4082_v43, %v11191_v18  ;;  %v4100_v57 = vmul.f32 %v4082_v43, %v11195_v21 }
0x149c   :  { %v9278_v12 = vpack.c.bf16 %v4100_v57, %v4098_v3  ;;  %v9280_v13 = vpack.c.bf16 %v4099_v46, %v4097_v30  ;;  %v9684_v46 = vld [vmem:[#allocation17 + $0x100] sm:$0xff]  }
0x149d   :  { %v4084_v44 = vpop.xlane.xlu0 %4083 }
0x149e   :  { %9279 = vmatprep.subr.bf16.mxu1 %v9278_v12  ;;  %v4101_v37 = vmul.f32 %v4084_v44, %v11199_v24  ;;  %v4102_v36 = vmul.f32 %v4084_v44, %v11202_v45  ;;  %v9685_v12 = vld [vmem:[#allocation17 + $0xc0] sm:$0xff]   ;;  %v12108_v44 = vmov 0.0  }
0x149f   :  { %9281 = vmatpush1.bf16.msra.mxu1 %v9280_v13  ;;  %v9688_v13 = vld [vmem:[#allocation17 + $0x108] sm:$0xff]  }
0x14a1   :  { %v4086_v55 = vpop.xlane.xlu0 %4085 }
0x14a2   :  { %v4103_v7 = vmul.f32 %v4086_v55, %v11209_v35  ;;  %v4104_v22 = vmul.f32 %v4086_v55, %v11213_v58  ;;  %v9689_v55 = vld [vmem:[#allocation17 + $0xc8] sm:$0xff]  }
0x14a4   :  { %v9282_v63 = vpack.c.bf16 %v4104_v22, %v4102_v36  ;;  %v9284_v33 = vpack.c.bf16 %v4103_v7, %v4101_v37  ;;  %v9692_v37 = vld [vmem:[#allocation17 + $0x110] sm:$0xff]   ;;  %v9696_v7 = vld [vmem:[#allocation17 + $0x118] sm:$0xff]  }
0x14a5   :  { %v4088_v40 = vpop.xlane.xlu0 %4087  ;;  %v9693_v36 = vld [vmem:[#allocation17 + $0xd0] sm:$0xff]   ;;  %v9697_v22 = vld [vmem:[#allocation17 + $0xd8] sm:$0xff]  }
0x14a6   :  { %9283 = vmatprep.subr.bf16.mxu1 %v9282_v63  ;;  %v4105_v0 = vmul.f32 %v4088_v40, %v11217_v59  ;;  %v4106_v31 = vmul.f32 %v4088_v40, %v11220_v8  ;;  %v9701_v63 = vld [vmem:[#allocation17 + $0xe0] sm:$0xff]   ;;  %v9705_v40 = vld [vmem:[#allocation17 + $0xe8] sm:$0xff]  }
0x14a7   :  { %9285 = vmatpush1.bf16.msra.mxu1 %v9284_v33  ;;  %v9704_v33 = vld [vmem:[#allocation17 + $0x128] sm:$0xff]  }
0x14a9   :  { %v4090_v41 = vpop.xlane.xlu0 %4089 }
0x14aa   :  { %v4107_v1 = vmul.f32 %v4090_v41, %v11227_v20  ;;  %v4108_v29 = vmul.f32 %v4090_v41, %v11231_v6  ;;  %v9708_v41 = vld [vmem:[#allocation17 + $0x130] sm:$0xff]  }
0x14ac   :  { %v9286_v60 = vpack.c.bf16 %v4108_v29, %v4106_v31  ;;  %v9288_v43 = vpack.c.bf16 %v4107_v1, %v4105_v0  ;;  %v9710_v0 = vld [vmem:[#allocation19 + $0x130] sm:$0xff]   ;;  %v9712_v1 = vld [vmem:[#allocation17 + $0x138] sm:$0xff]  }
0x14ad   :  { %v4092_v30 = vpop.xlane.xlu0 %4091  ;;  %v9711_v31 = vld [vmem:[#allocation19 + $0xf0] sm:$0xff]   ;;  %8339 = vmatprep.subr.bf16.mxu0 %v9710_v0  ;;  %v9713_v29 = vld [vmem:[#allocation17 + $0xf8] sm:$0xff]  }
0x14ae   :  { %v4110_v3 = vmul.f32 %v4092_v30, %v11240_v34  ;;  %9287 = vmatprep.subr.bf16.mxu1 %v9286_v60  ;;  %v4109_v57 = vmul.f32 %v4092_v30, %v11235_v16  ;;  %8340 = vmatpush3.bf16.msra.mxu0 %v9711_v31  ;;  %v9714_v60 = vld [vmem:[#allocation19 + $0x138] sm:$0xff]   ;;  %v12109_v30 = vmov 0.0|0.0  }
0x14af   :  { %9289 = vmatpush1.bf16.msra.mxu1 %v9288_v43  ;;  %v9715_v43 = vld [vmem:[#allocation19 + $0xf8] sm:$0xff]   ;;  %8341 = vmatprep.subr.bf16.mxu0 %v9714_v60 }
0x14b0   :  { %4127 = vmatprep.subr.mxu1 %v4110_v3  ;;  %v7859_v0 = vld [vmem:[%s12052_s13 + $0x1] ss:$0 sm:$0xff] }
0x14b2   :  { %8342 = vmatpush3.bf16.msra.mxu0 %v9715_v43 }
0x14b3   :  { %4128 = vmatpush1.msra.mxu1 %v4109_v57  ;;  %9290 = vmatprep.subr.bf16.mxu0 %v12109_v30 }
0x14b4   :  { %7824 = vmatmul.mubr.msk.f32.vlgmr.msra.gmra.mrb[160].mxu1 %vm1737_vm11, %v11366_v54  ;;  %8349 = vmatprep.subr.bf16.mxu1 %v9684_v46  ;;  %v9700_v54 = vld [vmem:[#allocation17 + $0x120] sm:$0xff]  }
0x14b5   :  { %4181 = vmatprep.mubr.f32.mxu1 %v12108_v44  ;;  %8350 = vmatpush3.bf16.msra.mxu1 %v9685_v12 }
0x14b6   :  { %8351 = vmatprep.subr.bf16.mxu1 %v9688_v13 }
0x14b8   :  { %7825 = vmatmul.mubr.msk.f32.gmra.mrb[162].mxu1 %vm1737_vm11, %v11413_v52  ;;  %v9709_v52 = vld [vmem:[#allocation17 + $0xf0] sm:$0xff]  }
0x14b9   :  { %4522 = vmatprep.mubr.bf16.mxu1 %v11085_v42  ;;  %8352 = vmatpush3.bf16.msra.mxu1 %v9689_v55 }
0x14ba   :  { %8353 = vmatprep.subr.bf16.mxu1 %v9692_v37 }
0x14bd   :  { %8354 = vmatpush3.bf16.msra.mxu1 %v9693_v36 }
0x14be   :  { %8355 = vmatprep.subr.bf16.mxu1 %v9696_v7 }
0x14c1   :  { %8356 = vmatpush3.bf16.msra.mxu1 %v9697_v22 }
0x14c2   :  { %8357 = vmatprep.subr.bf16.mxu1 %v9700_v54 }
0x14c5   :  { %8358 = vmatpush3.bf16.msra.mxu1 %v9701_v63 }
0x14c6   :  { %8359 = vmatprep.subr.bf16.mxu1 %v9704_v33 }
0x14c9   :  { %8360 = vmatpush3.bf16.msra.mxu1 %v9705_v40 }
0x14ca   :  { %8361 = vmatprep.subr.bf16.mxu1 %v9708_v41 }
0x14cd   :  { %8362 = vmatpush3.bf16.msra.mxu1 %v9709_v52 }
0x14ce   :  { %8363 = vmatprep.subr.bf16.mxu1 %v9712_v1 }
0x14d1   :  { %8364 = vmatpush3.bf16.msra.mxu1 %v9713_v29 }
0x14d2   :  { %9294 = vmatprep.subr.bf16.mxu1 %v12109_v30 }
0x14d4   :  { %4523 = vmatmul.mubr.bf16.vlgmr.msra.gmra.mrb[164].mxu1 %v10636_v5 }
0x14d5   :  { %8972 = vmatprep.mubr.msk.f32.mxu1 %vm10334_vm0, %v12108_v44 }
0x1587   :  { %v4177_v3 = vpop.f32.mrb[160].mxu1 }
0x1588   :  { %v4179_v46 = vpop.f32.mrb[161].mxu1 }
0x158b   :  { %v4183_v57 = vpop.f32.mrb[162].mxu1 }
0x158c   :  { %v4255_v12 = vpack.c.bf16 %v4183_v57, %v4177_v3  ;;  %v4185_v13 = vpop.f32.mrb[163].mxu1 }
0x158d   :  { %v4256_v55 = vpack.c.bf16 %v4185_v13, %v4179_v46 }
0x158f   :  { %4385 = vmatprep.mubr.bf16.mxu0 %v4256_v55  ;;  %v9718_v55 = vld [vmem:[#allocation5 + $0x304] ss:$8 sps:$4 sm:$0xff]  }
0x1590   :  { %4386 = vmatmul.mubr.bf16.vlgmr.msra.gmra.mrb[164].mxu0 %v4255_v12 }
0x1591   :  { %8941 = vmatprep.mubr.msk.f32.mxu0 %vm10334_vm0, %v12108_v44 }
0x15a7   :  { %v8365_v37 = vpop.f32.mrb[164].mxu1 }
0x15a8   :  { %v8366_v36 = vpop.f32.mrb[165].mxu1 }
0x15a9   :  { %v8367_v7 = vadd.f32 %v8366_v36, %v8365_v37  ;;  %v8368_v22 = vpop.f32.mrb[166].mxu1  ;;  %v9716_v36 = vld [vmem:[#allocation5 + $0x300] ss:$8 sps:$4 sm:$0xff]  }
0x15aa   :  { %v8369_v54 = vpop.f32.mrb[167].mxu1 }
0x15ab   :  { %v8370_v63 = vadd.f32 %v8369_v54, %v8368_v22  ;;  %v9980_v22 = vld [vmem:[%s12054_s15] sm:$0xff] }
0x15ac   :  { %v9719_v54 = vld [vmem:[#allocation5 + $0x310] ss:$8 sps:$4 sm:$0xff]  }
0x1663   :  { %v8343_v33 = vpop.f32.mrb[164].mxu0 }
0x1664   :  { %v8344_v40 = vpop.f32.mrb[165].mxu0 }
0x1665   :  { %v8345_v41 = vadd.f32 %v8344_v40, %v8343_v33  ;;  %v8346_v52 = vpop.f32.mrb[166].mxu0  ;;  %v9722_v33 = vld [vmem:[#allocation5 + $0x320] ss:$8 sps:$4 sm:$0xff]   ;;  %v9727_v40 = vld [vmem:[#allocation5 + $0x334] ss:$8 sps:$4 sm:$0xff]  }
0x1666   :  { %v8347_v31 = vpop.f32.mrb[167].mxu0 }
0x1667   :  { %v4525_v1 = vadd.f32 %v8367_v7, %v8345_v41  ;;  %v8348_v29 = vadd.f32 %v8347_v31, %v8346_v52  ;;  %v9721_v7 = vld [vmem:[#allocation5 + $0x314] ss:$8 sps:$4 sm:$0xff]   ;;  %v9725_v41 = vld [vmem:[#allocation5 + $0x330] ss:$8 sps:$4 sm:$0xff]   ;;  %v9730_v52 = vld [vmem:[#allocation5 + $0x344] ss:$8 sps:$4 sm:$0xff]  }
0x1668   :  { %v9733_v31 = vld [vmem:[#allocation5 + $0x354] ss:$8 sps:$4 sm:$0xff]  }
0x1669   :  { %v4539_v60 = vadd.f32 %v7859_v0, %v4525_v1  ;;  %v4528_v43 = vadd.f32 %v8370_v63, %v8348_v29  ;;  %v9724_v63 = vld [vmem:[#allocation5 + $0x324] ss:$8 sps:$4 sm:$0xff]   ;;  %v9731_v1 = vld [vmem:[#allocation5 + $0x350] ss:$8 sps:$4 sm:$0xff]  }
0x166a   :  { %v9736_v29 = vld [vmem:[#allocation5 + $0x364] ss:$8 sps:$4 sm:$0xff]  }
0x166b   :  { %v4543_v3 = vmul.f32 0.01, %v4539_v60  ;;  %v4540_v46 = vadd.f32 %v7859_v0, %v4528_v43  ;;  %vm4541_vm13 = vcmp.ge.f32.partialorder %v4539_v60, 0.0  ;;  %v9728_v0 = vld [vmem:[#allocation5 + $0x340] ss:$8 sps:$4 sm:$0xff]  }
0x166c   :  { %v9739_v43 = vld [vmem:[#allocation5 + $0x374] ss:$8 sps:$4 sm:$0xff]  }
0x166d   :  { %vm4542_vm14 = vcmp.ge.f32.partialorder %v4540_v46, 0.0  ;;  %v4544_v57 = vmul.f32 0.01, %v4540_v46  ;;  %v4545_v12 = vsel %vm4541_vm13, %v4539_v60, %v4543_v3  ;;  %v9734_v60 = vld [vmem:[#allocation5 + $0x360] ss:$8 sps:$4 sm:$0xff]  }
0x166e   :  { %v9737_v3 = vld [vmem:[#allocation5 + $0x370] ss:$8 sps:$4 sm:$0xff]  }
0x166f   :  { %v4546_v13 = vsel %vm4542_vm14, %v4540_v46, %v4544_v57  ;;  %v9742_v46 = vld [vmem:[#allocation5 + $0x384] ss:$8 sps:$4 sm:$0xff]   ;;  %v9740_v57 = vld [vmem:[#allocation5 + $0x380] ss:$8 sps:$4 sm:$0xff]  }
0x1670   :  { %v11555_v37 = vpack.c.bf16 %v4546_v13, %v4545_v12  ;;  %v9745_v12 = vld [vmem:[#allocation5 + $0x394] ss:$8 sps:$4 sm:$0xff]   ;;  %v9743_v13 = vld [vmem:[#allocation5 + $0x390] ss:$8 sps:$4 sm:$0xff]  }
0x1672   :  { %9293 = vmatpush3.bf16.msk.msra.mxu0 %vm10632_vm3, %v11555_v37  ;;  %9297 = vmatpush3.bf16.msk.msra.mxu1 %vm10632_vm3, %v11555_v37 }
0x1673   :  { %5095 = vmatprep.subr.bf16.mxu0 %v9718_v55  ;;  %v9748_v55 = vld [vmem:[#allocation5 + $0x3a4] ss:$8 sps:$4 sm:$0xff]  }
0x1675   :  { %8942 = vmatmul.mubr.msk.f32.vlgmr.msra.gmra.mrb[162].mxu0 %vm264_vm4, %v11433_v62  ;;  %8973 = vmatmul.mubr.msk.f32.vlgmr.msra.gmra.mrb[168].mxu1 %vm264_vm4, %v9980_v22  ;;  %v9981_v62 = vld [vmem:[%s12054_s15 + $0x8] sm:$0xff] }
0x1676   :  { %5096 = vmatpush1.bf16.msra.mxu0 %v9716_v36  ;;  %8944 = vmatprep.mubr.msk.f32.mxu0 %vm10334_vm0, %v12108_v44  ;;  %v9746_v36 = vld [vmem:[#allocation5 + $0x3a0] ss:$8 sps:$4 sm:$0xff]   ;;  %v9749_v22 = vld [vmem:[#allocation5 + $0x3b0] ss:$8 sps:$4 sm:$0xff]  }
0x1677   :  { %8975 = vmatprep.mubr.msk.f32.mxu1 %vm10334_vm0, %v12108_v44  ;;  %5097 = vmatprep.subr.bf16.mxu0 %v9721_v7  ;;  %v9751_v7 = vld [vmem:[#allocation5 + $0x3b4] ss:$8 sps:$4 sm:$0xff]  }
0x1679   :  { %8945 = vmatmul.mubr.msk.f32.gmra.mrb[168].mxu0 %vm264_vm4, %v11442_v2  ;;  %8976 = vmatmul.mubr.msk.f32.gmra.mrb[170].mxu1 %vm264_vm4, %v9981_v62  ;;  %v9982_v2 = vld [vmem:[%s12054_s15 + $0x10] sm:$0xff]  ;;  %v9755_v62 = vld [vmem:[#allocation5 + $0x3d0] ss:$8 sps:$4 sm:$0xff]  }
0x167a   :  { %5098 = vmatpush1.bf16.msra.mxu0 %v9719_v54  ;;  %8947 = vmatprep.mubr.msk.f32.mxu0 %vm10334_vm0, %v12108_v44  ;;  %v9752_v54 = vld [vmem:[#allocation5 + $0x3c0] ss:$8 sps:$4 sm:$0xff]  }
0x167b   :  { %8978 = vmatprep.mubr.msk.f32.mxu1 %vm10334_vm0, %v12108_v44  ;;  %5099 = vmatprep.subr.bf16.mxu0 %v9724_v63  ;;  %v9757_v63 = vld [vmem:[#allocation5 + $0x3d4] ss:$8 sps:$4 sm:$0xff]  }
0x167d   :  { %8948 = vmatmul.mubr.msk.f32.gmra.mrb[170].mxu0 %vm264_vm4, %v11451_v14  ;;  %8979 = vmatmul.mubr.msk.f32.gmra.mrb[172].mxu1 %vm264_vm4, %v9982_v2  ;;  %v9983_v14 = vld [vmem:[%s12054_s15 + $0x18] sm:$0xff]  ;;  %v9761_v2 = vld [vmem:[#allocation5 + $0x3f0] ss:$8 sps:$4 sm:$0xff]  }
0x167e   :  { %5100 = vmatpush1.bf16.msra.mxu0 %v9722_v33  ;;  %8950 = vmatprep.mubr.msk.f32.mxu0 %vm10334_vm0, %v12108_v44  ;;  %v9760_v33 = vld [vmem:[#allocation5 + $0x3e4] ss:$8 sps:$4 sm:$0xff]  }
0x167f   :  { %8981 = vmatprep.mubr.msk.f32.mxu1 %vm10334_vm0, %v12108_v44  ;;  %5101 = vmatprep.subr.bf16.mxu0 %v9727_v40  ;;  %v9763_v40 = vld [vmem:[#allocation5 + $0x3f4] ss:$8 sps:$4 sm:$0xff]  }
0x1681   :  { %8951 = vmatmul.mubr.msk.f32.gmra.mrb[172].mxu0 %vm264_vm4, %v11460_v26  ;;  %8982 = vmatmul.mubr.msk.f32.gmra.mrb[174].mxu1 %vm264_vm4, %v9983_v14  ;;  %v9984_v26 = vld [vmem:[%s12054_s15 + $0x20] sm:$0xff] }
0x1682   :  { %5102 = vmatpush1.bf16.msra.mxu0 %v9725_v41  ;;  %8953 = vmatprep.mubr.msk.f32.mxu0 %vm10334_vm0, %v12108_v44  ;;  %v9766_v41 = vld [vmem:[#allocation5 + $0x404] ss:$8 sps:$4 sm:$0xff]   ;;  %v9769_v14 = vld [vmem:[#allocation5 + $0x414] ss:$8 sps:$4 sm:$0xff]  }
0x1683   :  { %8984 = vmatprep.mubr.msk.f32.mxu1 %vm10334_vm0, %v12108_v44  ;;  %5103 = vmatprep.subr.bf16.mxu0 %v9730_v52  ;;  %v9764_v52 = vld [vmem:[#allocation5 + $0x400] ss:$8 sps:$4 sm:$0xff]  }
0x1685   :  { %8954 = vmatmul.mubr.msk.f32.gmra.mrb[174].mxu0 %vm264_vm4, %v11469_v53  ;;  %8985 = vmatmul.mubr.msk.f32.gmra.mrb[176].mxu1 %vm264_vm4, %v9984_v26  ;;  %v9985_v53 = vld [vmem:[%s12054_s15 + $0x28] sm:$0xff]  ;;  %v9770_v26 = vld [vmem:[#allocation5 + $0x420] ss:$8 sps:$4 sm:$0xff]  }
0x1686   :  { %5104 = vmatpush1.bf16.msra.mxu0 %v9728_v0  ;;  %8956 = vmatprep.mubr.msk.f32.mxu0 %vm10334_vm0, %v12108_v44  ;;  %v9767_v0 = vld [vmem:[#allocation5 + $0x410] ss:$8 sps:$4 sm:$0xff]  }
0x1687   :  { %8987 = vmatprep.mubr.msk.f32.mxu1 %vm10334_vm0, %v12108_v44  ;;  %5105 = vmatprep.subr.bf16.mxu0 %v9733_v31  ;;  %v9772_v31 = vld [vmem:[#allocation5 + $0x424] ss:$8 sps:$4 sm:$0xff]  }
0x1689   :  { %8957 = vmatmul.mubr.msk.f32.gmra.mrb[176].mxu0 %vm264_vm4, %v11478_v32  ;;  %8988 = vmatmul.mubr.msk.f32.gmra.mrb[178].mxu1 %vm264_vm4, %v9985_v53  ;;  %v9986_v32 = vld [vmem:[%s12054_s15 + $0x30] sm:$0xff] }
0x168a   :  { %5106 = vmatpush1.bf16.msra.mxu0 %v9731_v1  ;;  %8959 = vmatprep.mubr.msk.f32.mxu0 %vm10334_vm0, %v12108_v44  ;;  %v9775_v1 = vld [vmem:[#allocation5 + $0x434] ss:$8 sps:$4 sm:$0xff]   ;;  %v9778_v53 = vld [vmem:[#allocation5 + $0x444] ss:$8 sps:$4 sm:$0xff]  }
0x168b   :  { %8990 = vmatprep.mubr.msk.f32.mxu1 %vm10334_vm0, %v12108_v44  ;;  %5107 = vmatprep.subr.bf16.mxu0 %v9736_v29  ;;  %v9773_v29 = vld [vmem:[#allocation5 + $0x430] ss:$8 sps:$4 sm:$0xff]  }
0x168d   :  { %8960 = vmatmul.mubr.msk.f32.gmra.mrb[178].mxu0 %vm264_vm4, %v11487_v17  ;;  %8991 = vmatmul.mubr.msk.f32.gmra.mrb[180].mxu1 %vm264_vm4, %v9986_v32  ;;  %v9987_v17 = vld [vmem:[%s12054_s15 + $0x38] sm:$0xff]  ;;  %v9785_v32 = vld [vmem:[#allocation5 + $0x470] ss:$8 sps:$4 sm:$0xff]  }
0x168e   :  { %5108 = vmatpush1.bf16.msra.mxu0 %v9734_v60  ;;  %8962 = vmatprep.mubr.msk.f32.mxu0 %vm10334_vm0, %v12108_v44  ;;  %v9779_v60 = vld [vmem:[#allocation5 + $0x450] ss:$8 sps:$4 sm:$0xff]  }
0x168f   :  { %8993 = vmatprep.mubr.msk.f32.mxu1 %vm10334_vm0, %v12108_v44  ;;  %5109 = vmatprep.subr.bf16.mxu0 %v9739_v43  ;;  %v9784_v43 = vld [vmem:[#allocation5 + $0x464] ss:$8 sps:$4 sm:$0xff]  }
0x1691   :  { %8963 = vmatmul.mubr.msk.f32.gmra.mrb[180].mxu0 %vm264_vm4, %v11496_v15  ;;  %8994 = vmatmul.mubr.msk.f32.gmra.mrb[182].mxu1 %vm264_vm4, %v9987_v17  ;;  %v9988_v15 = vld [vmem:[%s12054_s15 + $0x40] sm:$0xff] }
0x1692   :  { %5110 = vmatpush1.bf16.msra.mxu0 %v9737_v3  ;;  %8965 = vmatprep.mubr.msk.f32.mxu0 %vm10334_vm0, %v12108_v44  ;;  %v9790_v3 = vld [vmem:[#allocation8 + $0x204] ss:$8 sps:$4 sm:$0xff]   ;;  %v9791_v17 = vld [vmem:[#allocation8 + $0x210] ss:$8 sps:$4 sm:$0xff]  }
0x1693   :  { %5111 = vmatprep.subr.bf16.mxu0 %v9742_v46  ;;  %8996 = vmatprep.mubr.msk.f32.mxu1 %vm10334_vm0, %v12108_v44  ;;  %v9793_v46 = vld [vmem:[#allocation8 + $0x214] ss:$8 sps:$4 sm:$0xff]  }
0x1694   :  { %5527 = vmatprep.subr.bf16.mxu1 %v9790_v3 }
0x1695   :  { %8966 = vmatmul.mubr.msk.f32.gmra.mrb[182].mxu0 %vm264_vm4, %v11505_v23  ;;  %8997 = vmatmul.mubr.msk.f32.gmra.mrb[184].mxu1 %vm264_vm4, %v9988_v15  ;;  %v9754_v23 = vld [vmem:[#allocation5 + $0x3c4] ss:$8 sps:$4 sm:$0xff]  }
0x1696   :  { %5112 = vmatpush1.bf16.msra.mxu0 %v9740_v57  ;;  %5127 = vmatprep.mubr.bf16.mxu0 %v11189_v56  ;;  %v9758_v56 = vld [vmem:[#allocation5 + $0x3e0] ss:$8 sps:$4 sm:$0xff]  }
0x1697   :  { %5113 = vmatprep.subr.bf16.mxu0 %v9745_v12  ;;  %v9799_v57 = vld [vmem:[#allocation8 + $0x234] ss:$8 sps:$4 sm:$0xff]   ;;  %v9797_v12 = vld [vmem:[#allocation8 + $0x230] ss:$8 sps:$4 sm:$0xff]   ;;  %v9802_v15 = vld [vmem:[#allocation8 + $0x244] ss:$8 sps:$4 sm:$0xff]  }
0x169a   :  { %5114 = vmatpush1.bf16.msra.mxu0 %v9743_v13  ;;  %v9805_v13 = vld [vmem:[#allocation8 + $0x254] ss:$8 sps:$4 sm:$0xff]  }
0x169b   :  { %5115 = vmatprep.subr.bf16.mxu0 %v9748_v55  ;;  %v9803_v55 = vld [vmem:[#allocation8 + $0x250] ss:$8 sps:$4 sm:$0xff]  }
0x169e   :  { %5116 = vmatpush1.bf16.msra.mxu0 %v9746_v36  ;;  %v9808_v36 = vld [vmem:[#allocation8 + $0x264] ss:$8 sps:$4 sm:$0xff]  }
0x169f   :  { %5117 = vmatprep.subr.bf16.mxu0 %v9751_v7  ;;  %v9806_v7 = vld [vmem:[#allocation8 + $0x260] ss:$8 sps:$4 sm:$0xff]  }
0x16a2   :  { %5118 = vmatpush1.bf16.msra.mxu0 %v9749_v22  ;;  %v9811_v22 = vld [vmem:[#allocation8 + $0x274] ss:$8 sps:$4 sm:$0xff]  }
0x16a3   :  { %5119 = vmatprep.subr.bf16.mxu0 %v9754_v23  ;;  %v9809_v23 = vld [vmem:[#allocation8 + $0x270] ss:$8 sps:$4 sm:$0xff]  }
0x16a6   :  { %5120 = vmatpush1.bf16.msra.mxu0 %v9752_v54  ;;  %v9814_v54 = vld [vmem:[#allocation8 + $0x284] ss:$8 sps:$4 sm:$0xff]  }
0x16a7   :  { %5121 = vmatprep.subr.bf16.mxu0 %v9757_v63  ;;  %v9812_v63 = vld [vmem:[#allocation8 + $0x280] ss:$8 sps:$4 sm:$0xff]  }
0x16aa   :  { %5122 = vmatpush1.bf16.msra.mxu0 %v9755_v62  ;;  %v9817_v62 = vld [vmem:[#allocation8 + $0x294] ss:$8 sps:$4 sm:$0xff]  }
0x16ab   :  { %5123 = vmatprep.subr.bf16.mxu0 %v9760_v33  ;;  %v9815_v33 = vld [vmem:[#allocation8 + $0x290] ss:$8 sps:$4 sm:$0xff]  }
0x16ae   :  { %5124 = vmatpush1.bf16.msra.mxu0 %v9758_v56  ;;  %v9820_v56 = vld [vmem:[#allocation8 + $0x2a4] ss:$8 sps:$4 sm:$0xff]  }
0x16af   :  { %5125 = vmatprep.subr.bf16.mxu0 %v9763_v40  ;;  %v9818_v40 = vld [vmem:[#allocation8 + $0x2a0] ss:$8 sps:$4 sm:$0xff]  }
0x16b2   :  { %5126 = vmatpush1.bf16.msra.mxu0 %v9761_v2  ;;  %v9823_v2 = vld [vmem:[#allocation8 + $0x2b4] ss:$8 sps:$4 sm:$0xff]  }
0x16b3   :  { %5176 = vmatprep.subr.bf16.mxu0 %v9766_v41  ;;  %v9821_v41 = vld [vmem:[#allocation8 + $0x2b0] ss:$8 sps:$4 sm:$0xff]  }
0x16b5   :  { %5128 = vmatmul.mubr.bf16.vlgmr.msra.gmra.mrb[184].mxu0 %v11183_v47  ;;  %v9776_v47 = vld [vmem:[#allocation5 + $0x440] ss:$8 sps:$4 sm:$0xff]  }
0x16b6   :  { %5137 = vmatprep.mubr.bf16.mxu0 %v11207_v28  ;;  %5177 = vmatpush1.bf16.msra.mxu0 %v9764_v52  ;;  %v9781_v28 = vld [vmem:[#allocation5 + $0x454] ss:$8 sps:$4 sm:$0xff]  }
0x16b7   :  { %5178 = vmatprep.subr.bf16.mxu0 %v9769_v14  ;;  %v9826_v52 = vld [vmem:[#allocation8 + $0x2c4] ss:$8 sps:$4 sm:$0xff]   ;;  %v9824_v14 = vld [vmem:[#allocation8 + $0x2c0] ss:$8 sps:$4 sm:$0xff]  }
0x16ba   :  { %5179 = vmatpush1.bf16.msra.mxu0 %v9767_v0 }
0x16bb   :  { %5180 = vmatprep.subr.bf16.mxu0 %v9772_v31 }
0x16bd   :  { %5138 = vmatmul.mubr.bf16.gmra.mrb[188].mxu0 %v11204_v27  ;;  %v9782_v27 = vld [vmem:[#allocation5 + $0x460] ss:$8 sps:$4 sm:$0xff]  }
0x16be   :  { %5147 = vmatprep.mubr.bf16.mxu0 %v11225_v11  ;;  %5181 = vmatpush1.bf16.msra.mxu0 %v9770_v26  ;;  %v9787_v11 = vld [vmem:[#allocation5 + $0x474] ss:$8 sps:$4 sm:$0xff]  }
0x16bf   :  { %5182 = vmatprep.subr.bf16.mxu0 %v9775_v1 }
0x16c2   :  { %5183 = vmatpush1.bf16.msra.mxu0 %v9773_v29 }
0x16c3   :  { %5184 = vmatprep.subr.bf16.mxu0 %v9778_v53 }
0x16c5   :  { %5148 = vmatmul.mubr.bf16.gmra.mrb[192].mxu0 %v11222_v10  ;;  %v12110_v10 = vmov 0  }
0x16c6   :  { %5157 = vmatprep.mubr.bf16.mxu0 %v11242_v19  ;;  %5185 = vmatpush1.bf16.msra.mxu0 %v9776_v47  ;;  %v9788_v19 = vld [vmem:[#allocation8 + $0x200] ss:$8 sps:$4 sm:$0xff]  }
0x16c7   :  { %5186 = vmatprep.subr.bf16.mxu0 %v9781_v28  ;;  %5528 = vmatpush1.bf16.msra.mxu1 %v9788_v19 }
0x16c8   :  { %5529 = vmatprep.subr.bf16.mxu1 %v9793_v46 }
0x16ca   :  { %5187 = vmatpush1.bf16.msra.mxu0 %v9779_v60 }
0x16cb   :  { %5188 = vmatprep.subr.bf16.mxu0 %v9784_v43  ;;  %5530 = vmatpush1.bf16.msra.mxu1 %v9791_v17 }
0x16cd   :  { %5158 = vmatmul.mubr.bf16.gmra.mrb[196].mxu0 %v11237_v9  ;;  %v9796_v9 = vld [vmem:[#allocation8 + $0x224] ss:$8 sps:$4 sm:$0xff]  }
0x16ce   :  { %5167 = vmatprep.mubr.bf16.mxu0 %v11247_v38  ;;  %5189 = vmatpush1.bf16.msra.mxu0 %v9782_v27  ;;  %v9794_v38 = vld [vmem:[#allocation8 + $0x220] ss:$8 sps:$4 sm:$0xff]  }
0x16cf   :  { %5190 = vmatprep.subr.bf16.mxu0 %v9787_v11  ;;  %5531 = vmatprep.subr.bf16.mxu1 %v9796_v9 }
0x16d0   :  { %5532 = vmatpush1.bf16.msra.mxu1 %v9794_v38 }
0x16d1   :  { %5533 = vmatprep.subr.bf16.mxu1 %v9799_v57 }
0x16d2   :  { %5191 = vmatpush1.bf16.msra.mxu0 %v9785_v32 }
0x16d3   :  { %8999 = vmatprep.subr.bf16.mxu0 %v12108_v44 }
0x16d4   :  { %5534 = vmatpush1.bf16.msra.mxu1 %v9797_v12 }
0x16d5   :  { %5168 = vmatmul.mubr.bf16.gmra.mrb[200].mxu0 %v11250_v25  ;;  %v9800_v25 = vld [vmem:[#allocation8 + $0x240] ss:$8 sps:$4 sm:$0xff]   ;;  %5535 = vmatprep.subr.bf16.mxu1 %v9802_v15 }
0x16d6   :  { %5208 = vmatprep.mubr.bf16.mxu0 %v12110_v10 }
0x16d8   :  { %5536 = vmatpush1.bf16.msra.mxu1 %v9800_v25 }
0x16d9   :  { %5537 = vmatprep.subr.bf16.mxu1 %v9805_v13 }
0x16dc   :  { %5538 = vmatpush1.bf16.msra.mxu1 %v9803_v55 }
0x16dd   :  { %5539 = vmatprep.subr.bf16.mxu1 %v9808_v36 }
0x16e0   :  { %5540 = vmatpush1.bf16.msra.mxu1 %v9806_v7 }
0x16e1   :  { %5541 = vmatprep.subr.bf16.mxu1 %v9811_v22 }
0x16e4   :  { %5542 = vmatpush1.bf16.msra.mxu1 %v9809_v23 }
0x16e5   :  { %5543 = vmatprep.subr.bf16.mxu1 %v9814_v54 }
0x16e8   :  { %5544 = vmatpush1.bf16.msra.mxu1 %v9812_v63 }
0x16e9   :  { %5545 = vmatprep.subr.bf16.mxu1 %v9817_v62 }
0x16ec   :  { %5546 = vmatpush1.bf16.msra.mxu1 %v9815_v33 }
0x16ed   :  { %5547 = vmatprep.subr.bf16.mxu1 %v9820_v56 }
0x16f0   :  { %5548 = vmatpush1.bf16.msra.mxu1 %v9818_v40 }
0x16f1   :  { %5549 = vmatprep.subr.bf16.mxu1 %v9823_v2 }
0x16f4   :  { %5550 = vmatpush1.bf16.msra.mxu1 %v9821_v41 }
0x16f5   :  { %5551 = vmatprep.subr.bf16.mxu1 %v9826_v52 }
0x16f8   :  { %5552 = vmatpush1.bf16.msra.mxu1 %v9824_v14 }
0x1748   :  { %v4616_v0 = vpop.f32.mrb[162].mxu0  ;;  %v11661_v31 = vpop.f32.mrb[168].mxu1 }
0x1749   :  { %v4770_v26 = vsub.f32 %v4616_v0, %v11661_v31  ;;  %v8943_v1 = vpop.f32.mrb[163].mxu0  ;;  %v8974_v29 = vpop.f32.mrb[169].mxu1 }
0x174b   :  { %v4779_v27 = vand.u32 2147483647, %v4770_v26 }
0x174c   :  { %v4621_v53 = vpop.f32.mrb[168].mxu0  ;;  %v11664_v47 = vpop.f32.mrb[170].mxu1 }
0x174d   :  { %v4771_v28 = vsub.f32 %v4621_v53, %v11664_v47  ;;  %v8946_v60 = vpop.f32.mrb[169].mxu0  ;;  %v8977_v43 = vpop.f32.mrb[171].mxu1 }
0x174f   :  { %v4780_v11 = vand.u32 2147483647, %v4771_v28 }
0x1750   :  { %v4626_v32 = vpop.f32.mrb[170].mxu0  ;;  %v11667_v19 = vpop.f32.mrb[172].mxu1 }
0x1751   :  { %v4788_v3 = vpack.c.bf16 %v4780_v11, %v4779_v27  ;;  %v4772_v46 = vsub.f32 %v4626_v32, %v11667_v19  ;;  %v8949_v17 = vpop.f32.mrb[171].mxu0  ;;  %v8980_v9 = vpop.f32.mrb[173].mxu1 }
0x1753   :  { %5209 = vmatmul.mubr.bf16.vlgmr.msra.gmra.mrb[184].mxu0 %v4788_v3  ;;  %v4781_v13 = vand.u32 2147483647, %v4772_v46 }
0x1754   :  { %v4631_v38 = vpop.f32.mrb[172].mxu0  ;;  %v11670_v57 = vpop.f32.mrb[174].mxu1  ;;  %5218 = vmatprep.mubr.bf16.mxu0 %v12110_v10 }
0x1755   :  { %v4773_v12 = vsub.f32 %v4631_v38, %v11670_v57  ;;  %v8952_v15 = vpop.f32.mrb[173].mxu0  ;;  %v8983_v25 = vpop.f32.mrb[175].mxu1 }
0x1757   :  { %v4782_v55 = vand.u32 2147483647, %v4773_v12 }
0x1758   :  { %v4636_v36 = vpop.f32.mrb[174].mxu0  ;;  %v11674_v7 = vpop.f32.mrb[176].mxu1 }
0x1759   :  { %v4774_v22 = vsub.f32 %v4636_v36, %v11674_v7  ;;  %v8955_v23 = vpop.f32.mrb[175].mxu0  ;;  %v8986_v54 = vpop.f32.mrb[177].mxu1  ;;  %v4789_v63 = vpack.c.bf16 %v4782_v55, %v4781_v13  ;;  %v9829_v55 = vld [vmem:[#allocation8 + $0x2d4] ss:$8 sps:$4 sm:$0xff]   ;;  %v9827_v36 = vld [vmem:[#allocation8 + $0x2d0] ss:$8 sps:$4 sm:$0xff]  }
0x175a   :  { %5553 = vmatprep.subr.bf16.mxu1 %v9829_v55  ;;  %v9830_v23 = vld [vmem:[#allocation8 + $0x2e0] ss:$8 sps:$4 sm:$0xff]   ;;  %v9835_v54 = vld [vmem:[#allocation8 + $0x2f4] ss:$8 sps:$4 sm:$0xff]  }
0x175b   :  { %5219 = vmatmul.mubr.bf16.gmra.mrb[188].mxu0 %v4789_v63  ;;  %v4783_v41 = vand.u32 2147483647, %v4774_v22  ;;  %5554 = vmatpush1.bf16.msra.mxu1 %v9827_v36  ;;  %v9832_v22 = vld [vmem:[#allocation8 + $0x2e4] ss:$8 sps:$4 sm:$0xff]   ;;  %v9833_v63 = vld [vmem:[#allocation8 + $0x2f0] ss:$8 sps:$4 sm:$0xff]  }
0x175c   :  { %v4641_v62 = vpop.f32.mrb[176].mxu0  ;;  %v11677_v33 = vpop.f32.mrb[178].mxu1  ;;  %5228 = vmatprep.mubr.bf16.mxu0 %v12110_v10  ;;  %5555 = vmatprep.subr.bf16.mxu1 %v9832_v22  ;;  %v9837_v22 = vld [vmem:[#allocation11 + $0x100] sm:$0xff]  }
0x175d   :  { %v4775_v56 = vsub.f32 %v4641_v62, %v11677_v33  ;;  %v8958_v40 = vpop.f32.mrb[177].mxu0  ;;  %v8989_v2 = vpop.f32.mrb[179].mxu1  ;;  %v9836_v62 = vld [vmem:[#allocation11 + $0x140] sm:$0xff]  }
0x175e   :  { %v12112_v2 = vld [vmem:[#allocation32_spill] sm:$0xff] }
0x175f   :  { %v4784_v52 = vand.u32 2147483647, %v4775_v56  ;;  %5556 = vmatpush1.bf16.msra.mxu1 %v9830_v23  ;;  %v12111_v56 = vld [vmem:[#allocation31_spill] sm:$0xff] }
0x1760   :  { %v4646_v14 = vpop.f32.mrb[178].mxu0  ;;  %v11681_v0 = vpop.f32.mrb[180].mxu1  ;;  %5557 = vmatprep.subr.bf16.mxu1 %v9835_v54 }
0x1761   :  { %v4776_v26 = vsub.f32 %v4646_v14, %v11681_v0  ;;  %v8961_v1 = vpop.f32.mrb[179].mxu0  ;;  %v8992_v29 = vpop.f32.mrb[181].mxu1  ;;  %v4790_v53 = vpack.c.bf16 %v4784_v52, %v4783_v41 }
0x1763   :  { %5229 = vmatmul.mubr.bf16.gmra.mrb[192].mxu0 %v4790_v53  ;;  %v4785_v32 = vand.u32 2147483647, %v4776_v26  ;;  %5558 = vmatpush1.bf16.msra.mxu1 %v9833_v63  ;;  %v9838_v63 = vld [vmem:[#allocation11 + $0x148] sm:$0xff]  }
0x1764   :  { %v4651_v28 = vpop.f32.mrb[180].mxu0  ;;  %v11684_v60 = vpop.f32.mrb[182].mxu1  ;;  %5238 = vmatprep.mubr.bf16.mxu0 %v12110_v10  ;;  %8393 = vmatprep.subr.bf16.mxu1 %v9836_v62 }
0x1765   :  { %v4777_v43 = vsub.f32 %v4651_v28, %v11684_v60  ;;  %v8964_v27 = vpop.f32.mrb[181].mxu0  ;;  %v8995_v11 = vpop.f32.mrb[183].mxu1 }
0x1767   :  { %v4786_v3 = vand.u32 2147483647, %v4777_v43 }
0x1768   :  { %v4656_v46 = vpop.f32.mrb[182].mxu0  ;;  %v11688_v17 = vpop.f32.mrb[184].mxu1 }
0x1769   :  { %v4791_v9 = vpack.c.bf16 %v4786_v3, %v4785_v32  ;;  %v4778_v38 = vsub.f32 %v4656_v46, %v11688_v17  ;;  %v8967_v12 = vpop.f32.mrb[183].mxu0  ;;  %v8998_v15 = vpop.f32.mrb[185].mxu1 }
0x176b   :  { %5239 = vmatmul.mubr.bf16.gmra.mrb[196].mxu0 %v4791_v9  ;;  %v4787_v25 = vand.u32 2147483647, %v4778_v38 }
0x176c   :  { %5248 = vmatprep.mubr.bf16.mxu0 %v12110_v10  ;;  %v4843_v10 = vld [vmem:[#allocation7 + $0x4] sm:$0x3] }
0x176d   :  { %v4792_v13 = vpack.c.bf16 %v4787_v25, %v4787_v25  ;;  %v11695_v40 = vrot.slane %v4843_v10, %v12111_v56  ;;  %v11698_v41 = vrot.slane %v4843_v10, %v12112_v2 }
0x1773   :  { %5249 = vmatmul.mubr.bf16.gmra.mrb[200].mxu0 %v4792_v13 }
0x1774   :  { %9015 = vmatprep.mubr.msk.bf16.mxu0 %vm10334_vm0, %v12108_v44 }
0x1826   :  { %v5210_v52 = vpop.f32.mrb[184].mxu0 }
0x1827   :  { %v9370_v14 = vadd.f32 %v5210_v52, %v11695_v40  ;;  %v5212_v26 = vpop.f32.mrb[185].mxu0 }
0x1828   :  { %v9371_v1 = vadd.f32 %v5212_v26, %v11698_v41  ;;  %v5214_v29 = vpop.f32.mrb[186].mxu0 }
0x1829   :  { %v5275_v53 = vmul.f32 0.01, %v9370_v14  ;;  %v9372_v28 = vadd.f32 %v5214_v29, %v11695_v40  ;;  %v5216_v43 = vpop.f32.mrb[187].mxu0  ;;  %vm5257_vm15 = vcmp.ge.f32.partialorder %v9370_v14, 0.0  ;;  %v9839_v29 = vld [vmem:[#allocation11 + $0x108] sm:$0xff]  }
0x182a   :  { %v5276_v27 = vmul.f32 0.01, %v9371_v1  ;;  %v9373_v11 = vadd.f32 %v5216_v43, %v11698_v41  ;;  %vm5258_vm2 = vcmp.ge.f32.partialorder %v9371_v1, 0.0 }
0x182b   :  { %vm5259_vm5 = vcmp.ge.f32.partialorder %v9372_v28, 0.0  ;;  %v5277_v32 = vmul.f32 0.01, %v9372_v28  ;;  %v5293_v46 = vsel %vm5257_vm15, %v9370_v14, %v5275_v53 }
0x182c   :  { %vm5260_vm6 = vcmp.ge.f32.partialorder %v9373_v11, 0.0  ;;  %v5278_v3 = vmul.f32 0.01, %v9373_v11  ;;  %v5294_v15 = vsel %vm5258_vm2, %v9371_v1, %v5276_v27 }
0x182d   :  { %v5295_v9 = vsel %vm5259_vm5, %v9372_v28, %v5277_v32  ;;  %v9840_v28 = vld [vmem:[#allocation11 + $0x150] sm:$0xff]  }
0x182e   :  { %v5311_v38 = vpack.c.bf16 %v5295_v9, %v5293_v46  ;;  %v5220_v12 = vpop.f32.mrb[188].mxu0  ;;  %v5296_v25 = vsel %vm5260_vm6, %v9373_v11, %v5278_v3 }
0x182f   :  { %v9374_v13 = vadd.f32 %v5220_v12, %v11695_v40  ;;  %v5222_v55 = vpop.f32.mrb[189].mxu0  ;;  %v5312_v36 = vpack.c.bf16 %v5296_v25, %v5294_v15 }
0x1830   :  { %v9375_v23 = vadd.f32 %v5222_v55, %v11698_v41  ;;  %v5224_v54 = vpop.f32.mrb[190].mxu0 }
0x1831   :  { %v5279_v62 = vmul.f32 0.01, %v9374_v13  ;;  %v9376_v10 = vadd.f32 %v5224_v54, %v11695_v40  ;;  %v5226_v52 = vpop.f32.mrb[191].mxu0  ;;  %5559 = vmatprep.mubr.bf16.mxu1 %v5312_v36  ;;  %vm5261_vm7 = vcmp.ge.f32.partialorder %v9374_v13, 0.0  ;;  %v9842_v36 = vld [vmem:[#allocation11 + $0x158] sm:$0xff]  }
0x1832   :  { %v5280_v14 = vmul.f32 0.01, %v9375_v23  ;;  %v9377_v26 = vadd.f32 %v5226_v52, %v11698_v41  ;;  %5560 = vmatmul.mubr.bf16.vlgmr.msra.gmra.mrb[188].mxu1 %v5311_v38  ;;  %vm5262_vm8 = vcmp.ge.f32.partialorder %v9375_v23, 0.0  ;;  %v9841_v38 = vld [vmem:[#allocation11 + $0x110] sm:$0xff]  }
0x1833   :  { %vm5263_vm9 = vcmp.ge.f32.partialorder %v9376_v10, 0.0  ;;  %v5281_v1 = vmul.f32 0.01, %v9376_v10  ;;  %8394 = vmatpush3.bf16.msra.mxu1 %v9837_v22  ;;  %v5297_v43 = vsel %vm5261_vm7, %v9374_v13, %v5279_v62 }
0x1834   :  { %vm5264_vm10 = vcmp.ge.f32.partialorder %v9377_v26, 0.0  ;;  %v5282_v53 = vmul.f32 0.01, %v9377_v26  ;;  %8395 = vmatprep.subr.bf16.mxu1 %v9838_v63  ;;  %v5298_v32 = vsel %vm5262_vm8, %v9375_v23, %v5280_v14  ;;  %v9844_v14 = vld [vmem:[#allocation11 + $0x160] sm:$0xff]  }
0x1835   :  { %v5299_v27 = vsel %vm5263_vm9, %v9376_v10, %v5281_v1  ;;  %v9843_v10 = vld [vmem:[#allocation11 + $0x118] sm:$0xff]  }
0x1836   :  { %v5230_v11 = vpop.f32.mrb[192].mxu0  ;;  %v5300_v3 = vsel %vm5264_vm10, %v9377_v26, %v5282_v53  ;;  %v5313_v46 = vpack.c.bf16 %v5299_v27, %v5297_v43 }
0x1837   :  { %v9378_v9 = vadd.f32 %v5230_v11, %v11695_v40  ;;  %v5232_v12 = vpop.f32.mrb[193].mxu0  ;;  %v5314_v15 = vpack.c.bf16 %v5300_v3, %v5298_v32  ;;  %8396 = vmatpush3.bf16.msra.mxu1 %v9839_v29  ;;  %v9845_v3 = vld [vmem:[#allocation11 + $0x120] sm:$0xff]  }
0x1838   :  { %v9379_v25 = vadd.f32 %v5232_v12, %v11698_v41  ;;  %v5234_v55 = vpop.f32.mrb[194].mxu0  ;;  %8397 = vmatprep.subr.bf16.mxu1 %v9840_v28 }
0x1839   :  { %v5283_v22 = vmul.f32 0.01, %v9378_v9  ;;  %v9380_v54 = vadd.f32 %v5234_v55, %v11695_v40  ;;  %v5236_v13 = vpop.f32.mrb[195].mxu0  ;;  %5569 = vmatprep.mubr.bf16.mxu1 %v5314_v15  ;;  %vm5265_vm12 = vcmp.ge.f32.partialorder %v9378_v9, 0.0 }
0x183a   :  { %v5284_v23 = vmul.f32 0.01, %v9379_v25  ;;  %v9381_v63 = vadd.f32 %v5236_v13, %v11698_v41  ;;  %5570 = vmatmul.mubr.bf16.gmra.mrb[192].mxu1 %v5313_v46  ;;  %vm5266_vm13 = vcmp.ge.f32.partialorder %v9379_v25, 0.0 }
0x183b   :  { %vm5267_vm14 = vcmp.ge.f32.partialorder %v9380_v54, 0.0  ;;  %v5285_v62 = vmul.f32 0.01, %v9380_v54  ;;  %8398 = vmatpush3.bf16.msra.mxu1 %v9841_v38  ;;  %v5301_v26 = vsel %vm5265_vm12, %v9378_v9, %v5283_v22 }
0x183c   :  { %vm5268_vm15 = vcmp.ge.f32.partialorder %v9381_v63, 0.0  ;;  %v5286_v52 = vmul.f32 0.01, %v9381_v63  ;;  %8399 = vmatprep.subr.bf16.mxu1 %v9842_v36  ;;  %v5302_v53 = vsel %vm5266_vm13, %v9379_v25, %v5284_v23 }
0x183d   :  { %v5303_v1 = vsel %vm5267_vm14, %v9380_v54, %v5285_v62 }
0x183e   :  { %v5240_v29 = vpop.f32.mrb[196].mxu0  ;;  %v5304_v28 = vsel %vm5268_vm15, %v9381_v63, %v5286_v52  ;;  %v5315_v43 = vpack.c.bf16 %v5303_v1, %v5301_v26 }
0x183f   :  { %v9382_v27 = vadd.f32 %v5240_v29, %v11695_v40  ;;  %v5242_v11 = vpop.f32.mrb[197].mxu0  ;;  %v5316_v32 = vpack.c.bf16 %v5304_v28, %v5302_v53  ;;  %8400 = vmatpush3.bf16.msra.mxu1 %v9843_v10 }
0x1840   :  { %v9383_v46 = vadd.f32 %v5242_v11, %v11698_v41  ;;  %v5244_v12 = vpop.f32.mrb[198].mxu0  ;;  %8401 = vmatprep.subr.bf16.mxu1 %v9844_v14 }
0x1841   :  { %v5287_v15 = vmul.f32 0.01, %v9382_v27  ;;  %v9384_v38 = vadd.f32 %v5244_v12, %v11695_v40  ;;  %v5246_v55 = vpop.f32.mrb[199].mxu0  ;;  %5579 = vmatprep.mubr.bf16.mxu1 %v5316_v32  ;;  %vm5269_vm2 = vcmp.ge.f32.partialorder %v9382_v27, 0.0  ;;  %v9848_v12 = vld [vmem:[#allocation11 + $0x170] sm:$0xff]  }
0x1842   :  { %v5288_v9 = vmul.f32 0.01, %v9383_v46  ;;  %v9385_v25 = vadd.f32 %v5246_v55, %v11698_v41  ;;  %5580 = vmatmul.mubr.bf16.gmra.mrb[196].mxu1 %v5315_v43  ;;  %vm5270_vm5 = vcmp.ge.f32.partialorder %v9383_v46, 0.0  ;;  %v9852_v55 = vld [vmem:[%s12046_s7 + $0x80] sm:$0xff]  }
0x1843   :  { %vm5271_vm6 = vcmp.ge.f32.partialorder %v9384_v38, 0.0  ;;  %v5289_v36 = vmul.f32 0.01, %v9384_v38  ;;  %8402 = vmatpush3.bf16.msra.mxu1 %v9845_v3  ;;  %v5305_v54 = vsel %vm5269_vm2, %v9382_v27, %v5287_v15  ;;  %v9850_v15 = vld [vmem:[#allocation11 + $0x178] sm:$0xff]   ;;  %9000 = vmatpush3.bf16.msra.mxu0 %v9852_v55 }
0x1844   :  { %vm5272_vm7 = vcmp.ge.f32.partialorder %v9385_v25, 0.0  ;;  %v5290_v22 = vmul.f32 0.01, %v9385_v25  ;;  %v5306_v63 = vsel %vm5270_vm5, %v9383_v46, %v5288_v9  ;;  %v9846_v46 = vld [vmem:[#allocation11 + $0x168] sm:$0xff]   ;;  %9001 = vmatprep.subr.bf16.mxu0 %v12108_v44 }
0x1845   :  { %v5307_v13 = vsel %vm5271_vm6, %v9384_v38, %v5289_v36  ;;  %8403 = vmatprep.subr.bf16.mxu1 %v9846_v46  ;;  %v9851_v38 = vld [vmem:[#allocation11 + $0x138] sm:$0xff]   ;;  %v9853_v9 = vld [vmem:[%s12046_s7 + $0x88] sm:$0xff]  }
0x1846   :  { %v5250_v23 = vpop.f32.mrb[200].mxu0  ;;  %v5308_v62 = vsel %vm5272_vm7, %v9385_v25, %v5290_v22  ;;  %v5317_v10 = vpack.c.bf16 %v5307_v13, %v5305_v54  ;;  %v9854_v25 = vld [vmem:[%s12046_s7 + $0x90] sm:$0xff]   ;;  %v9855_v36 = vld [vmem:[%s12046_s7 + $0x98] sm:$0xff]   ;;  %v9856_v22 = vld [vmem:[%s12046_s7 + $0xa0] sm:$0xff]  }
0x1847   :  { %v9386_v52 = vadd.f32 %v5250_v23, %v11695_v40  ;;  %v5252_v14 = vpop.f32.mrb[201].mxu0  ;;  %v5318_v26 = vpack.c.bf16 %v5308_v62, %v5306_v63  ;;  %v9847_v40 = vld [vmem:[#allocation11 + $0x128] sm:$0xff]   ;;  %9002 = vmatpush3.bf16.msra.mxu0 %v9853_v9  ;;  %v5355_v54 = vld [vmem:[#allocation10 + $0x4] sm:$0x3] }
0x1848   :  { %v9387_v1 = vadd.f32 %v5252_v14, %v11698_v41  ;;  %v5254_v29 = vpop.f32.mrb[202].mxu0  ;;  %8404 = vmatpush3.bf16.msra.mxu1 %v9847_v40  ;;  %v9849_v41 = vld [vmem:[#allocation11 + $0x130] sm:$0xff]   ;;  %9003 = vmatprep.subr.bf16.mxu0 %v12108_v44  ;;  %v11740_v13 = vrot.slane %v5355_v54, %v12111_v56  ;;  %v11743_v23 = vrot.slane %v5355_v54, %v12112_v2 }
0x1849   :  { %v5291_v53 = vmul.f32 0.01, %v9386_v52  ;;  %v5255_v28 = vpop.f32.mrb[203].mxu0  ;;  %5589 = vmatprep.mubr.bf16.mxu1 %v5318_v26  ;;  %vm5273_vm8 = vcmp.ge.f32.partialorder %v9386_v52, 0.0  ;;  %8405 = vmatprep.subr.bf16.mxu1 %v9848_v12 }
0x184a   :  { %vm5274_vm9 = vcmp.ge.f32.partialorder %v9387_v1, 0.0  ;;  %v5292_v43 = vmul.f32 0.01, %v9387_v1  ;;  %5590 = vmatmul.mubr.bf16.gmra.mrb[200].mxu1 %v5317_v10 }
0x184b   :  { %v5309_v32 = vsel %vm5273_vm8, %v9386_v52, %v5291_v53  ;;  %9004 = vmatpush3.bf16.msra.mxu0 %v9854_v25 }
0x184c   :  { %v5310_v27 = vsel %vm5274_vm9, %v9387_v1, %v5292_v43  ;;  %v5319_v3 = vpack.c.bf16 %v5309_v32, %v5309_v32  ;;  %8406 = vmatpush3.bf16.msra.mxu1 %v9849_v41  ;;  %9005 = vmatprep.subr.bf16.mxu0 %v12108_v44 }
0x184d   :  { %v5320_v11 = vpack.c.bf16 %v5310_v27, %v5310_v27  ;;  %8407 = vmatprep.subr.bf16.mxu1 %v9850_v15 }
0x184f   :  { %5599 = vmatprep.mubr.bf16.mxu1 %v5320_v11  ;;  %9006 = vmatpush3.bf16.msra.mxu0 %v9855_v36 }
0x1850   :  { %8408 = vmatpush3.bf16.msra.mxu1 %v9851_v38  ;;  %9007 = vmatprep.subr.bf16.mxu0 %v12108_v44 }
0x1851   :  { %9035 = vmatprep.subr.bf16.mxu1 %v12108_v44 }
0x1852   :  { %5600 = vmatmul.mubr.bf16.gmra.mrb[204].mxu1 %v5319_v3 }
0x1853   :  { %9008 = vmatpush3.bf16.msra.mxu0 %v9856_v22 }
0x1854   :  { %9009 = vmatprep.subr.bf16.mxu0 %v12108_v44 }
0x1905   :  { %v5561_v63 = vpop.f32.mrb[188].mxu1 }
0x1906   :  { %v5562_v62 = vadd.f32 %v5561_v63, %v11740_v13  ;;  %v5563_v10 = vpop.f32.mrb[189].mxu1 }
0x1907   :  { %v5564_v52 = vadd.f32 %v5563_v10, %v11743_v23  ;;  %v5565_v14 = vpop.f32.mrb[190].mxu1 }
0x1908   :  { %v5626_v26 = vmul.f32 0.01, %v5562_v62  ;;  %v5566_v1 = vadd.f32 %v5565_v14, %v11740_v13  ;;  %v5567_v29 = vpop.f32.mrb[191].mxu1  ;;  %vm5608_vm10 = vcmp.ge.f32.partialorder %v5562_v62, 0.0 }
0x1909   :  { %v5627_v53 = vmul.f32 0.01, %v5564_v52  ;;  %v5568_v28 = vadd.f32 %v5567_v29, %v11743_v23  ;;  %vm5609_vm12 = vcmp.ge.f32.partialorder %v5564_v52, 0.0 }
0x190a   :  { %vm5610_vm13 = vcmp.ge.f32.partialorder %v5566_v1, 0.0  ;;  %v5628_v56 = vmul.f32 0.01, %v5566_v1  ;;  %v5644_v43 = vsel %vm5608_vm10, %v5562_v62, %v5626_v26 }
0x190b   :  { %vm5611_vm14 = vcmp.ge.f32.partialorder %v5568_v28, 0.0  ;;  %v5629_v2 = vmul.f32 0.01, %v5568_v28  ;;  %v5645_v3 = vsel %vm5609_vm12, %v5564_v52, %v5627_v53 }
0x190c   :  { %v5646_v27 = vsel %vm5610_vm13, %v5566_v1, %v5628_v56 }
0x190d   :  { %v5662_v11 = vpack.c.bf16 %v5646_v27, %v5644_v43  ;;  %v5571_v32 = vpop.f32.mrb[192].mxu1  ;;  %v5647_v46 = vsel %vm5611_vm14, %v5568_v28, %v5629_v2 }
0x190e   :  { %v5572_v40 = vadd.f32 %v5571_v32, %v11740_v13  ;;  %v5573_v12 = vpop.f32.mrb[193].mxu1  ;;  %v5663_v41 = vpack.c.bf16 %v5647_v46, %v5645_v3 }
0x190f   :  { %v5574_v15 = vadd.f32 %v5573_v12, %v11743_v23  ;;  %v5575_v38 = vpop.f32.mrb[194].mxu1 }
0x1910   :  { %v5630_v55 = vmul.f32 0.01, %v5572_v40  ;;  %v5576_v9 = vadd.f32 %v5575_v38, %v11740_v13  ;;  %v5577_v25 = vpop.f32.mrb[195].mxu1  ;;  %5841 = vmatprep.mubr.bf16.mxu1 %v5663_v41  ;;  %vm5612_vm15 = vcmp.ge.f32.partialorder %v5572_v40, 0.0 }
0x1911   :  { %v5631_v36 = vmul.f32 0.01, %v5574_v15  ;;  %v5578_v22 = vadd.f32 %v5577_v25, %v11743_v23  ;;  %5842 = vmatmul.mubr.bf16.vlgmr.msra.gmra.mrb[208].mxu1 %v5662_v11  ;;  %vm5613_vm2 = vcmp.ge.f32.partialorder %v5574_v15, 0.0 }
0x1912   :  { %vm5614_vm5 = vcmp.ge.f32.partialorder %v5576_v9, 0.0  ;;  %v5632_v54 = vmul.f32 0.01, %v5576_v9  ;;  %v5648_v62 = vsel %vm5612_vm15, %v5572_v40, %v5630_v55 }
0x1913   :  { %vm5615_vm6 = vcmp.ge.f32.partialorder %v5578_v22, 0.0  ;;  %v5633_v63 = vmul.f32 0.01, %v5578_v22  ;;  %v5649_v14 = vsel %vm5613_vm2, %v5574_v15, %v5631_v36 }
0x1914   :  { %v5650_v10 = vsel %vm5614_vm5, %v5576_v9, %v5632_v54 }
0x1915   :  { %v5581_v52 = vpop.f32.mrb[196].mxu1  ;;  %v5651_v26 = vsel %vm5615_vm6, %v5578_v22, %v5633_v63  ;;  %v5664_v1 = vpack.c.bf16 %v5650_v10, %v5648_v62 }
0x1916   :  { %v5582_v29 = vadd.f32 %v5581_v52, %v11740_v13  ;;  %v5583_v53 = vpop.f32.mrb[197].mxu1  ;;  %v5665_v28 = vpack.c.bf16 %v5651_v26, %v5649_v14 }
0x1917   :  { %v5584_v56 = vadd.f32 %v5583_v53, %v11743_v23  ;;  %v5585_v2 = vpop.f32.mrb[198].mxu1 }
0x1918   :  { %v5634_v43 = vmul.f32 0.01, %v5582_v29  ;;  %v5586_v27 = vadd.f32 %v5585_v2, %v11740_v13  ;;  %v5587_v11 = vpop.f32.mrb[199].mxu1  ;;  %5849 = vmatprep.mubr.bf16.mxu1 %v5665_v28  ;;  %vm5616_vm7 = vcmp.ge.f32.partialorder %v5582_v29, 0.0 }
0x1919   :  { %v5635_v32 = vmul.f32 0.01, %v5584_v56  ;;  %v5588_v3 = vadd.f32 %v5587_v11, %v11743_v23  ;;  %5850 = vmatmul.mubr.bf16.gmra.mrb[212].mxu1 %v5664_v1  ;;  %vm5617_vm8 = vcmp.ge.f32.partialorder %v5584_v56, 0.0 }
0x191a   :  { %vm5618_vm9 = vcmp.ge.f32.partialorder %v5586_v27, 0.0  ;;  %v5636_v46 = vmul.f32 0.01, %v5586_v27  ;;  %v5652_v12 = vsel %vm5616_vm7, %v5582_v29, %v5634_v43 }
0x191b   :  { %vm5619_vm10 = vcmp.ge.f32.partialorder %v5588_v3, 0.0  ;;  %v5637_v40 = vmul.f32 0.01, %v5588_v3  ;;  %v5653_v38 = vsel %vm5617_vm8, %v5584_v56, %v5635_v32 }
0x191c   :  { %v5654_v41 = vsel %vm5618_vm9, %v5586_v27, %v5636_v46 }
0x191d   :  { %v5591_v15 = vpop.f32.mrb[200].mxu1  ;;  %v5655_v55 = vsel %vm5619_vm10, %v5588_v3, %v5637_v40  ;;  %v5666_v9 = vpack.c.bf16 %v5654_v41, %v5652_v12 }
0x191e   :  { %v5592_v25 = vadd.f32 %v5591_v15, %v11740_v13  ;;  %v5593_v36 = vpop.f32.mrb[201].mxu1  ;;  %v5667_v22 = vpack.c.bf16 %v5655_v55, %v5653_v38 }
0x191f   :  { %v5594_v54 = vadd.f32 %v5593_v36, %v11743_v23  ;;  %v5595_v63 = vpop.f32.mrb[202].mxu1  ;;  %v9859_v36 = vld [vmem:[%s12046_s7 + $0xb8] sm:$0xff]  }
0x1920   :  { %v5638_v62 = vmul.f32 0.01, %v5592_v25  ;;  %v5596_v10 = vadd.f32 %v5595_v63, %v11740_v13  ;;  %v5597_v52 = vpop.f32.mrb[203].mxu1  ;;  %5857 = vmatprep.mubr.bf16.mxu1 %v5667_v22  ;;  %vm5620_vm12 = vcmp.ge.f32.partialorder %v5592_v25, 0.0  ;;  %v9860_v22 = vld [vmem:[#allocation16 + $0x80] sm:$0xff]   ;;  %v9862_v63 = vld [vmem:[#allocation16 + $0x90] sm:$0xff]  }
0x1921   :  { %v5639_v14 = vmul.f32 0.01, %v5594_v54  ;;  %v5598_v26 = vadd.f32 %v5597_v52, %v11743_v23  ;;  %5858 = vmatmul.mubr.bf16.gmra.mrb[216].mxu1 %v5666_v9  ;;  %vm5621_vm13 = vcmp.ge.f32.partialorder %v5594_v54, 0.0  ;;  %v9865_v52 = vld [vmem:[#allocation16 + $0xa8] sm:$0xff]  }
0x1922   :  { %vm5622_vm14 = vcmp.ge.f32.partialorder %v5596_v10, 0.0  ;;  %v5640_v1 = vmul.f32 0.01, %v5596_v10  ;;  %v5656_v53 = vsel %vm5620_vm12, %v5592_v25, %v5638_v62  ;;  %9036 = vmatpush3.bf16.msra.mxu1 %v9860_v22  ;;  %v9863_v62 = vld [vmem:[#allocation16 + $0x98] sm:$0xff]  }
0x1923   :  { %vm5623_vm15 = vcmp.ge.f32.partialorder %v5598_v26, 0.0  ;;  %v5641_v29 = vmul.f32 0.01, %v5598_v26  ;;  %v5657_v2 = vsel %vm5621_vm13, %v5594_v54, %v5639_v14  ;;  %v9861_v54 = vld [vmem:[#allocation16 + $0x88] sm:$0xff]   ;;  %9037 = vmatprep.subr.bf16.mxu1 %v12108_v44 }
0x1924   :  { %v5658_v28 = vsel %vm5622_vm14, %v5596_v10, %v5640_v1  ;;  %v9864_v10 = vld [vmem:[#allocation16 + $0xa0] sm:$0xff]  }
0x1925   :  { %v5601_v56 = vpop.f32.mrb[204].mxu1  ;;  %v5659_v43 = vsel %vm5623_vm15, %v5598_v26, %v5641_v29  ;;  %v5668_v27 = vpack.c.bf16 %v5658_v28, %v5656_v53  ;;  %v11782_v26 = vld [vmem:[#allocation13 + $0x2] ss:$0 sm:$0xff] }
0x1926   :  { %v5602_v11 = vadd.f32 %v5601_v56, %v11740_v13  ;;  %v5603_v32 = vpop.f32.mrb[205].mxu1  ;;  %v5669_v3 = vpack.c.bf16 %v5659_v43, %v5657_v2  ;;  %v9857_v13 = vld [vmem:[%s12046_s7 + $0xa8] sm:$0xff]   ;;  %9038 = vmatpush3.bf16.msra.mxu1 %v9861_v54 }
0x1927   :  { %v5604_v46 = vadd.f32 %v5603_v32, %v11743_v23  ;;  %v5605_v40 = vpop.f32.mrb[206].mxu1  ;;  %9010 = vmatpush3.bf16.msra.mxu0 %v9857_v13  ;;  %v9858_v23 = vld [vmem:[%s12046_s7 + $0xb0] sm:$0xff]   ;;  %9039 = vmatprep.subr.bf16.mxu1 %v12108_v44 }
0x1928   :  { %v5642_v12 = vmul.f32 0.01, %v5602_v11  ;;  %v5606_v41 = vpop.f32.mrb[207].mxu1  ;;  %5865 = vmatprep.mubr.bf16.mxu1 %v5669_v3  ;;  %vm5624_vm2 = vcmp.ge.f32.partialorder %v5602_v11, 0.0  ;;  %9011 = vmatprep.subr.bf16.mxu0 %v12108_v44 }
0x1929   :  { %vm5625_vm5 = vcmp.ge.f32.partialorder %v5604_v46, 0.0  ;;  %v5643_v15 = vmul.f32 0.01, %v5604_v46  ;;  %5866 = vmatmul.mubr.bf16.gmra.mrb[220].mxu1 %v5668_v27 }
0x192a   :  { %v5660_v9 = vsel %vm5624_vm2, %v5602_v11, %v5642_v12  ;;  %9040 = vmatpush3.bf16.msra.mxu1 %v9862_v63 }
0x192b   :  { %v5661_v38 = vsel %vm5625_vm5, %v5604_v46, %v5643_v15  ;;  %v5670_v25 = vpack.c.bf16 %v5660_v9, %v5660_v9  ;;  %9012 = vmatpush3.bf16.msra.mxu0 %v9858_v23  ;;  %9041 = vmatprep.subr.bf16.mxu1 %v12108_v44 }
0x192c   :  { %v5671_v55 = vpack.c.bf16 %v5661_v38, %v5661_v38  ;;  %9013 = vmatprep.subr.bf16.mxu0 %v12108_v44 }
0x192e   :  { %5873 = vmatprep.mubr.bf16.mxu1 %v5671_v55  ;;  %9042 = vmatpush3.bf16.msra.mxu1 %v9863_v62 }
0x192f   :  { %9014 = vmatpush3.bf16.msra.mxu0 %v9859_v36  ;;  %9043 = vmatprep.subr.bf16.mxu1 %v12108_v44 }
0x1931   :  { %5874 = vmatmul.mubr.bf16.gmra.mrb[224].mxu1 %v5670_v25 }
0x1932   :  { %9051 = vmatprep.mubr.msk.bf16.mxu1 %vm10334_vm0, %v12108_v44  ;;  %9044 = vmatpush3.bf16.msra.mxu1 %v9864_v10 }
0x1933   :  { %9045 = vmatprep.subr.bf16.mxu1 %v12108_v44 }
0x1936   :  { %9046 = vmatpush3.bf16.msra.mxu1 %v9865_v52 }
0x1937   :  { %9047 = vmatprep.subr.bf16.mxu1 %v12108_v44 }
0x19e4   :  { %v8409_v14 = vpop.f32.mrb[208].mxu1 }
0x19e5   :  { %v8410_v1 = vpop.f32.mrb[209].mxu1 }
0x19e6   :  { %v8411_v29 = vadd.f32 %v8410_v1, %v8409_v14  ;;  %v8412_v53 = vpop.f32.mrb[210].mxu1 }
0x19e7   :  { %v8413_v28 = vpop.f32.mrb[211].mxu1 }
0x19e8   :  { %v5844_v56 = vadd.f32 %v8411_v29, %v11782_v26  ;;  %v8414_v2 = vadd.f32 %v8413_v28, %v8412_v53 }
0x19ea   :  { %v5890_v43 = vmul.f32 0.01, %v5844_v56  ;;  %v5847_v27 = vadd.f32 %v8414_v2, %v11782_v26  ;;  %vm5881_vm6 = vcmp.ge.f32.partialorder %v5844_v56, 0.0 }
0x19ec   :  { %vm5882_vm7 = vcmp.ge.f32.partialorder %v5847_v27, 0.0  ;;  %v5891_v11 = vmul.f32 0.01, %v5847_v27  ;;  %v8415_v32 = vpop.f32.mrb[212].mxu1  ;;  %v5899_v46 = vsel %vm5881_vm6, %v5844_v56, %v5890_v43 }
0x19ed   :  { %v8416_v3 = vpop.f32.mrb[213].mxu1 }
0x19ee   :  { %v5900_v40 = vsel %vm5882_vm7, %v5847_v27, %v5891_v11  ;;  %v8417_v12 = vadd.f32 %v8416_v3, %v8415_v32  ;;  %v8418_v41 = vpop.f32.mrb[214].mxu1 }
0x19ef   :  { %v5908_v15 = vpack.c.bf16 %v5900_v40, %v5899_v46  ;;  %v8419_v38 = vpop.f32.mrb[215].mxu1 }
0x19f0   :  { %v5852_v55 = vadd.f32 %v8417_v12, %v11782_v26  ;;  %v8420_v9 = vadd.f32 %v8419_v38, %v8418_v41 }
0x19f1   :  { %9016 = vmatmul.mubr.bf16.vlgmr.msra.gmra.mrb[204].mxu0 %v5908_v15 }
0x19f2   :  { %v5892_v25 = vmul.f32 0.01, %v5852_v55  ;;  %v5855_v13 = vadd.f32 %v8420_v9, %v11782_v26  ;;  %9019 = vmatprep.mubr.msk.bf16.mxu0 %vm10334_vm0, %v12108_v44  ;;  %vm5883_vm8 = vcmp.ge.f32.partialorder %v5852_v55, 0.0 }
0x19f4   :  { %vm5884_vm9 = vcmp.ge.f32.partialorder %v5855_v13, 0.0  ;;  %v5893_v23 = vmul.f32 0.01, %v5855_v13  ;;  %v8421_v36 = vpop.f32.mrb[216].mxu1  ;;  %v5901_v62 = vsel %vm5883_vm8, %v5852_v55, %v5892_v25 }
0x19f5   :  { %v8422_v22 = vpop.f32.mrb[217].mxu1 }
0x19f6   :  { %v8423_v54 = vadd.f32 %v8422_v22, %v8421_v36  ;;  %v8424_v63 = vpop.f32.mrb[218].mxu1  ;;  %v5902_v10 = vsel %vm5884_vm9, %v5855_v13, %v5893_v23 }
0x19f7   :  { %v8425_v52 = vpop.f32.mrb[219].mxu1  ;;  %v5909_v14 = vpack.c.bf16 %v5902_v10, %v5901_v62 }
0x19f8   :  { %v5860_v1 = vadd.f32 %v8423_v54, %v11782_v26  ;;  %v8426_v29 = vadd.f32 %v8425_v52, %v8424_v63 }
0x19f9   :  { %9020 = vmatmul.mubr.bf16.gmra.mrb[208].mxu0 %v5909_v14 }
0x19fa   :  { %v5894_v53 = vmul.f32 0.01, %v5860_v1  ;;  %v5863_v28 = vadd.f32 %v8426_v29, %v11782_v26  ;;  %9023 = vmatprep.mubr.msk.bf16.mxu0 %vm10334_vm0, %v12108_v44  ;;  %vm5885_vm10 = vcmp.ge.f32.partialorder %v5860_v1, 0.0  ;;  %v9866_v29 = vld [vmem:[#allocation16 + $0xb0] sm:$0xff]  }
0x19fb   :  { %9048 = vmatpush3.bf16.msra.mxu1 %v9866_v29 }
0x19fc   :  { %vm5886_vm12 = vcmp.ge.f32.partialorder %v5863_v28, 0.0  ;;  %v5895_v56 = vmul.f32 0.01, %v5863_v28  ;;  %v8427_v2 = vpop.f32.mrb[220].mxu1  ;;  %v5903_v32 = vsel %vm5885_vm10, %v5860_v1, %v5894_v53  ;;  %v11804_v1 = vld [vmem:[%s12055_s16] sm:$0xff]  ;;  %9049 = vmatprep.subr.bf16.mxu1 %v12108_v44 }
0x19fd   :  { %v8428_v43 = vpop.f32.mrb[221].mxu1  ;;  %v7993_v53 = vld [vmem:[#allocation14 + $0x2] ss:$0 sm:$0xff] }
0x19fe   :  { %v8429_v27 = vadd.f32 %v8428_v43, %v8427_v2  ;;  %v8430_v11 = vpop.f32.mrb[222].mxu1  ;;  %v5904_v3 = vsel %vm5886_vm12, %v5863_v28, %v5895_v56 }
0x19ff   :  { %v8431_v46 = vpop.f32.mrb[223].mxu1  ;;  %v5910_v40 = vpack.c.bf16 %v5904_v3, %v5903_v32 }
0x1a00   :  { %v5868_v12 = vadd.f32 %v8429_v27, %v11782_v26  ;;  %v8432_v41 = vadd.f32 %v8431_v46, %v8430_v11 }
0x1a01   :  { %9024 = vmatmul.mubr.bf16.gmra.mrb[212].mxu0 %v5910_v40 }
0x1a02   :  { %v5896_v15 = vmul.f32 0.01, %v5868_v12  ;;  %v5871_v38 = vadd.f32 %v8432_v41, %v11782_v26  ;;  %9027 = vmatprep.mubr.msk.bf16.mxu0 %vm10334_vm0, %v12108_v44  ;;  %vm5887_vm13 = vcmp.ge.f32.partialorder %v5868_v12, 0.0 }
0x1a04   :  { %vm5888_vm14 = vcmp.ge.f32.partialorder %v5871_v38, 0.0  ;;  %v5897_v55 = vmul.f32 0.01, %v5871_v38  ;;  %v8433_v9 = vpop.f32.mrb[224].mxu1  ;;  %v5905_v36 = vsel %vm5887_vm13, %v5868_v12, %v5896_v15 }
0x1a05   :  { %v8434_v25 = vpop.f32.mrb[225].mxu1 }
0x1a06   :  { %v8435_v13 = vadd.f32 %v8434_v25, %v8433_v9  ;;  %v8436_v23 = vpop.f32.mrb[226].mxu1  ;;  %v5906_v22 = vsel %vm5888_vm14, %v5871_v38, %v5897_v55 }
0x1a07   :  { %v8437_v54 = vpop.f32.mrb[227].mxu1  ;;  %v5911_v63 = vpack.c.bf16 %v5906_v22, %v5905_v36 }
0x1a08   :  { %v5876_v62 = vadd.f32 %v8435_v13, %v11782_v26  ;;  %v9867_v26 = vld [vmem:[#allocation16 + $0xb8] sm:$0xff]  }
0x1a09   :  { %9028 = vmatmul.mubr.bf16.gmra.mrb[216].mxu0 %v5911_v63  ;;  %9050 = vmatpush3.bf16.msra.mxu1 %v9867_v26 }
0x1a0a   :  { %v5898_v10 = vmul.f32 0.01, %v5876_v62  ;;  %9031 = vmatprep.mubr.msk.bf16.mxu0 %vm10334_vm0, %v12108_v44  ;;  %vm5889_vm15 = vcmp.ge.f32.partialorder %v5876_v62, 0.0 }
0x1a0c   :  { %v5907_v52 = vsel %vm5889_vm15, %v5876_v62, %v5898_v10 }
0x1a0d   :  { %v5912_v14 = vpack.c.bf16 %v5907_v52, %v5907_v52 }
0x1a11   :  { %9032 = vmatmul.mubr.bf16.gmra.mrb[220].mxu0 %v5912_v14 }
0x1a12   :  { %9089 = vmatprep.mubr.msk.f32.mxu0 %vm1737_vm11, %v11804_v1 }
0x1ac4   :  { %v6020_v28 = vpop.f32.mrb[204].mxu0 }
0x1ac5   :  { %v6021_v56 = vadd.f32 %v7993_v53, %v6020_v28  ;;  %v9017_v2 = vpop.f32.mrb[205].mxu0 }
0x1ac6   :  { %v6023_v43 = vpop.f32.mrb[206].mxu0 }
0x1ac7   :  { %v6067_v27 = vmul.f32 0.01, %v6021_v56  ;;  %v6024_v11 = vadd.f32 %v7993_v53, %v6023_v43  ;;  %v9018_v32 = vpop.f32.mrb[207].mxu0  ;;  %vm6058_vm2 = vcmp.ge.f32.partialorder %v6021_v56, 0.0 }
0x1ac9   :  { %vm6059_vm5 = vcmp.ge.f32.partialorder %v6024_v11, 0.0  ;;  %v6068_v3 = vmul.f32 0.01, %v6024_v11  ;;  %v6076_v46 = vsel %vm6058_vm2, %v6021_v56, %v6067_v27 }
0x1acb   :  { %v6077_v40 = vsel %vm6059_vm5, %v6024_v11, %v6068_v3 }
0x1acc   :  { %v6085_v12 = vpack.c.bf16 %v6077_v40, %v6076_v46  ;;  %v6028_v41 = vpop.f32.mrb[208].mxu0 }
0x1acd   :  { %v6029_v15 = vadd.f32 %v7993_v53, %v6028_v41  ;;  %v9021_v38 = vpop.f32.mrb[209].mxu0 }
0x1ace   :  { %v6031_v55 = vpop.f32.mrb[210].mxu0  ;;  %9052 = vmatmul.mubr.bf16.vlgmr.msra.gmra.mrb[228].mxu1 %v6085_v12 }
0x1acf   :  { %v6069_v9 = vmul.f32 0.01, %v6029_v15  ;;  %v6032_v25 = vadd.f32 %v7993_v53, %v6031_v55  ;;  %v9022_v13 = vpop.f32.mrb[211].mxu0  ;;  %9055 = vmatprep.mubr.msk.bf16.mxu1 %vm10334_vm0, %v12108_v44  ;;  %vm6060_vm6 = vcmp.ge.f32.partialorder %v6029_v15, 0.0 }
0x1ad1   :  { %vm6061_vm7 = vcmp.ge.f32.partialorder %v6032_v25, 0.0  ;;  %v6070_v23 = vmul.f32 0.01, %v6032_v25  ;;  %v6078_v36 = vsel %vm6060_vm6, %v6029_v15, %v6069_v9 }
0x1ad3   :  { %v6079_v22 = vsel %vm6061_vm7, %v6032_v25, %v6070_v23 }
0x1ad4   :  { %v6036_v54 = vpop.f32.mrb[212].mxu0  ;;  %v6086_v63 = vpack.c.bf16 %v6079_v22, %v6078_v36 }
0x1ad5   :  { %v6037_v62 = vadd.f32 %v7993_v53, %v6036_v54  ;;  %v9025_v10 = vpop.f32.mrb[213].mxu0 }
0x1ad6   :  { %v6039_v52 = vpop.f32.mrb[214].mxu0  ;;  %9056 = vmatmul.mubr.bf16.gmra.mrb[232].mxu1 %v6086_v63 }
0x1ad7   :  { %v6071_v14 = vmul.f32 0.01, %v6037_v62  ;;  %v6040_v29 = vadd.f32 %v7993_v53, %v6039_v52  ;;  %v9026_v26 = vpop.f32.mrb[215].mxu0  ;;  %9059 = vmatprep.mubr.msk.bf16.mxu1 %vm10334_vm0, %v12108_v44  ;;  %vm6062_vm8 = vcmp.ge.f32.partialorder %v6037_v62, 0.0 }
0x1ad9   :  { %vm6063_vm9 = vcmp.ge.f32.partialorder %v6040_v29, 0.0  ;;  %v6072_v28 = vmul.f32 0.01, %v6040_v29  ;;  %v6080_v56 = vsel %vm6062_vm8, %v6037_v62, %v6071_v14  ;;  %v11818_v14 = vld [vmem:[#allocation20] sm:$0xff] }
0x1adb   :  { %v6081_v2 = vsel %vm6063_vm9, %v6040_v29, %v6072_v28  ;;  %v11821_v29 = vld [vmem:[#allocation20 + $0x8] sm:$0xff] }
0x1adc   :  { %v6044_v43 = vpop.f32.mrb[216].mxu0  ;;  %v6087_v27 = vpack.c.bf16 %v6081_v2, %v6080_v56 }
0x1add   :  { %v6045_v11 = vadd.f32 %v7993_v53, %v6044_v43  ;;  %v9029_v32 = vpop.f32.mrb[217].mxu0 }
0x1ade   :  { %v6047_v3 = vpop.f32.mrb[218].mxu0  ;;  %9060 = vmatmul.mubr.bf16.gmra.mrb[236].mxu1 %v6087_v27 }
0x1adf   :  { %v6073_v46 = vmul.f32 0.01, %v6045_v11  ;;  %v6048_v40 = vadd.f32 %v7993_v53, %v6047_v3  ;;  %v9030_v12 = vpop.f32.mrb[219].mxu0  ;;  %9063 = vmatprep.mubr.msk.bf16.mxu1 %vm10334_vm0, %v12108_v44  ;;  %vm6064_vm10 = vcmp.ge.f32.partialorder %v6045_v11, 0.0  ;;  %v11827_v3 = vld [vmem:[#allocation20 + $0x18] sm:$0xff] }
0x1ae1   :  { %vm6065_vm12 = vcmp.ge.f32.partialorder %v6048_v40, 0.0  ;;  %v6074_v41 = vmul.f32 0.01, %v6048_v40  ;;  %v6082_v15 = vsel %vm6064_vm10, %v6045_v11, %v6073_v46  ;;  %v11824_v11 = vld [vmem:[#allocation20 + $0x10] sm:$0xff] }
0x1ae3   :  { %v6083_v38 = vsel %vm6065_vm12, %v6048_v40, %v6074_v41 }
0x1ae4   :  { %v6052_v55 = vpop.f32.mrb[220].mxu0  ;;  %v6088_v9 = vpack.c.bf16 %v6083_v38, %v6082_v15 }
0x1ae5   :  { %v6053_v25 = vadd.f32 %v7993_v53, %v6052_v55  ;;  %v9033_v13 = vpop.f32.mrb[221].mxu0  ;;  %v11830_v55 = vld [vmem:[#allocation20 + $0x20] sm:$0xff] }
0x1ae6   :  { %v6055_v23 = vpop.f32.mrb[222].mxu0  ;;  %9064 = vmatmul.mubr.bf16.gmra.mrb[240].mxu1 %v6088_v9 }
0x1ae7   :  { %vm6066_vm13 = vcmp.ge.f32.partialorder %v6053_v25, 0.0  ;;  %v6075_v36 = vmul.f32 0.01, %v6053_v25  ;;  %v9034_v22 = vpop.f32.mrb[223].mxu0  ;;  %9067 = vmatprep.mubr.msk.bf16.mxu1 %vm10334_vm0, %v12108_v44 }
0x1ae9   :  { %v6084_v54 = vsel %vm6066_vm13, %v6053_v25, %v6075_v36  ;;  %v11833_v25 = vld [vmem:[#allocation20 + $0x28] sm:$0xff] }
0x1aea   :  { %v6089_v63 = vpack.c.bf16 %v6084_v54, %v6084_v54 }
0x1aee   :  { %9068 = vmatmul.mubr.bf16.gmra.mrb[244].mxu1 %v6089_v63 }
0x1aef   :  { %6575 = vmatprep.mubr.f32.mxu1 %v12108_v44 }
0x1ba1   :  { %v6189_v62 = vpop.f32.mrb[228].mxu1 }
0x1ba2   :  { %v9053_v10 = vpop.f32.mrb[229].mxu1  ;;  %v6227_v53 = vmul.f32 %v11818_v14, %v6189_v62  ;;  %v11836_v62 = vld [vmem:[#allocation20 + $0x30] sm:$0xff] }
0x1ba3   :  { %v6192_v52 = vpop.f32.mrb[230].mxu1 }
0x1ba4   :  { %v6228_v26 = vmul.f32 %v11821_v29, %v6192_v52  ;;  %v9054_v28 = vpop.f32.mrb[231].mxu1  ;;  %v11839_v52 = vld [vmem:[#allocation20 + $0x38] sm:$0xff] }
0x1ba6   :  { %v9298_v56 = vpack.c.bf16 %v6228_v26, %v6227_v53 }
0x1ba8   :  { %9299 = vmatprep.subr.bf16.mxu0 %v9298_v56 }
0x1ba9   :  { %v6197_v2 = vpop.f32.mrb[232].mxu1  ;;  %9301 = vmatpush3.bf16.msra.mxu0 %v9298_v56 }
0x1baa   :  { %v9057_v43 = vpop.f32.mrb[233].mxu1  ;;  %v6229_v32 = vmul.f32 %v11824_v11, %v6197_v2  ;;  %v11842_v2 = vld [vmem:[#allocation20 + $0x40] sm:$0xff] }
0x1bab   :  { %v6200_v27 = vpop.f32.mrb[234].mxu1 }
0x1bac   :  { %v6230_v46 = vmul.f32 %v11827_v3, %v6200_v27  ;;  %v9058_v40 = vpop.f32.mrb[235].mxu1 }
0x1bad   :  { %v11848_v40 = vld [vmem:[%s12055_s16 + $0x8] sm:$0xf] }
0x1bae   :  { %v9302_v12 = vpack.c.bf16 %v6230_v46, %v6229_v32 }
0x1bb0   :  { %9303 = vmatprep.subr.bf16.mxu0 %v9302_v12 }
0x1bb1   :  { %v6205_v41 = vpop.f32.mrb[236].mxu1  ;;  %9305 = vmatpush3.bf16.msra.mxu0 %v9302_v12  ;;  %v6245_v12 = vpop.permute.xlu0 %6244 }
0x1bb2   :  { %v9061_v15 = vpop.f32.mrb[237].mxu1  ;;  %v6231_v9 = vmul.f32 %v11830_v55, %v6205_v41 }
0x1bb3   :  { %v6208_v38 = vpop.f32.mrb[238].mxu1 }
0x1bb4   :  { %v6232_v13 = vmul.f32 %v11833_v25, %v6208_v38  ;;  %v9062_v23 = vpop.f32.mrb[239].mxu1 }
0x1bb6   :  { %v9306_v36 = vpack.c.bf16 %v6232_v13, %v6231_v9  ;;  %v10000_v9 = vld [vmem:[%s12057_s18 + $0x8] sm:$0xf] }
0x1bb8   :  { %9307 = vmatprep.subr.bf16.mxu0 %v9306_v36 }
0x1bb9   :  { %v6213_v22 = vpop.f32.mrb[240].mxu1  ;;  %9309 = vmatpush3.bf16.msra.mxu0 %v9306_v36 }
0x1bba   :  { %v9065_v54 = vpop.f32.mrb[241].mxu1  ;;  %v6233_v10 = vmul.f32 %v11836_v62, %v6213_v22  ;;  %v10001_v22 = vld [vmem:[%s12057_s18] sm:$0xff] }
0x1bbb   :  { %v6216_v63 = vpop.f32.mrb[242].mxu1 }
0x1bbc   :  { %v6234_v53 = vmul.f32 %v11839_v52, %v6216_v63  ;;  %v9066_v26 = vpop.f32.mrb[243].mxu1 }
0x1bbe   :  { %v9310_v28 = vpack.c.bf16 %v6234_v53, %v6233_v10 }
0x1bc0   :  { %9311 = vmatprep.subr.bf16.mxu0 %v9310_v28 }
0x1bc1   :  { %v6221_v56 = vpop.f32.mrb[244].mxu1  ;;  %9313 = vmatpush3.bf16.msra.mxu0 %v9310_v28 }
0x1bc2   :  { %v6235_v43 = vmul.f32 %v11842_v2, %v6221_v56  ;;  %v9069_v27 = vpop.f32.mrb[245].mxu1 }
0x1bc3   :  { %v6224_v32 = vpop.f32.mrb[246].mxu1 }
0x1bc4   :  { %v9070_v46 = vpop.f32.mrb[247].mxu1  ;;  %9087 = vmatprep.subr.mxu0 %v6235_v43 }
0x1bc5   :  { %9088 = vmatpush3.msra.mxu0 %v6235_v43 }
0x1bc6   :  { %9090 = vmatmul.mubr.msk.f32.vlgmr.msra.gmra.mrb[224].mxu0 %vm1737_vm11, %v11848_v40  ;;  %9314 = vmatprep.subr.bf16.mxu0 %v12109_v30 }
0x1bc7   :  { %9096 = vmatprep.mubr.msk.f32.mxu0 %vm10334_vm0, %v12108_v44 }
0x1c99   :  { %v9091_v41 = vpop.f32.mrb[224].mxu0 }
0x1c9a   :  { %v6319_v15 = vadd.f32 %v9091_v41, %v6245_v12  ;;  %v6313_v38 = vpop.f32.mrb[225].mxu0 }
0x1c9b   :  { %v6314_v23 = vadd.f32 %v6313_v38, %v6245_v12 }
0x1c9c   :  { %v6323_v13 = vadd.f32 %v10000_v9, %v6319_v15 }
0x1c9d   :  { %v6322_v54 = vadd.f32 %v10001_v22, %v6314_v23  ;;  %v10002_v23 = vld [vmem:[%s12053_s14] sm:$0xff]  ;;  %v10004_v22 = vld [vmem:[%s12053_s14 + $0x10] sm:$0xff] }
0x1c9e   :  { %v6326_v36 = vsel %vm292_vm1, %v6323_v13, -inf }
0x1c9f   :  { %6327 = vmax.xlane.f32.xlu1 %v6326_v36  ;;  %v10003_v36 = vld [vmem:[%s12053_s14 + $0x8] sm:$0xff] }
0x1ca3   :  { %6324 = vmax.xlane.f32.xlu1 %v6322_v54 }
0x1d2c   :  { %v6328_v63 = vpop.xlane.xlu1 %6327 }
0x1d2d   :  { %v6330_v10 = vsub.f32 %v6323_v13, %v6328_v63  ;;  %v10006_v63 = vld [vmem:[%s12053_s14 + $0x20] sm:$0xff] }
0x1d2f   :  { %v6333_v28 = vmul.f32 1.442695, %v6330_v10  ;;  %v10007_v10 = vld [vmem:[%s12053_s14 + $0x28] sm:$0xff] }
0x1d30   :  { %v6325_v53 = vpop.xlane.xlu1 %6324 }
0x1d31   :  { %v6329_v26 = vsub.f32 %v6322_v54, %v6325_v53  ;;  %v10005_v54 = vld [vmem:[%s12053_s14 + $0x18] sm:$0xff]  ;;  %v10008_v53 = vld [vmem:[%s12053_s14 + $0x30] sm:$0xff] }
0x1d33   :  { %v6331_v56 = vmul.f32 1.442695, %v6329_v26  ;;  %v10009_v26 = vld [vmem:[%s12053_s14 + $0x38] sm:$0xff] }
0x1d35   :  { %9932 = vpow2.f32 %v6331_v56 }
0x1d36   :  { %9934 = vpow2.f32 %v6333_v28  ;;  %v10010_v28 = vld [vmem:[%s12053_s14 + $0x40] sm:$0xff] }
0x1d3f   :  { %v9933_v43 = vpop.eup %9932 }
0x1d40   :  { %v9935_v27 = vpop.eup %9934  ;;  %6335 = vadd.xlane.f32.xlu1 %v9933_v43 }
0x1d41   :  { %v6337_v32 = vsel %vm292_vm1, %v9935_v27, 0.0 }
0x1d44   :  { %6338 = vadd.xlane.f32.xlu1 %v6337_v32 }
0x1dcd   :  { %v6336_v46 = vpop.xlane.xlu1 %6335 }
0x1dce   :  { %9936 = vrcp.f32 %v6336_v46 }
0x1dd1   :  { %v6339_v12 = vpop.xlane.xlu1 %6338 }
0x1dd2   :  { %9938 = vrcp.f32 %v6339_v12 }
0x1dd8   :  { %v9937_v41 = vpop.eup %9936 }
0x1dd9   :  { %v6342_v38 = vmul.f32 %v9937_v41, %v9933_v43 }
0x1ddc   :  { %v9939_v15 = vpop.eup %9938 }
0x1ddd   :  { %v6343_v9 = vmul.f32 %v9939_v15, %v9935_v27 }
0x1ddf   :  { %v9315_v13 = vpack.c.bf16 %v6343_v9, %v6342_v38 }
0x1de1   :  { %9317 = vmatpush3.bf16.msk.msra.mxu0 %vm10632_vm3, %v9315_v13 }
0x1de4   :  { %9097 = vmatmul.mubr.msk.f32.vlgmr.msra.gmra.mrb[226].mxu0 %vm264_vm4, %v10002_v23 }
0x1de5   :  { %9099 = vmatprep.mubr.msk.f32.mxu0 %vm10334_vm0, %v12108_v44 }
0x1de8   :  { %9100 = vmatmul.mubr.msk.f32.gmra.mrb[228].mxu0 %vm264_vm4, %v10003_v36 }
0x1de9   :  { %9102 = vmatprep.mubr.msk.f32.mxu0 %vm10334_vm0, %v12108_v44 }
0x1dec   :  { %9103 = vmatmul.mubr.msk.f32.gmra.mrb[230].mxu0 %vm264_vm4, %v10004_v22 }
0x1ded   :  { %9105 = vmatprep.mubr.msk.f32.mxu0 %vm10334_vm0, %v12108_v44 }
0x1df0   :  { %9106 = vmatmul.mubr.msk.f32.gmra.mrb[232].mxu0 %vm264_vm4, %v10005_v54 }
0x1df1   :  { %9108 = vmatprep.mubr.msk.f32.mxu0 %vm10334_vm0, %v12108_v44 }
0x1df4   :  { %9109 = vmatmul.mubr.msk.f32.gmra.mrb[234].mxu0 %vm264_vm4, %v10006_v63 }
0x1df5   :  { %9111 = vmatprep.mubr.msk.f32.mxu0 %vm10334_vm0, %v12108_v44 }
0x1df8   :  { %9112 = vmatmul.mubr.msk.f32.gmra.mrb[236].mxu0 %vm264_vm4, %v10007_v10 }
0x1df9   :  { %9114 = vmatprep.mubr.msk.f32.mxu0 %vm10334_vm0, %v12108_v44 }
0x1dfc   :  { %9115 = vmatmul.mubr.msk.f32.gmra.mrb[238].mxu0 %vm264_vm4, %v10008_v53 }
0x1dfd   :  { %9117 = vmatprep.mubr.msk.f32.mxu0 %vm10334_vm0, %v12108_v44 }
0x1e00   :  { %9118 = vmatmul.mubr.msk.f32.gmra.mrb[240].mxu0 %vm264_vm4, %v10009_v26 }
0x1e01   :  { %9120 = vmatprep.mubr.msk.f32.mxu0 %vm10334_vm0, %v12108_v44 }
0x1e04   :  { %9121 = vmatmul.mubr.msk.f32.gmra.mrb[242].mxu0 %vm264_vm4, %v10010_v28 }
0x1e05   :  { %9141 = vmatprep.mubr.msk.f32.mxu0 %vm1737_vm11, %v11804_v1 }
0x1eb7   :  { %v6413_v56 = vpop.f32.mrb[226].mxu0 }
0x1eb8   :  { %v6457_v43 = vmul.f32 %v11818_v14, %v6413_v56  ;;  %v9098_v27 = vpop.f32.mrb[227].mxu0 }
0x1eba   :  { %6466 = vadd.xlane.f32.xlu1 %v6457_v43 }
0x1ebb   :  { %v6418_v32 = vpop.f32.mrb[228].mxu0 }
0x1ebc   :  { %v6458_v46 = vmul.f32 %v11821_v29, %v6418_v32  ;;  %v9101_v12 = vpop.f32.mrb[229].mxu0 }
0x1ebe   :  { %6468 = vadd.xlane.f32.xlu0 %v6458_v46 }
0x1ebf   :  { %v6423_v41 = vpop.f32.mrb[230].mxu0 }
0x1ec0   :  { %v6459_v15 = vmul.f32 %v11824_v11, %v6423_v41  ;;  %v9104_v38 = vpop.f32.mrb[231].mxu0 }
0x1ec2   :  { %6470 = vadd.xlane.f32.xlu1 %v6459_v15 }
0x1ec3   :  { %v6428_v9 = vpop.f32.mrb[232].mxu0 }
0x1ec4   :  { %v6460_v13 = vmul.f32 %v11827_v3, %v6428_v9  ;;  %v9107_v23 = vpop.f32.mrb[233].mxu0 }
0x1ec6   :  { %6472 = vadd.xlane.f32.xlu1 %v6460_v13 }
0x1ec7   :  { %v6433_v36 = vpop.f32.mrb[234].mxu0 }
0x1ec8   :  { %v6461_v14 = vmul.f32 %v11830_v55, %v6433_v36  ;;  %v9110_v22 = vpop.f32.mrb[235].mxu0 }
0x1eca   :  { %6474 = vadd.xlane.f32.xlu1 %v6461_v14 }
0x1ecb   :  { %v6438_v54 = vpop.f32.mrb[236].mxu0 }
0x1ecc   :  { %v6462_v29 = vmul.f32 %v11833_v25, %v6438_v54  ;;  %v9113_v63 = vpop.f32.mrb[237].mxu0 }
0x1ece   :  { %6476 = vadd.xlane.f32.xlu1 %v6462_v29 }
0x1ecf   :  { %v6443_v10 = vpop.f32.mrb[238].mxu0 }
0x1ed0   :  { %v6463_v11 = vmul.f32 %v11836_v62, %v6443_v10  ;;  %v9116_v53 = vpop.f32.mrb[239].mxu0 }
0x1ed2   :  { %6478 = vadd.xlane.f32.xlu1 %v6463_v11 }
0x1ed3   :  { %v6448_v26 = vpop.f32.mrb[240].mxu0 }
0x1ed4   :  { %v6464_v3 = vmul.f32 %v11839_v52, %v6448_v26  ;;  %v9119_v28 = vpop.f32.mrb[241].mxu0 }
0x1ed6   :  { %6480 = vadd.xlane.f32.xlu1 %v6464_v3 }
0x1ed7   :  { %v6453_v56 = vpop.f32.mrb[242].mxu0 }
0x1ed8   :  { %v6465_v55 = vmul.f32 %v11842_v2, %v6453_v56  ;;  %v9122_v43 = vpop.f32.mrb[243].mxu0 }
0x1eda   :  { %6482 = vadd.xlane.f32.xlu1 %v6465_v55 }
0x1f47   :  { %v6467_v27 = vpop.xlane.xlu1 %6466 }
0x1f48   :  { %v6484_v25 = vmul.f32 %v6467_v27, %v11169_v48  ;;  %v6485_v32 = vmul.f32 %v6467_v27, %v11172_v49  ;;  %v6486_v62 = vmul.f32 %v6467_v27, %v11661_v31  ;;  %v9871_v27 = vld [vmem:[#allocation19 + $0x180] sm:$0xff]  }
0x1f4b   :  { %v6469_v46 = vpop.xlane.xlu0 %6468 }
0x1f4c   :  { %v6487_v12 = vmul.f32 %v6469_v46, %v11175_v50  ;;  %v6488_v41 = vmul.f32 %v6469_v46, %v11178_v51  ;;  %v6489_v52 = vmul.f32 %v6469_v46, %v11664_v47  ;;  %v9872_v46 = vld [vmem:[#allocation19 + $0x210] sm:$0xff]  }
0x1f4e   :  { %v9318_v15 = vpack.c.bf16 %v6488_v41, %v6485_v32  ;;  %v9320_v38 = vpack.c.bf16 %v6487_v12, %v6484_v25  ;;  %v9334_v9 = vpack.c.bf16 %v6489_v52, %v6486_v62  ;;  %v9873_v32 = vld [vmem:[#allocation19 + $0x1c8] sm:$0xff]   ;;  %v9876_v41 = vld [vmem:[#allocation19 + $0x1d0] sm:$0xff]   ;;  %v9875_v52 = vld [vmem:[#allocation19 + $0x218] sm:$0xff]  }
0x1f4f   :  { %v6471_v2 = vpop.xlane.xlu1 %6470 }
0x1f50   :  { %9319 = vmatprep.subr.bf16.mxu1 %v9318_v15  ;;  %9335 = vmatprep.subr.bf16.mxu0 %v9334_v9  ;;  %v6490_v48 = vmul.f32 %v6471_v2, %v11181_v39  ;;  %v6491_v49 = vmul.f32 %v6471_v2, %v11186_v61  ;;  %v6492_v31 = vmul.f32 %v6471_v2, %v11667_v19  ;;  %v9877_v15 = vld [vmem:[#allocation19 + $0x190] sm:$0xff]   ;;  %v9880_v2 = vld [vmem:[#allocation19 + $0x198] sm:$0xff]  }
0x1f51   :  { %9321 = vmatpush1.bf16.msra.mxu1 %v9320_v38  ;;  %9337 = vmatpush3.bf16.msra.mxu0 %v9334_v9  ;;  %v9879_v38 = vld [vmem:[#allocation19 + $0x1d8] sm:$0xff]   ;;  %v9878_v9 = vld [vmem:[#allocation19 + $0x220] sm:$0xff]  }
0x1f53   :  { %v6473_v13 = vpop.xlane.xlu1 %6472 }
0x1f54   :  { %v6493_v50 = vmul.f32 %v6473_v13, %v11191_v18  ;;  %v6494_v51 = vmul.f32 %v6473_v13, %v11195_v21  ;;  %v6495_v47 = vmul.f32 %v6473_v13, %v11670_v57  ;;  %v9883_v13 = vld [vmem:[#allocation19 + $0x1a0] sm:$0xff]  }
0x1f56   :  { %v9324_v23 = vpack.c.bf16 %v6493_v50, %v6490_v48  ;;  %v9322_v36 = vpack.c.bf16 %v6494_v51, %v6491_v49  ;;  %v9338_v14 = vpack.c.bf16 %v6495_v47, %v6492_v31  ;;  %v9882_v48 = vld [vmem:[#allocation19 + $0x1e0] sm:$0xff]   ;;  %v9881_v49 = vld [vmem:[#allocation19 + $0x228] sm:$0xff]   ;;  %v9884_v50 = vld [vmem:[#allocation19 + $0x230] sm:$0xff]  }
0x1f57   :  { %v6475_v22 = vpop.xlane.xlu1 %6474  ;;  %v9885_v31 = vld [vmem:[#allocation19 + $0x1e8] sm:$0xff]   ;;  %v9887_v47 = vld [vmem:[#allocation19 + $0x238] sm:$0xff]  }
0x1f58   :  { %9323 = vmatprep.subr.bf16.mxu1 %v9322_v36  ;;  %9339 = vmatprep.subr.bf16.mxu0 %v9338_v14  ;;  %v6496_v39 = vmul.f32 %v6475_v22, %v11199_v24  ;;  %v6497_v61 = vmul.f32 %v6475_v22, %v11202_v45  ;;  %v6498_v19 = vmul.f32 %v6475_v22, %v11674_v7  ;;  %v9886_v51 = vld [vmem:[#allocation19 + $0x1a8] sm:$0xff]   ;;  %v9889_v36 = vld [vmem:[#allocation19 + $0x1b0] sm:$0xff]   ;;  %v9892_v22 = vld [vmem:[#allocation19 + $0x1b8] sm:$0xff]  }
0x1f59   :  { %9325 = vmatpush1.bf16.msra.mxu1 %v9324_v23  ;;  %9341 = vmatpush3.bf16.msra.mxu0 %v9338_v14  ;;  %v9888_v23 = vld [vmem:[#allocation19 + $0x1f0] sm:$0xff]   ;;  %v9891_v14 = vld [vmem:[#allocation19 + $0x1f8] sm:$0xff]  }
0x1f5b   :  { %v6477_v54 = vpop.xlane.xlu1 %6476 }
0x1f5c   :  { %v6499_v18 = vmul.f32 %v6477_v54, %v11209_v35  ;;  %v6500_v21 = vmul.f32 %v6477_v54, %v11213_v58  ;;  %v6501_v57 = vmul.f32 %v6477_v54, %v11677_v33  ;;  %v9890_v54 = vld [vmem:[#allocation17 + $0x200] sm:$0xff]  }
0x1f5e   :  { %v9328_v29 = vpack.c.bf16 %v6499_v18, %v6496_v39  ;;  %v9326_v63 = vpack.c.bf16 %v6500_v21, %v6497_v61  ;;  %v9342_v10 = vpack.c.bf16 %v6501_v57, %v6498_v19  ;;  %v9894_v39 = vld [vmem:[#allocation17 + $0x1c0] sm:$0xff]   ;;  %v9893_v21 = vld [vmem:[#allocation17 + $0x208] sm:$0xff]  }
0x1f5f   :  { %v6479_v11 = vpop.xlane.xlu1 %6478 }
0x1f60   :  { %9327 = vmatprep.subr.bf16.mxu1 %v9326_v63  ;;  %9343 = vmatprep.subr.bf16.mxu0 %v9342_v10  ;;  %v6502_v24 = vmul.f32 %v6479_v11, %v11217_v59  ;;  %v6503_v45 = vmul.f32 %v6479_v11, %v11220_v8  ;;  %v6504_v7 = vmul.f32 %v6479_v11, %v11681_v0  ;;  %v263_v8 = vld [vmem:[%s12113_s25] sm:$0x3] }
0x1f61   :  { %9329 = vmatpush1.bf16.msra.mxu1 %v9328_v29  ;;  %9345 = vmatpush3.bf16.msra.mxu0 %v9342_v10  ;;  %v9895_v10 = vld [vmem:[#allocation17 + $0x180] sm:$0xff]  }
0x1f63   :  { %v6481_v53 = vpop.xlane.xlu1 %6480 }
0x1f64   :  { %v6505_v35 = vmul.f32 %v6481_v53, %v11227_v20  ;;  %v6506_v58 = vmul.f32 %v6481_v53, %v11231_v6  ;;  %v6507_v33 = vmul.f32 %v6481_v53, %v11684_v60 }
0x1f66   :  { %v9332_v26 = vpack.c.bf16 %v6505_v35, %v6502_v24  ;;  %v9330_v3 = vpack.c.bf16 %v6506_v58, %v6503_v45  ;;  %v9346_v28 = vpack.c.bf16 %v6507_v33, %v6504_v7  ;;  %v9896_v24 = vld [vmem:[#allocation17 + $0x210] sm:$0xff]   ;;  %v9897_v45 = vld [vmem:[#allocation17 + $0x1c8] sm:$0xff]   ;;  %v9899_v35 = vld [vmem:[#allocation17 + $0x218] sm:$0xff]  }
0x1f67   :  { %v6483_v56 = vpop.xlane.xlu1 %6482  ;;  %v9898_v7 = vld [vmem:[#allocation17 + $0x188] sm:$0xff]   ;;  %v9900_v58 = vld [vmem:[#allocation17 + $0x1d0] sm:$0xff]  }
0x1f68   :  { %v6509_v55 = vmul.f32 %v6483_v56, %v11240_v34  ;;  %v6510_v43 = vmul.f32 %v6483_v56, %v11688_v17  ;;  %9331 = vmatprep.subr.bf16.mxu1 %v9330_v3  ;;  %9347 = vmatprep.subr.bf16.mxu0 %v9346_v28  ;;  %v6508_v59 = vmul.f32 %v6483_v56, %v11235_v16  ;;  %v9870_v17 = vld [vmem:[#allocation19 + $0x1c0] sm:$0xff]   ;;  %v9901_v33 = vld [vmem:[#allocation17 + $0x190] sm:$0xff]   ;;  %v9903_v3 = vld [vmem:[#allocation17 + $0x1d8] sm:$0xff]  }
0x1f69   :  { %9333 = vmatpush1.bf16.msra.mxu1 %v9332_v26  ;;  %9349 = vmatpush3.bf16.msra.mxu0 %v9346_v28  ;;  %v9902_v26 = vld [vmem:[#allocation17 + $0x220] sm:$0xff]   ;;  %v9904_v28 = vld [vmem:[#allocation17 + $0x198] sm:$0xff]   ;;  %v9905_v56 = vld [vmem:[#allocation17 + $0x228] sm:$0xff]  }
0x1f6a   :  { %6527 = vmatprep.subr.mxu1 %v6509_v55  ;;  %9139 = vmatprep.subr.mxu0 %v6510_v43  ;;  %v9906_v55 = vld [vmem:[#allocation17 + $0x1e0] sm:$0xff]  }
0x1f6d   :  { %6528 = vmatpush1.msra.mxu1 %v6508_v59  ;;  %9140 = vmatpush3.msra.mxu0 %v6510_v43  ;;  %v9907_v43 = vld [vmem:[#allocation17 + $0x1a0] sm:$0xff]   ;;  %v9908_v59 = vld [vmem:[#allocation17 + $0x230] sm:$0xff]  }
0x1f6e   :  { %8024 = vmatmul.mubr.msk.f32.vlgmr.msra.gmra.mrb[186].mxu1 %vm1737_vm11, %v11804_v1  ;;  %9142 = vmatmul.mubr.msk.f32.vlgmr.msra.gmra.mrb[244].mxu0 %vm1737_vm11, %v11848_v40  ;;  %v9869_v1 = vld [vmem:[#allocation19 + $0x208] sm:$0xff]  }
0x1f6f   :  { %9352 = vmatprep.subr.msk.bf16.mxu1 %vm10632_vm3, %v11085_v42  ;;  %6581 = vmatprep.mubr.f32.mxu1 %v12108_v44 }
0x1f70   :  { %9355 = vmatpush1.bf16.msk.msra.mxu1 %vm10632_vm3, %v10636_v5  ;;  %6978 = vmatprep.mubr.f32.mxu0 %v12108_v44 }
0x1f71   :  { %9356 = vmatprep.subr.bf16.mxu1 %v12109_v30 }
0x1f72   :  { %8025 = vmatmul.mubr.msk.f32.gmra.mrb[248].mxu1 %vm1737_vm11, %v11848_v40 }
0x1f73   :  { %6828 = vmatprep.mubr.f32.mxu1 %v12108_v44 }
0x1f76   :  { %8030 = vmatmul.mubr.msk.f32.vlgmr.msra.gmra.mrb[250].mxu1 %vm264_vm4, %v263_v8 }
0x1f77   :  { %9359 = vmatpush3.bf16.msk.msra.mxu1 %vm10632_vm3, %v11555_v37  ;;  %9148 = vmatprep.mubr.msk.f32.mxu1 %vm10334_vm0, %v12108_v44  ;;  %v9868_v37 = vld [vmem:[#allocation19 + $0x200] sm:$0xff]  }
0x1f78   :  { %9366 = vmatprep.subr.bf16.mxu1 %v12109_v30 }
0x1f7a   :  { %9149 = vmatmul.mubr.msk.f32.vlgmr.msra.gmra.mrb[252].mxu1 %vm264_vm4, %v263_v8 }
0x1f7b   :  { %9155 = vmatprep.mubr.msk.f32.mxu1 %vm10334_vm0, %v12108_v44 }
0x2041   :  { %v9143_v5 = vpop.f32.mrb[244].mxu0  ;;  %v6577_v42 = vpop.f32.mrb[186].mxu1 }
0x2042   :  { %v6654_v20 = vpop.f32.mrb[245].mxu0  ;;  %v6579_v6 = vpop.f32.mrb[187].mxu1 }
0x2043   :  { %v9367_v16 = vpack.c.bf16 %v9143_v5, %v6654_v20  ;;  %v9910_v5 = vld [vmem:[#allocation17 + $0x1a8] sm:$0xff]   ;;  %v9912_v20 = vld [vmem:[#allocation17 + $0x1f0] sm:$0xff]  }
0x2045   :  { %v6583_v34 = vpop.f32.mrb[248].mxu1  ;;  %9369 = vmatpush3.bf16.msk.msra.mxu1 %vm10632_vm3, %v9367_v16  ;;  %v9914_v16 = vld [vmem:[#allocation17 + $0x1f8] sm:$0xff]  }
0x2046   :  { %v9363_v0 = vpack.c.bf16 %v6583_v34, %v6577_v42  ;;  %v6585_v60 = vpop.f32.mrb[249].mxu1  ;;  %9158 = vmatprep.subr.bf16.mxu1 %v12108_v44  ;;  %v9911_v42 = vld [vmem:[#allocation17 + $0x238] sm:$0xff]  }
0x2047   :  { %v9360_v30 = vpack.c.bf16 %v6585_v60, %v6579_v6  ;;  %v9913_v6 = vld [vmem:[#allocation17 + $0x1b0] sm:$0xff]  }
0x2048   :  { %9156 = vmatmul.mubr.msk.f32.vlgmr.msra.gmra.mrb[254].mxu1 %vm264_vm4, %v263_v8 }
0x2049   :  { %9362 = vmatprep.subr.msk.bf16.mxu0 %vm10632_vm3, %v9360_v30  ;;  %9159 = vmatpush3.bf16.msra.mxu1 %v9868_v37  ;;  %v11990_v40 = vpop.f32.mrb[250].mxu1  ;;  %v9915_v37 = vld [vmem:[#allocation17 + $0x1b8] sm:$0xff]  }
0x204a   :  { %9365 = vmatpush1.bf16.msk.msra.mxu0 %vm10632_vm3, %v9363_v0  ;;  %9160 = vmatprep.subr.bf16.mxu1 %v12108_v44  ;;  %v11995_v25 = vpop.f32.mrb[251].mxu1  ;;  %v7055_v0 = vpack.c.bf16 %v11990_v40, %v11990_v40 }
0x204b   :  { %8504 = vmatprep.subr.bf16.mxu0 %v9870_v17  ;;  %9174 = vmatprep.mubr.msk.bf16.mxu1 %vm10334_vm0, %v12108_v44  ;;  %v7056_v53 = vpack.c.bf16 %v11995_v25, %v11995_v25 }
0x204d   :  { %8035 = vmatmul.mubr.msk.f32.vlgmr.msra.gmra.mrb[246].mxu0 %vm264_vm4, %v263_v8  ;;  %9161 = vmatpush3.bf16.msra.mxu1 %v9869_v1  ;;  %v12000_v62 = vpop.f32.mrb[252].mxu1  ;;  %v9909_v8 = vld [vmem:[#allocation17 + $0x1e8] sm:$0xff]  }
0x204e   :  { %8505 = vmatpush3.bf16.msra.mxu0 %v9871_v27  ;;  %9162 = vmatprep.subr.bf16.mxu1 %v12108_v44  ;;  %v9150_v12 = vpop.f32.mrb[253].mxu1  ;;  %v7057_v34 = vpack.c.bf16 %v12000_v62, %v12000_v62 }
0x204f   :  { %8506 = vmatprep.subr.bf16.mxu0 %v9873_v32 }
0x2051   :  { %9163 = vmatpush3.bf16.msra.mxu1 %v9872_v46 }
0x2052   :  { %8507 = vmatpush3.bf16.msra.mxu0 %v9874_v4  ;;  %9164 = vmatprep.subr.bf16.mxu1 %v12108_v44 }
0x2053   :  { %8508 = vmatprep.subr.bf16.mxu0 %v9876_v41 }
0x2055   :  { %9165 = vmatpush3.bf16.msra.mxu1 %v9875_v52 }
0x2056   :  { %8509 = vmatpush3.bf16.msra.mxu0 %v9877_v15  ;;  %9166 = vmatprep.subr.bf16.mxu1 %v12108_v44 }
0x2057   :  { %8510 = vmatprep.subr.bf16.mxu0 %v9879_v38 }
0x2059   :  { %9167 = vmatpush3.bf16.msra.mxu1 %v9878_v9 }
0x205a   :  { %8511 = vmatpush3.bf16.msra.mxu0 %v9880_v2  ;;  %9168 = vmatprep.subr.bf16.mxu1 %v12108_v44 }
0x205b   :  { %8512 = vmatprep.subr.bf16.mxu0 %v9882_v48 }
0x205d   :  { %9169 = vmatpush3.bf16.msra.mxu1 %v9881_v49  ;;  %v8087_v49 = vld [vmem:[%s12052_s13 + $0x2] ss:$0 sm:$0xff] }
0x205e   :  { %8513 = vmatpush3.bf16.msra.mxu0 %v9883_v13  ;;  %9170 = vmatprep.subr.bf16.mxu1 %v12108_v44 }
0x205f   :  { %8514 = vmatprep.subr.bf16.mxu0 %v9885_v31 }
0x2061   :  { %9171 = vmatpush3.bf16.msra.mxu1 %v9884_v50 }
0x2062   :  { %8515 = vmatpush3.bf16.msra.mxu0 %v9886_v51  ;;  %9172 = vmatprep.subr.bf16.mxu1 %v12108_v44 }
0x2063   :  { %8516 = vmatprep.subr.bf16.mxu0 %v9888_v23 }
0x2065   :  { %9173 = vmatpush3.bf16.msra.mxu1 %v9887_v47 }
0x2066   :  { %9178 = vmatprep.subr.bf16.mxu1 %v12108_v44  ;;  %8517 = vmatpush3.bf16.msra.mxu0 %v9889_v36 }
0x2067   :  { %8518 = vmatprep.subr.bf16.mxu0 %v9891_v14 }
0x206a   :  { %8519 = vmatpush3.bf16.msra.mxu0 %v9892_v22 }
0x206b   :  { %8535 = vmatprep.subr.bf16.mxu0 %v9894_v39 }
0x211b   :  { %v7051_v61 = vpop.f32.mrb[254].mxu1 }
0x211c   :  { %v7060_v19 = vpack.c.bf16 %v7051_v61, %v7051_v61  ;;  %v9157_v18 = vpop.f32.mrb[255].mxu1 }
0x211e   :  { %9175 = vmatmul.mubr.bf16.vlgmr.msra.gmra.mrb[0].mxu1 %v7060_v19 }
0x211f   :  { %9179 = vmatpush3.bf16.msra.mxu1 %v9890_v54  ;;  %9194 = vmatprep.mubr.msk.bf16.mxu1 %vm10334_vm0, %v12108_v44 }
0x2120   :  { %v6980_v57 = vpop.f32.mrb[246].mxu0  ;;  %9180 = vmatprep.subr.bf16.mxu1 %v12108_v44 }
0x2121   :  { %v6982_v29 = vpop.f32.mrb[247].mxu0  ;;  %v7058_v11 = vpack.c.bf16 %v6980_v57, %v6980_v57 }
0x2122   :  { %v7059_v63 = vpack.c.bf16 %v6982_v29, %v6982_v29 }
0x2123   :  { %9181 = vmatpush3.bf16.msra.mxu1 %v9893_v21 }
0x2124   :  { %7237 = vmatprep.mubr.bf16.mxu0 %v7059_v63  ;;  %9182 = vmatprep.subr.bf16.mxu1 %v12108_v44 }
0x2125   :  { %7238 = vmatmul.mubr.bf16.vlgmr.msra.gmra.mrb[248].mxu0 %v7058_v11 }
0x2126   :  { %8536 = vmatpush3.bf16.msra.mxu0 %v9895_v10  ;;  %7461 = vmatprep.mubr.bf16.mxu0 %v7056_v53 }
0x2127   :  { %9183 = vmatpush3.bf16.msra.mxu1 %v9896_v24  ;;  %8537 = vmatprep.subr.bf16.mxu0 %v9897_v45 }
0x2128   :  { %9184 = vmatprep.subr.bf16.mxu1 %v12108_v44 }
0x212a   :  { %8538 = vmatpush3.bf16.msra.mxu0 %v9898_v7 }
0x212b   :  { %9185 = vmatpush3.bf16.msra.mxu1 %v9899_v35  ;;  %8539 = vmatprep.subr.bf16.mxu0 %v9900_v58 }
0x212c   :  { %9186 = vmatprep.subr.bf16.mxu1 %v12108_v44 }
0x212e   :  { %8540 = vmatpush3.bf16.msra.mxu0 %v9901_v33 }
0x212f   :  { %9187 = vmatpush3.bf16.msra.mxu1 %v9902_v26  ;;  %8541 = vmatprep.subr.bf16.mxu0 %v9903_v3 }
0x2130   :  { %9188 = vmatprep.subr.bf16.mxu1 %v12108_v44 }
0x2132   :  { %8542 = vmatpush3.bf16.msra.mxu0 %v9904_v28 }
0x2133   :  { %9189 = vmatpush3.bf16.msra.mxu1 %v9905_v56  ;;  %8543 = vmatprep.subr.bf16.mxu0 %v9906_v55 }
0x2134   :  { %9190 = vmatprep.subr.bf16.mxu1 %v12108_v44 }
0x2136   :  { %8544 = vmatpush3.bf16.msra.mxu0 %v9907_v43 }
0x2137   :  { %9191 = vmatpush3.bf16.msra.mxu1 %v9908_v59  ;;  %8545 = vmatprep.subr.bf16.mxu0 %v9909_v8 }
0x2138   :  { %9192 = vmatprep.subr.bf16.mxu1 %v12108_v44 }
0x213a   :  { %8546 = vmatpush3.bf16.msra.mxu0 %v9910_v5 }
0x213b   :  { %9193 = vmatpush3.bf16.msra.mxu1 %v9911_v42  ;;  %8547 = vmatprep.subr.bf16.mxu0 %v9912_v20 }
0x213e   :  { %8548 = vmatpush3.bf16.msra.mxu0 %v9913_v6  ;;  %9195 = vmatmul.mubr.bf16.vlgmr.msra.gmra.mrb[4].mxu1 %v7057_v34 }
0x213f   :  { %8549 = vmatprep.subr.bf16.mxu0 %v9914_v16 }
0x2142   :  { %8550 = vmatpush3.bf16.msra.mxu0 %v9915_v37 }
0x2145   :  { %7462 = vmatmul.mubr.bf16.vlgmr.msra.gmra.mrb[252].mxu0 %v7055_v0 }
0x21f1   :  { %v7279_v60 = vpop.f32.mrb[0].mxu1 }
0x21f2   :  { %v9176_v30 = vpop.f32.mrb[1].mxu1 }
0x21f3   :  { %v7282_v44 = vpop.f32.mrb[2].mxu1 }
0x21f4   :  { %v9177_v17 = vpop.f32.mrb[3].mxu1 }
0x21f8   :  { %v8520_v1 = vpop.f32.mrb[248].mxu0 }
0x21f9   :  { %v8521_v27 = vpop.f32.mrb[249].mxu0 }
0x21fa   :  { %v8522_v25 = vadd.f32 %v8521_v27, %v8520_v1  ;;  %v8523_v32 = vpop.f32.mrb[250].mxu0 }
0x21fb   :  { %v8524_v46 = vpop.f32.mrb[251].mxu0 }
0x21fc   :  { %v7280_v4 = vadd.f32 %v8522_v25, %v7279_v60 }
0x2211   :  { %v7503_v62 = vpop.f32.mrb[4].mxu1 }
0x2212   :  { %v9196_v12 = vpop.f32.mrb[5].mxu1 }
0x2213   :  { %v7506_v41 = vpop.f32.mrb[6].mxu1 }
0x2214   :  { %v9197_v52 = vpop.f32.mrb[7].mxu1 }
0x2218   :  { %v8551_v15 = vpop.f32.mrb[252].mxu0 }
0x2219   :  { %v8552_v38 = vpop.f32.mrb[253].mxu0 }
0x221a   :  { %v8553_v9 = vadd.f32 %v8552_v38, %v8551_v15  ;;  %v8554_v2 = vpop.f32.mrb[254].mxu0 }
0x221b   :  { %v8555_v40 = vpop.f32.mrb[255].mxu0 }
0x221c   :  { %v7464_v48 = vadd.f32 %v8553_v9, %v7280_v4 }
0x221e   :  { %v7504_v13 = vadd.f32 %v7503_v62, %v7464_v48 }
0x2220   :  { %v7517_v31 = vadd.f32 %v8087_v49, %v7504_v13 }
0x2222   :  { %7518 = vst [vmem:[#allocation22] sm:$0x3] %v7517_v31 }
0x2223   :  { %10286 = shalt.err (!%p10283_p2)
}
0x2224   :  { %s12114_s16 = sld [smem:[#allocation39_spill]] }
0x222a   :  { %s10287_s6 = scalar_lea.hbm %s12114_s16, 32 }
0x222b   :  { %p10288_p3 = scmp.ne.s32.totalorder %s12114_s16, %s10287_s6  ;;  %p10291_p4 = scmp.lt.u32.totalorder %s10287_s6, %s12114_s16 }
0x222d   :  { %p10293_p5 = pnand %p10291_p4, %p10288_p3 }
0x222f   :  { %10296 = shalt.err (!%p10293_p5)
}
0x2230   :  { %7528 = dma.vmem_to_hbm [thread:$0]  %s7526_s19, 32, %s12114_s16, [#allocation4]  }
0x2231   :  { %10311 = dma.done.wait [#allocation4], 32  }
0x2232   :  { %10312 = vsyncadd [#allocation4], 4294967264 }
0x2233   :  { %7532 = vsyncpa [#allocation3], 1 }
0x2234   :  { %7533 = vsyncpa [#allocation6], 1 }
0x2235   :  { %7534 = vsyncpa [#allocation9], 1 }
0x2236   :  { %7535 = vsyncpa [#allocation12], 1 }
0x2237   :  { %7536 = vsyncpa [#allocation15], 1 }
0x2238   :  { %7537 = vsyncpa [#allocation18], 1 }
0x2239   :  { %7538 = vsyncpa [#allocation21], 1 }
0x223a   :  { %7539 = vsyncpa [#allocation4], 1 }

</bundles_post_ra>
